<compile_context>
chip_gen: v6e
topology: v6e:2x2x1
jax: 0.10.0
libtpu: 0.0.40
codegen_flags: <defaults>
</compile_context>

<pallas_src>
import functools
import math

import jax
import jax.numpy as jnp
from jax import lax
from jax.experimental import pallas as pl
from jax.experimental.pallas import tpu as pltpu

NEG_INF = -1e30

# ------------------------- small, consistent config -------------------------
B = 2
LC = 16            # config['para_limit'] (context length)
LQ = 8             # question length
MODEL_DIM = 32     # config['model_dim']
HEADS = 4
DW_K = 7           # depthwise-separable conv kernel size
EMB_CONV_LAYERS = 2
MOD_CONV_LAYERS = 2
NUM_MOD_BLOCKS = 7
WORD_VOCAB, WORD_DIM = 50, 24
CHAR_VOCAB, CHAR_DIM = 30, 8
CHAR_LIMIT, CHAR_CONV_K, CHAR_CHANNELS = 8, 5, 16


# ----------------------------- BlockSpec helpers -----------------------------
def _full(*shape):
    return pl.BlockSpec(shape, lambda b, _s=shape: (0,) * len(_s))


def _per_b(*shape):
    return pl.BlockSpec((1,) + shape, lambda b, _s=shape: (b,) + (0,) * len(_s))


# ------------------------------ shared in-kernel math ------------------------------
def _softmax_rows(z):
    m = jnp.max(z, axis=-1, keepdims=True)
    e = jnp.exp(z - m)
    return e / jnp.sum(e, axis=-1, keepdims=True)


def _dwconv_same(x, w, L, D, K):
    """'Same'-padded depthwise conv via K banded shift-matmuls (all on the MXU)."""
    pad = K // 2
    ii = lax.broadcasted_iota(jnp.int32, (L, L), 0)
    jj = lax.broadcasted_iota(jnp.int32, (L, L), 1)
    acc = jnp.zeros((L, D), jnp.float32)
    for k in range(K):
        d = k - pad
        shift = jnp.where(jj == ii + d, 1.0, 0.0)            # (L, L) shift matrix
        acc = acc + jnp.dot(shift, x, preferred_element_type=jnp.float32) * w[k:k + 1, :]
    return acc


# ------------------------------ embedding kernel ------------------------------
def _embed_kernel(w_emb_ref, cols_ref, ccw_ref, ccb_ref, pww_ref, pwc_ref,
                  hw_h_w_ref, hw_h_b_ref, hw_t_w_ref, hw_t_b_ref, o_ref,
                  *, lo, n_hw):
    w_emb = w_emb_ref[0]                                     # (L, WORD_DIM)
    # char conv (kernel over char positions) + ReLU + max-pool over positions
    feat = None
    for i in range(lo):
        ci = jnp.dot(cols_ref[0, i], ccw_ref[...],
                     preferred_element_type=jnp.float32) + ccb_ref[...]
        ci = jnp.maximum(ci, 0.0)
        feat = ci if feat is None else jnp.maximum(feat, ci)
    # projection (split weights == concat([word, char]) @ proj_w)
    emb = (jnp.dot(w_emb, pww_ref[...], preferred_element_type=jnp.float32)
           + jnp.dot(feat, pwc_ref[...], preferred_element_type=jnp.float32))
    # 2-layer highway
    for i in range(n_hw):
        h = jnp.maximum(jnp.dot(emb, hw_h_w_ref[i],
                                preferred_element_type=jnp.float32) + hw_h_b_ref[i], 0.0)
        tz = jnp.dot(emb, hw_t_w_ref[i], preferred_element_type=jnp.float32) + hw_t_b_ref[i]
        t = 1.0 / (1.0 + jnp.exp(-tz))                       # sigmoid (EUP exp)
        emb = t * h + (1.0 - t) * emb
    o_ref[0] = emb


@functools.lru_cache(maxsize=None)
def _embed_call(Bn, L, WD, lo, KCD, CC, D, n_hw):
    return pl.pallas_call(
        functools.partial(_embed_kernel, lo=lo, n_hw=n_hw),
        out_shape=jax.ShapeDtypeStruct((Bn, L, D), jnp.float32),
        grid=(Bn,),
        in_specs=[
            _per_b(L, WD),               # word embeddings
            _per_b(lo, L, KCD),          # char im2col windows
            _full(KCD, CC), _full(1, CC),
            _full(WD, D), _full(CC, D),
            _full(n_hw, D, D), _full(n_hw, 1, D),
            _full(n_hw, D, D), _full(n_hw, 1, D),
        ],
        out_specs=_per_b(L, D),
        compiler_params=pltpu.CompilerParams(dimension_semantics=("parallel",)),
    )


def embed(w_idxs, c_idxs, p):
    Bn, L = w_idxs.shape
    # embedding-table gathers + im2col stay as XLA glue under the single outer jit
    w_emb = p["word_vec"][w_idxs]                             # (B, L, WORD_DIM)
    c_emb = p["char_vec"][c_idxs]                             # (B, L, CL, CD)
    lo = CHAR_LIMIT - CHAR_CONV_K + 1
    cols = jnp.stack(
        [c_emb[:, :, i:i + CHAR_CONV_K, :].reshape(Bn, L, CHAR_CONV_K * CHAR_DIM)
         for i in range(lo)], axis=1)                         # (B, lo, L, K*CD)
    return _embed_call(Bn, L, WORD_DIM, lo, CHAR_CONV_K * CHAR_DIM,
                       CHAR_CHANNELS, MODEL_DIM, p["hw_h_w"].shape[0])(
        w_emb, cols, p["char_conv_w"], p["char_conv_b"],
        p["proj_w_word"], p["proj_w_char"],
        p["hw_h_w"], p["hw_h_b"], p["hw_t_w"], p["hw_t_b"])


# ------------------------------ fused encoder block ------------------------------
def _enc_block_kernel(x_ref, pos_ref, mb_ref,
                      ln_g_ref, ln_b_ref,
                      dw_ref, pw_w_ref, pw_b_ref,
                      wq_ref, wk_ref, wv_ref, wo_ref,
                      fc1_w_ref, fc1_b_ref, fc2_w_ref, fc2_b_ref,
                      o_ref, *, n_conv, heads, dw_k, L, D):
    dh = D // heads
    scale = 1.0 / math.sqrt(dh)

    out = x_ref[0] + pos_ref[...]                             # positional encoding

    def layer_norm(y, idx):
        mu = jnp.mean(y, axis=-1, keepdims=True)
        yc = y - mu
        var = jnp.mean(yc * yc, axis=-1, keepdims=True)
        return yc * lax.rsqrt(var + 1e-5) * ln_g_ref[idx] + ln_b_ref[idx]

    # --- conv sub-layers: LN -> depthwise -> pointwise + bias + ReLU -> residual ---
    for c in range(n_conv):
        res = out
        y = layer_norm(out, c)
        dwc = _dwconv_same(y, dw_ref[c], L, D, dw_k)
        y = jnp.dot(dwc, pw_w_ref[c], preferred_element_type=jnp.float32) + pw_b_ref[c]
        out = jnp.maximum(y, 0.0) + res

    # --- self-attention sub-layer: LN -> MHA -> residual ---
    res = out
    y = layer_norm(out, n_conv)
    mb = mb_ref[0]                                            # (1, L) additive key mask
    att = jnp.zeros((L, D), jnp.float32)
    for h in range(heads):
        q = jnp.dot(y, wq_ref[h], preferred_element_type=jnp.float32)   # (L, dh)
        k = jnp.dot(y, wk_ref[h], preferred_element_type=jnp.float32)
        v = jnp.dot(y, wv_ref[h], preferred_element_type=jnp.float32)
        s = lax.dot_general(q, k, (((1,), (1,)), ((), ())),
                            preferred_element_type=jnp.float32) * scale + mb
        p = _softmax_rows(s)
        ctx = jnp.dot(p, v, preferred_element_type=jnp.float32)         # (L, dh)
        att = att + jnp.dot(ctx, wo_ref[h], preferred_element_type=jnp.float32)
    out = att + res

    # --- feed-forward sub-layer: LN -> fc1(ReLU) -> fc2 -> residual ---
    res = out
    y = layer_norm(out, n_conv + 1)
    h1 = jnp.maximum(jnp.dot(y, fc1_w_ref[...],
                             preferred_element_type=jnp.float32) + fc1_b_ref[...], 0.0)
    h2 = jnp.dot(h1, fc2_w_ref[...], preferred_element_type=jnp.float32) + fc2_b_ref[...]
    o_ref[0] = h2 + res


@functools.lru_cache(maxsize=None)
def _enc_block_call(Bn, L, D, n_conv, heads, dw_k):
    dh = D // heads
    return pl.pallas_call(
        functools.partial(_enc_block_kernel, n_conv=n_conv, heads=heads,
                          dw_k=dw_k, L=L, D=D),
        out_shape=jax.ShapeDtypeStruct((Bn, L, D), jnp.float32),
        grid=(Bn,),
        in_specs=[
            _per_b(L, D),                 # activations
            _full(L, D),                  # positional signal
            _per_b(1, L),                 # key mask bias
            _full(n_conv + 2, 1, D),      # LN gammas (convs..., att, ffn)
            _full(n_conv + 2, 1, D),      # LN betas
            _full(n_conv, dw_k, D),       # depthwise weights
            _full(n_conv, D, D),          # pointwise weights
            _full(n_conv, 1, D),          # pointwise biases
            _full(heads, D, dh),          # Wq (per head)
            _full(heads, D, dh),          # Wk
            _full(heads, D, dh),          # Wv
            _full(heads, dh, D),          # Wo (per head -> sum == concat @ Wo)
            _full(D, D), _full(1, D),     # fc1
            _full(D, D), _full(1, D),     # fc2
        ],
        out_specs=_per_b(L, D),
        compiler_params=pltpu.CompilerParams(dimension_semantics=("parallel",)),
    )


def enc_block(x, mask_bias, p, pos):
    Bn, L, D = x.shape
    n_conv = p["dw"].shape[0]
    return _enc_block_call(Bn, L, D, n_conv, HEADS, DW_K)(
        x, pos, mask_bias,
        p["ln_g"], p["ln_b"], p["dw"], p["pw_w"], p["pw_b"],
        p["wq"], p["wk"], p["wv"], p["wo"],
        p["fc1_w"], p["fc1_b"], p["fc2_w"], p["fc2_b"])


# -------------------- BiDAF attention fused with att_resize conv --------------------
def _bidaf_resize_kernel(c_ref, q_ref, cmb_ref, qmb_ref,
                         wc_ref, wqv_ref, wcq_ref, tb_ref,
                         dw_ref, pww_ref, pwb_ref, o_ref,
                         *, Lc, Lq, D, dw_k):
    c = c_ref[0]                                              # (Lc, D)
    q = q_ref[0]                                              # (Lq, D)
    cmb = cmb_ref[0]                                          # (1, Lc)
    qmb = qmb_ref[0]                                          # (1, Lq)
    bias = tb_ref[...]                                        # (1, 1)

    cw = c * wcq_ref[...]
    # trilinear similarity and its transpose (both computed row-major, no transposes)
    s2 = lax.dot_general(cw, q, (((1,), (1,)), ((), ())),
                         preferred_element_type=jnp.float32)              # (Lc, Lq)
    st2 = lax.dot_general(q, cw, (((1,), (1,)), ((), ())),
                          preferred_element_type=jnp.float32)             # (Lq, Lc)
    s0_col = jnp.sum(c * wc_ref[...], axis=-1, keepdims=True)             # (Lc, 1)
    s1_col = jnp.sum(q * wqv_ref[...], axis=-1, keepdims=True)            # (Lq, 1)
    s0_row = lax.dot_general(wc_ref[...], c, (((1,), (1,)), ((), ())),
                             preferred_element_type=jnp.float32)          # (1, Lc)
    s1_row = lax.dot_general(wqv_ref[...], q, (((1,), (1,)), ((), ())),
                             preferred_element_type=jnp.float32)          # (1, Lq)

    s = s0_col + s1_row + s2 + bias                                       # (Lc, Lq)
    st = s1_col + s0_row + st2 + bias                                     # (Lq, Lc)

    a1 = _softmax_rows(s + qmb)                                           # softmax over q
    a2t = _softmax_rows(st + cmb)                                         # softmax over c

    a = jnp.dot(a1, q, preferred_element_type=jnp.float32)                # (Lc, D)
    bb = jnp.dot(jnp.dot(a1, a2t, preferred_element_type=jnp.float32), c,
                 preferred_element_type=jnp.float32)                      # (Lc, D)

    # att_resize DepthwiseSeparableConv(4D -> D) applied to [c, a, c*a, c*b]
    # (channel groups handled separately == concat along channels)
    feats = (c, a, c * a, c * bb)
    acc = jnp.zeros((Lc, D), jnp.float32) + pwb_ref[...]
    for g in range(4):
        dwc = _dwconv_same(feats[g], dw_ref[g], Lc, D, dw_k)
        acc = acc + jnp.dot(dwc, pww_ref[g], preferred_element_type=jnp.float32)
    o_ref[0] = jnp.maximum(acc, 0.0)


@functools.lru_cache(maxsize=None)
def _bidaf_resize_call(Bn, Lc, Lq, D, dw_k):
    return pl.pallas_call(
        functools.partial(_bidaf_resize_kernel, Lc=Lc, Lq=Lq, D=D, dw_k=dw_k),
        out_shape=jax.ShapeDtypeStruct((Bn, Lc, D), jnp.float32),
        grid=(Bn,),
        in_specs=[
            _per_b(Lc, D), _per_b(Lq, D), _per_b(1, Lc), _per_b(1, Lq),
            _full(1, D), _full(1, D), _full(1, D), _full(1, 1),
            _full(4, dw_k, D), _full(4, D, D), _full(1, D),
        ],
        out_specs=_per_b(Lc, D),
        compiler_params=pltpu.CompilerParams(dimension_semantics=("parallel",)),
    )


def bidaf_resize(c_enc, q_enc, c_mb, q_mb, att_p, rs_p):
    Bn, Lc, D = c_enc.shape
    Lq = q_enc.shape[1]
    return _bidaf_resize_call(Bn, Lc, Lq, D, DW_K)(
        c_enc, q_enc, c_mb, q_mb,
        att_p["w_c"], att_p["w_q"], att_p["w_cq"], att_p["bias"],
        rs_p["dw"], rs_p["pw_w"], rs_p["pw_b"])


# ------------------------------ pointer (output) kernel ------------------------------
def _pointer_kernel(m1_ref, m2_ref, m3_ref, cmb_ref,
                    w1a_ref, w1b_ref, b1_ref, w2a_ref, w2b_ref, b2_ref,
                    o1_ref, o2_ref):
    m1 = m1_ref[0]
    m2 = m2_ref[0]
    m3 = m3_ref[0]
    cmb = cmb_ref[0]                                          # (1, L)

    def log_softmax_logits(wa, wb, x2, bb):
        y = (lax.dot_general(wa, m1, (((1,), (1,)), ((), ())),
                             preferred_element_type=jnp.float32)
             + lax.dot_general(wb, x2, (((1,), (1,)), ((), ())),
                               preferred_element_type=jnp.float32)
             + bb + cmb)                                      # (1, L)
        mx = jnp.max(y, axis=-1, keepdims=True)
        z = y - mx
        return z - jnp.log(jnp.sum(jnp.exp(z), axis=-1, keepdims=True))

    o1_ref[0] = log_softmax_logits(w1a_ref[...], w1b_ref[...], m2, b1_ref[...])
    o2_ref[0] = log_softmax_logits(w2a_ref[...], w2b_ref[...], m3, b2_ref[...])


@functools.lru_cache(maxsize=None)
def _pointer_call(Bn, L, D):
    return pl.pallas_call(
        _pointer_kernel,
        out_shape=(jax.ShapeDtypeStruct((Bn, 1, L), jnp.float32),
                   jax.ShapeDtypeStruct((Bn, 1, L), jnp.float32)),
        grid=(Bn,),
        in_specs=[
            _per_b(L, D), _per_b(L, D), _per_b(L, D), _per_b(1, L),
            _full(1, D), _full(1, D), _full(1, 1),
            _full(1, D), _full(1, D), _full(1, 1),
        ],
        out_specs=(_per_b(1, L), _per_b(1, L)),
        compiler_params=pltpu.CompilerParams(dimension_semantics=("parallel",)),
    )


def pointer(m1, m2, m3, c_mb, p):
    Bn, L, D = m1.shape
    return _pointer_call(Bn, L, D)(m1, m2, m3, c_mb,
                                   p["w1a"], p["w1b"], p["b1"],
                                   p["w2a"], p["w2b"], p["b2"])


# ------------------------------ positional encoding ------------------------------
@functools.lru_cache(maxsize=None)
def pos_signal(L, D, min_t=1.0, max_t=1.0e4):
    pos = jnp.arange(L, dtype=jnp.float32)
    num_ts = D // 2
    log_inc = math.log(max_t / min_t) / max(num_ts - 1, 1)
    inv = min_t * jnp.exp(jnp.arange(num_ts, dtype=jnp.float32) * -log_inc)
    scaled = pos[:, None] * inv[None, :]
    return jnp.concatenate([jnp.sin(scaled), jnp.cos(scaled)], axis=1)    # (L, D)


# ------------------------------------ forward ------------------------------------
def qanet_forward(cw_idxs, qw_idxs, cc_idxs, qc_idxs, params):
    # additive key-mask biases (NEG_INF on pad positions), shaped (B, 1, L)
    c_mb = ((cw_idxs == 0).astype(jnp.float32) * NEG_INF)[:, None, :]
    q_mb = ((qw_idxs == 0).astype(jnp.float32) * NEG_INF)[:, None, :]

    c_emb = embed(cw_idxs, cc_idxs, params["emb"])
    q_emb = embed(qw_idxs, qc_idxs, params["emb"])

    pos_c = pos_signal(LC, MODEL_DIM)
    pos_q = pos_signal(LQ, MODEL_DIM)

    c_enc = enc_block(c_emb, c_mb, params["enc"], pos_c)
    q_enc = enc_block(q_emb, q_mb, params["enc"], pos_q)

    out = bidaf_resize(c_enc, q_enc, c_mb, q_mb, params["att"], params["att_resize"])

    for blk in params["mod_blocks"]:
        out = enc_block(out, c_mb, blk, pos_c)
    out1 = out
    for blk in params["mod_blocks"]:
        out = enc_block(out, c_mb, blk, pos_c)
    out2 = out
    for blk in params["mod_blocks"]:
        out = enc_block(out, c_mb, blk, pos_c)
    out3 = out

    lp1, lp2 = pointer(out1, out2, out3, c_mb, params["out"])
    return lp1[:, 0, :], lp2[:, 0, :]


# ------------------------------ deterministic params ------------------------------
class Rng:
    def __init__(self, key):
        self.key = key

    def normal(self, shape, scale=0.1):
        self.key, k = jax.random.split(self.key)
        return scale * jax.random.normal(k, shape, jnp.float32)


def init_params(key):
    rng = Rng(key)
    D = MODEL_DIM
    dh = D // HEADS

    def enc_block_params(n_conv):
        return {
            "ln_g": jnp.ones((n_conv + 2, 1, D), jnp.float32),
            "ln_b": jnp.zeros((n_conv + 2, 1, D), jnp.float32),
            "dw": rng.normal((n_conv, DW_K, D)),
            "pw_w": rng.normal((n_conv, D, D)),
            "pw_b": jnp.zeros((n_conv, 1, D), jnp.float32),
            "wq": rng.normal((HEADS, D, dh)),
            "wk": rng.normal((HEADS, D, dh)),
            "wv": rng.normal((HEADS, D, dh)),
            "wo": rng.normal((HEADS, dh, D)),
            "fc1_w": rng.normal((D, D)),
            "fc1_b": jnp.zeros((1, D), jnp.float32),
            "fc2_w": rng.normal((D, D)),
            "fc2_b": jnp.zeros((1, D), jnp.float32),
        }

    emb = {
        "word_vec": rng.normal((WORD_VOCAB, WORD_DIM), 1.0).at[0].set(0.0),
        "char_vec": rng.normal((CHAR_VOCAB, CHAR_DIM), 1.0).at[0].set(0.0),
        "char_conv_w": rng.normal((CHAR_CONV_K * CHAR_DIM, CHAR_CHANNELS)),
        "char_conv_b": jnp.zeros((1, CHAR_CHANNELS), jnp.float32),
        "proj_w_word": rng.normal((WORD_DIM, D)),
        "proj_w_char": rng.normal((CHAR_CHANNELS, D)),
        "hw_h_w": rng.normal((2, D, D)),
        "hw_h_b": jnp.zeros((2, 1, D), jnp.float32),
        "hw_t_w": rng.normal((2, D, D)),
        "hw_t_b": jnp.zeros((2, 1, D), jnp.float32),
    }
    att = {
        "w_c": rng.normal((1, D)),
        "w_q": rng.normal((1, D)),
        "w_cq": rng.normal((1, D)),
        "bias": jnp.zeros((1, 1), jnp.float32),
    }
    att_resize = {
        "dw": rng.normal((4, DW_K, D)),
        "pw_w": rng.normal((4, D, D)),
        "pw_b": jnp.zeros((1, D), jnp.float32),
    }
    out_p = {
        "w1a": rng.normal((1, D)), "w1b": rng.normal((1, D)),
        "b1": jnp.zeros((1, 1), jnp.float32),
        "w2a": rng.normal((1, D)), "w2b": rng.normal((1, D)),
        "b2": jnp.zeros((1, 1), jnp.float32),
    }
    return {
        "emb": emb,
        "enc": enc_block_params(EMB_CONV_LAYERS),
        "att": att,
        "att_resize": att_resize,
        "mod_blocks": [enc_block_params(MOD_CONV_LAYERS) for _ in range(NUM_MOD_BLOCKS)],
        "out": out_p,
    }


# ------------------------------------ main ------------------------------------
if __name__ == "__main__":
    params = init_params(jax.random.PRNGKey(42))

    key = jax.random.PRNGKey(0)
    k1, k2, k3, k4 = jax.random.split(key, 4)
    cw_idxs = jax.random.randint(k1, (B, LC), 1, WORD_VOCAB).astype(jnp.int32)
    qw_idxs = jax.random.randint(k2, (B, LQ), 1, WORD_VOCAB).astype(jnp.int32)
    cc_idxs = jax.random.randint(k3, (B, LC, CHAR_LIMIT), 1, CHAR_VOCAB).astype(jnp.int32)
    qc_idxs = jax.random.randint(k4, (B, LQ, CHAR_LIMIT), 1, CHAR_VOCAB).astype(jnp.int32)
    # introduce padding so the masks are actually exercised
    cw_idxs = cw_idxs.at[1, 12:].set(0)
    qw_idxs = qw_idxs.at[1, 6:].set(0)

    fwd = jax.jit(qanet_forward)                  # single outer jit over the whole model
    log_p1, log_p2 = fwd(cw_idxs, qw_idxs, cc_idxs, qc_idxs, params)
    jax.block_until_ready((log_p1, log_p2))
    assert log_p1.shape == (B, LC) and log_p2.shape == (B, LC)
    assert bool(jnp.all(jnp.isfinite(log_p1))) and bool(jnp.all(jnp.isfinite(log_p2)))
    print("KERNEL_OK")
</pallas_src>

<mosaic_0001>
module attributes {stable_mosaic.version = 11 : i64} {
  func.func @_embed_kernel(%arg0: i32, %arg1: memref<1x16x24xf32, #tpu.memory_space<vmem>>, %arg2: memref<1x4x16x40xf32, #tpu.memory_space<vmem>>, %arg3: memref<40x16xf32, #tpu.memory_space<vmem>>, %arg4: memref<1x16xf32, #tpu.memory_space<vmem>>, %arg5: memref<24x32xf32, #tpu.memory_space<vmem>>, %arg6: memref<16x32xf32, #tpu.memory_space<vmem>>, %arg7: memref<2x32x32xf32, #tpu.memory_space<vmem>>, %arg8: memref<2x1x32xf32, #tpu.memory_space<vmem>>, %arg9: memref<2x32x32xf32, #tpu.memory_space<vmem>>, %arg10: memref<2x1x32xf32, #tpu.memory_space<vmem>>, %arg11: memref<1x16x32xf32, #tpu.memory_space<vmem>>) attributes {dimension_semantics = [#tpu.dimension_semantics<parallel>], iteration_bounds = array<i64: 2>, scalar_prefetch = 0 : i64, scratch_operands = 0 : i64, tpu.core_type = #tpu.core_type<tc>, window_params = [{transform_indices = @transform_0, window_bounds = array<i64: 1, 16, 24>}, {transform_indices = @transform_1, window_bounds = array<i64: 1, 4, 16, 40>}, {pipeline_mode = #tpu.pipeline_mode<synchronous>, transform_indices = @transform_2, window_bounds = array<i64: 40, 16>}, {pipeline_mode = #tpu.pipeline_mode<synchronous>, transform_indices = @transform_3, window_bounds = array<i64: 1, 16>}, {pipeline_mode = #tpu.pipeline_mode<synchronous>, transform_indices = @transform_4, window_bounds = array<i64: 24, 32>}, {pipeline_mode = #tpu.pipeline_mode<synchronous>, transform_indices = @transform_5, window_bounds = array<i64: 16, 32>}, {pipeline_mode = #tpu.pipeline_mode<synchronous>, transform_indices = @transform_6, window_bounds = array<i64: 2, 32, 32>}, {pipeline_mode = #tpu.pipeline_mode<synchronous>, transform_indices = @transform_7, window_bounds = array<i64: 2, 1, 32>}, {pipeline_mode = #tpu.pipeline_mode<synchronous>, transform_indices = @transform_8, window_bounds = array<i64: 2, 32, 32>}, {pipeline_mode = #tpu.pipeline_mode<synchronous>, transform_indices = @transform_9, window_bounds = array<i64: 2, 1, 32>}, {transform_indices = @transform_10, window_bounds = array<i64: 1, 16, 32>}]} {
    %c0 = arith.constant 0 : index
    %c0_0 = arith.constant 0 : index
    %c0_1 = arith.constant 0 : index
    %0 = vector.load %arg1[%c0, %c0_0, %c0_1] : memref<1x16x24xf32, #tpu.memory_space<vmem>>, vector<1x16x24xf32>
    %1 = vector.shape_cast %0 : vector<1x16x24xf32> to vector<16x24xf32>
    %c0_2 = arith.constant 0 : index
    %c0_3 = arith.constant 0 : index
    %c0_4 = arith.constant 0 : index
    %c0_5 = arith.constant 0 : index
    %2 = vector.load %arg2[%c0_2, %c0_3, %c0_4, %c0_5] : memref<1x4x16x40xf32, #tpu.memory_space<vmem>>, vector<1x1x16x40xf32>
    %3 = vector.shape_cast %2 : vector<1x1x16x40xf32> to vector<16x40xf32>
    %c0_6 = arith.constant 0 : index
    %c0_7 = arith.constant 0 : index
    %4 = vector.load %arg3[%c0_6, %c0_7] : memref<40x16xf32, #tpu.memory_space<vmem>>, vector<40x16xf32>
    %cst = arith.constant dense<0.000000e+00> : vector<16x16xf32>
    %5 = tpu.matmul %3, %4, %cst {dimension_numbers = #tpu.dot_dimension_numbers<[1], [0], [0], [1], [0, 0, 1, 1], [], []>} : vector<16x40xf32>, vector<40x16xf32>, vector<16x16xf32> -> vector<16x16xf32>
    %c0_8 = arith.constant 0 : index
    %c0_9 = arith.constant 0 : index
    %6 = vector.load %arg4[%c0_8, %c0_9] : memref<1x16xf32, #tpu.memory_space<vmem>>, vector<1x16xf32>
    %7 = vector.broadcast %6 : vector<1x16xf32> to vector<16x16xf32>
    %8 = arith.addf %5, %7 : vector<16x16xf32>
    %cst_10 = arith.constant 0.000000e+00 : f32
    %9 = vector.broadcast %cst_10 : f32 to vector<16x16xf32>
    %10 = arith.maximumf %8, %9 : vector<16x16xf32>
    %c0_11 = arith.constant 0 : index
    %c1 = arith.constant 1 : index
    %c0_12 = arith.constant 0 : index
    %c0_13 = arith.constant 0 : index
    %11 = vector.load %arg2[%c0_11, %c1, %c0_12, %c0_13] : memref<1x4x16x40xf32, #tpu.memory_space<vmem>>, vector<1x1x16x40xf32>
    %12 = vector.shape_cast %11 : vector<1x1x16x40xf32> to vector<16x40xf32>
    %c0_14 = arith.constant 0 : index
    %c0_15 = arith.constant 0 : index
    %13 = vector.load %arg3[%c0_14, %c0_15] : memref<40x16xf32, #tpu.memory_space<vmem>>, vector<40x16xf32>
    %cst_16 = arith.constant dense<0.000000e+00> : vector<16x16xf32>
    %14 = tpu.matmul %12, %13, %cst_16 {dimension_numbers = #tpu.dot_dimension_numbers<[1], [0], [0], [1], [0, 0, 1, 1], [], []>} : vector<16x40xf32>, vector<40x16xf32>, vector<16x16xf32> -> vector<16x16xf32>
    %c0_17 = arith.constant 0 : index
    %c0_18 = arith.constant 0 : index
    %15 = vector.load %arg4[%c0_17, %c0_18] : memref<1x16xf32, #tpu.memory_space<vmem>>, vector<1x16xf32>
    %16 = vector.broadcast %15 : vector<1x16xf32> to vector<16x16xf32>
    %17 = arith.addf %14, %16 : vector<16x16xf32>
    %cst_19 = arith.constant 0.000000e+00 : f32
    %18 = vector.broadcast %cst_19 : f32 to vector<16x16xf32>
    %19 = arith.maximumf %17, %18 : vector<16x16xf32>
    %20 = arith.maximumf %10, %19 : vector<16x16xf32>
    %c0_20 = arith.constant 0 : index
    %c2 = arith.constant 2 : index
    %c0_21 = arith.constant 0 : index
    %c0_22 = arith.constant 0 : index
    %21 = vector.load %arg2[%c0_20, %c2, %c0_21, %c0_22] : memref<1x4x16x40xf32, #tpu.memory_space<vmem>>, vector<1x1x16x40xf32>
    %22 = vector.shape_cast %21 : vector<1x1x16x40xf32> to vector<16x40xf32>
    %c0_23 = arith.constant 0 : index
    %c0_24 = arith.constant 0 : index
    %23 = vector.load %arg3[%c0_23, %c0_24] : memref<40x16xf32, #tpu.memory_space<vmem>>, vector<40x16xf32>
    %cst_25 = arith.constant dense<0.000000e+00> : vector<16x16xf32>
    %24 = tpu.matmul %22, %23, %cst_25 {dimension_numbers = #tpu.dot_dimension_numbers<[1], [0], [0], [1], [0, 0, 1, 1], [], []>} : vector<16x40xf32>, vector<40x16xf32>, vector<16x16xf32> -> vector<16x16xf32>
    %c0_26 = arith.constant 0 : index
    %c0_27 = arith.constant 0 : index
    %25 = vector.load %arg4[%c0_26, %c0_27] : memref<1x16xf32, #tpu.memory_space<vmem>>, vector<1x16xf32>
    %26 = vector.broadcast %25 : vector<1x16xf32> to vector<16x16xf32>
    %27 = arith.addf %24, %26 : vector<16x16xf32>
    %cst_28 = arith.constant 0.000000e+00 : f32
    %28 = vector.broadcast %cst_28 : f32 to vector<16x16xf32>
    %29 = arith.maximumf %27, %28 : vector<16x16xf32>
    %30 = arith.maximumf %20, %29 : vector<16x16xf32>
    %c0_29 = arith.constant 0 : index
    %c3 = arith.constant 3 : index
    %c0_30 = arith.constant 0 : index
    %c0_31 = arith.constant 0 : index
    %31 = vector.load %arg2[%c0_29, %c3, %c0_30, %c0_31] : memref<1x4x16x40xf32, #tpu.memory_space<vmem>>, vector<1x1x16x40xf32>
    %32 = vector.shape_cast %31 : vector<1x1x16x40xf32> to vector<16x40xf32>
    %c0_32 = arith.constant 0 : index
    %c0_33 = arith.constant 0 : index
    %33 = vector.load %arg3[%c0_32, %c0_33] : memref<40x16xf32, #tpu.memory_space<vmem>>, vector<40x16xf32>
    %cst_34 = arith.constant dense<0.000000e+00> : vector<16x16xf32>
    %34 = tpu.matmul %32, %33, %cst_34 {dimension_numbers = #tpu.dot_dimension_numbers<[1], [0], [0], [1], [0, 0, 1, 1], [], []>} : vector<16x40xf32>, vector<40x16xf32>, vector<16x16xf32> -> vector<16x16xf32>
    %c0_35 = arith.constant 0 : index
    %c0_36 = arith.constant 0 : index
    %35 = vector.load %arg4[%c0_35, %c0_36] : memref<1x16xf32, #tpu.memory_space<vmem>>, vector<1x16xf32>
    %36 = vector.broadcast %35 : vector<1x16xf32> to vector<16x16xf32>
    %37 = arith.addf %34, %36 : vector<16x16xf32>
    %cst_37 = arith.constant 0.000000e+00 : f32
    %38 = vector.broadcast %cst_37 : f32 to vector<16x16xf32>
    %39 = arith.maximumf %37, %38 : vector<16x16xf32>
    %40 = arith.maximumf %30, %39 : vector<16x16xf32>
    %c0_38 = arith.constant 0 : index
    %c0_39 = arith.constant 0 : index
    %41 = vector.load %arg5[%c0_38, %c0_39] : memref<24x32xf32, #tpu.memory_space<vmem>>, vector<24x32xf32>
    %cst_40 = arith.constant dense<0.000000e+00> : vector<16x32xf32>
    %42 = tpu.matmul %1, %41, %cst_40 {dimension_numbers = #tpu.dot_dimension_numbers<[1], [0], [0], [1], [0, 0, 1, 1], [], []>} : vector<16x24xf32>, vector<24x32xf32>, vector<16x32xf32> -> vector<16x32xf32>
    %c0_41 = arith.constant 0 : index
    %c0_42 = arith.constant 0 : index
    %43 = vector.load %arg6[%c0_41, %c0_42] : memref<16x32xf32, #tpu.memory_space<vmem>>, vector<16x32xf32>
    %cst_43 = arith.constant dense<0.000000e+00> : vector<16x32xf32>
    %44 = tpu.matmul %40, %43, %cst_43 {dimension_numbers = #tpu.dot_dimension_numbers<[1], [0], [0], [1], [0, 0, 1, 1], [], []>} : vector<16x16xf32>, vector<16x32xf32>, vector<16x32xf32> -> vector<16x32xf32>
    %45 = arith.addf %42, %44 : vector<16x32xf32>
    %c0_44 = arith.constant 0 : index
    %c0_45 = arith.constant 0 : index
    %c0_46 = arith.constant 0 : index
    %46 = vector.load %arg7[%c0_44, %c0_45, %c0_46] : memref<2x32x32xf32, #tpu.memory_space<vmem>>, vector<1x32x32xf32>
    %47 = vector.shape_cast %46 : vector<1x32x32xf32> to vector<32x32xf32>
    %cst_47 = arith.constant dense<0.000000e+00> : vector<16x32xf32>
    %48 = tpu.matmul %45, %47, %cst_47 {dimension_numbers = #tpu.dot_dimension_numbers<[1], [0], [0], [1], [0, 0, 1, 1], [], []>} : vector<16x32xf32>, vector<32x32xf32>, vector<16x32xf32> -> vector<16x32xf32>
    %c0_48 = arith.constant 0 : index
    %c0_49 = arith.constant 0 : index
    %c0_50 = arith.constant 0 : index
    %49 = vector.load %arg8[%c0_48, %c0_49, %c0_50] : memref<2x1x32xf32, #tpu.memory_space<vmem>>, vector<1x1x32xf32>
    %50 = vector.shape_cast %49 : vector<1x1x32xf32> to vector<1x32xf32>
    %51 = vector.broadcast %50 : vector<1x32xf32> to vector<16x32xf32>
    %52 = arith.addf %48, %51 : vector<16x32xf32>
    %cst_51 = arith.constant 0.000000e+00 : f32
    %53 = vector.broadcast %cst_51 : f32 to vector<16x32xf32>
    %54 = arith.maximumf %52, %53 : vector<16x32xf32>
    %c0_52 = arith.constant 0 : index
    %c0_53 = arith.constant 0 : index
    %c0_54 = arith.constant 0 : index
    %55 = vector.load %arg9[%c0_52, %c0_53, %c0_54] : memref<2x32x32xf32, #tpu.memory_space<vmem>>, vector<1x32x32xf32>
    %56 = vector.shape_cast %55 : vector<1x32x32xf32> to vector<32x32xf32>
    %cst_55 = arith.constant dense<0.000000e+00> : vector<16x32xf32>
    %57 = tpu.matmul %45, %56, %cst_55 {dimension_numbers = #tpu.dot_dimension_numbers<[1], [0], [0], [1], [0, 0, 1, 1], [], []>} : vector<16x32xf32>, vector<32x32xf32>, vector<16x32xf32> -> vector<16x32xf32>
    %c0_56 = arith.constant 0 : index
    %c0_57 = arith.constant 0 : index
    %c0_58 = arith.constant 0 : index
    %58 = vector.load %arg10[%c0_56, %c0_57, %c0_58] : memref<2x1x32xf32, #tpu.memory_space<vmem>>, vector<1x1x32xf32>
    %59 = vector.shape_cast %58 : vector<1x1x32xf32> to vector<1x32xf32>
    %60 = vector.broadcast %59 : vector<1x32xf32> to vector<16x32xf32>
    %61 = arith.addf %57, %60 : vector<16x32xf32>
    %cst_59 = arith.constant 0.000000e+00 : f32
    %62 = vector.broadcast %cst_59 : f32 to vector<16x32xf32>
    %63 = arith.subf %62, %61 : vector<16x32xf32>
    %64 = math.exp %63 : vector<16x32xf32>
    %cst_60 = arith.constant 1.000000e+00 : f32
    %65 = vector.broadcast %cst_60 : f32 to vector<16x32xf32>
    %66 = arith.addf %65, %64 : vector<16x32xf32>
    %cst_61 = arith.constant 1.000000e+00 : f32
    %67 = vector.broadcast %cst_61 : f32 to vector<16x32xf32>
    %68 = arith.divf %67, %66 : vector<16x32xf32>
    %69 = arith.mulf %68, %54 : vector<16x32xf32>
    %cst_62 = arith.constant 1.000000e+00 : f32
    %70 = vector.broadcast %cst_62 : f32 to vector<16x32xf32>
    %71 = arith.subf %70, %68 : vector<16x32xf32>
    %72 = arith.mulf %71, %45 : vector<16x32xf32>
    %73 = arith.addf %69, %72 : vector<16x32xf32>
    %c1_63 = arith.constant 1 : index
    %c0_64 = arith.constant 0 : index
    %c0_65 = arith.constant 0 : index
    %74 = vector.load %arg7[%c1_63, %c0_64, %c0_65] : memref<2x32x32xf32, #tpu.memory_space<vmem>>, vector<1x32x32xf32>
    %75 = vector.shape_cast %74 : vector<1x32x32xf32> to vector<32x32xf32>
    %cst_66 = arith.constant dense<0.000000e+00> : vector<16x32xf32>
    %76 = tpu.matmul %73, %75, %cst_66 {dimension_numbers = #tpu.dot_dimension_numbers<[1], [0], [0], [1], [0, 0, 1, 1], [], []>} : vector<16x32xf32>, vector<32x32xf32>, vector<16x32xf32> -> vector<16x32xf32>
    %c1_67 = arith.constant 1 : index
    %c0_68 = arith.constant 0 : index
    %c0_69 = arith.constant 0 : index
    %77 = vector.load %arg8[%c1_67, %c0_68, %c0_69] : memref<2x1x32xf32, #tpu.memory_space<vmem>>, vector<1x1x32xf32>
    %78 = vector.shape_cast %77 : vector<1x1x32xf32> to vector<1x32xf32>
    %79 = vector.broadcast %78 : vector<1x32xf32> to vector<16x32xf32>
    %80 = arith.addf %76, %79 : vector<16x32xf32>
    %cst_70 = arith.constant 0.000000e+00 : f32
    %81 = vector.broadcast %cst_70 : f32 to vector<16x32xf32>
    %82 = arith.maximumf %80, %81 : vector<16x32xf32>
    %c1_71 = arith.constant 1 : index
    %c0_72 = arith.constant 0 : index
    %c0_73 = arith.constant 0 : index
    %83 = vector.load %arg9[%c1_71, %c0_72, %c0_73] : memref<2x32x32xf32, #tpu.memory_space<vmem>>, vector<1x32x32xf32>
    %84 = vector.shape_cast %83 : vector<1x32x32xf32> to vector<32x32xf32>
    %cst_74 = arith.constant dense<0.000000e+00> : vector<16x32xf32>
    %85 = tpu.matmul %73, %84, %cst_74 {dimension_numbers = #tpu.dot_dimension_numbers<[1], [0], [0], [1], [0, 0, 1, 1], [], []>} : vector<16x32xf32>, vector<32x32xf32>, vector<16x32xf32> -> vector<16x32xf32>
    %c1_75 = arith.constant 1 : index
    %c0_76 = arith.constant 0 : index
    %c0_77 = arith.constant 0 : index
    %86 = vector.load %arg10[%c1_75, %c0_76, %c0_77] : memref<2x1x32xf32, #tpu.memory_space<vmem>>, vector<1x1x32xf32>
    %87 = vector.shape_cast %86 : vector<1x1x32xf32> to vector<1x32xf32>
    %88 = vector.broadcast %87 : vector<1x32xf32> to vector<16x32xf32>
    %89 = arith.addf %85, %88 : vector<16x32xf32>
    %cst_78 = arith.constant 0.000000e+00 : f32
    %90 = vector.broadcast %cst_78 : f32 to vector<16x32xf32>
    %91 = arith.subf %90, %89 : vector<16x32xf32>
    %92 = math.exp %91 : vector<16x32xf32>
    %cst_79 = arith.constant 1.000000e+00 : f32
    %93 = vector.broadcast %cst_79 : f32 to vector<16x32xf32>
    %94 = arith.addf %93, %92 : vector<16x32xf32>
    %cst_80 = arith.constant 1.000000e+00 : f32
    %95 = vector.broadcast %cst_80 : f32 to vector<16x32xf32>
    %96 = arith.divf %95, %94 : vector<16x32xf32>
    %97 = arith.mulf %96, %82 : vector<16x32xf32>
    %cst_81 = arith.constant 1.000000e+00 : f32
    %98 = vector.broadcast %cst_81 : f32 to vector<16x32xf32>
    %99 = arith.subf %98, %96 : vector<16x32xf32>
    %100 = arith.mulf %99, %73 : vector<16x32xf32>
    %101 = arith.addf %97, %100 : vector<16x32xf32>
    %c0_82 = arith.constant 0 : index
    %c0_83 = arith.constant 0 : index
    %c0_84 = arith.constant 0 : index
    %102 = vector.load %arg11[%c0_82, %c0_83, %c0_84] : memref<1x16x32xf32, #tpu.memory_space<vmem>>, vector<1x16x32xf32>
    %103 = vector.shape_cast %102 : vector<1x16x32xf32> to vector<16x32xf32>
    %104 = vector.shape_cast %101 : vector<16x32xf32> to vector<1x16x32xf32>
    tpu.vector_store %arg11[%c0_82, %c0_83, %c0_84], %104 {strides = array<i32>} : memref<1x16x32xf32, #tpu.memory_space<vmem>>, vector<1x16x32xf32>,
    return
  }
  func.func @transform_0(%arg0: i32) -> (i32, i32, i32) {
    %c0_i32 = arith.constant 0 : i32
    %c0_i32_0 = arith.constant 0 : i32
    %c0_i32_1 = arith.constant 0 : i32
    return %arg0, %c0_i32, %c0_i32_0 : i32, i32, i32
  }
  func.func @transform_1(%arg0: i32) -> (i32, i32, i32, i32) {
    %c0_i32 = arith.constant 0 : i32
    %c0_i32_0 = arith.constant 0 : i32
    %c0_i32_1 = arith.constant 0 : i32
    %c0_i32_2 = arith.constant 0 : i32
    return %arg0, %c0_i32, %c0_i32_0, %c0_i32_1 : i32, i32, i32, i32
  }
  func.func @transform_2(%arg0: i32) -> (i32, i32) {
    %c0_i32 = arith.constant 0 : i32
    %c0_i32_0 = arith.constant 0 : i32
    %c0_i32_1 = arith.constant 0 : i32
    return %c0_i32, %c0_i32_0 : i32, i32
  }
  func.func @transform_3(%arg0: i32) -> (i32, i32) {
    %c0_i32 = arith.constant 0 : i32
    %c0_i32_0 = arith.constant 0 : i32
    %c0_i32_1 = arith.constant 0 : i32
    return %c0_i32, %c0_i32_0 : i32, i32
  }
  func.func @transform_4(%arg0: i32) -> (i32, i32) {
    %c0_i32 = arith.constant 0 : i32
    %c0_i32_0 = arith.constant 0 : i32
    %c0_i32_1 = arith.constant 0 : i32
    return %c0_i32, %c0_i32_0 : i32, i32
  }
  func.func @transform_5(%arg0: i32) -> (i32, i32) {
    %c0_i32 = arith.constant 0 : i32
    %c0_i32_0 = arith.constant 0 : i32
    %c0_i32_1 = arith.constant 0 : i32
    return %c0_i32, %c0_i32_0 : i32, i32
  }
  func.func @transform_6(%arg0: i32) -> (i32, i32, i32) {
    %c0_i32 = arith.constant 0 : i32
    %c0_i32_0 = arith.constant 0 : i32
    %c0_i32_1 = arith.constant 0 : i32
    %c0_i32_2 = arith.constant 0 : i32
    return %c0_i32, %c0_i32_0, %c0_i32_1 : i32, i32, i32
  }
  func.func @transform_7(%arg0: i32) -> (i32, i32, i32) {
    %c0_i32 = arith.constant 0 : i32
    %c0_i32_0 = arith.constant 0 : i32
    %c0_i32_1 = arith.constant 0 : i32
    %c0_i32_2 = arith.constant 0 : i32
    return %c0_i32, %c0_i32_0, %c0_i32_1 : i32, i32, i32
  }
  func.func @transform_8(%arg0: i32) -> (i32, i32, i32) {
    %c0_i32 = arith.constant 0 : i32
    %c0_i32_0 = arith.constant 0 : i32
    %c0_i32_1 = arith.constant 0 : i32
    %c0_i32_2 = arith.constant 0 : i32
    return %c0_i32, %c0_i32_0, %c0_i32_1 : i32, i32, i32
  }
  func.func @transform_9(%arg0: i32) -> (i32, i32, i32) {
    %c0_i32 = arith.constant 0 : i32
    %c0_i32_0 = arith.constant 0 : i32
    %c0_i32_1 = arith.constant 0 : i32
    %c0_i32_2 = arith.constant 0 : i32
    return %c0_i32, %c0_i32_0, %c0_i32_1 : i32, i32, i32
  }
  func.func @transform_10(%arg0: i32) -> (i32, i32, i32) {
    %c0_i32 = arith.constant 0 : i32
    %c0_i32_0 = arith.constant 0 : i32
    %c0_i32_1 = arith.constant 0 : i32
    return %arg0, %c0_i32, %c0_i32_0 : i32, i32, i32
  }
}

module attributes {stable_mosaic.version = 11 : i64} {
  func.func @_enc_block_kernel(%arg0: i32, %arg1: memref<1x16x32xf32, #tpu.memory_space<vmem>>, %arg2: memref<16x32xf32, #tpu.memory_space<vmem>>, %arg3: memref<1x1x16xf32, #tpu.memory_space<vmem>>, %arg4: memref<4x1x32xf32, #tpu.memory_space<vmem>>, %arg5: memref<4x1x32xf32, #tpu.memory_space<vmem>>, %arg6: memref<2x7x32xf32, #tpu.memory_space<vmem>>, %arg7: memref<2x32x32xf32, #tpu.memory_space<vmem>>, %arg8: memref<2x1x32xf32, #tpu.memory_space<vmem>>, %arg9: memref<4x32x8xf32, #tpu.memory_space<vmem>>, %arg10: memref<4x32x8xf32, #tpu.memory_space<vmem>>, %arg11: memref<4x32x8xf32, #tpu.memory_space<vmem>>, %arg12: memref<4x8x32xf32, #tpu.memory_space<vmem>>, %arg13: memref<32x32xf32, #tpu.memory_space<vmem>>, %arg14: memref<1x32xf32, #tpu.memory_space<vmem>>, %arg15: memref<32x32xf32, #tpu.memory_space<vmem>>, %arg16: memref<1x32xf32, #tpu.memory_space<vmem>>, %arg17: memref<1x16x32xf32, #tpu.memory_space<vmem>>) attributes {dimension_semantics = [#tpu.dimension_semantics<parallel>], iteration_bounds = array<i64: 2>, scalar_prefetch = 0 : i64, scratch_operands = 0 : i64, tpu.core_type = #tpu.core_type<tc>, window_params = [{transform_indices = @transform_0, window_bounds = array<i64: 1, 16, 32>}, {pipeline_mode = #tpu.pipeline_mode<synchronous>, transform_indices = @transform_1, window_bounds = array<i64: 16, 32>}, {transform_indices = @transform_2, window_bounds = array<i64: 1, 1, 16>}, {pipeline_mode = #tpu.pipeline_mode<synchronous>, transform_indices = @transform_3, window_bounds = array<i64: 4, 1, 32>}, {pipeline_mode = #tpu.pipeline_mode<synchronous>, transform_indices = @transform_4, window_bounds = array<i64: 4, 1, 32>}, {pipeline_mode = #tpu.pipeline_mode<synchronous>, transform_indices = @transform_5, window_bounds = array<i64: 2, 7, 32>}, {pipeline_mode = #tpu.pipeline_mode<synchronous>, transform_indices = @transform_6, window_bounds = array<i64: 2, 32, 32>}, {pipeline_mode = #tpu.pipeline_mode<synchronous>, transform_indices = @transform_7, window_bounds = array<i64: 2, 1, 32>}, {pipeline_mode = #tpu.pipeline_mode<synchronous>, transform_indices = @transform_8, window_bounds = array<i64: 4, 32, 8>}, {pipeline_mode = #tpu.pipeline_mode<synchronous>, transform_indices = @transform_9, window_bounds = array<i64: 4, 32, 8>}, {pipeline_mode = #tpu.pipeline_mode<synchronous>, transform_indices = @transform_10, window_bounds = array<i64: 4, 32, 8>}, {pipeline_mode = #tpu.pipeline_mode<synchronous>, transform_indices = @transform_11, window_bounds = array<i64: 4, 8, 32>}, {pipeline_mode = #tpu.pipeline_mode<synchronous>, transform_indices = @transform_12, window_bounds = array<i64: 32, 32>}, {pipeline_mode = #tpu.pipeline_mode<synchronous>, transform_indices = @transform_13, window_bounds = array<i64: 1, 32>}, {pipeline_mode = #tpu.pipeline_mode<synchronous>, transform_indices = @transform_14, window_bounds = array<i64: 32, 32>}, {pipeline_mode = #tpu.pipeline_mode<synchronous>, transform_indices = @transform_15, window_bounds = array<i64: 1, 32>}, {transform_indices = @transform_16, window_bounds = array<i64: 1, 16, 32>}]} {
    %c0 = arith.constant 0 : index
    %c0_0 = arith.constant 0 : index
    %c0_1 = arith.constant 0 : index
    %0 = vector.load %arg1[%c0, %c0_0, %c0_1] : memref<1x16x32xf32, #tpu.memory_space<vmem>>, vector<1x16x32xf32>
    %1 = vector.shape_cast %0 : vector<1x16x32xf32> to vector<16x32xf32>
    %c0_2 = arith.constant 0 : index
    %c0_3 = arith.constant 0 : index
    %2 = vector.load %arg2[%c0_2, %c0_3] : memref<16x32xf32, #tpu.memory_space<vmem>>, vector<16x32xf32>
    %3 = arith.addf %1, %2 : vector<16x32xf32>
    %cst = arith.constant dense<0.000000e+00> : vector<16xf32>
    %4 = vector.multi_reduction <add>, %3, %cst [1] : vector<16x32xf32> to vector<16xf32>
    %5 = vector.shape_cast %4 : vector<16xf32> to vector<16x1xf32>
    %cst_4 = arith.constant 3.200000e+01 : f32
    %6 = vector.broadcast %cst_4 : f32 to vector<16x1xf32>
    %7 = arith.divf %5, %6 : vector<16x1xf32>
    %8 = vector.broadcast %7 : vector<16x1xf32> to vector<16x32xf32>
    %9 = arith.subf %3, %8 : vector<16x32xf32>
    %10 = arith.mulf %9, %9 : vector<16x32xf32>
    %cst_5 = arith.constant dense<0.000000e+00> : vector<16xf32>
    %11 = vector.multi_reduction <add>, %10, %cst_5 [1] : vector<16x32xf32> to vector<16xf32>
    %12 = vector.shape_cast %11 : vector<16xf32> to vector<16x1xf32>
    %cst_6 = arith.constant 3.200000e+01 : f32
    %13 = vector.broadcast %cst_6 : f32 to vector<16x1xf32>
    %14 = arith.divf %12, %13 : vector<16x1xf32>
    %cst_7 = arith.constant 9.99999974E-6 : f32
    %15 = vector.broadcast %cst_7 : f32 to vector<16x1xf32>
    %16 = arith.addf %14, %15 : vector<16x1xf32>
    %17 = math.rsqrt %16 : vector<16x1xf32>
    %18 = vector.broadcast %17 : vector<16x1xf32> to vector<16x32xf32>
    %19 = arith.mulf %9, %18 : vector<16x32xf32>
    %c0_8 = arith.constant 0 : index
    %c0_9 = arith.constant 0 : index
    %c0_10 = arith.constant 0 : index
    %20 = vector.load %arg4[%c0_8, %c0_9, %c0_10] : memref<4x1x32xf32, #tpu.memory_space<vmem>>, vector<1x1x32xf32>
    %21 = vector.shape_cast %20 : vector<1x1x32xf32> to vector<1x32xf32>
    %22 = vector.broadcast %21 : vector<1x32xf32> to vector<16x32xf32>
    %23 = arith.mulf %19, %22 : vector<16x32xf32>
    %c0_11 = arith.constant 0 : index
    %c0_12 = arith.constant 0 : index
    %c0_13 = arith.constant 0 : index
    %24 = vector.load %arg5[%c0_11, %c0_12, %c0_13] : memref<4x1x32xf32, #tpu.memory_space<vmem>>, vector<1x1x32xf32>
    %25 = vector.shape_cast %24 : vector<1x1x32xf32> to vector<1x32xf32>
    %26 = vector.broadcast %25 : vector<1x32xf32> to vector<16x32xf32>
    %27 = arith.addf %23, %26 : vector<16x32xf32>
    %c0_14 = arith.constant 0 : index
    %c0_15 = arith.constant 0 : index
    %c0_16 = arith.constant 0 : index
    %28 = vector.load %arg6[%c0_14, %c0_15, %c0_16] : memref<2x7x32xf32, #tpu.memory_space<vmem>>, vector<1x7x32xf32>
    %29 = vector.shape_cast %28 : vector<1x7x32xf32> to vector<7x32xf32>
    %30 = tpu.iota {dimensions = array<i32: 0>} : vector<16x16xi32>
    %31 = tpu.iota {dimensions = array<i32: 1>} : vector<16x16xi32>
    %cst_17 = arith.constant 0.000000e+00 : f32
    %32 = vector.broadcast %cst_17 : f32 to vector<16x32xf32>
    %c-3_i32 = arith.constant -3 : i32
    %33 = vector.broadcast %c-3_i32 : i32 to vector<16x16xi32>
    %34 = arith.addi %30, %33 : vector<16x16xi32>
    %35 = arith.cmpi eq, %31, %34 : vector<16x16xi32>
    %cst_18 = arith.constant 1.000000e+00 : f32
    %cst_19 = arith.constant 0.000000e+00 : f32
    %36 = vector.broadcast %cst_18 : f32 to vector<16x16xf32>
    %37 = vector.broadcast %cst_19 : f32 to vector<16x16xf32>
    %38 = arith.select %35, %36, %37 : vector<16x16xi1>, vector<16x16xf32>
    %cst_20 = arith.constant dense<0.000000e+00> : vector<16x32xf32>
    %39 = tpu.matmul %38, %27, %cst_20 {dimension_numbers = #tpu.dot_dimension_numbers<[1], [0], [0], [1], [0, 0, 1, 1], [], []>} : vector<16x16xf32>, vector<16x32xf32>, vector<16x32xf32> -> vector<16x32xf32>
    %40 = vector.extract_strided_slice %29 {offsets = [0, 0], sizes = [1, 32], strides = [1, 1]} : vector<7x32xf32> to vector<1x32xf32>
    %41 = vector.broadcast %40 : vector<1x32xf32> to vector<16x32xf32>
    %42 = arith.mulf %39, %41 : vector<16x32xf32>
    %43 = arith.addf %32, %42 : vector<16x32xf32>
    %c-2_i32 = arith.constant -2 : i32
    %44 = vector.broadcast %c-2_i32 : i32 to vector<16x16xi32>
    %45 = arith.addi %30, %44 : vector<16x16xi32>
    %46 = arith.cmpi eq, %31, %45 : vector<16x16xi32>
    %cst_21 = arith.constant 1.000000e+00 : f32
    %cst_22 = arith.constant 0.000000e+00 : f32
    %47 = vector.broadcast %cst_21 : f32 to vector<16x16xf32>
    %48 = vector.broadcast %cst_22 : f32 to vector<16x16xf32>
    %49 = arith.select %46, %47, %48 : vector<16x16xi1>, vector<16x16xf32>
    %cst_23 = arith.constant dense<0.000000e+00> : vector<16x32xf32>
    %50 = tpu.matmul %49, %27, %cst_23 {dimension_numbers = #tpu.dot_dimension_numbers<[1], [0], [0], [1], [0, 0, 1, 1], [], []>} : vector<16x16xf32>, vector<16x32xf32>, vector<16x32xf32> -> vector<16x32xf32>
    %51 = vector.extract_strided_slice %29 {offsets = [1, 0], sizes = [1, 32], strides = [1, 1]} : vector<7x32xf32> to vector<1x32xf32>
    %52 = vector.broadcast %51 : vector<1x32xf32> to vector<16x32xf32>
    %53 = arith.mulf %50, %52 : vector<16x32xf32>
    %54 = arith.addf %43, %53 : vector<16x32xf32>
    %c-1_i32 = arith.constant -1 : i32
    %55 = vector.broadcast %c-1_i32 : i32 to vector<16x16xi32>
    %56 = arith.addi %30, %55 : vector<16x16xi32>
    %57 = arith.cmpi eq, %31, %56 : vector<16x16xi32>
    %cst_24 = arith.constant 1.000000e+00 : f32
    %cst_25 = arith.constant 0.000000e+00 : f32
    %58 = vector.broadcast %cst_24 : f32 to vector<16x16xf32>
    %59 = vector.broadcast %cst_25 : f32 to vector<16x16xf32>
    %60 = arith.select %57, %58, %59 : vector<16x16xi1>, vector<16x16xf32>
    %cst_26 = arith.constant dense<0.000000e+00> : vector<16x32xf32>
    %61 = tpu.matmul %60, %27, %cst_26 {dimension_numbers = #tpu.dot_dimension_numbers<[1], [0], [0], [1], [0, 0, 1, 1], [], []>} : vector<16x16xf32>, vector<16x32xf32>, vector<16x32xf32> -> vector<16x32xf32>
    %62 = vector.extract_strided_slice %29 {offsets = [2, 0], sizes = [1, 32], strides = [1, 1]} : vector<7x32xf32> to vector<1x32xf32>
    %63 = vector.broadcast %62 : vector<1x32xf32> to vector<16x32xf32>
    %64 = arith.mulf %61, %63 : vector<16x32xf32>
    %65 = arith.addf %54, %64 : vector<16x32xf32>
    %c0_i32 = arith.constant 0 : i32
    %66 = vector.broadcast %c0_i32 : i32 to vector<16x16xi32>
    %67 = arith.addi %30, %66 : vector<16x16xi32>
    %68 = arith.cmpi eq, %31, %67 : vector<16x16xi32>
    %cst_27 = arith.constant 1.000000e+00 : f32
    %cst_28 = arith.constant 0.000000e+00 : f32
    %69 = vector.broadcast %cst_27 : f32 to vector<16x16xf32>
    %70 = vector.broadcast %cst_28 : f32 to vector<16x16xf32>
    %71 = arith.select %68, %69, %70 : vector<16x16xi1>, vector<16x16xf32>
    %cst_29 = arith.constant dense<0.000000e+00> : vector<16x32xf32>
    %72 = tpu.matmul %71, %27, %cst_29 {dimension_numbers = #tpu.dot_dimension_numbers<[1], [0], [0], [1], [0, 0, 1, 1], [], []>} : vector<16x16xf32>, vector<16x32xf32>, vector<16x32xf32> -> vector<16x32xf32>
    %73 = vector.extract_strided_slice %29 {offsets = [3, 0], sizes = [1, 32], strides = [1, 1]} : vector<7x32xf32> to vector<1x32xf32>
    %74 = vector.broadcast %73 : vector<1x32xf32> to vector<16x32xf32>
    %75 = arith.mulf %72, %74 : vector<16x32xf32>
    %76 = arith.addf %65, %75 : vector<16x32xf32>
    %c1_i32 = arith.constant 1 : i32
    %77 = vector.broadcast %c1_i32 : i32 to vector<16x16xi32>
    %78 = arith.addi %30, %77 : vector<16x16xi32>
    %79 = arith.cmpi eq, %31, %78 : vector<16x16xi32>
    %cst_30 = arith.constant 1.000000e+00 : f32
    %cst_31 = arith.constant 0.000000e+00 : f32
    %80 = vector.broadcast %cst_30 : f32 to vector<16x16xf32>
    %81 = vector.broadcast %cst_31 : f32 to vector<16x16xf32>
    %82 = arith.select %79, %80, %81 : vector<16x16xi1>, vector<16x16xf32>
    %cst_32 = arith.constant dense<0.000000e+00> : vector<16x32xf32>
    %83 = tpu.matmul %82, %27, %cst_32 {dimension_numbers = #tpu.dot_dimension_numbers<[1], [0], [0], [1], [0, 0, 1, 1], [], []>} : vector<16x16xf32>, vector<16x32xf32>, vector<16x32xf32> -> vector<16x32xf32>
    %84 = vector.extract_strided_slice %29 {offsets = [4, 0], sizes = [1, 32], strides = [1, 1]} : vector<7x32xf32> to vector<1x32xf32>
    %85 = vector.broadcast %84 : vector<1x32xf32> to vector<16x32xf32>
    %86 = arith.mulf %83, %85 : vector<16x32xf32>
    %87 = arith.addf %76, %86 : vector<16x32xf32>
    %c2_i32 = arith.constant 2 : i32
    %88 = vector.broadcast %c2_i32 : i32 to vector<16x16xi32>
    %89 = arith.addi %30, %88 : vector<16x16xi32>
    %90 = arith.cmpi eq, %31, %89 : vector<16x16xi32>
    %cst_33 = arith.constant 1.000000e+00 : f32
    %cst_34 = arith.constant 0.000000e+00 : f32
    %91 = vector.broadcast %cst_33 : f32 to vector<16x16xf32>
    %92 = vector.broadcast %cst_34 : f32 to vector<16x16xf32>
    %93 = arith.select %90, %91, %92 : vector<16x16xi1>, vector<16x16xf32>
    %cst_35 = arith.constant dense<0.000000e+00> : vector<16x32xf32>
    %94 = tpu.matmul %93, %27, %cst_35 {dimension_numbers = #tpu.dot_dimension_numbers<[1], [0], [0], [1], [0, 0, 1, 1], [], []>} : vector<16x16xf32>, vector<16x32xf32>, vector<16x32xf32> -> vector<16x32xf32>
    %95 = vector.extract_strided_slice %29 {offsets = [5, 0], sizes = [1, 32], strides = [1, 1]} : vector<7x32xf32> to vector<1x32xf32>
    %96 = vector.broadcast %95 : vector<1x32xf32> to vector<16x32xf32>
    %97 = arith.mulf %94, %96 : vector<16x32xf32>
    %98 = arith.addf %87, %97 : vector<16x32xf32>
    %c3_i32 = arith.constant 3 : i32
    %99 = vector.broadcast %c3_i32 : i32 to vector<16x16xi32>
    %100 = arith.addi %30, %99 : vector<16x16xi32>
    %101 = arith.cmpi eq, %31, %100 : vector<16x16xi32>
    %cst_36 = arith.constant 1.000000e+00 : f32
    %cst_37 = arith.constant 0.000000e+00 : f32
    %102 = vector.broadcast %cst_36 : f32 to vector<16x16xf32>
    %103 = vector.broadcast %cst_37 : f32 to vector<16x16xf32>
    %104 = arith.select %101, %102, %103 : vector<16x16xi1>, vector<16x16xf32>
    %cst_38 = arith.constant dense<0.000000e+00> : vector<16x32xf32>
    %105 = tpu.matmul %104, %27, %cst_38 {dimension_numbers = #tpu.dot_dimension_numbers<[1], [0], [0], [1], [0, 0, 1, 1], [], []>} : vector<16x16xf32>, vector<16x32xf32>, vector<16x32xf32> -> vector<16x32xf32>
    %106 = vector.extract_strided_slice %29 {offsets = [6, 0], sizes = [1, 32], strides = [1, 1]} : vector<7x32xf32> to vector<1x32xf32>
    %107 = vector.broadcast %106 : vector<1x32xf32> to vector<16x32xf32>
    %108 = arith.mulf %105, %107 : vector<16x32xf32>
    %109 = arith.addf %98, %108 : vector<16x32xf32>
    %c0_39 = arith.constant 0 : index
    %c0_40 = arith.constant 0 : index
    %c0_41 = arith.constant 0 : index
    %110 = vector.load %arg7[%c0_39, %c0_40, %c0_41] : memref<2x32x32xf32, #tpu.memory_space<vmem>>, vector<1x32x32xf32>
    %111 = vector.shape_cast %110 : vector<1x32x32xf32> to vector<32x32xf32>
    %cst_42 = arith.constant dense<0.000000e+00> : vector<16x32xf32>
    %112 = tpu.matmul %109, %111, %cst_42 {dimension_numbers = #tpu.dot_dimension_numbers<[1], [0], [0], [1], [0, 0, 1, 1], [], []>} : vector<16x32xf32>, vector<32x32xf32>, vector<16x32xf32> -> vector<16x32xf32>
    %c0_43 = arith.constant 0 : index
    %c0_44 = arith.constant 0 : index
    %c0_45 = arith.constant 0 : index
    %113 = vector.load %arg8[%c0_43, %c0_44, %c0_45] : memref<2x1x32xf32, #tpu.memory_space<vmem>>, vector<1x1x32xf32>
    %114 = vector.shape_cast %113 : vector<1x1x32xf32> to vector<1x32xf32>
    %115 = vector.broadcast %114 : vector<1x32xf32> to vector<16x32xf32>
    %116 = arith.addf %112, %115 : vector<16x32xf32>
    %cst_46 = arith.constant 0.000000e+00 : f32
    %117 = vector.broadcast %cst_46 : f32 to vector<16x32xf32>
    %118 = arith.maximumf %116, %117 : vector<16x32xf32>
    %119 = arith.addf %118, %3 : vector<16x32xf32>
    %cst_47 = arith.constant dense<0.000000e+00> : vector<16xf32>
    %120 = vector.multi_reduction <add>, %119, %cst_47 [1] : vector<16x32xf32> to vector<16xf32>
    %121 = vector.shape_cast %120 : vector<16xf32> to vector<16x1xf32>
    %cst_48 = arith.constant 3.200000e+01 : f32
    %122 = vector.broadcast %cst_48 : f32 to vector<16x1xf32>
    %123 = arith.divf %121, %122 : vector<16x1xf32>
    %124 = vector.broadcast %123 : vector<16x1xf32> to vector<16x32xf32>
    %125 = arith.subf %119, %124 : vector<16x32xf32>
    %126 = arith.mulf %125, %125 : vector<16x32xf32>
    %cst_49 = arith.constant dense<0.000000e+00> : vector<16xf32>
    %127 = vector.multi_reduction <add>, %126, %cst_49 [1] : vector<16x32xf32> to vector<16xf32>
    %128 = vector.shape_cast %127 : vector<16xf32> to vector<16x1xf32>
    %cst_50 = arith.constant 3.200000e+01 : f32
    %129 = vector.broadcast %cst_50 : f32 to vector<16x1xf32>
    %130 = arith.divf %128, %129 : vector<16x1xf32>
    %cst_51 = arith.constant 9.99999974E-6 : f32
    %131 = vector.broadcast %cst_51 : f32 to vector<16x1xf32>
    %132 = arith.addf %130, %131 : vector<16x1xf32>
    %133 = math.rsqrt %132 : vector<16x1xf32>
    %134 = vector.broadcast %133 : vector<16x1xf32> to vector<16x32xf32>
    %135 = arith.mulf %125, %134 : vector<16x32xf32>
    %c1 = arith.constant 1 : index
    %c0_52 = arith.constant 0 : index
    %c0_53 = arith.constant 0 : index
    %136 = vector.load %arg4[%c1, %c0_52, %c0_53] : memref<4x1x32xf32, #tpu.memory_space<vmem>>, vector<1x1x32xf32>
    %137 = vector.shape_cast %136 : vector<1x1x32xf32> to vector<1x32xf32>
    %138 = vector.broadcast %137 : vector<1x32xf32> to vector<16x32xf32>
    %139 = arith.mulf %135, %138 : vector<16x32xf32>
    %c1_54 = arith.constant 1 : index
    %c0_55 = arith.constant 0 : index
    %c0_56 = arith.constant 0 : index
    %140 = vector.load %arg5[%c1_54, %c0_55, %c0_56] : memref<4x1x32xf32, #tpu.memory_space<vmem>>, vector<1x1x32xf32>
    %141 = vector.shape_cast %140 : vector<1x1x32xf32> to vector<1x32xf32>
    %142 = vector.broadcast %141 : vector<1x32xf32> to vector<16x32xf32>
    %143 = arith.addf %139, %142 : vector<16x32xf32>
    %c1_57 = arith.constant 1 : index
    %c0_58 = arith.constant 0 : index
    %c0_59 = arith.constant 0 : index
    %144 = vector.load %arg6[%c1_57, %c0_58, %c0_59] : memref<2x7x32xf32, #tpu.memory_space<vmem>>, vector<1x7x32xf32>
    %145 = vector.shape_cast %144 : vector<1x7x32xf32> to vector<7x32xf32>
    %146 = tpu.iota {dimensions = array<i32: 0>} : vector<16x16xi32>
    %147 = tpu.iota {dimensions = array<i32: 1>} : vector<16x16xi32>
    %cst_60 = arith.constant 0.000000e+00 : f32
    %148 = vector.broadcast %cst_60 : f32 to vector<16x32xf32>
    %c-3_i32_61 = arith.constant -3 : i32
    %149 = vector.broadcast %c-3_i32_61 : i32 to vector<16x16xi32>
    %150 = arith.addi %146, %149 : vector<16x16xi32>
    %151 = arith.cmpi eq, %147, %150 : vector<16x16xi32>
    %cst_62 = arith.constant 1.000000e+00 : f32
    %cst_63 = arith.constant 0.000000e+00 : f32
    %152 = vector.broadcast %cst_62 : f32 to vector<16x16xf32>
    %153 = vector.broadcast %cst_63 : f32 to vector<16x16xf32>
    %154 = arith.select %151, %152, %153 : vector<16x16xi1>, vector<16x16xf32>
    %cst_64 = arith.constant dense<0.000000e+00> : vector<16x32xf32>
    %155 = tpu.matmul %154, %143, %cst_64 {dimension_numbers = #tpu.dot_dimension_numbers<[1], [0], [0], [1], [0, 0, 1, 1], [], []>} : vector<16x16xf32>, vector<16x32xf32>, vector<16x32xf32> -> vector<16x32xf32>
    %156 = vector.extract_strided_slice %145 {offsets = [0, 0], sizes = [1, 32], strides = [1, 1]} : vector<7x32xf32> to vector<1x32xf32>
    %157 = vector.broadcast %156 : vector<1x32xf32> to vector<16x32xf32>
    %158 = arith.mulf %155, %157 : vector<16x32xf32>
    %159 = arith.addf %148, %158 : vector<16x32xf32>
    %c-2_i32_65 = arith.constant -2 : i32
    %160 = vector.broadcast %c-2_i32_65 : i32 to vector<16x16xi32>
    %161 = arith.addi %146, %160 : vector<16x16xi32>
    %162 = arith.cmpi eq, %147, %161 : vector<16x16xi32>
    %cst_66 = arith.constant 1.000000e+00 : f32
    %cst_67 = arith.constant 0.000000e+00 : f32
    %163 = vector.broadcast %cst_66 : f32 to vector<16x16xf32>
    %164 = vector.broadcast %cst_67 : f32 to vector<16x16xf32>
    %165 = arith.select %162, %163, %164 : vector<16x16xi1>, vector<16x16xf32>
    %cst_68 = arith.constant dense<0.000000e+00> : vector<16x32xf32>
    %166 = tpu.matmul %165, %143, %cst_68 {dimension_numbers = #tpu.dot_dimension_numbers<[1], [0], [0], [1], [0, 0, 1, 1], [], []>} : vector<16x16xf32>, vector<16x32xf32>, vector<16x32xf32> -> vector<16x32xf32>
    %167 = vector.extract_strided_slice %145 {offsets = [1, 0], sizes = [1, 32], strides = [1, 1]} : vector<7x32xf32> to vector<1x32xf32>
    %168 = vector.broadcast %167 : vector<1x32xf32> to vector<16x32xf32>
    %169 = arith.mulf %166, %168 : vector<16x32xf32>
    %170 = arith.addf %159, %169 : vector<16x32xf32>
    %c-1_i32_69 = arith.constant -1 : i32
    %171 = vector.broadcast %c-1_i32_69 : i32 to vector<16x16xi32>
    %172 = arith.addi %146, %171 : vector<16x16xi32>
    %173 = arith.cmpi eq, %147, %172 : vector<16x16xi32>
    %cst_70 = arith.constant 1.000000e+00 : f32
    %cst_71 = arith.constant 0.000000e+00 : f32
    %174 = vector.broadcast %cst_70 : f32 to vector<16x16xf32>
    %175 = vector.broadcast %cst_71 : f32 to vector<16x16xf32>
    %176 = arith.select %173, %174, %175 : vector<16x16xi1>, vector<16x16xf32>
    %cst_72 = arith.constant dense<0.000000e+00> : vector<16x32xf32>
    %177 = tpu.matmul %176, %143, %cst_72 {dimension_numbers = #tpu.dot_dimension_numbers<[1], [0], [0], [1], [0, 0, 1, 1], [], []>} : vector<16x16xf32>, vector<16x32xf32>, vector<16x32xf32> -> vector<16x32xf32>
    %178 = vector.extract_strided_slice %145 {offsets = [2, 0], sizes = [1, 32], strides = [1, 1]} : vector<7x32xf32> to vector<1x32xf32>
    %179 = vector.broadcast %178 : vector<1x32xf32> to vector<16x32xf32>
    %180 = arith.mulf %177, %179 : vector<16x32xf32>
    %181 = arith.addf %170, %180 : vector<16x32xf32>
    %c0_i32_73 = arith.constant 0 : i32
    %182 = vector.broadcast %c0_i32_73 : i32 to vector<16x16xi32>
    %183 = arith.addi %146, %182 : vector<16x16xi32>
    %184 = arith.cmpi eq, %147, %183 : vector<16x16xi32>
    %cst_74 = arith.constant 1.000000e+00 : f32
    %cst_75 = arith.constant 0.000000e+00 : f32
    %185 = vector.broadcast %cst_74 : f32 to vector<16x16xf32>
    %186 = vector.broadcast %cst_75 : f32 to vector<16x16xf32>
    %187 = arith.select %184, %185, %186 : vector<16x16xi1>, vector<16x16xf32>
    %cst_76 = arith.constant dense<0.000000e+00> : vector<16x32xf32>
    %188 = tpu.matmul %187, %143, %cst_76 {dimension_numbers = #tpu.dot_dimension_numbers<[1], [0], [0], [1], [0, 0, 1, 1], [], []>} : vector<16x16xf32>, vector<16x32xf32>, vector<16x32xf32> -> vector<16x32xf32>
    %189 = vector.extract_strided_slice %145 {offsets = [3, 0], sizes = [1, 32], strides = [1, 1]} : vector<7x32xf32> to vector<1x32xf32>
    %190 = vector.broadcast %189 : vector<1x32xf32> to vector<16x32xf32>
    %191 = arith.mulf %188, %190 : vector<16x32xf32>
    %192 = arith.addf %181, %191 : vector<16x32xf32>
    %c1_i32_77 = arith.constant 1 : i32
    %193 = vector.broadcast %c1_i32_77 : i32 to vector<16x16xi32>
    %194 = arith.addi %146, %193 : vector<16x16xi32>
    %195 = arith.cmpi eq, %147, %194 : vector<16x16xi32>
    %cst_78 = arith.constant 1.000000e+00 : f32
    %cst_79 = arith.constant 0.000000e+00 : f32
    %196 = vector.broadcast %cst_78 : f32 to vector<16x16xf32>
    %197 = vector.broadcast %cst_79 : f32 to vector<16x16xf32>
    %198 = arith.select %195, %196, %197 : vector<16x16xi1>, vector<16x16xf32>
    %cst_80 = arith.constant dense<0.000000e+00> : vector<16x32xf32>
    %199 = tpu.matmul %198, %143, %cst_80 {dimension_numbers = #tpu.dot_dimension_numbers<[1], [0], [0], [1], [0, 0, 1, 1], [], []>} : vector<16x16xf32>, vector<16x32xf32>, vector<16x32xf32> -> vector<16x32xf32>
    %200 = vector.extract_strided_slice %145 {offsets = [4, 0], sizes = [1, 32], strides = [1, 1]} : vector<7x32xf32> to vector<1x32xf32>
    %201 = vector.broadcast %200 : vector<1x32xf32> to vector<16x32xf32>
    %202 = arith.mulf %199, %201 : vector<16x32xf32>
    %203 = arith.addf %192, %202 : vector<16x32xf32>
    %c2_i32_81 = arith.constant 2 : i32
    %204 = vector.broadcast %c2_i32_81 : i32 to vector<16x16xi32>
    %205 = arith.addi %146, %204 : vector<16x16xi32>
    %206 = arith.cmpi eq, %147, %205 : vector<16x16xi32>
    %cst_82 = arith.constant 1.000000e+00 : f32
    %cst_83 = arith.constant 0.000000e+00 : f32
    %207 = vector.broadcast %cst_82 : f32 to vector<16x16xf32>
    %208 = vector.broadcast %cst_83 : f32 to vector<16x16xf32>
    %209 = arith.select %206, %207, %208 : vector<16x16xi1>, vector<16x16xf32>
    %cst_84 = arith.constant dense<0.000000e+00> : vector<16x32xf32>
    %210 = tpu.matmul %209, %143, %cst_84 {dimension_numbers = #tpu.dot_dimension_numbers<[1], [0], [0], [1], [0, 0, 1, 1], [], []>} : vector<16x16xf32>, vector<16x32xf32>, vector<16x32xf32> -> vector<16x32xf32>
    %211 = vector.extract_strided_slice %145 {offsets = [5, 0], sizes = [1, 32], strides = [1, 1]} : vector<7x32xf32> to vector<1x32xf32>
    %212 = vector.broadcast %211 : vector<1x32xf32> to vector<16x32xf32>
    %213 = arith.mulf %210, %212 : vector<16x32xf32>
    %214 = arith.addf %203, %213 : vector<16x32xf32>
    %c3_i32_85 = arith.constant 3 : i32
    %215 = vector.broadcast %c3_i32_85 : i32 to vector<16x16xi32>
    %216 = arith.addi %146, %215 : vector<16x16xi32>
    %217 = arith.cmpi eq, %147, %216 : vector<16x16xi32>
    %cst_86 = arith.constant 1.000000e+00 : f32
    %cst_87 = arith.constant 0.000000e+00 : f32
    %218 = vector.broadcast %cst_86 : f32 to vector<16x16xf32>
    %219 = vector.broadcast %cst_87 : f32 to vector<16x16xf32>
    %220 = arith.select %217, %218, %219 : vector<16x16xi1>, vector<16x16xf32>
    %cst_88 = arith.constant dense<0.000000e+00> : vector<16x32xf32>
    %221 = tpu.matmul %220, %143, %cst_88 {dimension_numbers = #tpu.dot_dimension_numbers<[1], [0], [0], [1], [0, 0, 1, 1], [], []>} : vector<16x16xf32>, vector<16x32xf32>, vector<16x32xf32> -> vector<16x32xf32>
    %222 = vector.extract_strided_slice %145 {offsets = [6, 0], sizes = [1, 32], strides = [1, 1]} : vector<7x32xf32> to vector<1x32xf32>
    %223 = vector.broadcast %222 : vector<1x32xf32> to vector<16x32xf32>
    %224 = arith.mulf %221, %223 : vector<16x32xf32>
    %225 = arith.addf %214, %224 : vector<16x32xf32>
    %c1_89 = arith.constant 1 : index
    %c0_90 = arith.constant 0 : index
    %c0_91 = arith.constant 0 : index
    %226 = vector.load %arg7[%c1_89, %c0_90, %c0_91] : memref<2x32x32xf32, #tpu.memory_space<vmem>>, vector<1x32x32xf32>
    %227 = vector.shape_cast %226 : vector<1x32x32xf32> to vector<32x32xf32>
    %cst_92 = arith.constant dense<0.000000e+00> : vector<16x32xf32>
    %228 = tpu.matmul %225, %227, %cst_92 {dimension_numbers = #tpu.dot_dimension_numbers<[1], [0], [0], [1], [0, 0, 1, 1], [], []>} : vector<16x32xf32>, vector<32x32xf32>, vector<16x32xf32> -> vector<16x32xf32>
    %c1_93 = arith.constant 1 : index
    %c0_94 = arith.constant 0 : index
    %c0_95 = arith.constant 0 : index
    %229 = vector.load %arg8[%c1_93, %c0_94, %c0_95] : memref<2x1x32xf32, #tpu.memory_space<vmem>>, vector<1x1x32xf32>
    %230 = vector.shape_cast %229 : vector<1x1x32xf32> to vector<1x32xf32>
    %231 = vector.broadcast %230 : vector<1x32xf32> to vector<16x32xf32>
    %232 = arith.addf %228, %231 : vector<16x32xf32>
    %cst_96 = arith.constant 0.000000e+00 : f32
    %233 = vector.broadcast %cst_96 : f32 to vector<16x32xf32>
    %234 = arith.maximumf %232, %233 : vector<16x32xf32>
    %235 = arith.addf %234, %119 : vector<16x32xf32>
    %cst_97 = arith.constant dense<0.000000e+00> : vector<16xf32>
    %236 = vector.multi_reduction <add>, %235, %cst_97 [1] : vector<16x32xf32> to vector<16xf32>
    %237 = vector.shape_cast %236 : vector<16xf32> to vector<16x1xf32>
    %cst_98 = arith.constant 3.200000e+01 : f32
    %238 = vector.broadcast %cst_98 : f32 to vector<16x1xf32>
    %239 = arith.divf %237, %238 : vector<16x1xf32>
    %240 = vector.broadcast %239 : vector<16x1xf32> to vector<16x32xf32>
    %241 = arith.subf %235, %240 : vector<16x32xf32>
    %242 = arith.mulf %241, %241 : vector<16x32xf32>
    %cst_99 = arith.constant dense<0.000000e+00> : vector<16xf32>
    %243 = vector.multi_reduction <add>, %242, %cst_99 [1] : vector<16x32xf32> to vector<16xf32>
    %244 = vector.shape_cast %243 : vector<16xf32> to vector<16x1xf32>
    %cst_100 = arith.constant 3.200000e+01 : f32
    %245 = vector.broadcast %cst_100 : f32 to vector<16x1xf32>
    %246 = arith.divf %244, %245 : vector<16x1xf32>
    %cst_101 = arith.constant 9.99999974E-6 : f32
    %247 = vector.broadcast %cst_101 : f32 to vector<16x1xf32>
    %248 = arith.addf %246, %247 : vector<16x1xf32>
    %249 = math.rsqrt %248 : vector<16x1xf32>
    %250 = vector.broadcast %249 : vector<16x1xf32> to vector<16x32xf32>
    %251 = arith.mulf %241, %250 : vector<16x32xf32>
    %c2 = arith.constant 2 : index
    %c0_102 = arith.constant 0 : index
    %c0_103 = arith.constant 0 : index
    %252 = vector.load %arg4[%c2, %c0_102, %c0_103] : memref<4x1x32xf32, #tpu.memory_space<vmem>>, vector<1x1x32xf32>
    %253 = vector.shape_cast %252 : vector<1x1x32xf32> to vector<1x32xf32>
    %254 = vector.broadcast %253 : vector<1x32xf32> to vector<16x32xf32>
    %255 = arith.mulf %251, %254 : vector<16x32xf32>
    %c2_104 = arith.constant 2 : index
    %c0_105 = arith.constant 0 : index
    %c0_106 = arith.constant 0 : index
    %256 = vector.load %arg5[%c2_104, %c0_105, %c0_106] : memref<4x1x32xf32, #tpu.memory_space<vmem>>, vector<1x1x32xf32>
    %257 = vector.shape_cast %256 : vector<1x1x32xf32> to vector<1x32xf32>
    %258 = vector.broadcast %257 : vector<1x32xf32> to vector<16x32xf32>
    %259 = arith.addf %255, %258 : vector<16x32xf32>
    %c0_107 = arith.constant 0 : index
    %c0_108 = arith.constant 0 : index
    %c0_109 = arith.constant 0 : index
    %260 = vector.load %arg3[%c0_107, %c0_108, %c0_109] : memref<1x1x16xf32, #tpu.memory_space<vmem>>, vector<1x1x16xf32>
    %261 = vector.shape_cast %260 : vector<1x1x16xf32> to vector<1x16xf32>
    %cst_110 = arith.constant 0.000000e+00 : f32
    %262 = vector.broadcast %cst_110 : f32 to vector<16x32xf32>
    %c0_111 = arith.constant 0 : index
    %c0_112 = arith.constant 0 : index
    %c0_113 = arith.constant 0 : index
    %263 = vector.load %arg9[%c0_111, %c0_112, %c0_113] : memref<4x32x8xf32, #tpu.memory_space<vmem>>, vector<1x32x8xf32>
    %264 = vector.shape_cast %263 : vector<1x32x8xf32> to vector<32x8xf32>
    %cst_114 = arith.constant dense<0.000000e+00> : vector<16x8xf32>
    %265 = tpu.matmul %259, %264, %cst_114 {dimension_numbers = #tpu.dot_dimension_numbers<[1], [0], [0], [1], [0, 0, 1, 1], [], []>} : vector<16x32xf32>, vector<32x8xf32>, vector<16x8xf32> -> vector<16x8xf32>
    %c0_115 = arith.constant 0 : index
    %c0_116 = arith.constant 0 : index
    %c0_117 = arith.constant 0 : index
    %266 = vector.load %arg10[%c0_115, %c0_116, %c0_117] : memref<4x32x8xf32, #tpu.memory_space<vmem>>, vector<1x32x8xf32>
    %267 = vector.shape_cast %266 : vector<1x32x8xf32> to vector<32x8xf32>
    %cst_118 = arith.constant dense<0.000000e+00> : vector<16x8xf32>
    %268 = tpu.matmul %259, %267, %cst_118 {dimension_numbers = #tpu.dot_dimension_numbers<[1], [0], [0], [1], [0, 0, 1, 1], [], []>} : vector<16x32xf32>, vector<32x8xf32>, vector<16x8xf32> -> vector<16x8xf32>
    %c0_119 = arith.constant 0 : index
    %c0_120 = arith.constant 0 : index
    %c0_121 = arith.constant 0 : index
    %269 = vector.load %arg11[%c0_119, %c0_120, %c0_121] : memref<4x32x8xf32, #tpu.memory_space<vmem>>, vector<1x32x8xf32>
    %270 = vector.shape_cast %269 : vector<1x32x8xf32> to vector<32x8xf32>
    %cst_122 = arith.constant dense<0.000000e+00> : vector<16x8xf32>
    %271 = tpu.matmul %259, %270, %cst_122 {dimension_numbers = #tpu.dot_dimension_numbers<[1], [0], [0], [1], [0, 0, 1, 1], [], []>} : vector<16x32xf32>, vector<32x8xf32>, vector<16x8xf32> -> vector<16x8xf32>
    %cst_123 = arith.constant dense<0.000000e+00> : vector<16x16xf32>
    %272 = tpu.matmul %265, %268, %cst_123 {dimension_numbers = #tpu.dot_dimension_numbers<[1], [1], [0], [0], [0, 0, 1, 0], [], []>} : vector<16x8xf32>, vector<16x8xf32>, vector<16x16xf32> -> vector<16x16xf32>
    %cst_124 = arith.constant 0.353553385 : f32
    %273 = vector.broadcast %cst_124 : f32 to vector<16x16xf32>
    %274 = arith.mulf %272, %273 : vector<16x16xf32>
    %275 = vector.broadcast %261 : vector<1x16xf32> to vector<16x16xf32>
    %276 = arith.addf %274, %275 : vector<16x16xf32>
    %cst_125 = arith.constant dense<0xFF800000> : vector<16xf32>
    %277 = vector.multi_reduction <maximumf>, %276, %cst_125 [1] : vector<16x16xf32> to vector<16xf32>
    %278 = vector.shape_cast %277 : vector<16xf32> to vector<16x1xf32>
    %279 = vector.broadcast %278 : vector<16x1xf32> to vector<16x16xf32>
    %280 = arith.subf %276, %279 : vector<16x16xf32>
    %281 = math.exp %280 : vector<16x16xf32>
    %cst_126 = arith.constant dense<0.000000e+00> : vector<16xf32>
    %282 = vector.multi_reduction <add>, %281, %cst_126 [1] : vector<16x16xf32> to vector<16xf32>
    %283 = vector.shape_cast %282 : vector<16xf32> to vector<16x1xf32>
    %284 = vector.broadcast %283 : vector<16x1xf32> to vector<16x16xf32>
    %285 = arith.divf %281, %284 : vector<16x16xf32>
    %cst_127 = arith.constant dense<0.000000e+00> : vector<16x8xf32>
    %286 = tpu.matmul %285, %271, %cst_127 {dimension_numbers = #tpu.dot_dimension_numbers<[1], [0], [0], [1], [0, 0, 1, 1], [], []>} : vector<16x16xf32>, vector<16x8xf32>, vector<16x8xf32> -> vector<16x8xf32>
    %c0_128 = arith.constant 0 : index
    %c0_129 = arith.constant 0 : index
    %c0_130 = arith.constant 0 : index
    %287 = vector.load %arg12[%c0_128, %c0_129, %c0_130] : memref<4x8x32xf32, #tpu.memory_space<vmem>>, vector<1x8x32xf32>
    %288 = vector.shape_cast %287 : vector<1x8x32xf32> to vector<8x32xf32>
    %cst_131 = arith.constant dense<0.000000e+00> : vector<16x32xf32>
    %289 = tpu.matmul %286, %288, %cst_131 {dimension_numbers = #tpu.dot_dimension_numbers<[1], [0], [0], [1], [0, 0, 1, 1], [], []>} : vector<16x8xf32>, vector<8x32xf32>, vector<16x32xf32> -> vector<16x32xf32>
    %290 = arith.addf %262, %289 : vector<16x32xf32>
    %c1_132 = arith.constant 1 : index
    %c0_133 = arith.constant 0 : index
    %c0_134 = arith.constant 0 : index
    %291 = vector.load %arg9[%c1_132, %c0_133, %c0_134] : memref<4x32x8xf32, #tpu.memory_space<vmem>>, vector<1x32x8xf32>
    %292 = vector.shape_cast %291 : vector<1x32x8xf32> to vector<32x8xf32>
    %cst_135 = arith.constant dense<0.000000e+00> : vector<16x8xf32>
    %293 = tpu.matmul %259, %292, %cst_135 {dimension_numbers = #tpu.dot_dimension_numbers<[1], [0], [0], [1], [0, 0, 1, 1], [], []>} : vector<16x32xf32>, vector<32x8xf32>, vector<16x8xf32> -> vector<16x8xf32>
    %c1_136 = arith.constant 1 : index
    %c0_137 = arith.constant 0 : index
    %c0_138 = arith.constant 0 : index
    %294 = vector.load %arg10[%c1_136, %c0_137, %c0_138] : memref<4x32x8xf32, #tpu.memory_space<vmem>>, vector<1x32x8xf32>
    %295 = vector.shape_cast %294 : vector<1x32x8xf32> to vector<32x8xf32>
    %cst_139 = arith.constant dense<0.000000e+00> : vector<16x8xf32>
    %296 = tpu.matmul %259, %295, %cst_139 {dimension_numbers = #tpu.dot_dimension_numbers<[1], [0], [0], [1], [0, 0, 1, 1], [], []>} : vector<16x32xf32>, vector<32x8xf32>, vector<16x8xf32> -> vector<16x8xf32>
    %c1_140 = arith.constant 1 : index
    %c0_141 = arith.constant 0 : index
    %c0_142 = arith.constant 0 : index
    %297 = vector.load %arg11[%c1_140, %c0_141, %c0_142] : memref<4x32x8xf32, #tpu.memory_space<vmem>>, vector<1x32x8xf32>
    %298 = vector.shape_cast %297 : vector<1x32x8xf32> to vector<32x8xf32>
    %cst_143 = arith.constant dense<0.000000e+00> : vector<16x8xf32>
    %299 = tpu.matmul %259, %298, %cst_143 {dimension_numbers = #tpu.dot_dimension_numbers<[1], [0], [0], [1], [0, 0, 1, 1], [], []>} : vector<16x32xf32>, vector<32x8xf32>, vector<16x8xf32> -> vector<16x8xf32>
    %cst_144 = arith.constant dense<0.000000e+00> : vector<16x16xf32>
    %300 = tpu.matmul %293, %296, %cst_144 {dimension_numbers = #tpu.dot_dimension_numbers<[1], [1], [0], [0], [0, 0, 1, 0], [], []>} : vector<16x8xf32>, vector<16x8xf32>, vector<16x16xf32> -> vector<16x16xf32>
    %cst_145 = arith.constant 0.353553385 : f32
    %301 = vector.broadcast %cst_145 : f32 to vector<16x16xf32>
    %302 = arith.mulf %300, %301 : vector<16x16xf32>
    %303 = vector.broadcast %261 : vector<1x16xf32> to vector<16x16xf32>
    %304 = arith.addf %302, %303 : vector<16x16xf32>
    %cst_146 = arith.constant dense<0xFF800000> : vector<16xf32>
    %305 = vector.multi_reduction <maximumf>, %304, %cst_146 [1] : vector<16x16xf32> to vector<16xf32>
    %306 = vector.shape_cast %305 : vector<16xf32> to vector<16x1xf32>
    %307 = vector.broadcast %306 : vector<16x1xf32> to vector<16x16xf32>
    %308 = arith.subf %304, %307 : vector<16x16xf32>
    %309 = math.exp %308 : vector<16x16xf32>
    %cst_147 = arith.constant dense<0.000000e+00> : vector<16xf32>
    %310 = vector.multi_reduction <add>, %309, %cst_147 [1] : vector<16x16xf32> to vector<16xf32>
    %311 = vector.shape_cast %310 : vector<16xf32> to vector<16x1xf32>
    %312 = vector.broadcast %311 : vector<16x1xf32> to vector<16x16xf32>
    %313 = arith.divf %309, %312 : vector<16x16xf32>
    %cst_148 = arith.constant dense<0.000000e+00> : vector<16x8xf32>
    %314 = tpu.matmul %313, %299, %cst_148 {dimension_numbers = #tpu.dot_dimension_numbers<[1], [0], [0], [1], [0, 0, 1, 1], [], []>} : vector<16x16xf32>, vector<16x8xf32>, vector<16x8xf32> -> vector<16x8xf32>
    %c1_149 = arith.constant 1 : index
    %c0_150 = arith.constant 0 : index
    %c0_151 = arith.constant 0 : index
    %315 = vector.load %arg12[%c1_149, %c0_150, %c0_151] : memref<4x8x32xf32, #tpu.memory_space<vmem>>, vector<1x8x32xf32>
    %316 = vector.shape_cast %315 : vector<1x8x32xf32> to vector<8x32xf32>
    %cst_152 = arith.constant dense<0.000000e+00> : vector<16x32xf32>
    %317 = tpu.matmul %314, %316, %cst_152 {dimension_numbers = #tpu.dot_dimension_numbers<[1], [0], [0], [1], [0, 0, 1, 1], [], []>} : vector<16x8xf32>, vector<8x32xf32>, vector<16x32xf32> -> vector<16x32xf32>
    %318 = arith.addf %290, %317 : vector<16x32xf32>
    %c2_153 = arith.constant 2 : index
    %c0_154 = arith.constant 0 : index
    %c0_155 = arith.constant 0 : index
    %319 = vector.load %arg9[%c2_153, %c0_154, %c0_155] : memref<4x32x8xf32, #tpu.memory_space<vmem>>, vector<1x32x8xf32>
    %320 = vector.shape_cast %319 : vector<1x32x8xf32> to vector<32x8xf32>
    %cst_156 = arith.constant dense<0.000000e+00> : vector<16x8xf32>
    %321 = tpu.matmul %259, %320, %cst_156 {dimension_numbers = #tpu.dot_dimension_numbers<[1], [0], [0], [1], [0, 0, 1, 1], [], []>} : vector<16x32xf32>, vector<32x8xf32>, vector<16x8xf32> -> vector<16x8xf32>
    %c2_157 = arith.constant 2 : index
    %c0_158 = arith.constant 0 : index
    %c0_159 = arith.constant 0 : index
    %322 = vector.load %arg10[%c2_157, %c0_158, %c0_159] : memref<4x32x8xf32, #tpu.memory_space<vmem>>, vector<1x32x8xf32>
    %323 = vector.shape_cast %322 : vector<1x32x8xf32> to vector<32x8xf32>
    %cst_160 = arith.constant dense<0.000000e+00> : vector<16x8xf32>
    %324 = tpu.matmul %259, %323, %cst_160 {dimension_numbers = #tpu.dot_dimension_numbers<[1], [0], [0], [1], [0, 0, 1, 1], [], []>} : vector<16x32xf32>, vector<32x8xf32>, vector<16x8xf32> -> vector<16x8xf32>
    %c2_161 = arith.constant 2 : index
    %c0_162 = arith.constant 0 : index
    %c0_163 = arith.constant 0 : index
    %325 = vector.load %arg11[%c2_161, %c0_162, %c0_163] : memref<4x32x8xf32, #tpu.memory_space<vmem>>, vector<1x32x8xf32>
    %326 = vector.shape_cast %325 : vector<1x32x8xf32> to vector<32x8xf32>
    %cst_164 = arith.constant dense<0.000000e+00> : vector<16x8xf32>
    %327 = tpu.matmul %259, %326, %cst_164 {dimension_numbers = #tpu.dot_dimension_numbers<[1], [0], [0], [1], [0, 0, 1, 1], [], []>} : vector<16x32xf32>, vector<32x8xf32>, vector<16x8xf32> -> vector<16x8xf32>
    %cst_165 = arith.constant dense<0.000000e+00> : vector<16x16xf32>
    %328 = tpu.matmul %321, %324, %cst_165 {dimension_numbers = #tpu.dot_dimension_numbers<[1], [1], [0], [0], [0, 0, 1, 0], [], []>} : vector<16x8xf32>, vector<16x8xf32>, vector<16x16xf32> -> vector<16x16xf32>
    %cst_166 = arith.constant 0.353553385 : f32
    %329 = vector.broadcast %cst_166 : f32 to vector<16x16xf32>
    %330 = arith.mulf %328, %329 : vector<16x16xf32>
    %331 = vector.broadcast %261 : vector<1x16xf32> to vector<16x16xf32>
    %332 = arith.addf %330, %331 : vector<16x16xf32>
    %cst_167 = arith.constant dense<0xFF800000> : vector<16xf32>
    %333 = vector.multi_reduction <maximumf>, %332, %cst_167 [1] : vector<16x16xf32> to vector<16xf32>
    %334 = vector.shape_cast %333 : vector<16xf32> to vector<16x1xf32>
    %335 = vector.broadcast %334 : vector<16x1xf32> to vector<16x16xf32>
    %336 = arith.subf %332, %335 : vector<16x16xf32>
    %337 = math.exp %336 : vector<16x16xf32>
    %cst_168 = arith.constant dense<0.000000e+00> : vector<16xf32>
    %338 = vector.multi_reduction <add>, %337, %cst_168 [1] : vector<16x16xf32> to vector<16xf32>
    %339 = vector.shape_cast %338 : vector<16xf32> to vector<16x1xf32>
    %340 = vector.broadcast %339 : vector<16x1xf32> to vector<16x16xf32>
    %341 = arith.divf %337, %340 : vector<16x16xf32>
    %cst_169 = arith.constant dense<0.000000e+00> : vector<16x8xf32>
    %342 = tpu.matmul %341, %327, %cst_169 {dimension_numbers = #tpu.dot_dimension_numbers<[1], [0], [0], [1], [0, 0, 1, 1], [], []>} : vector<16x16xf32>, vector<16x8xf32>, vector<16x8xf32> -> vector<16x8xf32>
    %c2_170 = arith.constant 2 : index
    %c0_171 = arith.constant 0 : index
    %c0_172 = arith.constant 0 : index
    %343 = vector.load %arg12[%c2_170, %c0_171, %c0_172] : memref<4x8x32xf32, #tpu.memory_space<vmem>>, vector<1x8x32xf32>
    %344 = vector.shape_cast %343 : vector<1x8x32xf32> to vector<8x32xf32>
    %cst_173 = arith.constant dense<0.000000e+00> : vector<16x32xf32>
    %345 = tpu.matmul %342, %344, %cst_173 {dimension_numbers = #tpu.dot_dimension_numbers<[1], [0], [0], [1], [0, 0, 1, 1], [], []>} : vector<16x8xf32>, vector<8x32xf32>, vector<16x32xf32> -> vector<16x32xf32>
    %346 = arith.addf %318, %345 : vector<16x32xf32>
    %c3 = arith.constant 3 : index
    %c0_174 = arith.constant 0 : index
    %c0_175 = arith.constant 0 : index
    %347 = vector.load %arg9[%c3, %c0_174, %c0_175] : memref<4x32x8xf32, #tpu.memory_space<vmem>>, vector<1x32x8xf32>
    %348 = vector.shape_cast %347 : vector<1x32x8xf32> to vector<32x8xf32>
    %cst_176 = arith.constant dense<0.000000e+00> : vector<16x8xf32>
    %349 = tpu.matmul %259, %348, %cst_176 {dimension_numbers = #tpu.dot_dimension_numbers<[1], [0], [0], [1], [0, 0, 1, 1], [], []>} : vector<16x32xf32>, vector<32x8xf32>, vector<16x8xf32> -> vector<16x8xf32>
    %c3_177 = arith.constant 3 : index
    %c0_178 = arith.constant 0 : index
    %c0_179 = arith.constant 0 : index
    %350 = vector.load %arg10[%c3_177, %c0_178, %c0_179] : memref<4x32x8xf32, #tpu.memory_space<vmem>>, vector<1x32x8xf32>
    %351 = vector.shape_cast %350 : vector<1x32x8xf32> to vector<32x8xf32>
    %cst_180 = arith.constant dense<0.000000e+00> : vector<16x8xf32>
    %352 = tpu.matmul %259, %351, %cst_180 {dimension_numbers = #tpu.dot_dimension_numbers<[1], [0], [0], [1], [0, 0, 1, 1], [], []>} : vector<16x32xf32>, vector<32x8xf32>, vector<16x8xf32> -> vector<16x8xf32>
    %c3_181 = arith.constant 3 : index
    %c0_182 = arith.constant 0 : index
    %c0_183 = arith.constant 0 : index
    %353 = vector.load %arg11[%c3_181, %c0_182, %c0_183] : memref<4x32x8xf32, #tpu.memory_space<vmem>>, vector<1x32x8xf32>
    %354 = vector.shape_cast %353 : vector<1x32x8xf32> to vector<32x8xf32>
    %cst_184 = arith.constant dense<0.000000e+00> : vector<16x8xf32>
    %355 = tpu.matmul %259, %354, %cst_184 {dimension_numbers = #tpu.dot_dimension_numbers<[1], [0], [0], [1], [0, 0, 1, 1], [], []>} : vector<16x32xf32>, vector<32x8xf32>, vector<16x8xf32> -> vector<16x8xf32>
    %cst_185 = arith.constant dense<0.000000e+00> : vector<16x16xf32>
    %356 = tpu.matmul %349, %352, %cst_185 {dimension_numbers = #tpu.dot_dimension_numbers<[1], [1], [0], [0], [0, 0, 1, 0], [], []>} : vector<16x8xf32>, vector<16x8xf32>, vector<16x16xf32> -> vector<16x16xf32>
    %cst_186 = arith.constant 0.353553385 : f32
    %357 = vector.broadcast %cst_186 : f32 to vector<16x16xf32>
    %358 = arith.mulf %356, %357 : vector<16x16xf32>
    %359 = vector.broadcast %261 : vector<1x16xf32> to vector<16x16xf32>
    %360 = arith.addf %358, %359 : vector<16x16xf32>
    %cst_187 = arith.constant dense<0xFF800000> : vector<16xf32>
    %361 = vector.multi_reduction <maximumf>, %360, %cst_187 [1] : vector<16x16xf32> to vector<16xf32>
    %362 = vector.shape_cast %361 : vector<16xf32> to vector<16x1xf32>
    %363 = vector.broadcast %362 : vector<16x1xf32> to vector<16x16xf32>
    %364 = arith.subf %360, %363 : vector<16x16xf32>
    %365 = math.exp %364 : vector<16x16xf32>
    %cst_188 = arith.constant dense<0.000000e+00> : vector<16xf32>
    %366 = vector.multi_reduction <add>, %365, %cst_188 [1] : vector<16x16xf32> to vector<16xf32>
    %367 = vector.shape_cast %366 : vector<16xf32> to vector<16x1xf32>
    %368 = vector.broadcast %367 : vector<16x1xf32> to vector<16x16xf32>
    %369 = arith.divf %365, %368 : vector<16x16xf32>
    %cst_189 = arith.constant dense<0.000000e+00> : vector<16x8xf32>
    %370 = tpu.matmul %369, %355, %cst_189 {dimension_numbers = #tpu.dot_dimension_numbers<[1], [0], [0], [1], [0, 0, 1, 1], [], []>} : vector<16x16xf32>, vector<16x8xf32>, vector<16x8xf32> -> vector<16x8xf32>
    %c3_190 = arith.constant 3 : index
    %c0_191 = arith.constant 0 : index
    %c0_192 = arith.constant 0 : index
    %371 = vector.load %arg12[%c3_190, %c0_191, %c0_192] : memref<4x8x32xf32, #tpu.memory_space<vmem>>, vector<1x8x32xf32>
    %372 = vector.shape_cast %371 : vector<1x8x32xf32> to vector<8x32xf32>
    %cst_193 = arith.constant dense<0.000000e+00> : vector<16x32xf32>
    %373 = tpu.matmul %370, %372, %cst_193 {dimension_numbers = #tpu.dot_dimension_numbers<[1], [0], [0], [1], [0, 0, 1, 1], [], []>} : vector<16x8xf32>, vector<8x32xf32>, vector<16x32xf32> -> vector<16x32xf32>
    %374 = arith.addf %346, %373 : vector<16x32xf32>
    %375 = arith.addf %374, %235 : vector<16x32xf32>
    %cst_194 = arith.constant dense<0.000000e+00> : vector<16xf32>
    %376 = vector.multi_reduction <add>, %375, %cst_194 [1] : vector<16x32xf32> to vector<16xf32>
    %377 = vector.shape_cast %376 : vector<16xf32> to vector<16x1xf32>
    %cst_195 = arith.constant 3.200000e+01 : f32
    %378 = vector.broadcast %cst_195 : f32 to vector<16x1xf32>
    %379 = arith.divf %377, %378 : vector<16x1xf32>
    %380 = vector.broadcast %379 : vector<16x1xf32> to vector<16x32xf32>
    %381 = arith.subf %375, %380 : vector<16x32xf32>
    %382 = arith.mulf %381, %381 : vector<16x32xf32>
    %cst_196 = arith.constant dense<0.000000e+00> : vector<16xf32>
    %383 = vector.multi_reduction <add>, %382, %cst_196 [1] : vector<16x32xf32> to vector<16xf32>
    %384 = vector.shape_cast %383 : vector<16xf32> to vector<16x1xf32>
    %cst_197 = arith.constant 3.200000e+01 : f32
    %385 = vector.broadcast %cst_197 : f32 to vector<16x1xf32>
    %386 = arith.divf %384, %385 : vector<16x1xf32>
    %cst_198 = arith.constant 9.99999974E-6 : f32
    %387 = vector.broadcast %cst_198 : f32 to vector<16x1xf32>
    %388 = arith.addf %386, %387 : vector<16x1xf32>
    %389 = math.rsqrt %388 : vector<16x1xf32>
    %390 = vector.broadcast %389 : vector<16x1xf32> to vector<16x32xf32>
    %391 = arith.mulf %381, %390 : vector<16x32xf32>
    %c3_199 = arith.constant 3 : index
    %c0_200 = arith.constant 0 : index
    %c0_201 = arith.constant 0 : index
    %392 = vector.load %arg4[%c3_199, %c0_200, %c0_201] : memref<4x1x32xf32, #tpu.memory_space<vmem>>, vector<1x1x32xf32>
    %393 = vector.shape_cast %392 : vector<1x1x32xf32> to vector<1x32xf32>
    %394 = vector.broadcast %393 : vector<1x32xf32> to vector<16x32xf32>
    %395 = arith.mulf %391, %394 : vector<16x32xf32>
    %c3_202 = arith.constant 3 : index
    %c0_203 = arith.constant 0 : index
    %c0_204 = arith.constant 0 : index
    %396 = vector.load %arg5[%c3_202, %c0_203, %c0_204] : memref<4x1x32xf32, #tpu.memory_space<vmem>>, vector<1x1x32xf32>
    %397 = vector.shape_cast %396 : vector<1x1x32xf32> to vector<1x32xf32>
    %398 = vector.broadcast %397 : vector<1x32xf32> to vector<16x32xf32>
    %399 = arith.addf %395, %398 : vector<16x32xf32>
    %c0_205 = arith.constant 0 : index
    %c0_206 = arith.constant 0 : index
    %400 = vector.load %arg13[%c0_205, %c0_206] : memref<32x32xf32, #tpu.memory_space<vmem>>, vector<32x32xf32>
    %cst_207 = arith.constant dense<0.000000e+00> : vector<16x32xf32>
    %401 = tpu.matmul %399, %400, %cst_207 {dimension_numbers = #tpu.dot_dimension_numbers<[1], [0], [0], [1], [0, 0, 1, 1], [], []>} : vector<16x32xf32>, vector<32x32xf32>, vector<16x32xf32> -> vector<16x32xf32>
    %c0_208 = arith.constant 0 : index
    %c0_209 = arith.constant 0 : index
    %402 = vector.load %arg14[%c0_208, %c0_209] : memref<1x32xf32, #tpu.memory_space<vmem>>, vector<1x32xf32>
    %403 = vector.broadcast %402 : vector<1x32xf32> to vector<16x32xf32>
    %404 = arith.addf %401, %403 : vector<16x32xf32>
    %cst_210 = arith.constant 0.000000e+00 : f32
    %405 = vector.broadcast %cst_210 : f32 to vector<16x32xf32>
    %406 = arith.maximumf %404, %405 : vector<16x32xf32>
    %c0_211 = arith.constant 0 : index
    %c0_212 = arith.constant 0 : index
    %407 = vector.load %arg15[%c0_211, %c0_212] : memref<32x32xf32, #tpu.memory_space<vmem>>, vector<32x32xf32>
    %cst_213 = arith.constant dense<0.000000e+00> : vector<16x32xf32>
    %408 = tpu.matmul %406, %407, %cst_213 {dimension_numbers = #tpu.dot_dimension_numbers<[1], [0], [0], [1], [0, 0, 1, 1], [], []>} : vector<16x32xf32>, vector<32x32xf32>, vector<16x32xf32> -> vector<16x32xf32>
    %c0_214 = arith.constant 0 : index
    %c0_215 = arith.constant 0 : index
    %409 = vector.load %arg16[%c0_214, %c0_215] : memref<1x32xf32, #tpu.memory_space<vmem>>, vector<1x32xf32>
    %410 = vector.broadcast %409 : vector<1x32xf32> to vector<16x32xf32>
    %411 = arith.addf %408, %410 : vector<16x32xf32>
    %412 = arith.addf %411, %375 : vector<16x32xf32>
    %c0_216 = arith.constant 0 : index
    %c0_217 = arith.constant 0 : index
    %c0_218 = arith.constant 0 : index
    %413 = vector.load %arg17[%c0_216, %c0_217, %c0_218] : memref<1x16x32xf32, #tpu.memory_space<vmem>>, vector<1x16x32xf32>
    %414 = vector.shape_cast %413 : vector<1x16x32xf32> to vector<16x32xf32>
    %415 = vector.shape_cast %412 : vector<16x32xf32> to vector<1x16x32xf32>
    tpu.vector_store %arg17[%c0_216, %c0_217, %c0_218], %415 {strides = array<i32>} : memref<1x16x32xf32, #tpu.memory_space<vmem>>, vector<1x16x32xf32>,
    return
  }
  func.func @transform_0(%arg0: i32) -> (i32, i32, i32) {
    %c0_i32 = arith.constant 0 : i32
    %c0_i32_0 = arith.constant 0 : i32
    %c0_i32_1 = arith.constant 0 : i32
    return %arg0, %c0_i32, %c0_i32_0 : i32, i32, i32
  }
  func.func @transform_1(%arg0: i32) -> (i32, i32) {
    %c0_i32 = arith.constant 0 : i32
    %c0_i32_0 = arith.constant 0 : i32
    %c0_i32_1 = arith.constant 0 : i32
    return %c0_i32, %c0_i32_0 : i32, i32
  }
  func.func @transform_2(%arg0: i32) -> (i32, i32, i32) {
    %c0_i32 = arith.constant 0 : i32
    %c0_i32_0 = arith.constant 0 : i32
    %c0_i32_1 = arith.constant 0 : i32
    return %arg0, %c0_i32, %c0_i32_0 : i32, i32, i32
  }
  func.func @transform_3(%arg0: i32) -> (i32, i32, i32) {
    %c0_i32 = arith.constant 0 : i32
    %c0_i32_0 = arith.constant 0 : i32
    %c0_i32_1 = arith.constant 0 : i32
    %c0_i32_2 = arith.constant 0 : i32
    return %c0_i32, %c0_i32_0, %c0_i32_1 : i32, i32, i32
  }
  func.func @transform_4(%arg0: i32) -> (i32, i32, i32) {
    %c0_i32 = arith.constant 0 : i32
    %c0_i32_0 = arith.constant 0 : i32
    %c0_i32_1 = arith.constant 0 : i32
    %c0_i32_2 = arith.constant 0 : i32
    return %c0_i32, %c0_i32_0, %c0_i32_1 : i32, i32, i32
  }
  func.func @transform_5(%arg0: i32) -> (i32, i32, i32) {
    %c0_i32 = arith.constant 0 : i32
    %c0_i32_0 = arith.constant 0 : i32
    %c0_i32_1 = arith.constant 0 : i32
    %c0_i32_2 = arith.constant 0 : i32
    return %c0_i32, %c0_i32_0, %c0_i32_1 : i32, i32, i32
  }
  func.func @transform_6(%arg0: i32) -> (i32, i32, i32) {
    %c0_i32 = arith.constant 0 : i32
    %c0_i32_0 = arith.constant 0 : i32
    %c0_i32_1 = arith.constant 0 : i32
    %c0_i32_2 = arith.constant 0 : i32
    return %c0_i32, %c0_i32_0, %c0_i32_1 : i32, i32, i32
  }
  func.func @transform_7(%arg0: i32) -> (i32, i32, i32) {
    %c0_i32 = arith.constant 0 : i32
    %c0_i32_0 = arith.constant 0 : i32
    %c0_i32_1 = arith.constant 0 : i32
    %c0_i32_2 = arith.constant 0 : i32
    return %c0_i32, %c0_i32_0, %c0_i32_1 : i32, i32, i32
  }
  func.func @transform_8(%arg0: i32) -> (i32, i32, i32) {
    %c0_i32 = arith.constant 0 : i32
    %c0_i32_0 = arith.constant 0 : i32
    %c0_i32_1 = arith.constant 0 : i32
    %c0_i32_2 = arith.constant 0 : i32
    return %c0_i32, %c0_i32_0, %c0_i32_1 : i32, i32, i32
  }
  func.func @transform_9(%arg0: i32) -> (i32, i32, i32) {
    %c0_i32 = arith.constant 0 : i32
    %c0_i32_0 = arith.constant 0 : i32
    %c0_i32_1 = arith.constant 0 : i32
    %c0_i32_2 = arith.constant 0 : i32
    return %c0_i32, %c0_i32_0, %c0_i32_1 : i32, i32, i32
  }
  func.func @transform_10(%arg0: i32) -> (i32, i32, i32) {
    %c0_i32 = arith.constant 0 : i32
    %c0_i32_0 = arith.constant 0 : i32
    %c0_i32_1 = arith.constant 0 : i32
    %c0_i32_2 = arith.constant 0 : i32
    return %c0_i32, %c0_i32_0, %c0_i32_1 : i32, i32, i32
  }
  func.func @transform_11(%arg0: i32) -> (i32, i32, i32) {
    %c0_i32 = arith.constant 0 : i32
    %c0_i32_0 = arith.constant 0 : i32
    %c0_i32_1 = arith.constant 0 : i32
    %c0_i32_2 = arith.constant 0 : i32
    return %c0_i32, %c0_i32_0, %c0_i32_1 : i32, i32, i32
  }
  func.func @transform_12(%arg0: i32) -> (i32, i32) {
    %c0_i32 = arith.constant 0 : i32
    %c0_i32_0 = arith.constant 0 : i32
    %c0_i32_1 = arith.constant 0 : i32
    return %c0_i32, %c0_i32_0 : i32, i32
  }
  func.func @transform_13(%arg0: i32) -> (i32, i32) {
    %c0_i32 = arith.constant 0 : i32
    %c0_i32_0 = arith.constant 0 : i32
    %c0_i32_1 = arith.constant 0 : i32
    return %c0_i32, %c0_i32_0 : i32, i32
  }
  func.func @transform_14(%arg0: i32) -> (i32, i32) {
    %c0_i32 = arith.constant 0 : i32
    %c0_i32_0 = arith.constant 0 : i32
    %c0_i32_1 = arith.constant 0 : i32
    return %c0_i32, %c0_i32_0 : i32, i32
  }
  func.func @transform_15(%arg0: i32) -> (i32, i32) {
    %c0_i32 = arith.constant 0 : i32
    %c0_i32_0 = arith.constant 0 : i32
    %c0_i32_1 = arith.constant 0 : i32
    return %c0_i32, %c0_i32_0 : i32, i32
  }
  func.func @transform_16(%arg0: i32) -> (i32, i32, i32) {
    %c0_i32 = arith.constant 0 : i32
    %c0_i32_0 = arith.constant 0 : i32
    %c0_i32_1 = arith.constant 0 : i32
    return %arg0, %c0_i32, %c0_i32_0 : i32, i32, i32
  }
}

module attributes {stable_mosaic.version = 11 : i64} {
  func.func @_embed_kernel(%arg0: i32, %arg1: memref<1x8x24xf32, #tpu.memory_space<vmem>>, %arg2: memref<1x4x8x40xf32, #tpu.memory_space<vmem>>, %arg3: memref<40x16xf32, #tpu.memory_space<vmem>>, %arg4: memref<1x16xf32, #tpu.memory_space<vmem>>, %arg5: memref<24x32xf32, #tpu.memory_space<vmem>>, %arg6: memref<16x32xf32, #tpu.memory_space<vmem>>, %arg7: memref<2x32x32xf32, #tpu.memory_space<vmem>>, %arg8: memref<2x1x32xf32, #tpu.memory_space<vmem>>, %arg9: memref<2x32x32xf32, #tpu.memory_space<vmem>>, %arg10: memref<2x1x32xf32, #tpu.memory_space<vmem>>, %arg11: memref<1x8x32xf32, #tpu.memory_space<vmem>>) attributes {dimension_semantics = [#tpu.dimension_semantics<parallel>], iteration_bounds = array<i64: 2>, scalar_prefetch = 0 : i64, scratch_operands = 0 : i64, tpu.core_type = #tpu.core_type<tc>, window_params = [{transform_indices = @transform_0, window_bounds = array<i64: 1, 8, 24>}, {transform_indices = @transform_1, window_bounds = array<i64: 1, 4, 8, 40>}, {pipeline_mode = #tpu.pipeline_mode<synchronous>, transform_indices = @transform_2, window_bounds = array<i64: 40, 16>}, {pipeline_mode = #tpu.pipeline_mode<synchronous>, transform_indices = @transform_3, window_bounds = array<i64: 1, 16>}, {pipeline_mode = #tpu.pipeline_mode<synchronous>, transform_indices = @transform_4, window_bounds = array<i64: 24, 32>}, {pipeline_mode = #tpu.pipeline_mode<synchronous>, transform_indices = @transform_5, window_bounds = array<i64: 16, 32>}, {pipeline_mode = #tpu.pipeline_mode<synchronous>, transform_indices = @transform_6, window_bounds = array<i64: 2, 32, 32>}, {pipeline_mode = #tpu.pipeline_mode<synchronous>, transform_indices = @transform_7, window_bounds = array<i64: 2, 1, 32>}, {pipeline_mode = #tpu.pipeline_mode<synchronous>, transform_indices = @transform_8, window_bounds = array<i64: 2, 32, 32>}, {pipeline_mode = #tpu.pipeline_mode<synchronous>, transform_indices = @transform_9, window_bounds = array<i64: 2, 1, 32>}, {transform_indices = @transform_10, window_bounds = array<i64: 1, 8, 32>}]} {
    %c0 = arith.constant 0 : index
    %c0_0 = arith.constant 0 : index
    %c0_1 = arith.constant 0 : index
    %0 = vector.load %arg1[%c0, %c0_0, %c0_1] : memref<1x8x24xf32, #tpu.memory_space<vmem>>, vector<1x8x24xf32>
    %1 = vector.shape_cast %0 : vector<1x8x24xf32> to vector<8x24xf32>
    %c0_2 = arith.constant 0 : index
    %c0_3 = arith.constant 0 : index
    %c0_4 = arith.constant 0 : index
    %c0_5 = arith.constant 0 : index
    %2 = vector.load %arg2[%c0_2, %c0_3, %c0_4, %c0_5] : memref<1x4x8x40xf32, #tpu.memory_space<vmem>>, vector<1x1x8x40xf32>
    %3 = vector.shape_cast %2 : vector<1x1x8x40xf32> to vector<8x40xf32>
    %c0_6 = arith.constant 0 : index
    %c0_7 = arith.constant 0 : index
    %4 = vector.load %arg3[%c0_6, %c0_7] : memref<40x16xf32, #tpu.memory_space<vmem>>, vector<40x16xf32>
    %cst = arith.constant dense<0.000000e+00> : vector<8x16xf32>
    %5 = tpu.matmul %3, %4, %cst {dimension_numbers = #tpu.dot_dimension_numbers<[1], [0], [0], [1], [0, 0, 1, 1], [], []>} : vector<8x40xf32>, vector<40x16xf32>, vector<8x16xf32> -> vector<8x16xf32>
    %c0_8 = arith.constant 0 : index
    %c0_9 = arith.constant 0 : index
    %6 = vector.load %arg4[%c0_8, %c0_9] : memref<1x16xf32, #tpu.memory_space<vmem>>, vector<1x16xf32>
    %7 = vector.broadcast %6 : vector<1x16xf32> to vector<8x16xf32>
    %8 = arith.addf %5, %7 : vector<8x16xf32>
    %cst_10 = arith.constant 0.000000e+00 : f32
    %9 = vector.broadcast %cst_10 : f32 to vector<8x16xf32>
    %10 = arith.maximumf %8, %9 : vector<8x16xf32>
    %c0_11 = arith.constant 0 : index
    %c1 = arith.constant 1 : index
    %c0_12 = arith.constant 0 : index
    %c0_13 = arith.constant 0 : index
    %11 = vector.load %arg2[%c0_11, %c1, %c0_12, %c0_13] : memref<1x4x8x40xf32, #tpu.memory_space<vmem>>, vector<1x1x8x40xf32>
    %12 = vector.shape_cast %11 : vector<1x1x8x40xf32> to vector<8x40xf32>
    %c0_14 = arith.constant 0 : index
    %c0_15 = arith.constant 0 : index
    %13 = vector.load %arg3[%c0_14, %c0_15] : memref<40x16xf32, #tpu.memory_space<vmem>>, vector<40x16xf32>
    %cst_16 = arith.constant dense<0.000000e+00> : vector<8x16xf32>
    %14 = tpu.matmul %12, %13, %cst_16 {dimension_numbers = #tpu.dot_dimension_numbers<[1], [0], [0], [1], [0, 0, 1, 1], [], []>} : vector<8x40xf32>, vector<40x16xf32>, vector<8x16xf32> -> vector<8x16xf32>
    %c0_17 = arith.constant 0 : index
    %c0_18 = arith.constant 0 : index
    %15 = vector.load %arg4[%c0_17, %c0_18] : memref<1x16xf32, #tpu.memory_space<vmem>>, vector<1x16xf32>
    %16 = vector.broadcast %15 : vector<1x16xf32> to vector<8x16xf32>
    %17 = arith.addf %14, %16 : vector<8x16xf32>
    %cst_19 = arith.constant 0.000000e+00 : f32
    %18 = vector.broadcast %cst_19 : f32 to vector<8x16xf32>
    %19 = arith.maximumf %17, %18 : vector<8x16xf32>
    %20 = arith.maximumf %10, %19 : vector<8x16xf32>
    %c0_20 = arith.constant 0 : index
    %c2 = arith.constant 2 : index
    %c0_21 = arith.constant 0 : index
    %c0_22 = arith.constant 0 : index
    %21 = vector.load %arg2[%c0_20, %c2, %c0_21, %c0_22] : memref<1x4x8x40xf32, #tpu.memory_space<vmem>>, vector<1x1x8x40xf32>
    %22 = vector.shape_cast %21 : vector<1x1x8x40xf32> to vector<8x40xf32>
    %c0_23 = arith.constant 0 : index
    %c0_24 = arith.constant 0 : index
    %23 = vector.load %arg3[%c0_23, %c0_24] : memref<40x16xf32, #tpu.memory_space<vmem>>, vector<40x16xf32>
    %cst_25 = arith.constant dense<0.000000e+00> : vector<8x16xf32>
    %24 = tpu.matmul %22, %23, %cst_25 {dimension_numbers = #tpu.dot_dimension_numbers<[1], [0], [0], [1], [0, 0, 1, 1], [], []>} : vector<8x40xf32>, vector<40x16xf32>, vector<8x16xf32> -> vector<8x16xf32>
    %c0_26 = arith.constant 0 : index
    %c0_27 = arith.constant 0 : index
    %25 = vector.load %arg4[%c0_26, %c0_27] : memref<1x16xf32, #tpu.memory_space<vmem>>, vector<1x16xf32>
    %26 = vector.broadcast %25 : vector<1x16xf32> to vector<8x16xf32>
    %27 = arith.addf %24, %26 : vector<8x16xf32>
    %cst_28 = arith.constant 0.000000e+00 : f32
    %28 = vector.broadcast %cst_28 : f32 to vector<8x16xf32>
    %29 = arith.maximumf %27, %28 : vector<8x16xf32>
    %30 = arith.maximumf %20, %29 : vector<8x16xf32>
    %c0_29 = arith.constant 0 : index
    %c3 = arith.constant 3 : index
    %c0_30 = arith.constant 0 : index
    %c0_31 = arith.constant 0 : index
    %31 = vector.load %arg2[%c0_29, %c3, %c0_30, %c0_31] : memref<1x4x8x40xf32, #tpu.memory_space<vmem>>, vector<1x1x8x40xf32>
    %32 = vector.shape_cast %31 : vector<1x1x8x40xf32> to vector<8x40xf32>
    %c0_32 = arith.constant 0 : index
    %c0_33 = arith.constant 0 : index
    %33 = vector.load %arg3[%c0_32, %c0_33] : memref<40x16xf32, #tpu.memory_space<vmem>>, vector<40x16xf32>
    %cst_34 = arith.constant dense<0.000000e+00> : vector<8x16xf32>
    %34 = tpu.matmul %32, %33, %cst_34 {dimension_numbers = #tpu.dot_dimension_numbers<[1], [0], [0], [1], [0, 0, 1, 1], [], []>} : vector<8x40xf32>, vector<40x16xf32>, vector<8x16xf32> -> vector<8x16xf32>
    %c0_35 = arith.constant 0 : index
    %c0_36 = arith.constant 0 : index
    %35 = vector.load %arg4[%c0_35, %c0_36] : memref<1x16xf32, #tpu.memory_space<vmem>>, vector<1x16xf32>
    %36 = vector.broadcast %35 : vector<1x16xf32> to vector<8x16xf32>
    %37 = arith.addf %34, %36 : vector<8x16xf32>
    %cst_37 = arith.constant 0.000000e+00 : f32
    %38 = vector.broadcast %cst_37 : f32 to vector<8x16xf32>
    %39 = arith.maximumf %37, %38 : vector<8x16xf32>
    %40 = arith.maximumf %30, %39 : vector<8x16xf32>
    %c0_38 = arith.constant 0 : index
    %c0_39 = arith.constant 0 : index
    %41 = vector.load %arg5[%c0_38, %c0_39] : memref<24x32xf32, #tpu.memory_space<vmem>>, vector<24x32xf32>
    %cst_40 = arith.constant dense<0.000000e+00> : vector<8x32xf32>
    %42 = tpu.matmul %1, %41, %cst_40 {dimension_numbers = #tpu.dot_dimension_numbers<[1], [0], [0], [1], [0, 0, 1, 1], [], []>} : vector<8x24xf32>, vector<24x32xf32>, vector<8x32xf32> -> vector<8x32xf32>
    %c0_41 = arith.constant 0 : index
    %c0_42 = arith.constant 0 : index
    %43 = vector.load %arg6[%c0_41, %c0_42] : memref<16x32xf32, #tpu.memory_space<vmem>>, vector<16x32xf32>
    %cst_43 = arith.constant dense<0.000000e+00> : vector<8x32xf32>
    %44 = tpu.matmul %40, %43, %cst_43 {dimension_numbers = #tpu.dot_dimension_numbers<[1], [0], [0], [1], [0, 0, 1, 1], [], []>} : vector<8x16xf32>, vector<16x32xf32>, vector<8x32xf32> -> vector<8x32xf32>
    %45 = arith.addf %42, %44 : vector<8x32xf32>
    %c0_44 = arith.constant 0 : index
    %c0_45 = arith.constant 0 : index
    %c0_46 = arith.constant 0 : index
    %46 = vector.load %arg7[%c0_44, %c0_45, %c0_46] : memref<2x32x32xf32, #tpu.memory_space<vmem>>, vector<1x32x32xf32>
    %47 = vector.shape_cast %46 : vector<1x32x32xf32> to vector<32x32xf32>
    %cst_47 = arith.constant dense<0.000000e+00> : vector<8x32xf32>
    %48 = tpu.matmul %45, %47, %cst_47 {dimension_numbers = #tpu.dot_dimension_numbers<[1], [0], [0], [1], [0, 0, 1, 1], [], []>} : vector<8x32xf32>, vector<32x32xf32>, vector<8x32xf32> -> vector<8x32xf32>
    %c0_48 = arith.constant 0 : index
    %c0_49 = arith.constant 0 : index
    %c0_50 = arith.constant 0 : index
    %49 = vector.load %arg8[%c0_48, %c0_49, %c0_50] : memref<2x1x32xf32, #tpu.memory_space<vmem>>, vector<1x1x32xf32>
    %50 = vector.shape_cast %49 : vector<1x1x32xf32> to vector<1x32xf32>
    %51 = vector.broadcast %50 : vector<1x32xf32> to vector<8x32xf32>
    %52 = arith.addf %48, %51 : vector<8x32xf32>
    %cst_51 = arith.constant 0.000000e+00 : f32
    %53 = vector.broadcast %cst_51 : f32 to vector<8x32xf32>
    %54 = arith.maximumf %52, %53 : vector<8x32xf32>
    %c0_52 = arith.constant 0 : index
    %c0_53 = arith.constant 0 : index
    %c0_54 = arith.constant 0 : index
    %55 = vector.load %arg9[%c0_52, %c0_53, %c0_54] : memref<2x32x32xf32, #tpu.memory_space<vmem>>, vector<1x32x32xf32>
    %56 = vector.shape_cast %55 : vector<1x32x32xf32> to vector<32x32xf32>
    %cst_55 = arith.constant dense<0.000000e+00> : vector<8x32xf32>
    %57 = tpu.matmul %45, %56, %cst_55 {dimension_numbers = #tpu.dot_dimension_numbers<[1], [0], [0], [1], [0, 0, 1, 1], [], []>} : vector<8x32xf32>, vector<32x32xf32>, vector<8x32xf32> -> vector<8x32xf32>
    %c0_56 = arith.constant 0 : index
    %c0_57 = arith.constant 0 : index
    %c0_58 = arith.constant 0 : index
    %58 = vector.load %arg10[%c0_56, %c0_57, %c0_58] : memref<2x1x32xf32, #tpu.memory_space<vmem>>, vector<1x1x32xf32>
    %59 = vector.shape_cast %58 : vector<1x1x32xf32> to vector<1x32xf32>
    %60 = vector.broadcast %59 : vector<1x32xf32> to vector<8x32xf32>
    %61 = arith.addf %57, %60 : vector<8x32xf32>
    %cst_59 = arith.constant 0.000000e+00 : f32
    %62 = vector.broadcast %cst_59 : f32 to vector<8x32xf32>
    %63 = arith.subf %62, %61 : vector<8x32xf32>
    %64 = math.exp %63 : vector<8x32xf32>
    %cst_60 = arith.constant 1.000000e+00 : f32
    %65 = vector.broadcast %cst_60 : f32 to vector<8x32xf32>
    %66 = arith.addf %65, %64 : vector<8x32xf32>
    %cst_61 = arith.constant 1.000000e+00 : f32
    %67 = vector.broadcast %cst_61 : f32 to vector<8x32xf32>
    %68 = arith.divf %67, %66 : vector<8x32xf32>
    %69 = arith.mulf %68, %54 : vector<8x32xf32>
    %cst_62 = arith.constant 1.000000e+00 : f32
    %70 = vector.broadcast %cst_62 : f32 to vector<8x32xf32>
    %71 = arith.subf %70, %68 : vector<8x32xf32>
    %72 = arith.mulf %71, %45 : vector<8x32xf32>
    %73 = arith.addf %69, %72 : vector<8x32xf32>
    %c1_63 = arith.constant 1 : index
    %c0_64 = arith.constant 0 : index
    %c0_65 = arith.constant 0 : index
    %74 = vector.load %arg7[%c1_63, %c0_64, %c0_65] : memref<2x32x32xf32, #tpu.memory_space<vmem>>, vector<1x32x32xf32>
    %75 = vector.shape_cast %74 : vector<1x32x32xf32> to vector<32x32xf32>
    %cst_66 = arith.constant dense<0.000000e+00> : vector<8x32xf32>
    %76 = tpu.matmul %73, %75, %cst_66 {dimension_numbers = #tpu.dot_dimension_numbers<[1], [0], [0], [1], [0, 0, 1, 1], [], []>} : vector<8x32xf32>, vector<32x32xf32>, vector<8x32xf32> -> vector<8x32xf32>
    %c1_67 = arith.constant 1 : index
    %c0_68 = arith.constant 0 : index
    %c0_69 = arith.constant 0 : index
    %77 = vector.load %arg8[%c1_67, %c0_68, %c0_69] : memref<2x1x32xf32, #tpu.memory_space<vmem>>, vector<1x1x32xf32>
    %78 = vector.shape_cast %77 : vector<1x1x32xf32> to vector<1x32xf32>
    %79 = vector.broadcast %78 : vector<1x32xf32> to vector<8x32xf32>
    %80 = arith.addf %76, %79 : vector<8x32xf32>
    %cst_70 = arith.constant 0.000000e+00 : f32
    %81 = vector.broadcast %cst_70 : f32 to vector<8x32xf32>
    %82 = arith.maximumf %80, %81 : vector<8x32xf32>
    %c1_71 = arith.constant 1 : index
    %c0_72 = arith.constant 0 : index
    %c0_73 = arith.constant 0 : index
    %83 = vector.load %arg9[%c1_71, %c0_72, %c0_73] : memref<2x32x32xf32, #tpu.memory_space<vmem>>, vector<1x32x32xf32>
    %84 = vector.shape_cast %83 : vector<1x32x32xf32> to vector<32x32xf32>
    %cst_74 = arith.constant dense<0.000000e+00> : vector<8x32xf32>
    %85 = tpu.matmul %73, %84, %cst_74 {dimension_numbers = #tpu.dot_dimension_numbers<[1], [0], [0], [1], [0, 0, 1, 1], [], []>} : vector<8x32xf32>, vector<32x32xf32>, vector<8x32xf32> -> vector<8x32xf32>
    %c1_75 = arith.constant 1 : index
    %c0_76 = arith.constant 0 : index
    %c0_77 = arith.constant 0 : index
    %86 = vector.load %arg10[%c1_75, %c0_76, %c0_77] : memref<2x1x32xf32, #tpu.memory_space<vmem>>, vector<1x1x32xf32>
    %87 = vector.shape_cast %86 : vector<1x1x32xf32> to vector<1x32xf32>
    %88 = vector.broadcast %87 : vector<1x32xf32> to vector<8x32xf32>
    %89 = arith.addf %85, %88 : vector<8x32xf32>
    %cst_78 = arith.constant 0.000000e+00 : f32
    %90 = vector.broadcast %cst_78 : f32 to vector<8x32xf32>
    %91 = arith.subf %90, %89 : vector<8x32xf32>
    %92 = math.exp %91 : vector<8x32xf32>
    %cst_79 = arith.constant 1.000000e+00 : f32
    %93 = vector.broadcast %cst_79 : f32 to vector<8x32xf32>
    %94 = arith.addf %93, %92 : vector<8x32xf32>
    %cst_80 = arith.constant 1.000000e+00 : f32
    %95 = vector.broadcast %cst_80 : f32 to vector<8x32xf32>
    %96 = arith.divf %95, %94 : vector<8x32xf32>
    %97 = arith.mulf %96, %82 : vector<8x32xf32>
    %cst_81 = arith.constant 1.000000e+00 : f32
    %98 = vector.broadcast %cst_81 : f32 to vector<8x32xf32>
    %99 = arith.subf %98, %96 : vector<8x32xf32>
    %100 = arith.mulf %99, %73 : vector<8x32xf32>
    %101 = arith.addf %97, %100 : vector<8x32xf32>
    %c0_82 = arith.constant 0 : index
    %c0_83 = arith.constant 0 : index
    %c0_84 = arith.constant 0 : index
    %102 = vector.load %arg11[%c0_82, %c0_83, %c0_84] : memref<1x8x32xf32, #tpu.memory_space<vmem>>, vector<1x8x32xf32>
    %103 = vector.shape_cast %102 : vector<1x8x32xf32> to vector<8x32xf32>
    %104 = vector.shape_cast %101 : vector<8x32xf32> to vector<1x8x32xf32>
    tpu.vector_store %arg11[%c0_82, %c0_83, %c0_84], %104 {strides = array<i32>} : memref<1x8x32xf32, #tpu.memory_space<vmem>>, vector<1x8x32xf32>,
    return
  }
  func.func @transform_0(%arg0: i32) -> (i32, i32, i32) {
    %c0_i32 = arith.constant 0 : i32
    %c0_i32_0 = arith.constant 0 : i32
    %c0_i32_1 = arith.constant 0 : i32
    return %arg0, %c0_i32, %c0_i32_0 : i32, i32, i32
  }
  func.func @transform_1(%arg0: i32) -> (i32, i32, i32, i32) {
    %c0_i32 = arith.constant 0 : i32
    %c0_i32_0 = arith.constant 0 : i32
    %c0_i32_1 = arith.constant 0 : i32
    %c0_i32_2 = arith.constant 0 : i32
    return %arg0, %c0_i32, %c0_i32_0, %c0_i32_1 : i32, i32, i32, i32
  }
  func.func @transform_2(%arg0: i32) -> (i32, i32) {
    %c0_i32 = arith.constant 0 : i32
    %c0_i32_0 = arith.constant 0 : i32
    %c0_i32_1 = arith.constant 0 : i32
    return %c0_i32, %c0_i32_0 : i32, i32
  }
  func.func @transform_3(%arg0: i32) -> (i32, i32) {
    %c0_i32 = arith.constant 0 : i32
    %c0_i32_0 = arith.constant 0 : i32
    %c0_i32_1 = arith.constant 0 : i32
    return %c0_i32, %c0_i32_0 : i32, i32
  }
  func.func @transform_4(%arg0: i32) -> (i32, i32) {
    %c0_i32 = arith.constant 0 : i32
    %c0_i32_0 = arith.constant 0 : i32
    %c0_i32_1 = arith.constant 0 : i32
    return %c0_i32, %c0_i32_0 : i32, i32
  }
  func.func @transform_5(%arg0: i32) -> (i32, i32) {
    %c0_i32 = arith.constant 0 : i32
    %c0_i32_0 = arith.constant 0 : i32
    %c0_i32_1 = arith.constant 0 : i32
    return %c0_i32, %c0_i32_0 : i32, i32
  }
  func.func @transform_6(%arg0: i32) -> (i32, i32, i32) {
    %c0_i32 = arith.constant 0 : i32
    %c0_i32_0 = arith.constant 0 : i32
    %c0_i32_1 = arith.constant 0 : i32
    %c0_i32_2 = arith.constant 0 : i32
    return %c0_i32, %c0_i32_0, %c0_i32_1 : i32, i32, i32
  }
  func.func @transform_7(%arg0: i32) -> (i32, i32, i32) {
    %c0_i32 = arith.constant 0 : i32
    %c0_i32_0 = arith.constant 0 : i32
    %c0_i32_1 = arith.constant 0 : i32
    %c0_i32_2 = arith.constant 0 : i32
    return %c0_i32, %c0_i32_0, %c0_i32_1 : i32, i32, i32
  }
  func.func @transform_8(%arg0: i32) -> (i32, i32, i32) {
    %c0_i32 = arith.constant 0 : i32
    %c0_i32_0 = arith.constant 0 : i32
    %c0_i32_1 = arith.constant 0 : i32
    %c0_i32_2 = arith.constant 0 : i32
    return %c0_i32, %c0_i32_0, %c0_i32_1 : i32, i32, i32
  }
  func.func @transform_9(%arg0: i32) -> (i32, i32, i32) {
    %c0_i32 = arith.constant 0 : i32
    %c0_i32_0 = arith.constant 0 : i32
    %c0_i32_1 = arith.constant 0 : i32
    %c0_i32_2 = arith.constant 0 : i32
    return %c0_i32, %c0_i32_0, %c0_i32_1 : i32, i32, i32
  }
  func.func @transform_10(%arg0: i32) -> (i32, i32, i32) {
    %c0_i32 = arith.constant 0 : i32
    %c0_i32_0 = arith.constant 0 : i32
    %c0_i32_1 = arith.constant 0 : i32
    return %arg0, %c0_i32, %c0_i32_0 : i32, i32, i32
  }
}

module attributes {stable_mosaic.version = 11 : i64} {
  func.func @_enc_block_kernel(%arg0: i32, %arg1: memref<1x8x32xf32, #tpu.memory_space<vmem>>, %arg2: memref<8x32xf32, #tpu.memory_space<vmem>>, %arg3: memref<1x1x8xf32, #tpu.memory_space<vmem>>, %arg4: memref<4x1x32xf32, #tpu.memory_space<vmem>>, %arg5: memref<4x1x32xf32, #tpu.memory_space<vmem>>, %arg6: memref<2x7x32xf32, #tpu.memory_space<vmem>>, %arg7: memref<2x32x32xf32, #tpu.memory_space<vmem>>, %arg8: memref<2x1x32xf32, #tpu.memory_space<vmem>>, %arg9: memref<4x32x8xf32, #tpu.memory_space<vmem>>, %arg10: memref<4x32x8xf32, #tpu.memory_space<vmem>>, %arg11: memref<4x32x8xf32, #tpu.memory_space<vmem>>, %arg12: memref<4x8x32xf32, #tpu.memory_space<vmem>>, %arg13: memref<32x32xf32, #tpu.memory_space<vmem>>, %arg14: memref<1x32xf32, #tpu.memory_space<vmem>>, %arg15: memref<32x32xf32, #tpu.memory_space<vmem>>, %arg16: memref<1x32xf32, #tpu.memory_space<vmem>>, %arg17: memref<1x8x32xf32, #tpu.memory_space<vmem>>) attributes {dimension_semantics = [#tpu.dimension_semantics<parallel>], iteration_bounds = array<i64: 2>, scalar_prefetch = 0 : i64, scratch_operands = 0 : i64, tpu.core_type = #tpu.core_type<tc>, window_params = [{transform_indices = @transform_0, window_bounds = array<i64: 1, 8, 32>}, {pipeline_mode = #tpu.pipeline_mode<synchronous>, transform_indices = @transform_1, window_bounds = array<i64: 8, 32>}, {transform_indices = @transform_2, window_bounds = array<i64: 1, 1, 8>}, {pipeline_mode = #tpu.pipeline_mode<synchronous>, transform_indices = @transform_3, window_bounds = array<i64: 4, 1, 32>}, {pipeline_mode = #tpu.pipeline_mode<synchronous>, transform_indices = @transform_4, window_bounds = array<i64: 4, 1, 32>}, {pipeline_mode = #tpu.pipeline_mode<synchronous>, transform_indices = @transform_5, window_bounds = array<i64: 2, 7, 32>}, {pipeline_mode = #tpu.pipeline_mode<synchronous>, transform_indices = @transform_6, window_bounds = array<i64: 2, 32, 32>}, {pipeline_mode = #tpu.pipeline_mode<synchronous>, transform_indices = @transform_7, window_bounds = array<i64: 2, 1, 32>}, {pipeline_mode = #tpu.pipeline_mode<synchronous>, transform_indices = @transform_8, window_bounds = array<i64: 4, 32, 8>}, {pipeline_mode = #tpu.pipeline_mode<synchronous>, transform_indices = @transform_9, window_bounds = array<i64: 4, 32, 8>}, {pipeline_mode = #tpu.pipeline_mode<synchronous>, transform_indices = @transform_10, window_bounds = array<i64: 4, 32, 8>}, {pipeline_mode = #tpu.pipeline_mode<synchronous>, transform_indices = @transform_11, window_bounds = array<i64: 4, 8, 32>}, {pipeline_mode = #tpu.pipeline_mode<synchronous>, transform_indices = @transform_12, window_bounds = array<i64: 32, 32>}, {pipeline_mode = #tpu.pipeline_mode<synchronous>, transform_indices = @transform_13, window_bounds = array<i64: 1, 32>}, {pipeline_mode = #tpu.pipeline_mode<synchronous>, transform_indices = @transform_14, window_bounds = array<i64: 32, 32>}, {pipeline_mode = #tpu.pipeline_mode<synchronous>, transform_indices = @transform_15, window_bounds = array<i64: 1, 32>}, {transform_indices = @transform_16, window_bounds = array<i64: 1, 8, 32>}]} {
    %c0 = arith.constant 0 : index
    %c0_0 = arith.constant 0 : index
    %c0_1 = arith.constant 0 : index
    %0 = vector.load %arg1[%c0, %c0_0, %c0_1] : memref<1x8x32xf32, #tpu.memory_space<vmem>>, vector<1x8x32xf32>
    %1 = vector.shape_cast %0 : vector<1x8x32xf32> to vector<8x32xf32>
    %c0_2 = arith.constant 0 : index
    %c0_3 = arith.constant 0 : index
    %2 = vector.load %arg2[%c0_2, %c0_3] : memref<8x32xf32, #tpu.memory_space<vmem>>, vector<8x32xf32>
    %3 = arith.addf %1, %2 : vector<8x32xf32>
    %cst = arith.constant dense<0.000000e+00> : vector<8xf32>
    %4 = vector.multi_reduction <add>, %3, %cst [1] : vector<8x32xf32> to vector<8xf32>
    %5 = vector.shape_cast %4 : vector<8xf32> to vector<8x1xf32>
    %cst_4 = arith.constant 3.200000e+01 : f32
    %6 = vector.broadcast %cst_4 : f32 to vector<8x1xf32>
    %7 = arith.divf %5, %6 : vector<8x1xf32>
    %8 = vector.broadcast %7 : vector<8x1xf32> to vector<8x32xf32>
    %9 = arith.subf %3, %8 : vector<8x32xf32>
    %10 = arith.mulf %9, %9 : vector<8x32xf32>
    %cst_5 = arith.constant dense<0.000000e+00> : vector<8xf32>
    %11 = vector.multi_reduction <add>, %10, %cst_5 [1] : vector<8x32xf32> to vector<8xf32>
    %12 = vector.shape_cast %11 : vector<8xf32> to vector<8x1xf32>
    %cst_6 = arith.constant 3.200000e+01 : f32
    %13 = vector.broadcast %cst_6 : f32 to vector<8x1xf32>
    %14 = arith.divf %12, %13 : vector<8x1xf32>
    %cst_7 = arith.constant 9.99999974E-6 : f32
    %15 = vector.broadcast %cst_7 : f32 to vector<8x1xf32>
    %16 = arith.addf %14, %15 : vector<8x1xf32>
    %17 = math.rsqrt %16 : vector<8x1xf32>
    %18 = vector.broadcast %17 : vector<8x1xf32> to vector<8x32xf32>
    %19 = arith.mulf %9, %18 : vector<8x32xf32>
    %c0_8 = arith.constant 0 : index
    %c0_9 = arith.constant 0 : index
    %c0_10 = arith.constant 0 : index
    %20 = vector.load %arg4[%c0_8, %c0_9, %c0_10] : memref<4x1x32xf32, #tpu.memory_space<vmem>>, vector<1x1x32xf32>
    %21 = vector.shape_cast %20 : vector<1x1x32xf32> to vector<1x32xf32>
    %22 = vector.broadcast %21 : vector<1x32xf32> to vector<8x32xf32>
    %23 = arith.mulf %19, %22 : vector<8x32xf32>
    %c0_11 = arith.constant 0 : index
    %c0_12 = arith.constant 0 : index
    %c0_13 = arith.constant 0 : index
    %24 = vector.load %arg5[%c0_11, %c0_12, %c0_13] : memref<4x1x32xf32, #tpu.memory_space<vmem>>, vector<1x1x32xf32>
    %25 = vector.shape_cast %24 : vector<1x1x32xf32> to vector<1x32xf32>
    %26 = vector.broadcast %25 : vector<1x32xf32> to vector<8x32xf32>
    %27 = arith.addf %23, %26 : vector<8x32xf32>
    %c0_14 = arith.constant 0 : index
    %c0_15 = arith.constant 0 : index
    %c0_16 = arith.constant 0 : index
    %28 = vector.load %arg6[%c0_14, %c0_15, %c0_16] : memref<2x7x32xf32, #tpu.memory_space<vmem>>, vector<1x7x32xf32>
    %29 = vector.shape_cast %28 : vector<1x7x32xf32> to vector<7x32xf32>
    %30 = tpu.iota {dimensions = array<i32: 0>} : vector<8x8xi32>
    %31 = tpu.iota {dimensions = array<i32: 1>} : vector<8x8xi32>
    %cst_17 = arith.constant 0.000000e+00 : f32
    %32 = vector.broadcast %cst_17 : f32 to vector<8x32xf32>
    %c-3_i32 = arith.constant -3 : i32
    %33 = vector.broadcast %c-3_i32 : i32 to vector<8x8xi32>
    %34 = arith.addi %30, %33 : vector<8x8xi32>
    %35 = arith.cmpi eq, %31, %34 : vector<8x8xi32>
    %cst_18 = arith.constant 1.000000e+00 : f32
    %cst_19 = arith.constant 0.000000e+00 : f32
    %36 = vector.broadcast %cst_18 : f32 to vector<8x8xf32>
    %37 = vector.broadcast %cst_19 : f32 to vector<8x8xf32>
    %38 = arith.select %35, %36, %37 : vector<8x8xi1>, vector<8x8xf32>
    %cst_20 = arith.constant dense<0.000000e+00> : vector<8x32xf32>
    %39 = tpu.matmul %38, %27, %cst_20 {dimension_numbers = #tpu.dot_dimension_numbers<[1], [0], [0], [1], [0, 0, 1, 1], [], []>} : vector<8x8xf32>, vector<8x32xf32>, vector<8x32xf32> -> vector<8x32xf32>
    %40 = vector.extract_strided_slice %29 {offsets = [0, 0], sizes = [1, 32], strides = [1, 1]} : vector<7x32xf32> to vector<1x32xf32>
    %41 = vector.broadcast %40 : vector<1x32xf32> to vector<8x32xf32>
    %42 = arith.mulf %39, %41 : vector<8x32xf32>
    %43 = arith.addf %32, %42 : vector<8x32xf32>
    %c-2_i32 = arith.constant -2 : i32
    %44 = vector.broadcast %c-2_i32 : i32 to vector<8x8xi32>
    %45 = arith.addi %30, %44 : vector<8x8xi32>
    %46 = arith.cmpi eq, %31, %45 : vector<8x8xi32>
    %cst_21 = arith.constant 1.000000e+00 : f32
    %cst_22 = arith.constant 0.000000e+00 : f32
    %47 = vector.broadcast %cst_21 : f32 to vector<8x8xf32>
    %48 = vector.broadcast %cst_22 : f32 to vector<8x8xf32>
    %49 = arith.select %46, %47, %48 : vector<8x8xi1>, vector<8x8xf32>
    %cst_23 = arith.constant dense<0.000000e+00> : vector<8x32xf32>
    %50 = tpu.matmul %49, %27, %cst_23 {dimension_numbers = #tpu.dot_dimension_numbers<[1], [0], [0], [1], [0, 0, 1, 1], [], []>} : vector<8x8xf32>, vector<8x32xf32>, vector<8x32xf32> -> vector<8x32xf32>
    %51 = vector.extract_strided_slice %29 {offsets = [1, 0], sizes = [1, 32], strides = [1, 1]} : vector<7x32xf32> to vector<1x32xf32>
    %52 = vector.broadcast %51 : vector<1x32xf32> to vector<8x32xf32>
    %53 = arith.mulf %50, %52 : vector<8x32xf32>
    %54 = arith.addf %43, %53 : vector<8x32xf32>
    %c-1_i32 = arith.constant -1 : i32
    %55 = vector.broadcast %c-1_i32 : i32 to vector<8x8xi32>
    %56 = arith.addi %30, %55 : vector<8x8xi32>
    %57 = arith.cmpi eq, %31, %56 : vector<8x8xi32>
    %cst_24 = arith.constant 1.000000e+00 : f32
    %cst_25 = arith.constant 0.000000e+00 : f32
    %58 = vector.broadcast %cst_24 : f32 to vector<8x8xf32>
    %59 = vector.broadcast %cst_25 : f32 to vector<8x8xf32>
    %60 = arith.select %57, %58, %59 : vector<8x8xi1>, vector<8x8xf32>
    %cst_26 = arith.constant dense<0.000000e+00> : vector<8x32xf32>
    %61 = tpu.matmul %60, %27, %cst_26 {dimension_numbers = #tpu.dot_dimension_numbers<[1], [0], [0], [1], [0, 0, 1, 1], [], []>} : vector<8x8xf32>, vector<8x32xf32>, vector<8x32xf32> -> vector<8x32xf32>
    %62 = vector.extract_strided_slice %29 {offsets = [2, 0], sizes = [1, 32], strides = [1, 1]} : vector<7x32xf32> to vector<1x32xf32>
    %63 = vector.broadcast %62 : vector<1x32xf32> to vector<8x32xf32>
    %64 = arith.mulf %61, %63 : vector<8x32xf32>
    %65 = arith.addf %54, %64 : vector<8x32xf32>
    %c0_i32 = arith.constant 0 : i32
    %66 = vector.broadcast %c0_i32 : i32 to vector<8x8xi32>
    %67 = arith.addi %30, %66 : vector<8x8xi32>
    %68 = arith.cmpi eq, %31, %67 : vector<8x8xi32>
    %cst_27 = arith.constant 1.000000e+00 : f32
    %cst_28 = arith.constant 0.000000e+00 : f32
    %69 = vector.broadcast %cst_27 : f32 to vector<8x8xf32>
    %70 = vector.broadcast %cst_28 : f32 to vector<8x8xf32>
    %71 = arith.select %68, %69, %70 : vector<8x8xi1>, vector<8x8xf32>
    %cst_29 = arith.constant dense<0.000000e+00> : vector<8x32xf32>
    %72 = tpu.matmul %71, %27, %cst_29 {dimension_numbers = #tpu.dot_dimension_numbers<[1], [0], [0], [1], [0, 0, 1, 1], [], []>} : vector<8x8xf32>, vector<8x32xf32>, vector<8x32xf32> -> vector<8x32xf32>
    %73 = vector.extract_strided_slice %29 {offsets = [3, 0], sizes = [1, 32], strides = [1, 1]} : vector<7x32xf32> to vector<1x32xf32>
    %74 = vector.broadcast %73 : vector<1x32xf32> to vector<8x32xf32>
    %75 = arith.mulf %72, %74 : vector<8x32xf32>
    %76 = arith.addf %65, %75 : vector<8x32xf32>
    %c1_i32 = arith.constant 1 : i32
    %77 = vector.broadcast %c1_i32 : i32 to vector<8x8xi32>
    %78 = arith.addi %30, %77 : vector<8x8xi32>
    %79 = arith.cmpi eq, %31, %78 : vector<8x8xi32>
    %cst_30 = arith.constant 1.000000e+00 : f32
    %cst_31 = arith.constant 0.000000e+00 : f32
    %80 = vector.broadcast %cst_30 : f32 to vector<8x8xf32>
    %81 = vector.broadcast %cst_31 : f32 to vector<8x8xf32>
    %82 = arith.select %79, %80, %81 : vector<8x8xi1>, vector<8x8xf32>
    %cst_32 = arith.constant dense<0.000000e+00> : vector<8x32xf32>
    %83 = tpu.matmul %82, %27, %cst_32 {dimension_numbers = #tpu.dot_dimension_numbers<[1], [0], [0], [1], [0, 0, 1, 1], [], []>} : vector<8x8xf32>, vector<8x32xf32>, vector<8x32xf32> -> vector<8x32xf32>
    %84 = vector.extract_strided_slice %29 {offsets = [4, 0], sizes = [1, 32], strides = [1, 1]} : vector<7x32xf32> to vector<1x32xf32>
    %85 = vector.broadcast %84 : vector<1x32xf32> to vector<8x32xf32>
    %86 = arith.mulf %83, %85 : vector<8x32xf32>
    %87 = arith.addf %76, %86 : vector<8x32xf32>
    %c2_i32 = arith.constant 2 : i32
    %88 = vector.broadcast %c2_i32 : i32 to vector<8x8xi32>
    %89 = arith.addi %30, %88 : vector<8x8xi32>
    %90 = arith.cmpi eq, %31, %89 : vector<8x8xi32>
    %cst_33 = arith.constant 1.000000e+00 : f32
    %cst_34 = arith.constant 0.000000e+00 : f32
    %91 = vector.broadcast %cst_33 : f32 to vector<8x8xf32>
    %92 = vector.broadcast %cst_34 : f32 to vector<8x8xf32>
    %93 = arith.select %90, %91, %92 : vector<8x8xi1>, vector<8x8xf32>
    %cst_35 = arith.constant dense<0.000000e+00> : vector<8x32xf32>
    %94 = tpu.matmul %93, %27, %cst_35 {dimension_numbers = #tpu.dot_dimension_numbers<[1], [0], [0], [1], [0, 0, 1, 1], [], []>} : vector<8x8xf32>, vector<8x32xf32>, vector<8x32xf32> -> vector<8x32xf32>
    %95 = vector.extract_strided_slice %29 {offsets = [5, 0], sizes = [1, 32], strides = [1, 1]} : vector<7x32xf32> to vector<1x32xf32>
    %96 = vector.broadcast %95 : vector<1x32xf32> to vector<8x32xf32>
    %97 = arith.mulf %94, %96 : vector<8x32xf32>
    %98 = arith.addf %87, %97 : vector<8x32xf32>
    %c3_i32 = arith.constant 3 : i32
    %99 = vector.broadcast %c3_i32 : i32 to vector<8x8xi32>
    %100 = arith.addi %30, %99 : vector<8x8xi32>
    %101 = arith.cmpi eq, %31, %100 : vector<8x8xi32>
    %cst_36 = arith.constant 1.000000e+00 : f32
    %cst_37 = arith.constant 0.000000e+00 : f32
    %102 = vector.broadcast %cst_36 : f32 to vector<8x8xf32>
    %103 = vector.broadcast %cst_37 : f32 to vector<8x8xf32>
    %104 = arith.select %101, %102, %103 : vector<8x8xi1>, vector<8x8xf32>
    %cst_38 = arith.constant dense<0.000000e+00> : vector<8x32xf32>
    %105 = tpu.matmul %104, %27, %cst_38 {dimension_numbers = #tpu.dot_dimension_numbers<[1], [0], [0], [1], [0, 0, 1, 1], [], []>} : vector<8x8xf32>, vector<8x32xf32>, vector<8x32xf32> -> vector<8x32xf32>
    %106 = vector.extract_strided_slice %29 {offsets = [6, 0], sizes = [1, 32], strides = [1, 1]} : vector<7x32xf32> to vector<1x32xf32>
    %107 = vector.broadcast %106 : vector<1x32xf32> to vector<8x32xf32>
    %108 = arith.mulf %105, %107 : vector<8x32xf32>
    %109 = arith.addf %98, %108 : vector<8x32xf32>
    %c0_39 = arith.constant 0 : index
    %c0_40 = arith.constant 0 : index
    %c0_41 = arith.constant 0 : index
    %110 = vector.load %arg7[%c0_39, %c0_40, %c0_41] : memref<2x32x32xf32, #tpu.memory_space<vmem>>, vector<1x32x32xf32>
    %111 = vector.shape_cast %110 : vector<1x32x32xf32> to vector<32x32xf32>
    %cst_42 = arith.constant dense<0.000000e+00> : vector<8x32xf32>
    %112 = tpu.matmul %109, %111, %cst_42 {dimension_numbers = #tpu.dot_dimension_numbers<[1], [0], [0], [1], [0, 0, 1, 1], [], []>} : vector<8x32xf32>, vector<32x32xf32>, vector<8x32xf32> -> vector<8x32xf32>
    %c0_43 = arith.constant 0 : index
    %c0_44 = arith.constant 0 : index
    %c0_45 = arith.constant 0 : index
    %113 = vector.load %arg8[%c0_43, %c0_44, %c0_45] : memref<2x1x32xf32, #tpu.memory_space<vmem>>, vector<1x1x32xf32>
    %114 = vector.shape_cast %113 : vector<1x1x32xf32> to vector<1x32xf32>
    %115 = vector.broadcast %114 : vector<1x32xf32> to vector<8x32xf32>
    %116 = arith.addf %112, %115 : vector<8x32xf32>
    %cst_46 = arith.constant 0.000000e+00 : f32
    %117 = vector.broadcast %cst_46 : f32 to vector<8x32xf32>
    %118 = arith.maximumf %116, %117 : vector<8x32xf32>
    %119 = arith.addf %118, %3 : vector<8x32xf32>
    %cst_47 = arith.constant dense<0.000000e+00> : vector<8xf32>
    %120 = vector.multi_reduction <add>, %119, %cst_47 [1] : vector<8x32xf32> to vector<8xf32>
    %121 = vector.shape_cast %120 : vector<8xf32> to vector<8x1xf32>
    %cst_48 = arith.constant 3.200000e+01 : f32
    %122 = vector.broadcast %cst_48 : f32 to vector<8x1xf32>
    %123 = arith.divf %121, %122 : vector<8x1xf32>
    %124 = vector.broadcast %123 : vector<8x1xf32> to vector<8x32xf32>
    %125 = arith.subf %119, %124 : vector<8x32xf32>
    %126 = arith.mulf %125, %125 : vector<8x32xf32>
    %cst_49 = arith.constant dense<0.000000e+00> : vector<8xf32>
    %127 = vector.multi_reduction <add>, %126, %cst_49 [1] : vector<8x32xf32> to vector<8xf32>
    %128 = vector.shape_cast %127 : vector<8xf32> to vector<8x1xf32>
    %cst_50 = arith.constant 3.200000e+01 : f32
    %129 = vector.broadcast %cst_50 : f32 to vector<8x1xf32>
    %130 = arith.divf %128, %129 : vector<8x1xf32>
    %cst_51 = arith.constant 9.99999974E-6 : f32
    %131 = vector.broadcast %cst_51 : f32 to vector<8x1xf32>
    %132 = arith.addf %130, %131 : vector<8x1xf32>
    %133 = math.rsqrt %132 : vector<8x1xf32>
    %134 = vector.broadcast %133 : vector<8x1xf32> to vector<8x32xf32>
    %135 = arith.mulf %125, %134 : vector<8x32xf32>
    %c1 = arith.constant 1 : index
    %c0_52 = arith.constant 0 : index
    %c0_53 = arith.constant 0 : index
    %136 = vector.load %arg4[%c1, %c0_52, %c0_53] : memref<4x1x32xf32, #tpu.memory_space<vmem>>, vector<1x1x32xf32>
    %137 = vector.shape_cast %136 : vector<1x1x32xf32> to vector<1x32xf32>
    %138 = vector.broadcast %137 : vector<1x32xf32> to vector<8x32xf32>
    %139 = arith.mulf %135, %138 : vector<8x32xf32>
    %c1_54 = arith.constant 1 : index
    %c0_55 = arith.constant 0 : index
    %c0_56 = arith.constant 0 : index
    %140 = vector.load %arg5[%c1_54, %c0_55, %c0_56] : memref<4x1x32xf32, #tpu.memory_space<vmem>>, vector<1x1x32xf32>
    %141 = vector.shape_cast %140 : vector<1x1x32xf32> to vector<1x32xf32>
    %142 = vector.broadcast %141 : vector<1x32xf32> to vector<8x32xf32>
    %143 = arith.addf %139, %142 : vector<8x32xf32>
    %c1_57 = arith.constant 1 : index
    %c0_58 = arith.constant 0 : index
    %c0_59 = arith.constant 0 : index
    %144 = vector.load %arg6[%c1_57, %c0_58, %c0_59] : memref<2x7x32xf32, #tpu.memory_space<vmem>>, vector<1x7x32xf32>
    %145 = vector.shape_cast %144 : vector<1x7x32xf32> to vector<7x32xf32>
    %146 = tpu.iota {dimensions = array<i32: 0>} : vector<8x8xi32>
    %147 = tpu.iota {dimensions = array<i32: 1>} : vector<8x8xi32>
    %cst_60 = arith.constant 0.000000e+00 : f32
    %148 = vector.broadcast %cst_60 : f32 to vector<8x32xf32>
    %c-3_i32_61 = arith.constant -3 : i32
    %149 = vector.broadcast %c-3_i32_61 : i32 to vector<8x8xi32>
    %150 = arith.addi %146, %149 : vector<8x8xi32>
    %151 = arith.cmpi eq, %147, %150 : vector<8x8xi32>
    %cst_62 = arith.constant 1.000000e+00 : f32
    %cst_63 = arith.constant 0.000000e+00 : f32
    %152 = vector.broadcast %cst_62 : f32 to vector<8x8xf32>
    %153 = vector.broadcast %cst_63 : f32 to vector<8x8xf32>
    %154 = arith.select %151, %152, %153 : vector<8x8xi1>, vector<8x8xf32>
    %cst_64 = arith.constant dense<0.000000e+00> : vector<8x32xf32>
    %155 = tpu.matmul %154, %143, %cst_64 {dimension_numbers = #tpu.dot_dimension_numbers<[1], [0], [0], [1], [0, 0, 1, 1], [], []>} : vector<8x8xf32>, vector<8x32xf32>, vector<8x32xf32> -> vector<8x32xf32>
    %156 = vector.extract_strided_slice %145 {offsets = [0, 0], sizes = [1, 32], strides = [1, 1]} : vector<7x32xf32> to vector<1x32xf32>
    %157 = vector.broadcast %156 : vector<1x32xf32> to vector<8x32xf32>
    %158 = arith.mulf %155, %157 : vector<8x32xf32>
    %159 = arith.addf %148, %158 : vector<8x32xf32>
    %c-2_i32_65 = arith.constant -2 : i32
    %160 = vector.broadcast %c-2_i32_65 : i32 to vector<8x8xi32>
    %161 = arith.addi %146, %160 : vector<8x8xi32>
    %162 = arith.cmpi eq, %147, %161 : vector<8x8xi32>
    %cst_66 = arith.constant 1.000000e+00 : f32
    %cst_67 = arith.constant 0.000000e+00 : f32
    %163 = vector.broadcast %cst_66 : f32 to vector<8x8xf32>
    %164 = vector.broadcast %cst_67 : f32 to vector<8x8xf32>
    %165 = arith.select %162, %163, %164 : vector<8x8xi1>, vector<8x8xf32>
    %cst_68 = arith.constant dense<0.000000e+00> : vector<8x32xf32>
    %166 = tpu.matmul %165, %143, %cst_68 {dimension_numbers = #tpu.dot_dimension_numbers<[1], [0], [0], [1], [0, 0, 1, 1], [], []>} : vector<8x8xf32>, vector<8x32xf32>, vector<8x32xf32> -> vector<8x32xf32>
    %167 = vector.extract_strided_slice %145 {offsets = [1, 0], sizes = [1, 32], strides = [1, 1]} : vector<7x32xf32> to vector<1x32xf32>
    %168 = vector.broadcast %167 : vector<1x32xf32> to vector<8x32xf32>
    %169 = arith.mulf %166, %168 : vector<8x32xf32>
    %170 = arith.addf %159, %169 : vector<8x32xf32>
    %c-1_i32_69 = arith.constant -1 : i32
    %171 = vector.broadcast %c-1_i32_69 : i32 to vector<8x8xi32>
    %172 = arith.addi %146, %171 : vector<8x8xi32>
    %173 = arith.cmpi eq, %147, %172 : vector<8x8xi32>
    %cst_70 = arith.constant 1.000000e+00 : f32
    %cst_71 = arith.constant 0.000000e+00 : f32
    %174 = vector.broadcast %cst_70 : f32 to vector<8x8xf32>
    %175 = vector.broadcast %cst_71 : f32 to vector<8x8xf32>
    %176 = arith.select %173, %174, %175 : vector<8x8xi1>, vector<8x8xf32>
    %cst_72 = arith.constant dense<0.000000e+00> : vector<8x32xf32>
    %177 = tpu.matmul %176, %143, %cst_72 {dimension_numbers = #tpu.dot_dimension_numbers<[1], [0], [0], [1], [0, 0, 1, 1], [], []>} : vector<8x8xf32>, vector<8x32xf32>, vector<8x32xf32> -> vector<8x32xf32>
    %178 = vector.extract_strided_slice %145 {offsets = [2, 0], sizes = [1, 32], strides = [1, 1]} : vector<7x32xf32> to vector<1x32xf32>
    %179 = vector.broadcast %178 : vector<1x32xf32> to vector<8x32xf32>
    %180 = arith.mulf %177, %179 : vector<8x32xf32>
    %181 = arith.addf %170, %180 : vector<8x32xf32>
    %c0_i32_73 = arith.constant 0 : i32
    %182 = vector.broadcast %c0_i32_73 : i32 to vector<8x8xi32>
    %183 = arith.addi %146, %182 : vector<8x8xi32>
    %184 = arith.cmpi eq, %147, %183 : vector<8x8xi32>
    %cst_74 = arith.constant 1.000000e+00 : f32
    %cst_75 = arith.constant 0.000000e+00 : f32
    %185 = vector.broadcast %cst_74 : f32 to vector<8x8xf32>
    %186 = vector.broadcast %cst_75 : f32 to vector<8x8xf32>
    %187 = arith.select %184, %185, %186 : vector<8x8xi1>, vector<8x8xf32>
    %cst_76 = arith.constant dense<0.000000e+00> : vector<8x32xf32>
    %188 = tpu.matmul %187, %143, %cst_76 {dimension_numbers = #tpu.dot_dimension_numbers<[1], [0], [0], [1], [0, 0, 1, 1], [], []>} : vector<8x8xf32>, vector<8x32xf32>, vector<8x32xf32> -> vector<8x32xf32>
    %189 = vector.extract_strided_slice %145 {offsets = [3, 0], sizes = [1, 32], strides = [1, 1]} : vector<7x32xf32> to vector<1x32xf32>
    %190 = vector.broadcast %189 : vector<1x32xf32> to vector<8x32xf32>
    %191 = arith.mulf %188, %190 : vector<8x32xf32>
    %192 = arith.addf %181, %191 : vector<8x32xf32>
    %c1_i32_77 = arith.constant 1 : i32
    %193 = vector.broadcast %c1_i32_77 : i32 to vector<8x8xi32>
    %194 = arith.addi %146, %193 : vector<8x8xi32>
    %195 = arith.cmpi eq, %147, %194 : vector<8x8xi32>
    %cst_78 = arith.constant 1.000000e+00 : f32
    %cst_79 = arith.constant 0.000000e+00 : f32
    %196 = vector.broadcast %cst_78 : f32 to vector<8x8xf32>
    %197 = vector.broadcast %cst_79 : f32 to vector<8x8xf32>
    %198 = arith.select %195, %196, %197 : vector<8x8xi1>, vector<8x8xf32>
    %cst_80 = arith.constant dense<0.000000e+00> : vector<8x32xf32>
    %199 = tpu.matmul %198, %143, %cst_80 {dimension_numbers = #tpu.dot_dimension_numbers<[1], [0], [0], [1], [0, 0, 1, 1], [], []>} : vector<8x8xf32>, vector<8x32xf32>, vector<8x32xf32> -> vector<8x32xf32>
    %200 = vector.extract_strided_slice %145 {offsets = [4, 0], sizes = [1, 32], strides = [1, 1]} : vector<7x32xf32> to vector<1x32xf32>
    %201 = vector.broadcast %200 : vector<1x32xf32> to vector<8x32xf32>
    %202 = arith.mulf %199, %201 : vector<8x32xf32>
    %203 = arith.addf %192, %202 : vector<8x32xf32>
    %c2_i32_81 = arith.constant 2 : i32
    %204 = vector.broadcast %c2_i32_81 : i32 to vector<8x8xi32>
    %205 = arith.addi %146, %204 : vector<8x8xi32>
    %206 = arith.cmpi eq, %147, %205 : vector<8x8xi32>
    %cst_82 = arith.constant 1.000000e+00 : f32
    %cst_83 = arith.constant 0.000000e+00 : f32
    %207 = vector.broadcast %cst_82 : f32 to vector<8x8xf32>
    %208 = vector.broadcast %cst_83 : f32 to vector<8x8xf32>
    %209 = arith.select %206, %207, %208 : vector<8x8xi1>, vector<8x8xf32>
    %cst_84 = arith.constant dense<0.000000e+00> : vector<8x32xf32>
    %210 = tpu.matmul %209, %143, %cst_84 {dimension_numbers = #tpu.dot_dimension_numbers<[1], [0], [0], [1], [0, 0, 1, 1], [], []>} : vector<8x8xf32>, vector<8x32xf32>, vector<8x32xf32> -> vector<8x32xf32>
    %211 = vector.extract_strided_slice %145 {offsets = [5, 0], sizes = [1, 32], strides = [1, 1]} : vector<7x32xf32> to vector<1x32xf32>
    %212 = vector.broadcast %211 : vector<1x32xf32> to vector<8x32xf32>
    %213 = arith.mulf %210, %212 : vector<8x32xf32>
    %214 = arith.addf %203, %213 : vector<8x32xf32>
    %c3_i32_85 = arith.constant 3 : i32
    %215 = vector.broadcast %c3_i32_85 : i32 to vector<8x8xi32>
    %216 = arith.addi %146, %215 : vector<8x8xi32>
    %217 = arith.cmpi eq, %147, %216 : vector<8x8xi32>
    %cst_86 = arith.constant 1.000000e+00 : f32
    %cst_87 = arith.constant 0.000000e+00 : f32
    %218 = vector.broadcast %cst_86 : f32 to vector<8x8xf32>
    %219 = vector.broadcast %cst_87 : f32 to vector<8x8xf32>
    %220 = arith.select %217, %218, %219 : vector<8x8xi1>, vector<8x8xf32>
    %cst_88 = arith.constant dense<0.000000e+00> : vector<8x32xf32>
    %221 = tpu.matmul %220, %143, %cst_88 {dimension_numbers = #tpu.dot_dimension_numbers<[1], [0], [0], [1], [0, 0, 1, 1], [], []>} : vector<8x8xf32>, vector<8x32xf32>, vector<8x32xf32> -> vector<8x32xf32>
    %222 = vector.extract_strided_slice %145 {offsets = [6, 0], sizes = [1, 32], strides = [1, 1]} : vector<7x32xf32> to vector<1x32xf32>
    %223 = vector.broadcast %222 : vector<1x32xf32> to vector<8x32xf32>
    %224 = arith.mulf %221, %223 : vector<8x32xf32>
    %225 = arith.addf %214, %224 : vector<8x32xf32>
    %c1_89 = arith.constant 1 : index
    %c0_90 = arith.constant 0 : index
    %c0_91 = arith.constant 0 : index
    %226 = vector.load %arg7[%c1_89, %c0_90, %c0_91] : memref<2x32x32xf32, #tpu.memory_space<vmem>>, vector<1x32x32xf32>
    %227 = vector.shape_cast %226 : vector<1x32x32xf32> to vector<32x32xf32>
    %cst_92 = arith.constant dense<0.000000e+00> : vector<8x32xf32>
    %228 = tpu.matmul %225, %227, %cst_92 {dimension_numbers = #tpu.dot_dimension_numbers<[1], [0], [0], [1], [0, 0, 1, 1], [], []>} : vector<8x32xf32>, vector<32x32xf32>, vector<8x32xf32> -> vector<8x32xf32>
    %c1_93 = arith.constant 1 : index
    %c0_94 = arith.constant 0 : index
    %c0_95 = arith.constant 0 : index
    %229 = vector.load %arg8[%c1_93, %c0_94, %c0_95] : memref<2x1x32xf32, #tpu.memory_space<vmem>>, vector<1x1x32xf32>
    %230 = vector.shape_cast %229 : vector<1x1x32xf32> to vector<1x32xf32>
    %231 = vector.broadcast %230 : vector<1x32xf32> to vector<8x32xf32>
    %232 = arith.addf %228, %231 : vector<8x32xf32>
    %cst_96 = arith.constant 0.000000e+00 : f32
    %233 = vector.broadcast %cst_96 : f32 to vector<8x32xf32>
    %234 = arith.maximumf %232, %233 : vector<8x32xf32>
    %235 = arith.addf %234, %119 : vector<8x32xf32>
    %cst_97 = arith.constant dense<0.000000e+00> : vector<8xf32>
    %236 = vector.multi_reduction <add>, %235, %cst_97 [1] : vector<8x32xf32> to vector<8xf32>
    %237 = vector.shape_cast %236 : vector<8xf32> to vector<8x1xf32>
    %cst_98 = arith.constant 3.200000e+01 : f32
    %238 = vector.broadcast %cst_98 : f32 to vector<8x1xf32>
    %239 = arith.divf %237, %238 : vector<8x1xf32>
    %240 = vector.broadcast %239 : vector<8x1xf32> to vector<8x32xf32>
    %241 = arith.subf %235, %240 : vector<8x32xf32>
    %242 = arith.mulf %241, %241 : vector<8x32xf32>
    %cst_99 = arith.constant dense<0.000000e+00> : vector<8xf32>
    %243 = vector.multi_reduction <add>, %242, %cst_99 [1] : vector<8x32xf32> to vector<8xf32>
    %244 = vector.shape_cast %243 : vector<8xf32> to vector<8x1xf32>
    %cst_100 = arith.constant 3.200000e+01 : f32
    %245 = vector.broadcast %cst_100 : f32 to vector<8x1xf32>
    %246 = arith.divf %244, %245 : vector<8x1xf32>
    %cst_101 = arith.constant 9.99999974E-6 : f32
    %247 = vector.broadcast %cst_101 : f32 to vector<8x1xf32>
    %248 = arith.addf %246, %247 : vector<8x1xf32>
    %249 = math.rsqrt %248 : vector<8x1xf32>
    %250 = vector.broadcast %249 : vector<8x1xf32> to vector<8x32xf32>
    %251 = arith.mulf %241, %250 : vector<8x32xf32>
    %c2 = arith.constant 2 : index
    %c0_102 = arith.constant 0 : index
    %c0_103 = arith.constant 0 : index
    %252 = vector.load %arg4[%c2, %c0_102, %c0_103] : memref<4x1x32xf32, #tpu.memory_space<vmem>>, vector<1x1x32xf32>
    %253 = vector.shape_cast %252 : vector<1x1x32xf32> to vector<1x32xf32>
    %254 = vector.broadcast %253 : vector<1x32xf32> to vector<8x32xf32>
    %255 = arith.mulf %251, %254 : vector<8x32xf32>
    %c2_104 = arith.constant 2 : index
    %c0_105 = arith.constant 0 : index
    %c0_106 = arith.constant 0 : index
    %256 = vector.load %arg5[%c2_104, %c0_105, %c0_106] : memref<4x1x32xf32, #tpu.memory_space<vmem>>, vector<1x1x32xf32>
    %257 = vector.shape_cast %256 : vector<1x1x32xf32> to vector<1x32xf32>
    %258 = vector.broadcast %257 : vector<1x32xf32> to vector<8x32xf32>
    %259 = arith.addf %255, %258 : vector<8x32xf32>
    %c0_107 = arith.constant 0 : index
    %c0_108 = arith.constant 0 : index
    %c0_109 = arith.constant 0 : index
    %260 = vector.load %arg3[%c0_107, %c0_108, %c0_109] : memref<1x1x8xf32, #tpu.memory_space<vmem>>, vector<1x1x8xf32>
    %261 = vector.shape_cast %260 : vector<1x1x8xf32> to vector<1x8xf32>
    %cst_110 = arith.constant 0.000000e+00 : f32
    %262 = vector.broadcast %cst_110 : f32 to vector<8x32xf32>
    %c0_111 = arith.constant 0 : index
    %c0_112 = arith.constant 0 : index
    %c0_113 = arith.constant 0 : index
    %263 = vector.load %arg9[%c0_111, %c0_112, %c0_113] : memref<4x32x8xf32, #tpu.memory_space<vmem>>, vector<1x32x8xf32>
    %264 = vector.shape_cast %263 : vector<1x32x8xf32> to vector<32x8xf32>
    %cst_114 = arith.constant dense<0.000000e+00> : vector<8x8xf32>
    %265 = tpu.matmul %259, %264, %cst_114 {dimension_numbers = #tpu.dot_dimension_numbers<[1], [0], [0], [1], [0, 0, 1, 1], [], []>} : vector<8x32xf32>, vector<32x8xf32>, vector<8x8xf32> -> vector<8x8xf32>
    %c0_115 = arith.constant 0 : index
    %c0_116 = arith.constant 0 : index
    %c0_117 = arith.constant 0 : index
    %266 = vector.load %arg10[%c0_115, %c0_116, %c0_117] : memref<4x32x8xf32, #tpu.memory_space<vmem>>, vector<1x32x8xf32>
    %267 = vector.shape_cast %266 : vector<1x32x8xf32> to vector<32x8xf32>
    %cst_118 = arith.constant dense<0.000000e+00> : vector<8x8xf32>
    %268 = tpu.matmul %259, %267, %cst_118 {dimension_numbers = #tpu.dot_dimension_numbers<[1], [0], [0], [1], [0, 0, 1, 1], [], []>} : vector<8x32xf32>, vector<32x8xf32>, vector<8x8xf32> -> vector<8x8xf32>
    %c0_119 = arith.constant 0 : index
    %c0_120 = arith.constant 0 : index
    %c0_121 = arith.constant 0 : index
    %269 = vector.load %arg11[%c0_119, %c0_120, %c0_121] : memref<4x32x8xf32, #tpu.memory_space<vmem>>, vector<1x32x8xf32>
    %270 = vector.shape_cast %269 : vector<1x32x8xf32> to vector<32x8xf32>
    %cst_122 = arith.constant dense<0.000000e+00> : vector<8x8xf32>
    %271 = tpu.matmul %259, %270, %cst_122 {dimension_numbers = #tpu.dot_dimension_numbers<[1], [0], [0], [1], [0, 0, 1, 1], [], []>} : vector<8x32xf32>, vector<32x8xf32>, vector<8x8xf32> -> vector<8x8xf32>
    %cst_123 = arith.constant dense<0.000000e+00> : vector<8x8xf32>
    %272 = tpu.matmul %265, %268, %cst_123 {dimension_numbers = #tpu.dot_dimension_numbers<[1], [1], [0], [0], [0, 0, 1, 0], [], []>} : vector<8x8xf32>, vector<8x8xf32>, vector<8x8xf32> -> vector<8x8xf32>
    %cst_124 = arith.constant 0.353553385 : f32
    %273 = vector.broadcast %cst_124 : f32 to vector<8x8xf32>
    %274 = arith.mulf %272, %273 : vector<8x8xf32>
    %275 = vector.broadcast %261 : vector<1x8xf32> to vector<8x8xf32>
    %276 = arith.addf %274, %275 : vector<8x8xf32>
    %cst_125 = arith.constant dense<0xFF800000> : vector<8xf32>
    %277 = vector.multi_reduction <maximumf>, %276, %cst_125 [1] : vector<8x8xf32> to vector<8xf32>
    %278 = vector.shape_cast %277 : vector<8xf32> to vector<8x1xf32>
    %279 = vector.broadcast %278 : vector<8x1xf32> to vector<8x8xf32>
    %280 = arith.subf %276, %279 : vector<8x8xf32>
    %281 = math.exp %280 : vector<8x8xf32>
    %cst_126 = arith.constant dense<0.000000e+00> : vector<8xf32>
    %282 = vector.multi_reduction <add>, %281, %cst_126 [1] : vector<8x8xf32> to vector<8xf32>
    %283 = vector.shape_cast %282 : vector<8xf32> to vector<8x1xf32>
    %284 = vector.broadcast %283 : vector<8x1xf32> to vector<8x8xf32>
    %285 = arith.divf %281, %284 : vector<8x8xf32>
    %cst_127 = arith.constant dense<0.000000e+00> : vector<8x8xf32>
    %286 = tpu.matmul %285, %271, %cst_127 {dimension_numbers = #tpu.dot_dimension_numbers<[1], [0], [0], [1], [0, 0, 1, 1], [], []>} : vector<8x8xf32>, vector<8x8xf32>, vector<8x8xf32> -> vector<8x8xf32>
    %c0_128 = arith.constant 0 : index
    %c0_129 = arith.constant 0 : index
    %c0_130 = arith.constant 0 : index
    %287 = vector.load %arg12[%c0_128, %c0_129, %c0_130] : memref<4x8x32xf32, #tpu.memory_space<vmem>>, vector<1x8x32xf32>
    %288 = vector.shape_cast %287 : vector<1x8x32xf32> to vector<8x32xf32>
    %cst_131 = arith.constant dense<0.000000e+00> : vector<8x32xf32>
    %289 = tpu.matmul %286, %288, %cst_131 {dimension_numbers = #tpu.dot_dimension_numbers<[1], [0], [0], [1], [0, 0, 1, 1], [], []>} : vector<8x8xf32>, vector<8x32xf32>, vector<8x32xf32> -> vector<8x32xf32>
    %290 = arith.addf %262, %289 : vector<8x32xf32>
    %c1_132 = arith.constant 1 : index
    %c0_133 = arith.constant 0 : index
    %c0_134 = arith.constant 0 : index
    %291 = vector.load %arg9[%c1_132, %c0_133, %c0_134] : memref<4x32x8xf32, #tpu.memory_space<vmem>>, vector<1x32x8xf32>
    %292 = vector.shape_cast %291 : vector<1x32x8xf32> to vector<32x8xf32>
    %cst_135 = arith.constant dense<0.000000e+00> : vector<8x8xf32>
    %293 = tpu.matmul %259, %292, %cst_135 {dimension_numbers = #tpu.dot_dimension_numbers<[1], [0], [0], [1], [0, 0, 1, 1], [], []>} : vector<8x32xf32>, vector<32x8xf32>, vector<8x8xf32> -> vector<8x8xf32>
    %c1_136 = arith.constant 1 : index
    %c0_137 = arith.constant 0 : index
    %c0_138 = arith.constant 0 : index
    %294 = vector.load %arg10[%c1_136, %c0_137, %c0_138] : memref<4x32x8xf32, #tpu.memory_space<vmem>>, vector<1x32x8xf32>
    %295 = vector.shape_cast %294 : vector<1x32x8xf32> to vector<32x8xf32>
    %cst_139 = arith.constant dense<0.000000e+00> : vector<8x8xf32>
    %296 = tpu.matmul %259, %295, %cst_139 {dimension_numbers = #tpu.dot_dimension_numbers<[1], [0], [0], [1], [0, 0, 1, 1], [], []>} : vector<8x32xf32>, vector<32x8xf32>, vector<8x8xf32> -> vector<8x8xf32>
    %c1_140 = arith.constant 1 : index
    %c0_141 = arith.constant 0 : index
    %c0_142 = arith.constant 0 : index
    %297 = vector.load %arg11[%c1_140, %c0_141, %c0_142] : memref<4x32x8xf32, #tpu.memory_space<vmem>>, vector<1x32x8xf32>
    %298 = vector.shape_cast %297 : vector<1x32x8xf32> to vector<32x8xf32>
    %cst_143 = arith.constant dense<0.000000e+00> : vector<8x8xf32>
    %299 = tpu.matmul %259, %298, %cst_143 {dimension_numbers = #tpu.dot_dimension_numbers<[1], [0], [0], [1], [0, 0, 1, 1], [], []>} : vector<8x32xf32>, vector<32x8xf32>, vector<8x8xf32> -> vector<8x8xf32>
    %cst_144 = arith.constant dense<0.000000e+00> : vector<8x8xf32>
    %300 = tpu.matmul %293, %296, %cst_144 {dimension_numbers = #tpu.dot_dimension_numbers<[1], [1], [0], [0], [0, 0, 1, 0], [], []>} : vector<8x8xf32>, vector<8x8xf32>, vector<8x8xf32> -> vector<8x8xf32>
    %cst_145 = arith.constant 0.353553385 : f32
    %301 = vector.broadcast %cst_145 : f32 to vector<8x8xf32>
    %302 = arith.mulf %300, %301 : vector<8x8xf32>
    %303 = vector.broadcast %261 : vector<1x8xf32> to vector<8x8xf32>
    %304 = arith.addf %302, %303 : vector<8x8xf32>
    %cst_146 = arith.constant dense<0xFF800000> : vector<8xf32>
    %305 = vector.multi_reduction <maximumf>, %304, %cst_146 [1] : vector<8x8xf32> to vector<8xf32>
    %306 = vector.shape_cast %305 : vector<8xf32> to vector<8x1xf32>
    %307 = vector.broadcast %306 : vector<8x1xf32> to vector<8x8xf32>
    %308 = arith.subf %304, %307 : vector<8x8xf32>
    %309 = math.exp %308 : vector<8x8xf32>
    %cst_147 = arith.constant dense<0.000000e+00> : vector<8xf32>
    %310 = vector.multi_reduction <add>, %309, %cst_147 [1] : vector<8x8xf32> to vector<8xf32>
    %311 = vector.shape_cast %310 : vector<8xf32> to vector<8x1xf32>
    %312 = vector.broadcast %311 : vector<8x1xf32> to vector<8x8xf32>
    %313 = arith.divf %309, %312 : vector<8x8xf32>
    %cst_148 = arith.constant dense<0.000000e+00> : vector<8x8xf32>
    %314 = tpu.matmul %313, %299, %cst_148 {dimension_numbers = #tpu.dot_dimension_numbers<[1], [0], [0], [1], [0, 0, 1, 1], [], []>} : vector<8x8xf32>, vector<8x8xf32>, vector<8x8xf32> -> vector<8x8xf32>
    %c1_149 = arith.constant 1 : index
    %c0_150 = arith.constant 0 : index
    %c0_151 = arith.constant 0 : index
    %315 = vector.load %arg12[%c1_149, %c0_150, %c0_151] : memref<4x8x32xf32, #tpu.memory_space<vmem>>, vector<1x8x32xf32>
    %316 = vector.shape_cast %315 : vector<1x8x32xf32> to vector<8x32xf32>
    %cst_152 = arith.constant dense<0.000000e+00> : vector<8x32xf32>
    %317 = tpu.matmul %314, %316, %cst_152 {dimension_numbers = #tpu.dot_dimension_numbers<[1], [0], [0], [1], [0, 0, 1, 1], [], []>} : vector<8x8xf32>, vector<8x32xf32>, vector<8x32xf32> -> vector<8x32xf32>
    %318 = arith.addf %290, %317 : vector<8x32xf32>
    %c2_153 = arith.constant 2 : index
    %c0_154 = arith.constant 0 : index
    %c0_155 = arith.constant 0 : index
    %319 = vector.load %arg9[%c2_153, %c0_154, %c0_155] : memref<4x32x8xf32, #tpu.memory_space<vmem>>, vector<1x32x8xf32>
    %320 = vector.shape_cast %319 : vector<1x32x8xf32> to vector<32x8xf32>
    %cst_156 = arith.constant dense<0.000000e+00> : vector<8x8xf32>
    %321 = tpu.matmul %259, %320, %cst_156 {dimension_numbers = #tpu.dot_dimension_numbers<[1], [0], [0], [1], [0, 0, 1, 1], [], []>} : vector<8x32xf32>, vector<32x8xf32>, vector<8x8xf32> -> vector<8x8xf32>
    %c2_157 = arith.constant 2 : index
    %c0_158 = arith.constant 0 : index
    %c0_159 = arith.constant 0 : index
    %322 = vector.load %arg10[%c2_157, %c0_158, %c0_159] : memref<4x32x8xf32, #tpu.memory_space<vmem>>, vector<1x32x8xf32>
    %323 = vector.shape_cast %322 : vector<1x32x8xf32> to vector<32x8xf32>
    %cst_160 = arith.constant dense<0.000000e+00> : vector<8x8xf32>
    %324 = tpu.matmul %259, %323, %cst_160 {dimension_numbers = #tpu.dot_dimension_numbers<[1], [0], [0], [1], [0, 0, 1, 1], [], []>} : vector<8x32xf32>, vector<32x8xf32>, vector<8x8xf32> -> vector<8x8xf32>
    %c2_161 = arith.constant 2 : index
    %c0_162 = arith.constant 0 : index
    %c0_163 = arith.constant 0 : index
    %325 = vector.load %arg11[%c2_161, %c0_162, %c0_163] : memref<4x32x8xf32, #tpu.memory_space<vmem>>, vector<1x32x8xf32>
    %326 = vector.shape_cast %325 : vector<1x32x8xf32> to vector<32x8xf32>
    %cst_164 = arith.constant dense<0.000000e+00> : vector<8x8xf32>
    %327 = tpu.matmul %259, %326, %cst_164 {dimension_numbers = #tpu.dot_dimension_numbers<[1], [0], [0], [1], [0, 0, 1, 1], [], []>} : vector<8x32xf32>, vector<32x8xf32>, vector<8x8xf32> -> vector<8x8xf32>
    %cst_165 = arith.constant dense<0.000000e+00> : vector<8x8xf32>
    %328 = tpu.matmul %321, %324, %cst_165 {dimension_numbers = #tpu.dot_dimension_numbers<[1], [1], [0], [0], [0, 0, 1, 0], [], []>} : vector<8x8xf32>, vector<8x8xf32>, vector<8x8xf32> -> vector<8x8xf32>
    %cst_166 = arith.constant 0.353553385 : f32
    %329 = vector.broadcast %cst_166 : f32 to vector<8x8xf32>
    %330 = arith.mulf %328, %329 : vector<8x8xf32>
    %331 = vector.broadcast %261 : vector<1x8xf32> to vector<8x8xf32>
    %332 = arith.addf %330, %331 : vector<8x8xf32>
    %cst_167 = arith.constant dense<0xFF800000> : vector<8xf32>
    %333 = vector.multi_reduction <maximumf>, %332, %cst_167 [1] : vector<8x8xf32> to vector<8xf32>
    %334 = vector.shape_cast %333 : vector<8xf32> to vector<8x1xf32>
    %335 = vector.broadcast %334 : vector<8x1xf32> to vector<8x8xf32>
    %336 = arith.subf %332, %335 : vector<8x8xf32>
    %337 = math.exp %336 : vector<8x8xf32>
    %cst_168 = arith.constant dense<0.000000e+00> : vector<8xf32>
    %338 = vector.multi_reduction <add>, %337, %cst_168 [1] : vector<8x8xf32> to vector<8xf32>
    %339 = vector.shape_cast %338 : vector<8xf32> to vector<8x1xf32>
    %340 = vector.broadcast %339 : vector<8x1xf32> to vector<8x8xf32>
    %341 = arith.divf %337, %340 : vector<8x8xf32>
    %cst_169 = arith.constant dense<0.000000e+00> : vector<8x8xf32>
    %342 = tpu.matmul %341, %327, %cst_169 {dimension_numbers = #tpu.dot_dimension_numbers<[1], [0], [0], [1], [0, 0, 1, 1], [], []>} : vector<8x8xf32>, vector<8x8xf32>, vector<8x8xf32> -> vector<8x8xf32>
    %c2_170 = arith.constant 2 : index
    %c0_171 = arith.constant 0 : index
    %c0_172 = arith.constant 0 : index
    %343 = vector.load %arg12[%c2_170, %c0_171, %c0_172] : memref<4x8x32xf32, #tpu.memory_space<vmem>>, vector<1x8x32xf32>
    %344 = vector.shape_cast %343 : vector<1x8x32xf32> to vector<8x32xf32>
    %cst_173 = arith.constant dense<0.000000e+00> : vector<8x32xf32>
    %345 = tpu.matmul %342, %344, %cst_173 {dimension_numbers = #tpu.dot_dimension_numbers<[1], [0], [0], [1], [0, 0, 1, 1], [], []>} : vector<8x8xf32>, vector<8x32xf32>, vector<8x32xf32> -> vector<8x32xf32>
    %346 = arith.addf %318, %345 : vector<8x32xf32>
    %c3 = arith.constant 3 : index
    %c0_174 = arith.constant 0 : index
    %c0_175 = arith.constant 0 : index
    %347 = vector.load %arg9[%c3, %c0_174, %c0_175] : memref<4x32x8xf32, #tpu.memory_space<vmem>>, vector<1x32x8xf32>
    %348 = vector.shape_cast %347 : vector<1x32x8xf32> to vector<32x8xf32>
    %cst_176 = arith.constant dense<0.000000e+00> : vector<8x8xf32>
    %349 = tpu.matmul %259, %348, %cst_176 {dimension_numbers = #tpu.dot_dimension_numbers<[1], [0], [0], [1], [0, 0, 1, 1], [], []>} : vector<8x32xf32>, vector<32x8xf32>, vector<8x8xf32> -> vector<8x8xf32>
    %c3_177 = arith.constant 3 : index
    %c0_178 = arith.constant 0 : index
    %c0_179 = arith.constant 0 : index
    %350 = vector.load %arg10[%c3_177, %c0_178, %c0_179] : memref<4x32x8xf32, #tpu.memory_space<vmem>>, vector<1x32x8xf32>
    %351 = vector.shape_cast %350 : vector<1x32x8xf32> to vector<32x8xf32>
    %cst_180 = arith.constant dense<0.000000e+00> : vector<8x8xf32>
    %352 = tpu.matmul %259, %351, %cst_180 {dimension_numbers = #tpu.dot_dimension_numbers<[1], [0], [0], [1], [0, 0, 1, 1], [], []>} : vector<8x32xf32>, vector<32x8xf32>, vector<8x8xf32> -> vector<8x8xf32>
    %c3_181 = arith.constant 3 : index
    %c0_182 = arith.constant 0 : index
    %c0_183 = arith.constant 0 : index
    %353 = vector.load %arg11[%c3_181, %c0_182, %c0_183] : memref<4x32x8xf32, #tpu.memory_space<vmem>>, vector<1x32x8xf32>
    %354 = vector.shape_cast %353 : vector<1x32x8xf32> to vector<32x8xf32>
    %cst_184 = arith.constant dense<0.000000e+00> : vector<8x8xf32>
    %355 = tpu.matmul %259, %354, %cst_184 {dimension_numbers = #tpu.dot_dimension_numbers<[1], [0], [0], [1], [0, 0, 1, 1], [], []>} : vector<8x32xf32>, vector<32x8xf32>, vector<8x8xf32> -> vector<8x8xf32>
    %cst_185 = arith.constant dense<0.000000e+00> : vector<8x8xf32>
    %356 = tpu.matmul %349, %352, %cst_185 {dimension_numbers = #tpu.dot_dimension_numbers<[1], [1], [0], [0], [0, 0, 1, 0], [], []>} : vector<8x8xf32>, vector<8x8xf32>, vector<8x8xf32> -> vector<8x8xf32>
    %cst_186 = arith.constant 0.353553385 : f32
    %357 = vector.broadcast %cst_186 : f32 to vector<8x8xf32>
    %358 = arith.mulf %356, %357 : vector<8x8xf32>
    %359 = vector.broadcast %261 : vector<1x8xf32> to vector<8x8xf32>
    %360 = arith.addf %358, %359 : vector<8x8xf32>
    %cst_187 = arith.constant dense<0xFF800000> : vector<8xf32>
    %361 = vector.multi_reduction <maximumf>, %360, %cst_187 [1] : vector<8x8xf32> to vector<8xf32>
    %362 = vector.shape_cast %361 : vector<8xf32> to vector<8x1xf32>
    %363 = vector.broadcast %362 : vector<8x1xf32> to vector<8x8xf32>
    %364 = arith.subf %360, %363 : vector<8x8xf32>
    %365 = math.exp %364 : vector<8x8xf32>
    %cst_188 = arith.constant dense<0.000000e+00> : vector<8xf32>
    %366 = vector.multi_reduction <add>, %365, %cst_188 [1] : vector<8x8xf32> to vector<8xf32>
    %367 = vector.shape_cast %366 : vector<8xf32> to vector<8x1xf32>
    %368 = vector.broadcast %367 : vector<8x1xf32> to vector<8x8xf32>
    %369 = arith.divf %365, %368 : vector<8x8xf32>
    %cst_189 = arith.constant dense<0.000000e+00> : vector<8x8xf32>
    %370 = tpu.matmul %369, %355, %cst_189 {dimension_numbers = #tpu.dot_dimension_numbers<[1], [0], [0], [1], [0, 0, 1, 1], [], []>} : vector<8x8xf32>, vector<8x8xf32>, vector<8x8xf32> -> vector<8x8xf32>
    %c3_190 = arith.constant 3 : index
    %c0_191 = arith.constant 0 : index
    %c0_192 = arith.constant 0 : index
    %371 = vector.load %arg12[%c3_190, %c0_191, %c0_192] : memref<4x8x32xf32, #tpu.memory_space<vmem>>, vector<1x8x32xf32>
    %372 = vector.shape_cast %371 : vector<1x8x32xf32> to vector<8x32xf32>
    %cst_193 = arith.constant dense<0.000000e+00> : vector<8x32xf32>
    %373 = tpu.matmul %370, %372, %cst_193 {dimension_numbers = #tpu.dot_dimension_numbers<[1], [0], [0], [1], [0, 0, 1, 1], [], []>} : vector<8x8xf32>, vector<8x32xf32>, vector<8x32xf32> -> vector<8x32xf32>
    %374 = arith.addf %346, %373 : vector<8x32xf32>
    %375 = arith.addf %374, %235 : vector<8x32xf32>
    %cst_194 = arith.constant dense<0.000000e+00> : vector<8xf32>
    %376 = vector.multi_reduction <add>, %375, %cst_194 [1] : vector<8x32xf32> to vector<8xf32>
    %377 = vector.shape_cast %376 : vector<8xf32> to vector<8x1xf32>
    %cst_195 = arith.constant 3.200000e+01 : f32
    %378 = vector.broadcast %cst_195 : f32 to vector<8x1xf32>
    %379 = arith.divf %377, %378 : vector<8x1xf32>
    %380 = vector.broadcast %379 : vector<8x1xf32> to vector<8x32xf32>
    %381 = arith.subf %375, %380 : vector<8x32xf32>
    %382 = arith.mulf %381, %381 : vector<8x32xf32>
    %cst_196 = arith.constant dense<0.000000e+00> : vector<8xf32>
    %383 = vector.multi_reduction <add>, %382, %cst_196 [1] : vector<8x32xf32> to vector<8xf32>
    %384 = vector.shape_cast %383 : vector<8xf32> to vector<8x1xf32>
    %cst_197 = arith.constant 3.200000e+01 : f32
    %385 = vector.broadcast %cst_197 : f32 to vector<8x1xf32>
    %386 = arith.divf %384, %385 : vector<8x1xf32>
    %cst_198 = arith.constant 9.99999974E-6 : f32
    %387 = vector.broadcast %cst_198 : f32 to vector<8x1xf32>
    %388 = arith.addf %386, %387 : vector<8x1xf32>
    %389 = math.rsqrt %388 : vector<8x1xf32>
    %390 = vector.broadcast %389 : vector<8x1xf32> to vector<8x32xf32>
    %391 = arith.mulf %381, %390 : vector<8x32xf32>
    %c3_199 = arith.constant 3 : index
    %c0_200 = arith.constant 0 : index
    %c0_201 = arith.constant 0 : index
    %392 = vector.load %arg4[%c3_199, %c0_200, %c0_201] : memref<4x1x32xf32, #tpu.memory_space<vmem>>, vector<1x1x32xf32>
    %393 = vector.shape_cast %392 : vector<1x1x32xf32> to vector<1x32xf32>
    %394 = vector.broadcast %393 : vector<1x32xf32> to vector<8x32xf32>
    %395 = arith.mulf %391, %394 : vector<8x32xf32>
    %c3_202 = arith.constant 3 : index
    %c0_203 = arith.constant 0 : index
    %c0_204 = arith.constant 0 : index
    %396 = vector.load %arg5[%c3_202, %c0_203, %c0_204] : memref<4x1x32xf32, #tpu.memory_space<vmem>>, vector<1x1x32xf32>
    %397 = vector.shape_cast %396 : vector<1x1x32xf32> to vector<1x32xf32>
    %398 = vector.broadcast %397 : vector<1x32xf32> to vector<8x32xf32>
    %399 = arith.addf %395, %398 : vector<8x32xf32>
    %c0_205 = arith.constant 0 : index
    %c0_206 = arith.constant 0 : index
    %400 = vector.load %arg13[%c0_205, %c0_206] : memref<32x32xf32, #tpu.memory_space<vmem>>, vector<32x32xf32>
    %cst_207 = arith.constant dense<0.000000e+00> : vector<8x32xf32>
    %401 = tpu.matmul %399, %400, %cst_207 {dimension_numbers = #tpu.dot_dimension_numbers<[1], [0], [0], [1], [0, 0, 1, 1], [], []>} : vector<8x32xf32>, vector<32x32xf32>, vector<8x32xf32> -> vector<8x32xf32>
    %c0_208 = arith.constant 0 : index
    %c0_209 = arith.constant 0 : index
    %402 = vector.load %arg14[%c0_208, %c0_209] : memref<1x32xf32, #tpu.memory_space<vmem>>, vector<1x32xf32>
    %403 = vector.broadcast %402 : vector<1x32xf32> to vector<8x32xf32>
    %404 = arith.addf %401, %403 : vector<8x32xf32>
    %cst_210 = arith.constant 0.000000e+00 : f32
    %405 = vector.broadcast %cst_210 : f32 to vector<8x32xf32>
    %406 = arith.maximumf %404, %405 : vector<8x32xf32>
    %c0_211 = arith.constant 0 : index
    %c0_212 = arith.constant 0 : index
    %407 = vector.load %arg15[%c0_211, %c0_212] : memref<32x32xf32, #tpu.memory_space<vmem>>, vector<32x32xf32>
    %cst_213 = arith.constant dense<0.000000e+00> : vector<8x32xf32>
    %408 = tpu.matmul %406, %407, %cst_213 {dimension_numbers = #tpu.dot_dimension_numbers<[1], [0], [0], [1], [0, 0, 1, 1], [], []>} : vector<8x32xf32>, vector<32x32xf32>, vector<8x32xf32> -> vector<8x32xf32>
    %c0_214 = arith.constant 0 : index
    %c0_215 = arith.constant 0 : index
    %409 = vector.load %arg16[%c0_214, %c0_215] : memref<1x32xf32, #tpu.memory_space<vmem>>, vector<1x32xf32>
    %410 = vector.broadcast %409 : vector<1x32xf32> to vector<8x32xf32>
    %411 = arith.addf %408, %410 : vector<8x32xf32>
    %412 = arith.addf %411, %375 : vector<8x32xf32>
    %c0_216 = arith.constant 0 : index
    %c0_217 = arith.constant 0 : index
    %c0_218 = arith.constant 0 : index
    %413 = vector.load %arg17[%c0_216, %c0_217, %c0_218] : memref<1x8x32xf32, #tpu.memory_space<vmem>>, vector<1x8x32xf32>
    %414 = vector.shape_cast %413 : vector<1x8x32xf32> to vector<8x32xf32>
    %415 = vector.shape_cast %412 : vector<8x32xf32> to vector<1x8x32xf32>
    tpu.vector_store %arg17[%c0_216, %c0_217, %c0_218], %415 {strides = array<i32>} : memref<1x8x32xf32, #tpu.memory_space<vmem>>, vector<1x8x32xf32>,
    return
  }
  func.func @transform_0(%arg0: i32) -> (i32, i32, i32) {
    %c0_i32 = arith.constant 0 : i32
    %c0_i32_0 = arith.constant 0 : i32
    %c0_i32_1 = arith.constant 0 : i32
    return %arg0, %c0_i32, %c0_i32_0 : i32, i32, i32
  }
  func.func @transform_1(%arg0: i32) -> (i32, i32) {
    %c0_i32 = arith.constant 0 : i32
    %c0_i32_0 = arith.constant 0 : i32
    %c0_i32_1 = arith.constant 0 : i32
    return %c0_i32, %c0_i32_0 : i32, i32
  }
  func.func @transform_2(%arg0: i32) -> (i32, i32, i32) {
    %c0_i32 = arith.constant 0 : i32
    %c0_i32_0 = arith.constant 0 : i32
    %c0_i32_1 = arith.constant 0 : i32
    return %arg0, %c0_i32, %c0_i32_0 : i32, i32, i32
  }
  func.func @transform_3(%arg0: i32) -> (i32, i32, i32) {
    %c0_i32 = arith.constant 0 : i32
    %c0_i32_0 = arith.constant 0 : i32
    %c0_i32_1 = arith.constant 0 : i32
    %c0_i32_2 = arith.constant 0 : i32
    return %c0_i32, %c0_i32_0, %c0_i32_1 : i32, i32, i32
  }
  func.func @transform_4(%arg0: i32) -> (i32, i32, i32) {
    %c0_i32 = arith.constant 0 : i32
    %c0_i32_0 = arith.constant 0 : i32
    %c0_i32_1 = arith.constant 0 : i32
    %c0_i32_2 = arith.constant 0 : i32
    return %c0_i32, %c0_i32_0, %c0_i32_1 : i32, i32, i32
  }
  func.func @transform_5(%arg0: i32) -> (i32, i32, i32) {
    %c0_i32 = arith.constant 0 : i32
    %c0_i32_0 = arith.constant 0 : i32
    %c0_i32_1 = arith.constant 0 : i32
    %c0_i32_2 = arith.constant 0 : i32
    return %c0_i32, %c0_i32_0, %c0_i32_1 : i32, i32, i32
  }
  func.func @transform_6(%arg0: i32) -> (i32, i32, i32) {
    %c0_i32 = arith.constant 0 : i32
    %c0_i32_0 = arith.constant 0 : i32
    %c0_i32_1 = arith.constant 0 : i32
    %c0_i32_2 = arith.constant 0 : i32
    return %c0_i32, %c0_i32_0, %c0_i32_1 : i32, i32, i32
  }
  func.func @transform_7(%arg0: i32) -> (i32, i32, i32) {
    %c0_i32 = arith.constant 0 : i32
    %c0_i32_0 = arith.constant 0 : i32
    %c0_i32_1 = arith.constant 0 : i32
    %c0_i32_2 = arith.constant 0 : i32
    return %c0_i32, %c0_i32_0, %c0_i32_1 : i32, i32, i32
  }
  func.func @transform_8(%arg0: i32) -> (i32, i32, i32) {
    %c0_i32 = arith.constant 0 : i32
    %c0_i32_0 = arith.constant 0 : i32
    %c0_i32_1 = arith.constant 0 : i32
    %c0_i32_2 = arith.constant 0 : i32
    return %c0_i32, %c0_i32_0, %c0_i32_1 : i32, i32, i32
  }
  func.func @transform_9(%arg0: i32) -> (i32, i32, i32) {
    %c0_i32 = arith.constant 0 : i32
    %c0_i32_0 = arith.constant 0 : i32
    %c0_i32_1 = arith.constant 0 : i32
    %c0_i32_2 = arith.constant 0 : i32
    return %c0_i32, %c0_i32_0, %c0_i32_1 : i32, i32, i32
  }
  func.func @transform_10(%arg0: i32) -> (i32, i32, i32) {
    %c0_i32 = arith.constant 0 : i32
    %c0_i32_0 = arith.constant 0 : i32
    %c0_i32_1 = arith.constant 0 : i32
    %c0_i32_2 = arith.constant 0 : i32
    return %c0_i32, %c0_i32_0, %c0_i32_1 : i32, i32, i32
  }
  func.func @transform_11(%arg0: i32) -> (i32, i32, i32) {
    %c0_i32 = arith.constant 0 : i32
    %c0_i32_0 = arith.constant 0 : i32
    %c0_i32_1 = arith.constant 0 : i32
    %c0_i32_2 = arith.constant 0 : i32
    return %c0_i32, %c0_i32_0, %c0_i32_1 : i32, i32, i32
  }
  func.func @transform_12(%arg0: i32) -> (i32, i32) {
    %c0_i32 = arith.constant 0 : i32
    %c0_i32_0 = arith.constant 0 : i32
    %c0_i32_1 = arith.constant 0 : i32
    return %c0_i32, %c0_i32_0 : i32, i32
  }
  func.func @transform_13(%arg0: i32) -> (i32, i32) {
    %c0_i32 = arith.constant 0 : i32
    %c0_i32_0 = arith.constant 0 : i32
    %c0_i32_1 = arith.constant 0 : i32
    return %c0_i32, %c0_i32_0 : i32, i32
  }
  func.func @transform_14(%arg0: i32) -> (i32, i32) {
    %c0_i32 = arith.constant 0 : i32
    %c0_i32_0 = arith.constant 0 : i32
    %c0_i32_1 = arith.constant 0 : i32
    return %c0_i32, %c0_i32_0 : i32, i32
  }
  func.func @transform_15(%arg0: i32) -> (i32, i32) {
    %c0_i32 = arith.constant 0 : i32
    %c0_i32_0 = arith.constant 0 : i32
    %c0_i32_1 = arith.constant 0 : i32
    return %c0_i32, %c0_i32_0 : i32, i32
  }
  func.func @transform_16(%arg0: i32) -> (i32, i32, i32) {
    %c0_i32 = arith.constant 0 : i32
    %c0_i32_0 = arith.constant 0 : i32
    %c0_i32_1 = arith.constant 0 : i32
    return %arg0, %c0_i32, %c0_i32_0 : i32, i32, i32
  }
}

module attributes {stable_mosaic.version = 11 : i64} {
  func.func @_pointer_kernel(%arg0: i32, %arg1: memref<1x16x32xf32, #tpu.memory_space<vmem>>, %arg2: memref<1x16x32xf32, #tpu.memory_space<vmem>>, %arg3: memref<1x16x32xf32, #tpu.memory_space<vmem>>, %arg4: memref<1x1x16xf32, #tpu.memory_space<vmem>>, %arg5: memref<1x32xf32, #tpu.memory_space<vmem>>, %arg6: memref<1x32xf32, #tpu.memory_space<vmem>>, %arg7: memref<1x1xf32, #tpu.memory_space<vmem>>, %arg8: memref<1x32xf32, #tpu.memory_space<vmem>>, %arg9: memref<1x32xf32, #tpu.memory_space<vmem>>, %arg10: memref<1x1xf32, #tpu.memory_space<vmem>>, %arg11: memref<1x1x16xf32, #tpu.memory_space<vmem>>, %arg12: memref<1x1x16xf32, #tpu.memory_space<vmem>>) attributes {dimension_semantics = [#tpu.dimension_semantics<parallel>], iteration_bounds = array<i64: 2>, scalar_prefetch = 0 : i64, scratch_operands = 0 : i64, tpu.core_type = #tpu.core_type<tc>, window_params = [{transform_indices = @transform_0, window_bounds = array<i64: 1, 16, 32>}, {transform_indices = @transform_1, window_bounds = array<i64: 1, 16, 32>}, {transform_indices = @transform_2, window_bounds = array<i64: 1, 16, 32>}, {transform_indices = @transform_3, window_bounds = array<i64: 1, 1, 16>}, {pipeline_mode = #tpu.pipeline_mode<synchronous>, transform_indices = @transform_4, window_bounds = array<i64: 1, 32>}, {pipeline_mode = #tpu.pipeline_mode<synchronous>, transform_indices = @transform_5, window_bounds = array<i64: 1, 32>}, {pipeline_mode = #tpu.pipeline_mode<synchronous>, transform_indices = @transform_6, window_bounds = array<i64: 1, 1>}, {pipeline_mode = #tpu.pipeline_mode<synchronous>, transform_indices = @transform_7, window_bounds = array<i64: 1, 32>}, {pipeline_mode = #tpu.pipeline_mode<synchronous>, transform_indices = @transform_8, window_bounds = array<i64: 1, 32>}, {pipeline_mode = #tpu.pipeline_mode<synchronous>, transform_indices = @transform_9, window_bounds = array<i64: 1, 1>}, {transform_indices = @transform_10, window_bounds = array<i64: 1, 1, 16>}, {transform_indices = @transform_11, window_bounds = array<i64: 1, 1, 16>}]} {
    %c0 = arith.constant 0 : index
    %c0_0 = arith.constant 0 : index
    %c0_1 = arith.constant 0 : index
    %0 = vector.load %arg1[%c0, %c0_0, %c0_1] : memref<1x16x32xf32, #tpu.memory_space<vmem>>, vector<1x16x32xf32>
    %1 = vector.shape_cast %0 : vector<1x16x32xf32> to vector<16x32xf32>
    %c0_2 = arith.constant 0 : index
    %c0_3 = arith.constant 0 : index
    %c0_4 = arith.constant 0 : index
    %2 = vector.load %arg2[%c0_2, %c0_3, %c0_4] : memref<1x16x32xf32, #tpu.memory_space<vmem>>, vector<1x16x32xf32>
    %3 = vector.shape_cast %2 : vector<1x16x32xf32> to vector<16x32xf32>
    %c0_5 = arith.constant 0 : index
    %c0_6 = arith.constant 0 : index
    %c0_7 = arith.constant 0 : index
    %4 = vector.load %arg3[%c0_5, %c0_6, %c0_7] : memref<1x16x32xf32, #tpu.memory_space<vmem>>, vector<1x16x32xf32>
    %5 = vector.shape_cast %4 : vector<1x16x32xf32> to vector<16x32xf32>
    %c0_8 = arith.constant 0 : index
    %c0_9 = arith.constant 0 : index
    %c0_10 = arith.constant 0 : index
    %6 = vector.load %arg4[%c0_8, %c0_9, %c0_10] : memref<1x1x16xf32, #tpu.memory_space<vmem>>, vector<1x1x16xf32>
    %7 = vector.shape_cast %6 : vector<1x1x16xf32> to vector<1x16xf32>
    %c0_11 = arith.constant 0 : index
    %c0_12 = arith.constant 0 : index
    %8 = vector.load %arg5[%c0_11, %c0_12] : memref<1x32xf32, #tpu.memory_space<vmem>>, vector<1x32xf32>
    %c0_13 = arith.constant 0 : index
    %c0_14 = arith.constant 0 : index
    %9 = vector.load %arg6[%c0_13, %c0_14] : memref<1x32xf32, #tpu.memory_space<vmem>>, vector<1x32xf32>
    %c0_15 = arith.constant 0 : index
    %c0_16 = arith.constant 0 : index
    %10 = vector.load %arg7[%c0_15, %c0_16] : memref<1x1xf32, #tpu.memory_space<vmem>>, vector<1x1xf32>
    %cst = arith.constant dense<0.000000e+00> : vector<1x16xf32>
    %11 = tpu.matmul %8, %1, %cst {dimension_numbers = #tpu.dot_dimension_numbers<[1], [1], [0], [0], [0, 0, 1, 0], [], []>} : vector<1x32xf32>, vector<16x32xf32>, vector<1x16xf32> -> vector<1x16xf32>
    %cst_17 = arith.constant dense<0.000000e+00> : vector<1x16xf32>
    %12 = tpu.matmul %9, %3, %cst_17 {dimension_numbers = #tpu.dot_dimension_numbers<[1], [1], [0], [0], [0, 0, 1, 0], [], []>} : vector<1x32xf32>, vector<16x32xf32>, vector<1x16xf32> -> vector<1x16xf32>
    %13 = arith.addf %11, %12 : vector<1x16xf32>
    %14 = vector.broadcast %10 : vector<1x1xf32> to vector<1x16xf32>
    %15 = arith.addf %13, %14 : vector<1x16xf32>
    %16 = arith.addf %15, %7 : vector<1x16xf32>
    %cst_18 = arith.constant dense<0xFF800000> : vector<1xf32>
    %17 = vector.multi_reduction <maximumf>, %16, %cst_18 [1] : vector<1x16xf32> to vector<1xf32>
    %18 = vector.shape_cast %17 : vector<1xf32> to vector<1x1xf32>
    %19 = vector.broadcast %18 : vector<1x1xf32> to vector<1x16xf32>
    %20 = arith.subf %16, %19 : vector<1x16xf32>
    %21 = math.exp %20 : vector<1x16xf32>
    %cst_19 = arith.constant dense<0.000000e+00> : vector<1xf32>
    %22 = vector.multi_reduction <add>, %21, %cst_19 [1] : vector<1x16xf32> to vector<1xf32>
    %23 = vector.shape_cast %22 : vector<1xf32> to vector<1x1xf32>
    %24 = math.log %23 : vector<1x1xf32>
    %25 = vector.broadcast %24 : vector<1x1xf32> to vector<1x16xf32>
    %26 = arith.subf %20, %25 : vector<1x16xf32>
    %c0_20 = arith.constant 0 : index
    %c0_21 = arith.constant 0 : index
    %c0_22 = arith.constant 0 : index
    %27 = vector.load %arg11[%c0_20, %c0_21, %c0_22] : memref<1x1x16xf32, #tpu.memory_space<vmem>>, vector<1x1x16xf32>
    %28 = vector.shape_cast %27 : vector<1x1x16xf32> to vector<1x16xf32>
    %29 = vector.shape_cast %26 : vector<1x16xf32> to vector<1x1x16xf32>
    tpu.vector_store %arg11[%c0_20, %c0_21, %c0_22], %29 {strides = array<i32>} : memref<1x1x16xf32, #tpu.memory_space<vmem>>, vector<1x1x16xf32>,
    %c0_23 = arith.constant 0 : index
    %c0_24 = arith.constant 0 : index
    %30 = vector.load %arg8[%c0_23, %c0_24] : memref<1x32xf32, #tpu.memory_space<vmem>>, vector<1x32xf32>
    %c0_25 = arith.constant 0 : index
    %c0_26 = arith.constant 0 : index
    %31 = vector.load %arg9[%c0_25, %c0_26] : memref<1x32xf32, #tpu.memory_space<vmem>>, vector<1x32xf32>
    %c0_27 = arith.constant 0 : index
    %c0_28 = arith.constant 0 : index
    %32 = vector.load %arg10[%c0_27, %c0_28] : memref<1x1xf32, #tpu.memory_space<vmem>>, vector<1x1xf32>
    %cst_29 = arith.constant dense<0.000000e+00> : vector<1x16xf32>
    %33 = tpu.matmul %30, %1, %cst_29 {dimension_numbers = #tpu.dot_dimension_numbers<[1], [1], [0], [0], [0, 0, 1, 0], [], []>} : vector<1x32xf32>, vector<16x32xf32>, vector<1x16xf32> -> vector<1x16xf32>
    %cst_30 = arith.constant dense<0.000000e+00> : vector<1x16xf32>
    %34 = tpu.matmul %31, %5, %cst_30 {dimension_numbers = #tpu.dot_dimension_numbers<[1], [1], [0], [0], [0, 0, 1, 0], [], []>} : vector<1x32xf32>, vector<16x32xf32>, vector<1x16xf32> -> vector<1x16xf32>
    %35 = arith.addf %33, %34 : vector<1x16xf32>
    %36 = vector.broadcast %32 : vector<1x1xf32> to vector<1x16xf32>
    %37 = arith.addf %35, %36 : vector<1x16xf32>
    %38 = arith.addf %37, %7 : vector<1x16xf32>
    %cst_31 = arith.constant dense<0xFF800000> : vector<1xf32>
    %39 = vector.multi_reduction <maximumf>, %38, %cst_31 [1] : vector<1x16xf32> to vector<1xf32>
    %40 = vector.shape_cast %39 : vector<1xf32> to vector<1x1xf32>
    %41 = vector.broadcast %40 : vector<1x1xf32> to vector<1x16xf32>
    %42 = arith.subf %38, %41 : vector<1x16xf32>
    %43 = math.exp %42 : vector<1x16xf32>
    %cst_32 = arith.constant dense<0.000000e+00> : vector<1xf32>
    %44 = vector.multi_reduction <add>, %43, %cst_32 [1] : vector<1x16xf32> to vector<1xf32>
    %45 = vector.shape_cast %44 : vector<1xf32> to vector<1x1xf32>
    %46 = math.log %45 : vector<1x1xf32>
    %47 = vector.broadcast %46 : vector<1x1xf32> to vector<1x16xf32>
    %48 = arith.subf %42, %47 : vector<1x16xf32>
    %c0_33 = arith.constant 0 : index
    %c0_34 = arith.constant 0 : index
    %c0_35 = arith.constant 0 : index
    %49 = vector.load %arg12[%c0_33, %c0_34, %c0_35] : memref<1x1x16xf32, #tpu.memory_space<vmem>>, vector<1x1x16xf32>
    %50 = vector.shape_cast %49 : vector<1x1x16xf32> to vector<1x16xf32>
    %51 = vector.shape_cast %48 : vector<1x16xf32> to vector<1x1x16xf32>
    tpu.vector_store %arg12[%c0_33, %c0_34, %c0_35], %51 {strides = array<i32>} : memref<1x1x16xf32, #tpu.memory_space<vmem>>, vector<1x1x16xf32>,
    return
  }
  func.func @transform_0(%arg0: i32) -> (i32, i32, i32) {
    %c0_i32 = arith.constant 0 : i32
    %c0_i32_0 = arith.constant 0 : i32
    %c0_i32_1 = arith.constant 0 : i32
    return %arg0, %c0_i32, %c0_i32_0 : i32, i32, i32
  }
  func.func @transform_1(%arg0: i32) -> (i32, i32, i32) {
    %c0_i32 = arith.constant 0 : i32
    %c0_i32_0 = arith.constant 0 : i32
    %c0_i32_1 = arith.constant 0 : i32
    return %arg0, %c0_i32, %c0_i32_0 : i32, i32, i32
  }
  func.func @transform_2(%arg0: i32) -> (i32, i32, i32) {
    %c0_i32 = arith.constant 0 : i32
    %c0_i32_0 = arith.constant 0 : i32
    %c0_i32_1 = arith.constant 0 : i32
    return %arg0, %c0_i32, %c0_i32_0 : i32, i32, i32
  }
  func.func @transform_3(%arg0: i32) -> (i32, i32, i32) {
    %c0_i32 = arith.constant 0 : i32
    %c0_i32_0 = arith.constant 0 : i32
    %c0_i32_1 = arith.constant 0 : i32
    return %arg0, %c0_i32, %c0_i32_0 : i32, i32, i32
  }
  func.func @transform_4(%arg0: i32) -> (i32, i32) {
    %c0_i32 = arith.constant 0 : i32
    %c0_i32_0 = arith.constant 0 : i32
    %c0_i32_1 = arith.constant 0 : i32
    return %c0_i32, %c0_i32_0 : i32, i32
  }
  func.func @transform_5(%arg0: i32) -> (i32, i32) {
    %c0_i32 = arith.constant 0 : i32
    %c0_i32_0 = arith.constant 0 : i32
    %c0_i32_1 = arith.constant 0 : i32
    return %c0_i32, %c0_i32_0 : i32, i32
  }
  func.func @transform_6(%arg0: i32) -> (i32, i32) {
    %c0_i32 = arith.constant 0 : i32
    %c0_i32_0 = arith.constant 0 : i32
    %c0_i32_1 = arith.constant 0 : i32
    return %c0_i32, %c0_i32_0 : i32, i32
  }
  func.func @transform_7(%arg0: i32) -> (i32, i32) {
    %c0_i32 = arith.constant 0 : i32
    %c0_i32_0 = arith.constant 0 : i32
    %c0_i32_1 = arith.constant 0 : i32
    return %c0_i32, %c0_i32_0 : i32, i32
  }
  func.func @transform_8(%arg0: i32) -> (i32, i32) {
    %c0_i32 = arith.constant 0 : i32
    %c0_i32_0 = arith.constant 0 : i32
    %c0_i32_1 = arith.constant 0 : i32
    return %c0_i32, %c0_i32_0 : i32, i32
  }
  func.func @transform_9(%arg0: i32) -> (i32, i32) {
    %c0_i32 = arith.constant 0 : i32
    %c0_i32_0 = arith.constant 0 : i32
    %c0_i32_1 = arith.constant 0 : i32
    return %c0_i32, %c0_i32_0 : i32, i32
  }
  func.func @transform_10(%arg0: i32) -> (i32, i32, i32) {
    %c0_i32 = arith.constant 0 : i32
    %c0_i32_0 = arith.constant 0 : i32
    %c0_i32_1 = arith.constant 0 : i32
    return %arg0, %c0_i32, %c0_i32_0 : i32, i32, i32
  }
  func.func @transform_11(%arg0: i32) -> (i32, i32, i32) {
    %c0_i32 = arith.constant 0 : i32
    %c0_i32_0 = arith.constant 0 : i32
    %c0_i32_1 = arith.constant 0 : i32
    return %arg0, %c0_i32, %c0_i32_0 : i32, i32, i32
  }
}

module attributes {stable_mosaic.version = 11 : i64} {
  func.func @_bidaf_resize_kernel(%arg0: i32, %arg1: memref<1x16x32xf32, #tpu.memory_space<vmem>>, %arg2: memref<1x8x32xf32, #tpu.memory_space<vmem>>, %arg3: memref<1x1x16xf32, #tpu.memory_space<vmem>>, %arg4: memref<1x1x8xf32, #tpu.memory_space<vmem>>, %arg5: memref<1x32xf32, #tpu.memory_space<vmem>>, %arg6: memref<1x32xf32, #tpu.memory_space<vmem>>, %arg7: memref<1x32xf32, #tpu.memory_space<vmem>>, %arg8: memref<1x1xf32, #tpu.memory_space<vmem>>, %arg9: memref<4x7x32xf32, #tpu.memory_space<vmem>>, %arg10: memref<4x32x32xf32, #tpu.memory_space<vmem>>, %arg11: memref<1x32xf32, #tpu.memory_space<vmem>>, %arg12: memref<1x16x32xf32, #tpu.memory_space<vmem>>) attributes {dimension_semantics = [#tpu.dimension_semantics<parallel>], iteration_bounds = array<i64: 2>, scalar_prefetch = 0 : i64, scratch_operands = 0 : i64, tpu.core_type = #tpu.core_type<tc>, window_params = [{transform_indices = @transform_0, window_bounds = array<i64: 1, 16, 32>}, {transform_indices = @transform_1, window_bounds = array<i64: 1, 8, 32>}, {transform_indices = @transform_2, window_bounds = array<i64: 1, 1, 16>}, {transform_indices = @transform_3, window_bounds = array<i64: 1, 1, 8>}, {pipeline_mode = #tpu.pipeline_mode<synchronous>, transform_indices = @transform_4, window_bounds = array<i64: 1, 32>}, {pipeline_mode = #tpu.pipeline_mode<synchronous>, transform_indices = @transform_5, window_bounds = array<i64: 1, 32>}, {pipeline_mode = #tpu.pipeline_mode<synchronous>, transform_indices = @transform_6, window_bounds = array<i64: 1, 32>}, {pipeline_mode = #tpu.pipeline_mode<synchronous>, transform_indices = @transform_7, window_bounds = array<i64: 1, 1>}, {pipeline_mode = #tpu.pipeline_mode<synchronous>, transform_indices = @transform_8, window_bounds = array<i64: 4, 7, 32>}, {pipeline_mode = #tpu.pipeline_mode<synchronous>, transform_indices = @transform_9, window_bounds = array<i64: 4, 32, 32>}, {pipeline_mode = #tpu.pipeline_mode<synchronous>, transform_indices = @transform_10, window_bounds = array<i64: 1, 32>}, {transform_indices = @transform_11, window_bounds = array<i64: 1, 16, 32>}]} {
    %c0 = arith.constant 0 : index
    %c0_0 = arith.constant 0 : index
    %c0_1 = arith.constant 0 : index
    %0 = vector.load %arg1[%c0, %c0_0, %c0_1] : memref<1x16x32xf32, #tpu.memory_space<vmem>>, vector<1x16x32xf32>
    %1 = vector.shape_cast %0 : vector<1x16x32xf32> to vector<16x32xf32>
    %c0_2 = arith.constant 0 : index
    %c0_3 = arith.constant 0 : index
    %c0_4 = arith.constant 0 : index
    %2 = vector.load %arg2[%c0_2, %c0_3, %c0_4] : memref<1x8x32xf32, #tpu.memory_space<vmem>>, vector<1x8x32xf32>
    %3 = vector.shape_cast %2 : vector<1x8x32xf32> to vector<8x32xf32>
    %c0_5 = arith.constant 0 : index
    %c0_6 = arith.constant 0 : index
    %c0_7 = arith.constant 0 : index
    %4 = vector.load %arg3[%c0_5, %c0_6, %c0_7] : memref<1x1x16xf32, #tpu.memory_space<vmem>>, vector<1x1x16xf32>
    %5 = vector.shape_cast %4 : vector<1x1x16xf32> to vector<1x16xf32>
    %c0_8 = arith.constant 0 : index
    %c0_9 = arith.constant 0 : index
    %c0_10 = arith.constant 0 : index
    %6 = vector.load %arg4[%c0_8, %c0_9, %c0_10] : memref<1x1x8xf32, #tpu.memory_space<vmem>>, vector<1x1x8xf32>
    %7 = vector.shape_cast %6 : vector<1x1x8xf32> to vector<1x8xf32>
    %c0_11 = arith.constant 0 : index
    %c0_12 = arith.constant 0 : index
    %8 = vector.load %arg8[%c0_11, %c0_12] : memref<1x1xf32, #tpu.memory_space<vmem>>, vector<1x1xf32>
    %c0_13 = arith.constant 0 : index
    %c0_14 = arith.constant 0 : index
    %9 = vector.load %arg7[%c0_13, %c0_14] : memref<1x32xf32, #tpu.memory_space<vmem>>, vector<1x32xf32>
    %10 = vector.broadcast %9 : vector<1x32xf32> to vector<16x32xf32>
    %11 = arith.mulf %1, %10 : vector<16x32xf32>
    %cst = arith.constant dense<0.000000e+00> : vector<16x8xf32>
    %12 = tpu.matmul %11, %3, %cst {dimension_numbers = #tpu.dot_dimension_numbers<[1], [1], [0], [0], [0, 0, 1, 0], [], []>} : vector<16x32xf32>, vector<8x32xf32>, vector<16x8xf32> -> vector<16x8xf32>
    %cst_15 = arith.constant dense<0.000000e+00> : vector<8x16xf32>
    %13 = tpu.matmul %3, %11, %cst_15 {dimension_numbers = #tpu.dot_dimension_numbers<[1], [1], [0], [0], [0, 0, 1, 0], [], []>} : vector<8x32xf32>, vector<16x32xf32>, vector<8x16xf32> -> vector<8x16xf32>
    %c0_16 = arith.constant 0 : index
    %c0_17 = arith.constant 0 : index
    %14 = vector.load %arg5[%c0_16, %c0_17] : memref<1x32xf32, #tpu.memory_space<vmem>>, vector<1x32xf32>
    %15 = vector.broadcast %14 : vector<1x32xf32> to vector<16x32xf32>
    %16 = arith.mulf %1, %15 : vector<16x32xf32>
    %cst_18 = arith.constant dense<0.000000e+00> : vector<16xf32>
    %17 = vector.multi_reduction <add>, %16, %cst_18 [1] : vector<16x32xf32> to vector<16xf32>
    %18 = vector.shape_cast %17 : vector<16xf32> to vector<16x1xf32>
    %c0_19 = arith.constant 0 : index
    %c0_20 = arith.constant 0 : index
    %19 = vector.load %arg6[%c0_19, %c0_20] : memref<1x32xf32, #tpu.memory_space<vmem>>, vector<1x32xf32>
    %20 = vector.broadcast %19 : vector<1x32xf32> to vector<8x32xf32>
    %21 = arith.mulf %3, %20 : vector<8x32xf32>
    %cst_21 = arith.constant dense<0.000000e+00> : vector<8xf32>
    %22 = vector.multi_reduction <add>, %21, %cst_21 [1] : vector<8x32xf32> to vector<8xf32>
    %23 = vector.shape_cast %22 : vector<8xf32> to vector<8x1xf32>
    %c0_22 = arith.constant 0 : index
    %c0_23 = arith.constant 0 : index
    %24 = vector.load %arg5[%c0_22, %c0_23] : memref<1x32xf32, #tpu.memory_space<vmem>>, vector<1x32xf32>
    %cst_24 = arith.constant dense<0.000000e+00> : vector<1x16xf32>
    %25 = tpu.matmul %24, %1, %cst_24 {dimension_numbers = #tpu.dot_dimension_numbers<[1], [1], [0], [0], [0, 0, 1, 0], [], []>} : vector<1x32xf32>, vector<16x32xf32>, vector<1x16xf32> -> vector<1x16xf32>
    %c0_25 = arith.constant 0 : index
    %c0_26 = arith.constant 0 : index
    %26 = vector.load %arg6[%c0_25, %c0_26] : memref<1x32xf32, #tpu.memory_space<vmem>>, vector<1x32xf32>
    %cst_27 = arith.constant dense<0.000000e+00> : vector<1x8xf32>
    %27 = tpu.matmul %26, %3, %cst_27 {dimension_numbers = #tpu.dot_dimension_numbers<[1], [1], [0], [0], [0, 0, 1, 0], [], []>} : vector<1x32xf32>, vector<8x32xf32>, vector<1x8xf32> -> vector<1x8xf32>
    %28 = vector.broadcast %18 : vector<16x1xf32> to vector<16x8xf32>
    %29 = vector.broadcast %27 : vector<1x8xf32> to vector<16x8xf32>
    %30 = arith.addf %28, %29 : vector<16x8xf32>
    %31 = arith.addf %30, %12 : vector<16x8xf32>
    %32 = vector.broadcast %8 : vector<1x1xf32> to vector<16x8xf32>
    %33 = arith.addf %31, %32 : vector<16x8xf32>
    %34 = vector.broadcast %23 : vector<8x1xf32> to vector<8x16xf32>
    %35 = vector.broadcast %25 : vector<1x16xf32> to vector<8x16xf32>
    %36 = arith.addf %34, %35 : vector<8x16xf32>
    %37 = arith.addf %36, %13 : vector<8x16xf32>
    %38 = vector.broadcast %8 : vector<1x1xf32> to vector<8x16xf32>
    %39 = arith.addf %37, %38 : vector<8x16xf32>
    %40 = vector.broadcast %7 : vector<1x8xf32> to vector<16x8xf32>
    %41 = arith.addf %33, %40 : vector<16x8xf32>
    %cst_28 = arith.constant dense<0xFF800000> : vector<16xf32>
    %42 = vector.multi_reduction <maximumf>, %41, %cst_28 [1] : vector<16x8xf32> to vector<16xf32>
    %43 = vector.shape_cast %42 : vector<16xf32> to vector<16x1xf32>
    %44 = vector.broadcast %43 : vector<16x1xf32> to vector<16x8xf32>
    %45 = arith.subf %41, %44 : vector<16x8xf32>
    %46 = math.exp %45 : vector<16x8xf32>
    %cst_29 = arith.constant dense<0.000000e+00> : vector<16xf32>
    %47 = vector.multi_reduction <add>, %46, %cst_29 [1] : vector<16x8xf32> to vector<16xf32>
    %48 = vector.shape_cast %47 : vector<16xf32> to vector<16x1xf32>
    %49 = vector.broadcast %48 : vector<16x1xf32> to vector<16x8xf32>
    %50 = arith.divf %46, %49 : vector<16x8xf32>
    %51 = vector.broadcast %5 : vector<1x16xf32> to vector<8x16xf32>
    %52 = arith.addf %39, %51 : vector<8x16xf32>
    %cst_30 = arith.constant dense<0xFF800000> : vector<8xf32>
    %53 = vector.multi_reduction <maximumf>, %52, %cst_30 [1] : vector<8x16xf32> to vector<8xf32>
    %54 = vector.shape_cast %53 : vector<8xf32> to vector<8x1xf32>
    %55 = vector.broadcast %54 : vector<8x1xf32> to vector<8x16xf32>
    %56 = arith.subf %52, %55 : vector<8x16xf32>
    %57 = math.exp %56 : vector<8x16xf32>
    %cst_31 = arith.constant dense<0.000000e+00> : vector<8xf32>
    %58 = vector.multi_reduction <add>, %57, %cst_31 [1] : vector<8x16xf32> to vector<8xf32>
    %59 = vector.shape_cast %58 : vector<8xf32> to vector<8x1xf32>
    %60 = vector.broadcast %59 : vector<8x1xf32> to vector<8x16xf32>
    %61 = arith.divf %57, %60 : vector<8x16xf32>
    %cst_32 = arith.constant dense<0.000000e+00> : vector<16x32xf32>
    %62 = tpu.matmul %50, %3, %cst_32 {dimension_numbers = #tpu.dot_dimension_numbers<[1], [0], [0], [1], [0, 0, 1, 1], [], []>} : vector<16x8xf32>, vector<8x32xf32>, vector<16x32xf32> -> vector<16x32xf32>
    %cst_33 = arith.constant dense<0.000000e+00> : vector<16x16xf32>
    %63 = tpu.matmul %50, %61, %cst_33 {dimension_numbers = #tpu.dot_dimension_numbers<[1], [0], [0], [1], [0, 0, 1, 1], [], []>} : vector<16x8xf32>, vector<8x16xf32>, vector<16x16xf32> -> vector<16x16xf32>
    %cst_34 = arith.constant dense<0.000000e+00> : vector<16x32xf32>
    %64 = tpu.matmul %63, %1, %cst_34 {dimension_numbers = #tpu.dot_dimension_numbers<[1], [0], [0], [1], [0, 0, 1, 1], [], []>} : vector<16x16xf32>, vector<16x32xf32>, vector<16x32xf32> -> vector<16x32xf32>
    %65 = arith.mulf %1, %62 : vector<16x32xf32>
    %66 = arith.mulf %1, %64 : vector<16x32xf32>
    %cst_35 = arith.constant 0.000000e+00 : f32
    %67 = vector.broadcast %cst_35 : f32 to vector<16x32xf32>
    %c0_36 = arith.constant 0 : index
    %c0_37 = arith.constant 0 : index
    %68 = vector.load %arg11[%c0_36, %c0_37] : memref<1x32xf32, #tpu.memory_space<vmem>>, vector<1x32xf32>
    %69 = vector.broadcast %68 : vector<1x32xf32> to vector<16x32xf32>
    %70 = arith.addf %67, %69 : vector<16x32xf32>
    %c0_38 = arith.constant 0 : index
    %c0_39 = arith.constant 0 : index
    %c0_40 = arith.constant 0 : index
    %71 = vector.load %arg9[%c0_38, %c0_39, %c0_40] : memref<4x7x32xf32, #tpu.memory_space<vmem>>, vector<1x7x32xf32>
    %72 = vector.shape_cast %71 : vector<1x7x32xf32> to vector<7x32xf32>
    %73 = tpu.iota {dimensions = array<i32: 0>} : vector<16x16xi32>
    %74 = tpu.iota {dimensions = array<i32: 1>} : vector<16x16xi32>
    %cst_41 = arith.constant 0.000000e+00 : f32
    %75 = vector.broadcast %cst_41 : f32 to vector<16x32xf32>
    %c-3_i32 = arith.constant -3 : i32
    %76 = vector.broadcast %c-3_i32 : i32 to vector<16x16xi32>
    %77 = arith.addi %73, %76 : vector<16x16xi32>
    %78 = arith.cmpi eq, %74, %77 : vector<16x16xi32>
    %cst_42 = arith.constant 1.000000e+00 : f32
    %cst_43 = arith.constant 0.000000e+00 : f32
    %79 = vector.broadcast %cst_42 : f32 to vector<16x16xf32>
    %80 = vector.broadcast %cst_43 : f32 to vector<16x16xf32>
    %81 = arith.select %78, %79, %80 : vector<16x16xi1>, vector<16x16xf32>
    %cst_44 = arith.constant dense<0.000000e+00> : vector<16x32xf32>
    %82 = tpu.matmul %81, %1, %cst_44 {dimension_numbers = #tpu.dot_dimension_numbers<[1], [0], [0], [1], [0, 0, 1, 1], [], []>} : vector<16x16xf32>, vector<16x32xf32>, vector<16x32xf32> -> vector<16x32xf32>
    %83 = vector.extract_strided_slice %72 {offsets = [0, 0], sizes = [1, 32], strides = [1, 1]} : vector<7x32xf32> to vector<1x32xf32>
    %84 = vector.broadcast %83 : vector<1x32xf32> to vector<16x32xf32>
    %85 = arith.mulf %82, %84 : vector<16x32xf32>
    %86 = arith.addf %75, %85 : vector<16x32xf32>
    %c-2_i32 = arith.constant -2 : i32
    %87 = vector.broadcast %c-2_i32 : i32 to vector<16x16xi32>
    %88 = arith.addi %73, %87 : vector<16x16xi32>
    %89 = arith.cmpi eq, %74, %88 : vector<16x16xi32>
    %cst_45 = arith.constant 1.000000e+00 : f32
    %cst_46 = arith.constant 0.000000e+00 : f32
    %90 = vector.broadcast %cst_45 : f32 to vector<16x16xf32>
    %91 = vector.broadcast %cst_46 : f32 to vector<16x16xf32>
    %92 = arith.select %89, %90, %91 : vector<16x16xi1>, vector<16x16xf32>
    %cst_47 = arith.constant dense<0.000000e+00> : vector<16x32xf32>
    %93 = tpu.matmul %92, %1, %cst_47 {dimension_numbers = #tpu.dot_dimension_numbers<[1], [0], [0], [1], [0, 0, 1, 1], [], []>} : vector<16x16xf32>, vector<16x32xf32>, vector<16x32xf32> -> vector<16x32xf32>
    %94 = vector.extract_strided_slice %72 {offsets = [1, 0], sizes = [1, 32], strides = [1, 1]} : vector<7x32xf32> to vector<1x32xf32>
    %95 = vector.broadcast %94 : vector<1x32xf32> to vector<16x32xf32>
    %96 = arith.mulf %93, %95 : vector<16x32xf32>
    %97 = arith.addf %86, %96 : vector<16x32xf32>
    %c-1_i32 = arith.constant -1 : i32
    %98 = vector.broadcast %c-1_i32 : i32 to vector<16x16xi32>
    %99 = arith.addi %73, %98 : vector<16x16xi32>
    %100 = arith.cmpi eq, %74, %99 : vector<16x16xi32>
    %cst_48 = arith.constant 1.000000e+00 : f32
    %cst_49 = arith.constant 0.000000e+00 : f32
    %101 = vector.broadcast %cst_48 : f32 to vector<16x16xf32>
    %102 = vector.broadcast %cst_49 : f32 to vector<16x16xf32>
    %103 = arith.select %100, %101, %102 : vector<16x16xi1>, vector<16x16xf32>
    %cst_50 = arith.constant dense<0.000000e+00> : vector<16x32xf32>
    %104 = tpu.matmul %103, %1, %cst_50 {dimension_numbers = #tpu.dot_dimension_numbers<[1], [0], [0], [1], [0, 0, 1, 1], [], []>} : vector<16x16xf32>, vector<16x32xf32>, vector<16x32xf32> -> vector<16x32xf32>
    %105 = vector.extract_strided_slice %72 {offsets = [2, 0], sizes = [1, 32], strides = [1, 1]} : vector<7x32xf32> to vector<1x32xf32>
    %106 = vector.broadcast %105 : vector<1x32xf32> to vector<16x32xf32>
    %107 = arith.mulf %104, %106 : vector<16x32xf32>
    %108 = arith.addf %97, %107 : vector<16x32xf32>
    %c0_i32 = arith.constant 0 : i32
    %109 = vector.broadcast %c0_i32 : i32 to vector<16x16xi32>
    %110 = arith.addi %73, %109 : vector<16x16xi32>
    %111 = arith.cmpi eq, %74, %110 : vector<16x16xi32>
    %cst_51 = arith.constant 1.000000e+00 : f32
    %cst_52 = arith.constant 0.000000e+00 : f32
    %112 = vector.broadcast %cst_51 : f32 to vector<16x16xf32>
    %113 = vector.broadcast %cst_52 : f32 to vector<16x16xf32>
    %114 = arith.select %111, %112, %113 : vector<16x16xi1>, vector<16x16xf32>
    %cst_53 = arith.constant dense<0.000000e+00> : vector<16x32xf32>
    %115 = tpu.matmul %114, %1, %cst_53 {dimension_numbers = #tpu.dot_dimension_numbers<[1], [0], [0], [1], [0, 0, 1, 1], [], []>} : vector<16x16xf32>, vector<16x32xf32>, vector<16x32xf32> -> vector<16x32xf32>
    %116 = vector.extract_strided_slice %72 {offsets = [3, 0], sizes = [1, 32], strides = [1, 1]} : vector<7x32xf32> to vector<1x32xf32>
    %117 = vector.broadcast %116 : vector<1x32xf32> to vector<16x32xf32>
    %118 = arith.mulf %115, %117 : vector<16x32xf32>
    %119 = arith.addf %108, %118 : vector<16x32xf32>
    %c1_i32 = arith.constant 1 : i32
    %120 = vector.broadcast %c1_i32 : i32 to vector<16x16xi32>
    %121 = arith.addi %73, %120 : vector<16x16xi32>
    %122 = arith.cmpi eq, %74, %121 : vector<16x16xi32>
    %cst_54 = arith.constant 1.000000e+00 : f32
    %cst_55 = arith.constant 0.000000e+00 : f32
    %123 = vector.broadcast %cst_54 : f32 to vector<16x16xf32>
    %124 = vector.broadcast %cst_55 : f32 to vector<16x16xf32>
    %125 = arith.select %122, %123, %124 : vector<16x16xi1>, vector<16x16xf32>
    %cst_56 = arith.constant dense<0.000000e+00> : vector<16x32xf32>
    %126 = tpu.matmul %125, %1, %cst_56 {dimension_numbers = #tpu.dot_dimension_numbers<[1], [0], [0], [1], [0, 0, 1, 1], [], []>} : vector<16x16xf32>, vector<16x32xf32>, vector<16x32xf32> -> vector<16x32xf32>
    %127 = vector.extract_strided_slice %72 {offsets = [4, 0], sizes = [1, 32], strides = [1, 1]} : vector<7x32xf32> to vector<1x32xf32>
    %128 = vector.broadcast %127 : vector<1x32xf32> to vector<16x32xf32>
    %129 = arith.mulf %126, %128 : vector<16x32xf32>
    %130 = arith.addf %119, %129 : vector<16x32xf32>
    %c2_i32 = arith.constant 2 : i32
    %131 = vector.broadcast %c2_i32 : i32 to vector<16x16xi32>
    %132 = arith.addi %73, %131 : vector<16x16xi32>
    %133 = arith.cmpi eq, %74, %132 : vector<16x16xi32>
    %cst_57 = arith.constant 1.000000e+00 : f32
    %cst_58 = arith.constant 0.000000e+00 : f32
    %134 = vector.broadcast %cst_57 : f32 to vector<16x16xf32>
    %135 = vector.broadcast %cst_58 : f32 to vector<16x16xf32>
    %136 = arith.select %133, %134, %135 : vector<16x16xi1>, vector<16x16xf32>
    %cst_59 = arith.constant dense<0.000000e+00> : vector<16x32xf32>
    %137 = tpu.matmul %136, %1, %cst_59 {dimension_numbers = #tpu.dot_dimension_numbers<[1], [0], [0], [1], [0, 0, 1, 1], [], []>} : vector<16x16xf32>, vector<16x32xf32>, vector<16x32xf32> -> vector<16x32xf32>
    %138 = vector.extract_strided_slice %72 {offsets = [5, 0], sizes = [1, 32], strides = [1, 1]} : vector<7x32xf32> to vector<1x32xf32>
    %139 = vector.broadcast %138 : vector<1x32xf32> to vector<16x32xf32>
    %140 = arith.mulf %137, %139 : vector<16x32xf32>
    %141 = arith.addf %130, %140 : vector<16x32xf32>
    %c3_i32 = arith.constant 3 : i32
    %142 = vector.broadcast %c3_i32 : i32 to vector<16x16xi32>
    %143 = arith.addi %73, %142 : vector<16x16xi32>
    %144 = arith.cmpi eq, %74, %143 : vector<16x16xi32>
    %cst_60 = arith.constant 1.000000e+00 : f32
    %cst_61 = arith.constant 0.000000e+00 : f32
    %145 = vector.broadcast %cst_60 : f32 to vector<16x16xf32>
    %146 = vector.broadcast %cst_61 : f32 to vector<16x16xf32>
    %147 = arith.select %144, %145, %146 : vector<16x16xi1>, vector<16x16xf32>
    %cst_62 = arith.constant dense<0.000000e+00> : vector<16x32xf32>
    %148 = tpu.matmul %147, %1, %cst_62 {dimension_numbers = #tpu.dot_dimension_numbers<[1], [0], [0], [1], [0, 0, 1, 1], [], []>} : vector<16x16xf32>, vector<16x32xf32>, vector<16x32xf32> -> vector<16x32xf32>
    %149 = vector.extract_strided_slice %72 {offsets = [6, 0], sizes = [1, 32], strides = [1, 1]} : vector<7x32xf32> to vector<1x32xf32>
    %150 = vector.broadcast %149 : vector<1x32xf32> to vector<16x32xf32>
    %151 = arith.mulf %148, %150 : vector<16x32xf32>
    %152 = arith.addf %141, %151 : vector<16x32xf32>
    %c0_63 = arith.constant 0 : index
    %c0_64 = arith.constant 0 : index
    %c0_65 = arith.constant 0 : index
    %153 = vector.load %arg10[%c0_63, %c0_64, %c0_65] : memref<4x32x32xf32, #tpu.memory_space<vmem>>, vector<1x32x32xf32>
    %154 = vector.shape_cast %153 : vector<1x32x32xf32> to vector<32x32xf32>
    %cst_66 = arith.constant dense<0.000000e+00> : vector<16x32xf32>
    %155 = tpu.matmul %152, %154, %cst_66 {dimension_numbers = #tpu.dot_dimension_numbers<[1], [0], [0], [1], [0, 0, 1, 1], [], []>} : vector<16x32xf32>, vector<32x32xf32>, vector<16x32xf32> -> vector<16x32xf32>
    %156 = arith.addf %70, %155 : vector<16x32xf32>
    %c1 = arith.constant 1 : index
    %c0_67 = arith.constant 0 : index
    %c0_68 = arith.constant 0 : index
    %157 = vector.load %arg9[%c1, %c0_67, %c0_68] : memref<4x7x32xf32, #tpu.memory_space<vmem>>, vector<1x7x32xf32>
    %158 = vector.shape_cast %157 : vector<1x7x32xf32> to vector<7x32xf32>
    %159 = tpu.iota {dimensions = array<i32: 0>} : vector<16x16xi32>
    %160 = tpu.iota {dimensions = array<i32: 1>} : vector<16x16xi32>
    %cst_69 = arith.constant 0.000000e+00 : f32
    %161 = vector.broadcast %cst_69 : f32 to vector<16x32xf32>
    %c-3_i32_70 = arith.constant -3 : i32
    %162 = vector.broadcast %c-3_i32_70 : i32 to vector<16x16xi32>
    %163 = arith.addi %159, %162 : vector<16x16xi32>
    %164 = arith.cmpi eq, %160, %163 : vector<16x16xi32>
    %cst_71 = arith.constant 1.000000e+00 : f32
    %cst_72 = arith.constant 0.000000e+00 : f32
    %165 = vector.broadcast %cst_71 : f32 to vector<16x16xf32>
    %166 = vector.broadcast %cst_72 : f32 to vector<16x16xf32>
    %167 = arith.select %164, %165, %166 : vector<16x16xi1>, vector<16x16xf32>
    %cst_73 = arith.constant dense<0.000000e+00> : vector<16x32xf32>
    %168 = tpu.matmul %167, %62, %cst_73 {dimension_numbers = #tpu.dot_dimension_numbers<[1], [0], [0], [1], [0, 0, 1, 1], [], []>} : vector<16x16xf32>, vector<16x32xf32>, vector<16x32xf32> -> vector<16x32xf32>
    %169 = vector.extract_strided_slice %158 {offsets = [0, 0], sizes = [1, 32], strides = [1, 1]} : vector<7x32xf32> to vector<1x32xf32>
    %170 = vector.broadcast %169 : vector<1x32xf32> to vector<16x32xf32>
    %171 = arith.mulf %168, %170 : vector<16x32xf32>
    %172 = arith.addf %161, %171 : vector<16x32xf32>
    %c-2_i32_74 = arith.constant -2 : i32
    %173 = vector.broadcast %c-2_i32_74 : i32 to vector<16x16xi32>
    %174 = arith.addi %159, %173 : vector<16x16xi32>
    %175 = arith.cmpi eq, %160, %174 : vector<16x16xi32>
    %cst_75 = arith.constant 1.000000e+00 : f32
    %cst_76 = arith.constant 0.000000e+00 : f32
    %176 = vector.broadcast %cst_75 : f32 to vector<16x16xf32>
    %177 = vector.broadcast %cst_76 : f32 to vector<16x16xf32>
    %178 = arith.select %175, %176, %177 : vector<16x16xi1>, vector<16x16xf32>
    %cst_77 = arith.constant dense<0.000000e+00> : vector<16x32xf32>
    %179 = tpu.matmul %178, %62, %cst_77 {dimension_numbers = #tpu.dot_dimension_numbers<[1], [0], [0], [1], [0, 0, 1, 1], [], []>} : vector<16x16xf32>, vector<16x32xf32>, vector<16x32xf32> -> vector<16x32xf32>
    %180 = vector.extract_strided_slice %158 {offsets = [1, 0], sizes = [1, 32], strides = [1, 1]} : vector<7x32xf32> to vector<1x32xf32>
    %181 = vector.broadcast %180 : vector<1x32xf32> to vector<16x32xf32>
    %182 = arith.mulf %179, %181 : vector<16x32xf32>
    %183 = arith.addf %172, %182 : vector<16x32xf32>
    %c-1_i32_78 = arith.constant -1 : i32
    %184 = vector.broadcast %c-1_i32_78 : i32 to vector<16x16xi32>
    %185 = arith.addi %159, %184 : vector<16x16xi32>
    %186 = arith.cmpi eq, %160, %185 : vector<16x16xi32>
    %cst_79 = arith.constant 1.000000e+00 : f32
    %cst_80 = arith.constant 0.000000e+00 : f32
    %187 = vector.broadcast %cst_79 : f32 to vector<16x16xf32>
    %188 = vector.broadcast %cst_80 : f32 to vector<16x16xf32>
    %189 = arith.select %186, %187, %188 : vector<16x16xi1>, vector<16x16xf32>
    %cst_81 = arith.constant dense<0.000000e+00> : vector<16x32xf32>
    %190 = tpu.matmul %189, %62, %cst_81 {dimension_numbers = #tpu.dot_dimension_numbers<[1], [0], [0], [1], [0, 0, 1, 1], [], []>} : vector<16x16xf32>, vector<16x32xf32>, vector<16x32xf32> -> vector<16x32xf32>
    %191 = vector.extract_strided_slice %158 {offsets = [2, 0], sizes = [1, 32], strides = [1, 1]} : vector<7x32xf32> to vector<1x32xf32>
    %192 = vector.broadcast %191 : vector<1x32xf32> to vector<16x32xf32>
    %193 = arith.mulf %190, %192 : vector<16x32xf32>
    %194 = arith.addf %183, %193 : vector<16x32xf32>
    %c0_i32_82 = arith.constant 0 : i32
    %195 = vector.broadcast %c0_i32_82 : i32 to vector<16x16xi32>
    %196 = arith.addi %159, %195 : vector<16x16xi32>
    %197 = arith.cmpi eq, %160, %196 : vector<16x16xi32>
    %cst_83 = arith.constant 1.000000e+00 : f32
    %cst_84 = arith.constant 0.000000e+00 : f32
    %198 = vector.broadcast %cst_83 : f32 to vector<16x16xf32>
    %199 = vector.broadcast %cst_84 : f32 to vector<16x16xf32>
    %200 = arith.select %197, %198, %199 : vector<16x16xi1>, vector<16x16xf32>
    %cst_85 = arith.constant dense<0.000000e+00> : vector<16x32xf32>
    %201 = tpu.matmul %200, %62, %cst_85 {dimension_numbers = #tpu.dot_dimension_numbers<[1], [0], [0], [1], [0, 0, 1, 1], [], []>} : vector<16x16xf32>, vector<16x32xf32>, vector<16x32xf32> -> vector<16x32xf32>
    %202 = vector.extract_strided_slice %158 {offsets = [3, 0], sizes = [1, 32], strides = [1, 1]} : vector<7x32xf32> to vector<1x32xf32>
    %203 = vector.broadcast %202 : vector<1x32xf32> to vector<16x32xf32>
    %204 = arith.mulf %201, %203 : vector<16x32xf32>
    %205 = arith.addf %194, %204 : vector<16x32xf32>
    %c1_i32_86 = arith.constant 1 : i32
    %206 = vector.broadcast %c1_i32_86 : i32 to vector<16x16xi32>
    %207 = arith.addi %159, %206 : vector<16x16xi32>
    %208 = arith.cmpi eq, %160, %207 : vector<16x16xi32>
    %cst_87 = arith.constant 1.000000e+00 : f32
    %cst_88 = arith.constant 0.000000e+00 : f32
    %209 = vector.broadcast %cst_87 : f32 to vector<16x16xf32>
    %210 = vector.broadcast %cst_88 : f32 to vector<16x16xf32>
    %211 = arith.select %208, %209, %210 : vector<16x16xi1>, vector<16x16xf32>
    %cst_89 = arith.constant dense<0.000000e+00> : vector<16x32xf32>
    %212 = tpu.matmul %211, %62, %cst_89 {dimension_numbers = #tpu.dot_dimension_numbers<[1], [0], [0], [1], [0, 0, 1, 1], [], []>} : vector<16x16xf32>, vector<16x32xf32>, vector<16x32xf32> -> vector<16x32xf32>
    %213 = vector.extract_strided_slice %158 {offsets = [4, 0], sizes = [1, 32], strides = [1, 1]} : vector<7x32xf32> to vector<1x32xf32>
    %214 = vector.broadcast %213 : vector<1x32xf32> to vector<16x32xf32>
    %215 = arith.mulf %212, %214 : vector<16x32xf32>
    %216 = arith.addf %205, %215 : vector<16x32xf32>
    %c2_i32_90 = arith.constant 2 : i32
    %217 = vector.broadcast %c2_i32_90 : i32 to vector<16x16xi32>
    %218 = arith.addi %159, %217 : vector<16x16xi32>
    %219 = arith.cmpi eq, %160, %218 : vector<16x16xi32>
    %cst_91 = arith.constant 1.000000e+00 : f32
    %cst_92 = arith.constant 0.000000e+00 : f32
    %220 = vector.broadcast %cst_91 : f32 to vector<16x16xf32>
    %221 = vector.broadcast %cst_92 : f32 to vector<16x16xf32>
    %222 = arith.select %219, %220, %221 : vector<16x16xi1>, vector<16x16xf32>
    %cst_93 = arith.constant dense<0.000000e+00> : vector<16x32xf32>
    %223 = tpu.matmul %222, %62, %cst_93 {dimension_numbers = #tpu.dot_dimension_numbers<[1], [0], [0], [1], [0, 0, 1, 1], [], []>} : vector<16x16xf32>, vector<16x32xf32>, vector<16x32xf32> -> vector<16x32xf32>
    %224 = vector.extract_strided_slice %158 {offsets = [5, 0], sizes = [1, 32], strides = [1, 1]} : vector<7x32xf32> to vector<1x32xf32>
    %225 = vector.broadcast %224 : vector<1x32xf32> to vector<16x32xf32>
    %226 = arith.mulf %223, %225 : vector<16x32xf32>
    %227 = arith.addf %216, %226 : vector<16x32xf32>
    %c3_i32_94 = arith.constant 3 : i32
    %228 = vector.broadcast %c3_i32_94 : i32 to vector<16x16xi32>
    %229 = arith.addi %159, %228 : vector<16x16xi32>
    %230 = arith.cmpi eq, %160, %229 : vector<16x16xi32>
    %cst_95 = arith.constant 1.000000e+00 : f32
    %cst_96 = arith.constant 0.000000e+00 : f32
    %231 = vector.broadcast %cst_95 : f32 to vector<16x16xf32>
    %232 = vector.broadcast %cst_96 : f32 to vector<16x16xf32>
    %233 = arith.select %230, %231, %232 : vector<16x16xi1>, vector<16x16xf32>
    %cst_97 = arith.constant dense<0.000000e+00> : vector<16x32xf32>
    %234 = tpu.matmul %233, %62, %cst_97 {dimension_numbers = #tpu.dot_dimension_numbers<[1], [0], [0], [1], [0, 0, 1, 1], [], []>} : vector<16x16xf32>, vector<16x32xf32>, vector<16x32xf32> -> vector<16x32xf32>
    %235 = vector.extract_strided_slice %158 {offsets = [6, 0], sizes = [1, 32], strides = [1, 1]} : vector<7x32xf32> to vector<1x32xf32>
    %236 = vector.broadcast %235 : vector<1x32xf32> to vector<16x32xf32>
    %237 = arith.mulf %234, %236 : vector<16x32xf32>
    %238 = arith.addf %227, %237 : vector<16x32xf32>
    %c1_98 = arith.constant 1 : index
    %c0_99 = arith.constant 0 : index
    %c0_100 = arith.constant 0 : index
    %239 = vector.load %arg10[%c1_98, %c0_99, %c0_100] : memref<4x32x32xf32, #tpu.memory_space<vmem>>, vector<1x32x32xf32>
    %240 = vector.shape_cast %239 : vector<1x32x32xf32> to vector<32x32xf32>
    %cst_101 = arith.constant dense<0.000000e+00> : vector<16x32xf32>
    %241 = tpu.matmul %238, %240, %cst_101 {dimension_numbers = #tpu.dot_dimension_numbers<[1], [0], [0], [1], [0, 0, 1, 1], [], []>} : vector<16x32xf32>, vector<32x32xf32>, vector<16x32xf32> -> vector<16x32xf32>
    %242 = arith.addf %156, %241 : vector<16x32xf32>
    %c2 = arith.constant 2 : index
    %c0_102 = arith.constant 0 : index
    %c0_103 = arith.constant 0 : index
    %243 = vector.load %arg9[%c2, %c0_102, %c0_103] : memref<4x7x32xf32, #tpu.memory_space<vmem>>, vector<1x7x32xf32>
    %244 = vector.shape_cast %243 : vector<1x7x32xf32> to vector<7x32xf32>
    %245 = tpu.iota {dimensions = array<i32: 0>} : vector<16x16xi32>
    %246 = tpu.iota {dimensions = array<i32: 1>} : vector<16x16xi32>
    %cst_104 = arith.constant 0.000000e+00 : f32
    %247 = vector.broadcast %cst_104 : f32 to vector<16x32xf32>
    %c-3_i32_105 = arith.constant -3 : i32
    %248 = vector.broadcast %c-3_i32_105 : i32 to vector<16x16xi32>
    %249 = arith.addi %245, %248 : vector<16x16xi32>
    %250 = arith.cmpi eq, %246, %249 : vector<16x16xi32>
    %cst_106 = arith.constant 1.000000e+00 : f32
    %cst_107 = arith.constant 0.000000e+00 : f32
    %251 = vector.broadcast %cst_106 : f32 to vector<16x16xf32>
    %252 = vector.broadcast %cst_107 : f32 to vector<16x16xf32>
    %253 = arith.select %250, %251, %252 : vector<16x16xi1>, vector<16x16xf32>
    %cst_108 = arith.constant dense<0.000000e+00> : vector<16x32xf32>
    %254 = tpu.matmul %253, %65, %cst_108 {dimension_numbers = #tpu.dot_dimension_numbers<[1], [0], [0], [1], [0, 0, 1, 1], [], []>} : vector<16x16xf32>, vector<16x32xf32>, vector<16x32xf32> -> vector<16x32xf32>
    %255 = vector.extract_strided_slice %244 {offsets = [0, 0], sizes = [1, 32], strides = [1, 1]} : vector<7x32xf32> to vector<1x32xf32>
    %256 = vector.broadcast %255 : vector<1x32xf32> to vector<16x32xf32>
    %257 = arith.mulf %254, %256 : vector<16x32xf32>
    %258 = arith.addf %247, %257 : vector<16x32xf32>
    %c-2_i32_109 = arith.constant -2 : i32
    %259 = vector.broadcast %c-2_i32_109 : i32 to vector<16x16xi32>
    %260 = arith.addi %245, %259 : vector<16x16xi32>
    %261 = arith.cmpi eq, %246, %260 : vector<16x16xi32>
    %cst_110 = arith.constant 1.000000e+00 : f32
    %cst_111 = arith.constant 0.000000e+00 : f32
    %262 = vector.broadcast %cst_110 : f32 to vector<16x16xf32>
    %263 = vector.broadcast %cst_111 : f32 to vector<16x16xf32>
    %264 = arith.select %261, %262, %263 : vector<16x16xi1>, vector<16x16xf32>
    %cst_112 = arith.constant dense<0.000000e+00> : vector<16x32xf32>
    %265 = tpu.matmul %264, %65, %cst_112 {dimension_numbers = #tpu.dot_dimension_numbers<[1], [0], [0], [1], [0, 0, 1, 1], [], []>} : vector<16x16xf32>, vector<16x32xf32>, vector<16x32xf32> -> vector<16x32xf32>
    %266 = vector.extract_strided_slice %244 {offsets = [1, 0], sizes = [1, 32], strides = [1, 1]} : vector<7x32xf32> to vector<1x32xf32>
    %267 = vector.broadcast %266 : vector<1x32xf32> to vector<16x32xf32>
    %268 = arith.mulf %265, %267 : vector<16x32xf32>
    %269 = arith.addf %258, %268 : vector<16x32xf32>
    %c-1_i32_113 = arith.constant -1 : i32
    %270 = vector.broadcast %c-1_i32_113 : i32 to vector<16x16xi32>
    %271 = arith.addi %245, %270 : vector<16x16xi32>
    %272 = arith.cmpi eq, %246, %271 : vector<16x16xi32>
    %cst_114 = arith.constant 1.000000e+00 : f32
    %cst_115 = arith.constant 0.000000e+00 : f32
    %273 = vector.broadcast %cst_114 : f32 to vector<16x16xf32>
    %274 = vector.broadcast %cst_115 : f32 to vector<16x16xf32>
    %275 = arith.select %272, %273, %274 : vector<16x16xi1>, vector<16x16xf32>
    %cst_116 = arith.constant dense<0.000000e+00> : vector<16x32xf32>
    %276 = tpu.matmul %275, %65, %cst_116 {dimension_numbers = #tpu.dot_dimension_numbers<[1], [0], [0], [1], [0, 0, 1, 1], [], []>} : vector<16x16xf32>, vector<16x32xf32>, vector<16x32xf32> -> vector<16x32xf32>
    %277 = vector.extract_strided_slice %244 {offsets = [2, 0], sizes = [1, 32], strides = [1, 1]} : vector<7x32xf32> to vector<1x32xf32>
    %278 = vector.broadcast %277 : vector<1x32xf32> to vector<16x32xf32>
    %279 = arith.mulf %276, %278 : vector<16x32xf32>
    %280 = arith.addf %269, %279 : vector<16x32xf32>
    %c0_i32_117 = arith.constant 0 : i32
    %281 = vector.broadcast %c0_i32_117 : i32 to vector<16x16xi32>
    %282 = arith.addi %245, %281 : vector<16x16xi32>
    %283 = arith.cmpi eq, %246, %282 : vector<16x16xi32>
    %cst_118 = arith.constant 1.000000e+00 : f32
    %cst_119 = arith.constant 0.000000e+00 : f32
    %284 = vector.broadcast %cst_118 : f32 to vector<16x16xf32>
    %285 = vector.broadcast %cst_119 : f32 to vector<16x16xf32>
    %286 = arith.select %283, %284, %285 : vector<16x16xi1>, vector<16x16xf32>
    %cst_120 = arith.constant dense<0.000000e+00> : vector<16x32xf32>
    %287 = tpu.matmul %286, %65, %cst_120 {dimension_numbers = #tpu.dot_dimension_numbers<[1], [0], [0], [1], [0, 0, 1, 1], [], []>} : vector<16x16xf32>, vector<16x32xf32>, vector<16x32xf32> -> vector<16x32xf32>
    %288 = vector.extract_strided_slice %244 {offsets = [3, 0], sizes = [1, 32], strides = [1, 1]} : vector<7x32xf32> to vector<1x32xf32>
    %289 = vector.broadcast %288 : vector<1x32xf32> to vector<16x32xf32>
    %290 = arith.mulf %287, %289 : vector<16x32xf32>
    %291 = arith.addf %280, %290 : vector<16x32xf32>
    %c1_i32_121 = arith.constant 1 : i32
    %292 = vector.broadcast %c1_i32_121 : i32 to vector<16x16xi32>
    %293 = arith.addi %245, %292 : vector<16x16xi32>
    %294 = arith.cmpi eq, %246, %293 : vector<16x16xi32>
    %cst_122 = arith.constant 1.000000e+00 : f32
    %cst_123 = arith.constant 0.000000e+00 : f32
    %295 = vector.broadcast %cst_122 : f32 to vector<16x16xf32>
    %296 = vector.broadcast %cst_123 : f32 to vector<16x16xf32>
    %297 = arith.select %294, %295, %296 : vector<16x16xi1>, vector<16x16xf32>
    %cst_124 = arith.constant dense<0.000000e+00> : vector<16x32xf32>
    %298 = tpu.matmul %297, %65, %cst_124 {dimension_numbers = #tpu.dot_dimension_numbers<[1], [0], [0], [1], [0, 0, 1, 1], [], []>} : vector<16x16xf32>, vector<16x32xf32>, vector<16x32xf32> -> vector<16x32xf32>
    %299 = vector.extract_strided_slice %244 {offsets = [4, 0], sizes = [1, 32], strides = [1, 1]} : vector<7x32xf32> to vector<1x32xf32>
    %300 = vector.broadcast %299 : vector<1x32xf32> to vector<16x32xf32>
    %301 = arith.mulf %298, %300 : vector<16x32xf32>
    %302 = arith.addf %291, %301 : vector<16x32xf32>
    %c2_i32_125 = arith.constant 2 : i32
    %303 = vector.broadcast %c2_i32_125 : i32 to vector<16x16xi32>
    %304 = arith.addi %245, %303 : vector<16x16xi32>
    %305 = arith.cmpi eq, %246, %304 : vector<16x16xi32>
    %cst_126 = arith.constant 1.000000e+00 : f32
    %cst_127 = arith.constant 0.000000e+00 : f32
    %306 = vector.broadcast %cst_126 : f32 to vector<16x16xf32>
    %307 = vector.broadcast %cst_127 : f32 to vector<16x16xf32>
    %308 = arith.select %305, %306, %307 : vector<16x16xi1>, vector<16x16xf32>
    %cst_128 = arith.constant dense<0.000000e+00> : vector<16x32xf32>
    %309 = tpu.matmul %308, %65, %cst_128 {dimension_numbers = #tpu.dot_dimension_numbers<[1], [0], [0], [1], [0, 0, 1, 1], [], []>} : vector<16x16xf32>, vector<16x32xf32>, vector<16x32xf32> -> vector<16x32xf32>
    %310 = vector.extract_strided_slice %244 {offsets = [5, 0], sizes = [1, 32], strides = [1, 1]} : vector<7x32xf32> to vector<1x32xf32>
    %311 = vector.broadcast %310 : vector<1x32xf32> to vector<16x32xf32>
    %312 = arith.mulf %309, %311 : vector<16x32xf32>
    %313 = arith.addf %302, %312 : vector<16x32xf32>
    %c3_i32_129 = arith.constant 3 : i32
    %314 = vector.broadcast %c3_i32_129 : i32 to vector<16x16xi32>
    %315 = arith.addi %245, %314 : vector<16x16xi32>
    %316 = arith.cmpi eq, %246, %315 : vector<16x16xi32>
    %cst_130 = arith.constant 1.000000e+00 : f32
    %cst_131 = arith.constant 0.000000e+00 : f32
    %317 = vector.broadcast %cst_130 : f32 to vector<16x16xf32>
    %318 = vector.broadcast %cst_131 : f32 to vector<16x16xf32>
    %319 = arith.select %316, %317, %318 : vector<16x16xi1>, vector<16x16xf32>
    %cst_132 = arith.constant dense<0.000000e+00> : vector<16x32xf32>
    %320 = tpu.matmul %319, %65, %cst_132 {dimension_numbers = #tpu.dot_dimension_numbers<[1], [0], [0], [1], [0, 0, 1, 1], [], []>} : vector<16x16xf32>, vector<16x32xf32>, vector<16x32xf32> -> vector<16x32xf32>
    %321 = vector.extract_strided_slice %244 {offsets = [6, 0], sizes = [1, 32], strides = [1, 1]} : vector<7x32xf32> to vector<1x32xf32>
    %322 = vector.broadcast %321 : vector<1x32xf32> to vector<16x32xf32>
    %323 = arith.mulf %320, %322 : vector<16x32xf32>
    %324 = arith.addf %313, %323 : vector<16x32xf32>
    %c2_133 = arith.constant 2 : index
    %c0_134 = arith.constant 0 : index
    %c0_135 = arith.constant 0 : index
    %325 = vector.load %arg10[%c2_133, %c0_134, %c0_135] : memref<4x32x32xf32, #tpu.memory_space<vmem>>, vector<1x32x32xf32>
    %326 = vector.shape_cast %325 : vector<1x32x32xf32> to vector<32x32xf32>
    %cst_136 = arith.constant dense<0.000000e+00> : vector<16x32xf32>
    %327 = tpu.matmul %324, %326, %cst_136 {dimension_numbers = #tpu.dot_dimension_numbers<[1], [0], [0], [1], [0, 0, 1, 1], [], []>} : vector<16x32xf32>, vector<32x32xf32>, vector<16x32xf32> -> vector<16x32xf32>
    %328 = arith.addf %242, %327 : vector<16x32xf32>
    %c3 = arith.constant 3 : index
    %c0_137 = arith.constant 0 : index
    %c0_138 = arith.constant 0 : index
    %329 = vector.load %arg9[%c3, %c0_137, %c0_138] : memref<4x7x32xf32, #tpu.memory_space<vmem>>, vector<1x7x32xf32>
    %330 = vector.shape_cast %329 : vector<1x7x32xf32> to vector<7x32xf32>
    %331 = tpu.iota {dimensions = array<i32: 0>} : vector<16x16xi32>
    %332 = tpu.iota {dimensions = array<i32: 1>} : vector<16x16xi32>
    %cst_139 = arith.constant 0.000000e+00 : f32
    %333 = vector.broadcast %cst_139 : f32 to vector<16x32xf32>
    %c-3_i32_140 = arith.constant -3 : i32
    %334 = vector.broadcast %c-3_i32_140 : i32 to vector<16x16xi32>
    %335 = arith.addi %331, %334 : vector<16x16xi32>
    %336 = arith.cmpi eq, %332, %335 : vector<16x16xi32>
    %cst_141 = arith.constant 1.000000e+00 : f32
    %cst_142 = arith.constant 0.000000e+00 : f32
    %337 = vector.broadcast %cst_141 : f32 to vector<16x16xf32>
    %338 = vector.broadcast %cst_142 : f32 to vector<16x16xf32>
    %339 = arith.select %336, %337, %338 : vector<16x16xi1>, vector<16x16xf32>
    %cst_143 = arith.constant dense<0.000000e+00> : vector<16x32xf32>
    %340 = tpu.matmul %339, %66, %cst_143 {dimension_numbers = #tpu.dot_dimension_numbers<[1], [0], [0], [1], [0, 0, 1, 1], [], []>} : vector<16x16xf32>, vector<16x32xf32>, vector<16x32xf32> -> vector<16x32xf32>
    %341 = vector.extract_strided_slice %330 {offsets = [0, 0], sizes = [1, 32], strides = [1, 1]} : vector<7x32xf32> to vector<1x32xf32>
    %342 = vector.broadcast %341 : vector<1x32xf32> to vector<16x32xf32>
    %343 = arith.mulf %340, %342 : vector<16x32xf32>
    %344 = arith.addf %333, %343 : vector<16x32xf32>
    %c-2_i32_144 = arith.constant -2 : i32
    %345 = vector.broadcast %c-2_i32_144 : i32 to vector<16x16xi32>
    %346 = arith.addi %331, %345 : vector<16x16xi32>
    %347 = arith.cmpi eq, %332, %346 : vector<16x16xi32>
    %cst_145 = arith.constant 1.000000e+00 : f32
    %cst_146 = arith.constant 0.000000e+00 : f32
    %348 = vector.broadcast %cst_145 : f32 to vector<16x16xf32>
    %349 = vector.broadcast %cst_146 : f32 to vector<16x16xf32>
    %350 = arith.select %347, %348, %349 : vector<16x16xi1>, vector<16x16xf32>
    %cst_147 = arith.constant dense<0.000000e+00> : vector<16x32xf32>
    %351 = tpu.matmul %350, %66, %cst_147 {dimension_numbers = #tpu.dot_dimension_numbers<[1], [0], [0], [1], [0, 0, 1, 1], [], []>} : vector<16x16xf32>, vector<16x32xf32>, vector<16x32xf32> -> vector<16x32xf32>
    %352 = vector.extract_strided_slice %330 {offsets = [1, 0], sizes = [1, 32], strides = [1, 1]} : vector<7x32xf32> to vector<1x32xf32>
    %353 = vector.broadcast %352 : vector<1x32xf32> to vector<16x32xf32>
    %354 = arith.mulf %351, %353 : vector<16x32xf32>
    %355 = arith.addf %344, %354 : vector<16x32xf32>
    %c-1_i32_148 = arith.constant -1 : i32
    %356 = vector.broadcast %c-1_i32_148 : i32 to vector<16x16xi32>
    %357 = arith.addi %331, %356 : vector<16x16xi32>
    %358 = arith.cmpi eq, %332, %357 : vector<16x16xi32>
    %cst_149 = arith.constant 1.000000e+00 : f32
    %cst_150 = arith.constant 0.000000e+00 : f32
    %359 = vector.broadcast %cst_149 : f32 to vector<16x16xf32>
    %360 = vector.broadcast %cst_150 : f32 to vector<16x16xf32>
    %361 = arith.select %358, %359, %360 : vector<16x16xi1>, vector<16x16xf32>
    %cst_151 = arith.constant dense<0.000000e+00> : vector<16x32xf32>
    %362 = tpu.matmul %361, %66, %cst_151 {dimension_numbers = #tpu.dot_dimension_numbers<[1], [0], [0], [1], [0, 0, 1, 1], [], []>} : vector<16x16xf32>, vector<16x32xf32>, vector<16x32xf32> -> vector<16x32xf32>
    %363 = vector.extract_strided_slice %330 {offsets = [2, 0], sizes = [1, 32], strides = [1, 1]} : vector<7x32xf32> to vector<1x32xf32>
    %364 = vector.broadcast %363 : vector<1x32xf32> to vector<16x32xf32>
    %365 = arith.mulf %362, %364 : vector<16x32xf32>
    %366 = arith.addf %355, %365 : vector<16x32xf32>
    %c0_i32_152 = arith.constant 0 : i32
    %367 = vector.broadcast %c0_i32_152 : i32 to vector<16x16xi32>
    %368 = arith.addi %331, %367 : vector<16x16xi32>
    %369 = arith.cmpi eq, %332, %368 : vector<16x16xi32>
    %cst_153 = arith.constant 1.000000e+00 : f32
    %cst_154 = arith.constant 0.000000e+00 : f32
    %370 = vector.broadcast %cst_153 : f32 to vector<16x16xf32>
    %371 = vector.broadcast %cst_154 : f32 to vector<16x16xf32>
    %372 = arith.select %369, %370, %371 : vector<16x16xi1>, vector<16x16xf32>
    %cst_155 = arith.constant dense<0.000000e+00> : vector<16x32xf32>
    %373 = tpu.matmul %372, %66, %cst_155 {dimension_numbers = #tpu.dot_dimension_numbers<[1], [0], [0], [1], [0, 0, 1, 1], [], []>} : vector<16x16xf32>, vector<16x32xf32>, vector<16x32xf32> -> vector<16x32xf32>
    %374 = vector.extract_strided_slice %330 {offsets = [3, 0], sizes = [1, 32], strides = [1, 1]} : vector<7x32xf32> to vector<1x32xf32>
    %375 = vector.broadcast %374 : vector<1x32xf32> to vector<16x32xf32>
    %376 = arith.mulf %373, %375 : vector<16x32xf32>
    %377 = arith.addf %366, %376 : vector<16x32xf32>
    %c1_i32_156 = arith.constant 1 : i32
    %378 = vector.broadcast %c1_i32_156 : i32 to vector<16x16xi32>
    %379 = arith.addi %331, %378 : vector<16x16xi32>
    %380 = arith.cmpi eq, %332, %379 : vector<16x16xi32>
    %cst_157 = arith.constant 1.000000e+00 : f32
    %cst_158 = arith.constant 0.000000e+00 : f32
    %381 = vector.broadcast %cst_157 : f32 to vector<16x16xf32>
    %382 = vector.broadcast %cst_158 : f32 to vector<16x16xf32>
    %383 = arith.select %380, %381, %382 : vector<16x16xi1>, vector<16x16xf32>
    %cst_159 = arith.constant dense<0.000000e+00> : vector<16x32xf32>
    %384 = tpu.matmul %383, %66, %cst_159 {dimension_numbers = #tpu.dot_dimension_numbers<[1], [0], [0], [1], [0, 0, 1, 1], [], []>} : vector<16x16xf32>, vector<16x32xf32>, vector<16x32xf32> -> vector<16x32xf32>
    %385 = vector.extract_strided_slice %330 {offsets = [4, 0], sizes = [1, 32], strides = [1, 1]} : vector<7x32xf32> to vector<1x32xf32>
    %386 = vector.broadcast %385 : vector<1x32xf32> to vector<16x32xf32>
    %387 = arith.mulf %384, %386 : vector<16x32xf32>
    %388 = arith.addf %377, %387 : vector<16x32xf32>
    %c2_i32_160 = arith.constant 2 : i32
    %389 = vector.broadcast %c2_i32_160 : i32 to vector<16x16xi32>
    %390 = arith.addi %331, %389 : vector<16x16xi32>
    %391 = arith.cmpi eq, %332, %390 : vector<16x16xi32>
    %cst_161 = arith.constant 1.000000e+00 : f32
    %cst_162 = arith.constant 0.000000e+00 : f32
    %392 = vector.broadcast %cst_161 : f32 to vector<16x16xf32>
    %393 = vector.broadcast %cst_162 : f32 to vector<16x16xf32>
    %394 = arith.select %391, %392, %393 : vector<16x16xi1>, vector<16x16xf32>
    %cst_163 = arith.constant dense<0.000000e+00> : vector<16x32xf32>
    %395 = tpu.matmul %394, %66, %cst_163 {dimension_numbers = #tpu.dot_dimension_numbers<[1], [0], [0], [1], [0, 0, 1, 1], [], []>} : vector<16x16xf32>, vector<16x32xf32>, vector<16x32xf32> -> vector<16x32xf32>
    %396 = vector.extract_strided_slice %330 {offsets = [5, 0], sizes = [1, 32], strides = [1, 1]} : vector<7x32xf32> to vector<1x32xf32>
    %397 = vector.broadcast %396 : vector<1x32xf32> to vector<16x32xf32>
    %398 = arith.mulf %395, %397 : vector<16x32xf32>
    %399 = arith.addf %388, %398 : vector<16x32xf32>
    %c3_i32_164 = arith.constant 3 : i32
    %400 = vector.broadcast %c3_i32_164 : i32 to vector<16x16xi32>
    %401 = arith.addi %331, %400 : vector<16x16xi32>
    %402 = arith.cmpi eq, %332, %401 : vector<16x16xi32>
    %cst_165 = arith.constant 1.000000e+00 : f32
    %cst_166 = arith.constant 0.000000e+00 : f32
    %403 = vector.broadcast %cst_165 : f32 to vector<16x16xf32>
    %404 = vector.broadcast %cst_166 : f32 to vector<16x16xf32>
    %405 = arith.select %402, %403, %404 : vector<16x16xi1>, vector<16x16xf32>
    %cst_167 = arith.constant dense<0.000000e+00> : vector<16x32xf32>
    %406 = tpu.matmul %405, %66, %cst_167 {dimension_numbers = #tpu.dot_dimension_numbers<[1], [0], [0], [1], [0, 0, 1, 1], [], []>} : vector<16x16xf32>, vector<16x32xf32>, vector<16x32xf32> -> vector<16x32xf32>
    %407 = vector.extract_strided_slice %330 {offsets = [6, 0], sizes = [1, 32], strides = [1, 1]} : vector<7x32xf32> to vector<1x32xf32>
    %408 = vector.broadcast %407 : vector<1x32xf32> to vector<16x32xf32>
    %409 = arith.mulf %406, %408 : vector<16x32xf32>
    %410 = arith.addf %399, %409 : vector<16x32xf32>
    %c3_168 = arith.constant 3 : index
    %c0_169 = arith.constant 0 : index
    %c0_170 = arith.constant 0 : index
    %411 = vector.load %arg10[%c3_168, %c0_169, %c0_170] : memref<4x32x32xf32, #tpu.memory_space<vmem>>, vector<1x32x32xf32>
    %412 = vector.shape_cast %411 : vector<1x32x32xf32> to vector<32x32xf32>
    %cst_171 = arith.constant dense<0.000000e+00> : vector<16x32xf32>
    %413 = tpu.matmul %410, %412, %cst_171 {dimension_numbers = #tpu.dot_dimension_numbers<[1], [0], [0], [1], [0, 0, 1, 1], [], []>} : vector<16x32xf32>, vector<32x32xf32>, vector<16x32xf32> -> vector<16x32xf32>
    %414 = arith.addf %328, %413 : vector<16x32xf32>
    %cst_172 = arith.constant 0.000000e+00 : f32
    %415 = vector.broadcast %cst_172 : f32 to vector<16x32xf32>
    %416 = arith.maximumf %414, %415 : vector<16x32xf32>
    %c0_173 = arith.constant 0 : index
    %c0_174 = arith.constant 0 : index
    %c0_175 = arith.constant 0 : index
    %417 = vector.load %arg12[%c0_173, %c0_174, %c0_175] : memref<1x16x32xf32, #tpu.memory_space<vmem>>, vector<1x16x32xf32>
    %418 = vector.shape_cast %417 : vector<1x16x32xf32> to vector<16x32xf32>
    %419 = vector.shape_cast %416 : vector<16x32xf32> to vector<1x16x32xf32>
    tpu.vector_store %arg12[%c0_173, %c0_174, %c0_175], %419 {strides = array<i32>} : memref<1x16x32xf32, #tpu.memory_space<vmem>>, vector<1x16x32xf32>,
    return
  }
  func.func @transform_0(%arg0: i32) -> (i32, i32, i32) {
    %c0_i32 = arith.constant 0 : i32
    %c0_i32_0 = arith.constant 0 : i32
    %c0_i32_1 = arith.constant 0 : i32
    return %arg0, %c0_i32, %c0_i32_0 : i32, i32, i32
  }
  func.func @transform_1(%arg0: i32) -> (i32, i32, i32) {
    %c0_i32 = arith.constant 0 : i32
    %c0_i32_0 = arith.constant 0 : i32
    %c0_i32_1 = arith.constant 0 : i32
    return %arg0, %c0_i32, %c0_i32_0 : i32, i32, i32
  }
  func.func @transform_2(%arg0: i32) -> (i32, i32, i32) {
    %c0_i32 = arith.constant 0 : i32
    %c0_i32_0 = arith.constant 0 : i32
    %c0_i32_1 = arith.constant 0 : i32
    return %arg0, %c0_i32, %c0_i32_0 : i32, i32, i32
  }
  func.func @transform_3(%arg0: i32) -> (i32, i32, i32) {
    %c0_i32 = arith.constant 0 : i32
    %c0_i32_0 = arith.constant 0 : i32
    %c0_i32_1 = arith.constant 0 : i32
    return %arg0, %c0_i32, %c0_i32_0 : i32, i32, i32
  }
  func.func @transform_4(%arg0: i32) -> (i32, i32) {
    %c0_i32 = arith.constant 0 : i32
    %c0_i32_0 = arith.constant 0 : i32
    %c0_i32_1 = arith.constant 0 : i32
    return %c0_i32, %c0_i32_0 : i32, i32
  }
  func.func @transform_5(%arg0: i32) -> (i32, i32) {
    %c0_i32 = arith.constant 0 : i32
    %c0_i32_0 = arith.constant 0 : i32
    %c0_i32_1 = arith.constant 0 : i32
    return %c0_i32, %c0_i32_0 : i32, i32
  }
  func.func @transform_6(%arg0: i32) -> (i32, i32) {
    %c0_i32 = arith.constant 0 : i32
    %c0_i32_0 = arith.constant 0 : i32
    %c0_i32_1 = arith.constant 0 : i32
    return %c0_i32, %c0_i32_0 : i32, i32
  }
  func.func @transform_7(%arg0: i32) -> (i32, i32) {
    %c0_i32 = arith.constant 0 : i32
    %c0_i32_0 = arith.constant 0 : i32
    %c0_i32_1 = arith.constant 0 : i32
    return %c0_i32, %c0_i32_0 : i32, i32
  }
  func.func @transform_8(%arg0: i32) -> (i32, i32, i32) {
    %c0_i32 = arith.constant 0 : i32
    %c0_i32_0 = arith.constant 0 : i32
    %c0_i32_1 = arith.constant 0 : i32
    %c0_i32_2 = arith.constant 0 : i32
    return %c0_i32, %c0_i32_0, %c0_i32_1 : i32, i32, i32
  }
  func.func @transform_9(%arg0: i32) -> (i32, i32, i32) {
    %c0_i32 = arith.constant 0 : i32
    %c0_i32_0 = arith.constant 0 : i32
    %c0_i32_1 = arith.constant 0 : i32
    %c0_i32_2 = arith.constant 0 : i32
    return %c0_i32, %c0_i32_0, %c0_i32_1 : i32, i32, i32
  }
  func.func @transform_10(%arg0: i32) -> (i32, i32) {
    %c0_i32 = arith.constant 0 : i32
    %c0_i32_0 = arith.constant 0 : i32
    %c0_i32_1 = arith.constant 0 : i32
    return %c0_i32, %c0_i32_0 : i32, i32
  }
  func.func @transform_11(%arg0: i32) -> (i32, i32, i32) {
    %c0_i32 = arith.constant 0 : i32
    %c0_i32_0 = arith.constant 0 : i32
    %c0_i32_1 = arith.constant 0 : i32
    return %arg0, %c0_i32, %c0_i32_0 : i32, i32, i32
  }
}

</mosaic_0001>

<bundles_post_ra>
// kernel: qanet_forward.27
= control target key start
LH: loop header
LB: loop body
LE: loop exit
PB: predicated region body
PF: predicated region fallthrough
CT: control target
= control target key end

     0   :  { %s1704_s13 = smov 0   ;;  %s1853_s0 = inlined_call_operand.vmem [shape: f32[2,16,24], index: 0, kind: input, shape index: {}]   ;;  %s1854_s1 = inlined_call_operand.vmem [shape: f32[2,4,16,40], index: 1, kind: input, shape index: {}]   ;;  %s1855_s2 = inlined_call_operand.vmem [shape: f32[40,16], index: 2, kind: input, shape index: {}]   ;;  %s1856_s3 = inlined_call_operand.vmem [shape: f32[1,16], index: 3, kind: input, shape index: {}]   ;;  %s1857_s4 = inlined_call_operand.vmem [shape: f32[24,32], index: 4, kind: input, shape index: {}]   ;;  %s1858_s5 = inlined_call_operand.vmem [shape: f32[16,32], index: 5, kind: input, shape index: {}]   ;;  %s1859_s6 = inlined_call_operand.vmem [shape: f32[2,32,32], index: 6, kind: input, shape index: {}]   ;;  %s1860_s7 = inlined_call_operand.vmem [shape: f32[2,1,32], index: 7, kind: input, shape index: {}]   ;;  %s1861_s8 = inlined_call_operand.vmem [shape: f32[2,32,32], index: 8, kind: input, shape index: {}]   ;;  %s1862_s9 = inlined_call_operand.vmem [shape: f32[2,1,32], index: 9, kind: input, shape index: {}]   ;;  %s1863_s10 = inlined_call_operand.vmem [shape: f32[2,16,32], index: 10, kind: output, shape index: {}]  }
   0x1 LB: > { %s1387_s14 = sadd.s32 4294967295, %s1647_s13   ;;  %p1391_p0 = scmp.ge.s32.totalorder %s1647_s13, 1  ;;  %s1647_s13 = sphi %s1704_s13, %s20_s13  }
   0x2   : > { %p322_p1 = scmp.lt.s32.totalorder %s1647_s13, 3 }
   0x4   : > { %p323_p2 = pnand %p1391_p0, %p322_p1 }
   0x5   : > { %p365_p3 = scmp.lt.s32.totalorder (!%p323_p2), %s1387_s14, 1 }
   0x6   : > { %326 = sbr.rel (%p323_p2) target bundleno = 913 (0x391), region = 60 }
   0xb   : > { %v388_v0 = vld [vmem:[%s1855_s2 + $0x20] sm:$0xff]  ;;  %v387_v1 = vld [vmem:[%s1855_s2 + $0x18] sm:$0xff]  ;;  %v386_v2 = vld [vmem:[%s1855_s2 + $0x10] sm:$0xff]  ;;  %s1865_s14 = smov (!%p365_p3, %s1387_s14), 1  ;;  %vm396_vm0 = vcmask 326656   ;;  %vm831_vm1 = vcmask 195584  }
   0xc   : > { %1505 = vmatprep.subr.mxu0 %v388_v0  ;;  %1518 = vmatprep.subr.mxu1 %v388_v0  ;;  %v385_v3 = vld [vmem:[%s1855_s2 + $0x8] sm:$0xff]  ;;  %s1442_s23 = sshll.u32 %s1865_s14, 6  ;;  %v384_v4 = vld [vmem:[%s1855_s2] sm:$0xff]  ;;  %v746_v13 = vld [vmem:[%s1857_s4 + $0x10] sm:$0xff]  ;;  %s1441_s15 = sshll.u32 %s1865_s14, 4  ;;  %vm749_vm2 = vcmask 130048  }
   0xd   : > { %1506 = vmatpush3.msra.mxu0 %v388_v0  ;;  %1519 = vmatpush3.msra.mxu1 %v388_v0  ;;  %s1730_s26 = scalar_lea.vmem %s1854_s1, %s1442_s23  ;;  %v745_v14 = vld [vmem:[%s1857_s4 + $0x8] sm:$0xff]  ;;  %v744_v16 = vld [vmem:[%s1857_s4] sm:$0xff]  ;;  %s369_s22 = scalar_lea.vmem %s1853_s0, %s1441_s15  ;;  %v916_v20 = vld [vmem:[%s1859_s6 + $0x18] sm:$0xff]  ;;  %vm924_vm3 = vcmask 261120  }
   0xe   : > { %1507 = vmatprep.subr.mxu0 %v387_v1  ;;  %1520 = vmatprep.subr.mxu1 %v387_v1  ;;  %v382_v5 = vld [vmem:[%s1730_s26] sm:$0xff]  ;;  %v1401_v6 = vld [vmem:[%s1730_s26 + $0x10] sm:$0xff]  ;;  %v383_v7 = vld [vmem:[%s1730_s26 + $0x8] sm:$0xff]  ;;  %s379_s18 = scalar_lea.vmem %s1863_s10, %s1441_s15 }
   0xf   : > { %1508 = vmatpush3.msra.mxu0 %v387_v1  ;;  %1521 = vmatpush3.msra.mxu1 %v387_v1  ;;  %v1402_v8 = vld [vmem:[%s1730_s26 + $0x18] sm:$0xff]  ;;  %v1405_v9 = vld [vmem:[%s1730_s26 + $0x20] sm:$0xff]  ;;  %v1409_v10 = vld [vmem:[%s1730_s26 + $0x30] sm:$0xff] }
  0x10   : > { %1509 = vmatprep.subr.mxu0 %v386_v2  ;;  %1522 = vmatprep.subr.mxu1 %v386_v2  ;;  %v1406_v11 = vld [vmem:[%s1730_s26 + $0x28] sm:$0xff]  ;;  %v1410_v12 = vld [vmem:[%s1730_s26 + $0x38] sm:$0xff]  ;;  %v380_v17 = vld [vmem:[%s369_s22] sm:$0xff] }
  0x11   : > { %1510 = vmatpush3.msra.mxu0 %v386_v2  ;;  %1523 = vmatpush3.msra.mxu1 %v386_v2  ;;  %v748_v15 = vld [vmem:[%s1858_s5 + $0x8] sm:$0xff]  ;;  %v747_v18 = vld [vmem:[%s1858_s5] sm:$0xff]  ;;  %v1011_v21 = vld [vmem:[%s1861_s8 + $0x18] sm:$0xff] }
  0x12   : > { %1511 = vmatprep.subr.mxu0 %v385_v3  ;;  %1524 = vmatprep.subr.mxu1 %v385_v3  ;;  %v381_v19 = vld [vmem:[%s369_s22 + $0x8] sm:$0xff]  ;;  %v1398_v24 = vld [vmem:[%s1856_s3] ss:$0 sm:$0xff]  ;;  %v915_v53 = vld [vmem:[%s1859_s6 + $0x10] sm:$0xff] }
  0x13   : > { %1512 = vmatpush3.msra.mxu0 %v385_v3  ;;  %1525 = vmatpush3.msra.mxu1 %v385_v3  ;;  %v1010_v54 = vld [vmem:[%s1861_s8 + $0x10] sm:$0xff]  ;;  %v914_v55 = vld [vmem:[%s1859_s6 + $0x8] sm:$0xff]  ;;  %v913_v57 = vld [vmem:[%s1859_s6] sm:$0xff] }
  0x14   : > { %1513 = vmatprep.subr.mxu0 %v384_v4  ;;  %1526 = vmatprep.subr.mxu1 %v384_v4  ;;  %v1009_v56 = vld [vmem:[%s1861_s8 + $0x8] sm:$0xff]  ;;  %v1008_v58 = vld [vmem:[%s1861_s8] sm:$0xff] }
  0x15   : > { %1514 = vmatpush3.msra.mxu0 %v384_v4  ;;  %1515 = vmatprep.mubr.msk.f32.mxu0 %vm396_vm0, %v382_v5  ;;  %v1424_v5 = vld [vmem:[%s1859_s6 + $0x28] sm:$0xff] }
  0x16   : > { %1527 = vmatpush3.msra.mxu1 %v384_v4  ;;  %1528 = vmatprep.mubr.msk.f32.mxu1 %vm396_vm0, %v1401_v6  ;;  %v1432_v6 = vld [vmem:[%s1861_s8 + $0x28] sm:$0xff] }
  0x17   : > { %1516 = vmatmul.mubr.msk.f32.vlgmr.msra.gmra.mxu0 %vm396_vm0, %v383_v7  ;;  %1529 = vmatmul.mubr.msk.f32.vlgmr.msra.gmra.mxu1 %vm396_vm0, %v1402_v8  ;;  %v1423_v7 = vld [vmem:[%s1859_s6 + $0x20] sm:$0xff] }
  0x18   : > { %1531 = vmatprep.subr.mxu0 %v388_v0  ;;  %1544 = vmatprep.subr.mxu1 %v388_v0  ;;  %v1431_v8 = vld [vmem:[%s1861_s8 + $0x20] sm:$0xff] }
  0x19   : > { %1532 = vmatpush3.msra.mxu0 %v388_v0  ;;  %1545 = vmatpush3.msra.mxu1 %v388_v0 }
  0x1a   : > { %1533 = vmatprep.subr.mxu0 %v387_v1  ;;  %1546 = vmatprep.subr.mxu1 %v387_v1 }
  0x1b   : > { %1534 = vmatpush3.msra.mxu0 %v387_v1  ;;  %1547 = vmatpush3.msra.mxu1 %v387_v1  ;;  %v1426_v1 = vld [vmem:[%s1859_s6 + $0x38] sm:$0xff] }
  0x1c   : > { %1535 = vmatprep.subr.mxu0 %v386_v2  ;;  %1548 = vmatprep.subr.mxu1 %v386_v2 }
  0x1d   : > { %1536 = vmatpush3.msra.mxu0 %v386_v2  ;;  %1549 = vmatpush3.msra.mxu1 %v386_v2  ;;  %v1434_v2 = vld [vmem:[%s1861_s8 + $0x38] sm:$0xff] }
  0x1e   : > { %1537 = vmatprep.subr.mxu0 %v385_v3  ;;  %1550 = vmatprep.subr.mxu1 %v385_v3 }
  0x1f   : > { %1538 = vmatpush3.msra.mxu0 %v385_v3  ;;  %1551 = vmatpush3.msra.mxu1 %v385_v3  ;;  %v1425_v3 = vld [vmem:[%s1859_s6 + $0x30] sm:$0xff] }
  0x20   : > { %1539 = vmatprep.subr.mxu0 %v384_v4  ;;  %1552 = vmatprep.subr.mxu1 %v384_v4 }
  0x21   : > { %1540 = vmatpush3.msra.mxu0 %v384_v4  ;;  %1541 = vmatprep.mubr.msk.f32.mxu0 %vm396_vm0, %v1405_v9  ;;  %v1420_v9 = vld [vmem:[%s1862_s9] ss:$0 sm:$0xff] }
  0x22   : > { %1553 = vmatpush3.msra.mxu1 %v384_v4  ;;  %1554 = vmatprep.mubr.msk.f32.mxu1 %vm396_vm0, %v1409_v10  ;;  %v1433_v4 = vld [vmem:[%s1861_s8 + $0x30] sm:$0xff] }
  0x23   : > { %1542 = vmatmul.mubr.msk.f32.vlgmr.msra.gmra.mxu0 %vm396_vm0, %v1406_v11  ;;  %1555 = vmatmul.mubr.msk.f32.vlgmr.msra.gmra.mxu1 %vm396_vm0, %v1410_v12 }
  0x24   : > { %1564 = vmatprep.subr.mxu1 %v746_v13  ;;  %1557 = vmatprep.subr.mxu0 %v748_v15 }
  0x25   : > { %1565 = vmatpush3.msra.mxu1 %v746_v13  ;;  %1558 = vmatpush3.msra.mxu0 %v748_v15 }
  0x26   : > { %1566 = vmatprep.subr.mxu1 %v745_v14  ;;  %1559 = vmatprep.subr.mxu0 %v747_v18 }
  0x27   : > { %1567 = vmatpush3.msra.mxu1 %v745_v14  ;;  %1570 = vmatprep.mubr.msk.f32.mxu1 %vm831_vm1, %v380_v17 }
  0x28   : > { %1568 = vmatprep.subr.mxu1 %v744_v16  ;;  %1560 = vmatpush3.msra.mxu0 %v747_v18 }
  0x29   : > { %1569 = vmatpush3.msra.mxu1 %v744_v16  ;;  %1573 = vmatprep.subr.mxu0 %v916_v20 }
  0x2a   : > { %1571 = vmatmul.mubr.msk.f32.vlgmr.msra.gmra.mxu1 %vm831_vm1, %v381_v19  ;;  %1584 = vmatprep.subr.mxu1 %v1011_v21 }
  0x2b   : > { %1585 = vmatpush3.msra.mxu1 %v1011_v21 }
  0x2c   : > { %1586 = vmatprep.subr.mxu1 %v1010_v54 }
  0x2d   : > { %1587 = vmatpush3.msra.mxu1 %v1010_v54 }
  0x2e   : > { %1588 = vmatprep.subr.mxu1 %v1009_v56 }
  0x2f   : > { %1589 = vmatpush3.msra.mxu1 %v1009_v56 }
  0x30   : > { %1590 = vmatprep.subr.mxu1 %v1008_v58 }
  0x31   : > { %1591 = vmatpush3.msra.mxu1 %v1008_v58 }
  0x32   : > { %1606 = vmatprep.subr.mxu1 %v1434_v2 }
  0xd7   : > { %v1517_v22 = vpop.f32.mrf.mxu0  ;;  %v1530_v23 = vpop.f32.mrf.mxu1 }
  0xd8   : > { %v475_v27 = vadd.f32 %v1517_v22, %v1398_v24  ;;  %v561_v28 = vadd.f32 %v1530_v23, %v1398_v24 }
  0xd9   : > { %v469_v25 = vpop.f32.mrf.mxu0  ;;  %v555_v26 = vpop.f32.mrf.mxu1 }
  0xda   : > { %v470_v29 = vadd.f32 %v1398_v24, %v469_v25  ;;  %v556_v30 = vadd.f32 %v1398_v24, %v555_v26  ;;  %v479_v31 = vmax.f32 %v475_v27, 0.0  ;;  %v565_v32 = vmax.f32 %v561_v28, 0.0 }
  0xdc   : > { %v478_v35 = vmax.f32 %v470_v29, 0.0  ;;  %v564_v36 = vmax.f32 %v556_v30, 0.0  ;;  %v567_v44 = vmax.f32 %v479_v31, %v565_v32 }
  0xde   : > { %v566_v45 = vmax.f32 %v478_v35, %v564_v36 }
  0xe3   : > { %v1543_v33 = vpop.f32.mrf.mxu0  ;;  %v1556_v34 = vpop.f32.mrf.mxu1 }
  0xe4   : > { %v649_v37 = vadd.f32 %v1543_v33, %v1398_v24  ;;  %v737_v38 = vadd.f32 %v1556_v34, %v1398_v24 }
  0xe5   : > { %v643_v39 = vpop.f32.mrf.mxu0  ;;  %v731_v40 = vpop.f32.mrf.mxu1 }
  0xe6   : > { %v653_v41 = vmax.f32 %v649_v37, 0.0  ;;  %v644_v42 = vadd.f32 %v1398_v24, %v643_v39  ;;  %v732_v43 = vadd.f32 %v1398_v24, %v731_v40  ;;  %v741_v48 = vmax.f32 %v737_v38, 0.0  ;;  %v1417_v24 = vld [vmem:[%s1860_s7] ss:$0 sm:$0xff]  ;;  %v1436_v39 = vld [vmem:[%s1862_s9 + $0x1] ss:$0 sm:$0xff] }
  0xe8   : > { %v652_v46 = vmax.f32 %v644_v42, 0.0  ;;  %v655_v47 = vmax.f32 %v567_v44, %v653_v41  ;;  %v740_v50 = vmax.f32 %v732_v43, 0.0 }
  0xea   : > { %v654_v49 = vmax.f32 %v566_v45, %v652_v46  ;;  %v743_v52 = vmax.f32 %v655_v47, %v741_v48  ;;  %v1572_v59 = vpop.f32.mrf.mxu1 }
  0xec   : > { %v742_v51 = vmax.f32 %v654_v49, %v740_v50  ;;  %v904_v61 = vpop.f32.mrf.mxu1 }
  0xee   : > { %1561 = vmatprep.mubr.msk.f32.mxu0 %vm749_vm2, %v742_v51 }
  0xef   : > { %1562 = vmatmul.mubr.msk.f32.vlgmr.msra.gmra.mxu0 %vm749_vm2, %v743_v52 }
  0xf0   : > { %1574 = vmatpush3.msra.mxu0 %v916_v20 }
  0xf1   : > { %1575 = vmatprep.subr.mxu0 %v915_v53 }
  0xf2   : > { %1576 = vmatpush3.msra.mxu0 %v915_v53  ;;  %v1428_v53 = vld [vmem:[%s1860_s7 + $0x1] ss:$0 sm:$0xff] }
  0xf3   : > { %1577 = vmatprep.subr.mxu0 %v914_v55 }
  0xf4   : > { %1578 = vmatpush3.msra.mxu0 %v914_v55 }
  0xf5   : > { %1579 = vmatprep.subr.mxu0 %v913_v57 }
  0xf6   : > { %1580 = vmatpush3.msra.mxu0 %v913_v57 }
  0xf7   : > { %1595 = vmatprep.subr.mxu0 %v1426_v1 }
 0x1af   : > { %v1563_v60 = vpop.f32.mrf.mxu0 }
 0x1b0   : > { %v910_v0 = vadd.f32 %v1572_v59, %v1563_v60 }
 0x1b1   : > { %v822_v62 = vpop.f32.mrf.mxu0 }
 0x1b2   : > { %v905_v63 = vadd.f32 %v904_v61, %v822_v62 }
 0x1b4   : > { %1581 = vmatprep.mubr.msk.f32.mxu0 %vm924_vm3, %v905_v63  ;;  %1592 = vmatprep.mubr.msk.f32.mxu1 %vm924_vm3, %v905_v63 }
 0x1b5   : > { %1582 = vmatmul.mubr.msk.f32.vlgmr.msra.gmra.mxu0 %vm924_vm3, %v910_v0  ;;  %1593 = vmatmul.mubr.msk.f32.vlgmr.msra.gmra.mxu1 %vm924_vm3, %v910_v0 }
 0x1b6   : > { %1596 = vmatpush3.msra.mxu0 %v1426_v1  ;;  %1607 = vmatpush3.msra.mxu1 %v1434_v2 }
 0x1b7   : > { %1597 = vmatprep.subr.mxu0 %v1425_v3  ;;  %1608 = vmatprep.subr.mxu1 %v1433_v4 }
 0x1b8   : > { %1598 = vmatpush3.msra.mxu0 %v1425_v3  ;;  %1609 = vmatpush3.msra.mxu1 %v1433_v4 }
 0x1b9   : > { %1599 = vmatprep.subr.mxu0 %v1424_v5  ;;  %1610 = vmatprep.subr.mxu1 %v1432_v6 }
 0x1ba   : > { %1600 = vmatpush3.msra.mxu0 %v1424_v5  ;;  %1611 = vmatpush3.msra.mxu1 %v1432_v6 }
 0x1bb   : > { %1601 = vmatprep.subr.mxu0 %v1423_v7  ;;  %1612 = vmatprep.subr.mxu1 %v1431_v8 }
 0x1bc   : > { %1602 = vmatpush3.msra.mxu0 %v1423_v7  ;;  %1613 = vmatpush3.msra.mxu1 %v1431_v8 }
 0x275   : > { %v1594_v10 = vpop.f32.mrf.mxu1  ;;  %v1583_v22 = vpop.f32.mrf.mxu0 }
 0x276   : > { %v1091_v11 = vadd.f32 %v1594_v10, %v1420_v9  ;;  %v1003_v27 = vadd.f32 %v1583_v22, %v1417_v24 }
 0x277   : > { %v1085_v12 = vpop.f32.mrf.mxu1  ;;  %v997_v23 = vpop.f32.mrf.mxu0 }
 0x278   : > { %v1095_v13 = vsub.f32 0.0, %v1091_v11  ;;  %v1086_v14 = vadd.f32 %v1420_v9, %v1085_v12  ;;  %v998_v25 = vadd.f32 %v1417_v24, %v997_v23  ;;  %v1007_v32 = vmax.f32 %v1003_v27, 0.0 }
 0x27a   : > { %v1098_v15 = vmul.f32 1.442695, %v1095_v13  ;;  %v1094_v16 = vsub.f32 0.0, %v1086_v14  ;;  %v1006_v30 = vmax.f32 %v998_v25, 0.0 }
 0x27c   : > { %1625 = vpow2.f32 %v1098_v15  ;;  %v1096_v17 = vmul.f32 1.442695, %v1094_v16 }
 0x27e   : > { %1627 = vpow2.f32 %v1096_v17 }
 0x289   : > { %v1626_v18 = vpop.eup %1625 }
 0x28a   : > { %v1101_v19 = vadd.f32 1.0, %v1626_v18 }
 0x28b   : > { %v1628_v20 = vpop.eup %1627 }
 0x28c   : > { %1629 = vrcp.f32 %v1101_v19  ;;  %v1100_v21 = vadd.f32 1.0, %v1628_v20 }
 0x28e   : > { %1631 = vrcp.f32 %v1100_v21 }
 0x299   : > { %v1630_v26 = vpop.eup %1629 }
 0x29a   : > { %v1109_v28 = vsub.f32 1.0, %v1630_v26  ;;  %v1107_v36 = vmul.f32 %v1630_v26, %v1007_v32 }
 0x29b   : > { %v1632_v29 = vpop.eup %1631 }
 0x29c   : > { %v1108_v31 = vsub.f32 1.0, %v1632_v29  ;;  %v1111_v33 = vmul.f32 %v1109_v28, %v910_v0  ;;  %v1106_v34 = vmul.f32 %v1632_v29, %v1006_v30 }
 0x29e   : > { %v1110_v35 = vmul.f32 %v1108_v31, %v905_v63  ;;  %v1113_v38 = vadd.f32 %v1111_v33, %v1107_v36 }
 0x2a0   : > { %v1112_v37 = vadd.f32 %v1110_v35, %v1106_v34 }
 0x2a2   : > { %1603 = vmatprep.mubr.msk.f32.mxu0 %vm924_vm3, %v1112_v37  ;;  %1614 = vmatprep.mubr.msk.f32.mxu1 %vm924_vm3, %v1112_v37 }
 0x2a3   : > { %1604 = vmatmul.mubr.msk.f32.vlgmr.msra.gmra.mxu0 %vm924_vm3, %v1113_v38  ;;  %1615 = vmatmul.mubr.msk.f32.vlgmr.msra.gmra.mxu1 %vm924_vm3, %v1113_v38 }
 0x363   : > { %v1616_v40 = vpop.f32.mrf.mxu1  ;;  %v1605_v52 = vpop.f32.mrf.mxu0 }
 0x364   : > { %v1295_v41 = vadd.f32 %v1616_v40, %v1436_v39  ;;  %v1205_v55 = vadd.f32 %v1605_v52, %v1428_v53 }
 0x365   : > { %v1289_v42 = vpop.f32.mrf.mxu1  ;;  %v1199_v54 = vpop.f32.mrf.mxu0 }
 0x366   : > { %v1299_v43 = vsub.f32 0.0, %v1295_v41  ;;  %v1290_v44 = vadd.f32 %v1436_v39, %v1289_v42  ;;  %v1200_v56 = vadd.f32 %v1428_v53, %v1199_v54  ;;  %v1209_v58 = vmax.f32 %v1205_v55, 0.0 }
 0x368   : > { %v1302_v45 = vmul.f32 1.442695, %v1299_v43  ;;  %v1298_v46 = vsub.f32 0.0, %v1290_v44  ;;  %v1208_v63 = vmax.f32 %v1200_v56, 0.0 }
 0x36a   : > { %1633 = vpow2.f32 %v1302_v45  ;;  %v1300_v47 = vmul.f32 1.442695, %v1298_v46 }
 0x36c   : > { %1635 = vpow2.f32 %v1300_v47 }
 0x377   : > { %v1634_v48 = vpop.eup %1633 }
 0x378   : > { %v1305_v49 = vadd.f32 1.0, %v1634_v48 }
 0x379   : > { %v1636_v50 = vpop.eup %1635 }
 0x37a   : > { %1637 = vrcp.f32 %v1305_v49  ;;  %v1304_v51 = vadd.f32 1.0, %v1636_v50 }
 0x37c   : > { %1639 = vrcp.f32 %v1304_v51 }
 0x387   : > { %v1638_v57 = vpop.eup %1637 }
 0x388   : > { %v1313_v59 = vsub.f32 1.0, %v1638_v57  ;;  %v1311_v61 = vmul.f32 %v1638_v57, %v1209_v58 }
 0x389   : > { %v1640_v60 = vpop.eup %1639 }
 0x38a   : > { %v1315_v62 = vmul.f32 %v1313_v59, %v1113_v38  ;;  %v1312_v0 = vsub.f32 1.0, %v1640_v60  ;;  %v1310_v2 = vmul.f32 %v1640_v60, %v1208_v63 }
 0x38c   : > { %v1317_v1 = vadd.f32 %v1315_v62, %v1311_v61  ;;  %v1314_v3 = vmul.f32 %v1312_v0, %v1112_v37 }
 0x38e   : > { %1319 = vst.msk [vmem:[%s379_s18 + $0x8] sm:$0xff] %vm924_vm3, %v1317_v1  ;;  %v1316_v4 = vadd.f32 %v1314_v3, %v1310_v2 }
 0x390   : > { %1318 = vst.msk [vmem:[%s379_s18] sm:$0xff] %vm924_vm3, %v1316_v4 }
 0x391 PF: > { %s20_s13 = sadd.s32 1, %s1647_s13  }
 0x392   : > { %p17_p4 = scmp.ge.s32.totalorder %s20_s13, 4  }
 0x394   :  { %19 = sbr.rel (!%p17_p4) target bundleno = 1 (0x1), region = 100 }

// kernel: qanet_forward.28
= control target key start
LH: loop header
LB: loop body
LE: loop exit
PB: predicated region body
PF: predicated region fallthrough
CT: control target
= control target key end

     0   :  { %s1557_s13 = smov 0   ;;  %s1754_s0 = inlined_call_operand.vmem [shape: f32[2,8,24], index: 0, kind: input, shape index: {}]   ;;  %s1755_s1 = inlined_call_operand.vmem [shape: f32[2,4,8,40], index: 1, kind: input, shape index: {}]   ;;  %s1756_s2 = inlined_call_operand.vmem [shape: f32[40,16], index: 2, kind: input, shape index: {}]   ;;  %s1757_s3 = inlined_call_operand.vmem [shape: f32[1,16], index: 3, kind: input, shape index: {}]   ;;  %s1758_s4 = inlined_call_operand.vmem [shape: f32[24,32], index: 4, kind: input, shape index: {}]   ;;  %s1759_s5 = inlined_call_operand.vmem [shape: f32[16,32], index: 5, kind: input, shape index: {}]   ;;  %s1760_s6 = inlined_call_operand.vmem [shape: f32[2,32,32], index: 6, kind: input, shape index: {}]   ;;  %s1761_s7 = inlined_call_operand.vmem [shape: f32[2,1,32], index: 7, kind: input, shape index: {}]   ;;  %s1762_s8 = inlined_call_operand.vmem [shape: f32[2,32,32], index: 8, kind: input, shape index: {}]   ;;  %s1763_s9 = inlined_call_operand.vmem [shape: f32[2,1,32], index: 9, kind: input, shape index: {}]   ;;  %s1764_s10 = inlined_call_operand.vmem [shape: f32[2,8,32], index: 10, kind: output, shape index: {}]  }
   0x1 LB: > { %s1271_s14 = sadd.s32 4294967295, %s1498_s13   ;;  %p1275_p0 = scmp.ge.s32.totalorder %s1498_s13, 1  ;;  %s1498_s13 = sphi %s1557_s13, %s20_s13  }
   0x2   : > { %p321_p1 = scmp.lt.s32.totalorder %s1498_s13, 3 }
   0x4   : > { %p322_p2 = pnand %p1275_p0, %p321_p1 }
   0x5   : > { %p362_p3 = scmp.lt.s32.totalorder (!%p322_p2), %s1271_s14, 1 }
   0x6   : > { %325 = sbr.rel (%p322_p2) target bundleno = 902 (0x386), region = 60 }
   0xb   : > { %v381_v0 = vld [vmem:[%s1756_s2 + $0x20] sm:$0xff]  ;;  %v1500_v1 = vmov 0.0   ;;  %v380_v2 = vld [vmem:[%s1756_s2 + $0x18] sm:$0xff]  ;;  %s1766_s14 = smov (!%p362_p3, %s1271_s14), 1  ;;  %v379_v3 = vld [vmem:[%s1756_s2 + $0x10] sm:$0xff]  ;;  %vm389_vm0 = vcmask 326656  }
   0xc   : > { %1362 = vmatprep.subr.mxu0 %v1500_v1  ;;  %1375 = vmatprep.subr.mxu1 %v1500_v1  ;;  %s1310_s21 = sshll.u32 %s1766_s14, 5  ;;  %v378_v4 = vld [vmem:[%s1756_s2 + $0x8] sm:$0xff]  ;;  %v377_v5 = vld [vmem:[%s1756_s2] sm:$0xff]  ;;  %vm1501_vm1 = vmmov 0   ;;  %v697_v10 = vld [vmem:[%s1758_s4 + $0x10] sm:$0xff]  ;;  %s1276_s15 = sshll.u32 %s1766_s14, 3 }
   0xd   : > { %1363 = vmatpush3.msra.mxu0 %v381_v0  ;;  %1376 = vmatpush3.msra.mxu1 %v381_v0  ;;  %s1589_s26 = scalar_lea.vmem %s1755_s1, %s1310_s21  ;;  %v696_v11 = vld [vmem:[%s1758_s4 + $0x8] sm:$0xff]  ;;  %v695_v13 = vld [vmem:[%s1758_s4] sm:$0xff]  ;;  %s365_s22 = scalar_lea.vmem %s1754_s0, %s1276_s15  ;;  %vm774_vm2 = vcmask 195584   ;;  %v937_v16 = vld [vmem:[%s1762_s8 + $0x18] sm:$0xff]  ;;  %vm700_vm3 = vcmask 130048   ;;  %vm859_vm4 = vcmask 261120  }
   0xe   : > { %1364 = vmatprep.subr.mxu0 %v1500_v1  ;;  %1377 = vmatprep.subr.mxu1 %v1500_v1  ;;  %v376_v6 = vld [vmem:[%s1589_s26] sm:$0xff]  ;;  %v1282_v7 = vld [vmem:[%s1589_s26 + $0x8] sm:$0xff]  ;;  %v1284_v8 = vld [vmem:[%s1589_s26 + $0x10] sm:$0xff]  ;;  %s374_s18 = scalar_lea.vmem %s1764_s10, %s1276_s15 }
   0xf   : > { %1365 = vmatpush3.msra.mxu0 %v380_v2  ;;  %1378 = vmatpush3.msra.mxu1 %v380_v2  ;;  %v1286_v9 = vld [vmem:[%s1589_s26 + $0x18] sm:$0xff]  ;;  %v699_v12 = vld [vmem:[%s1759_s5 + $0x8] sm:$0xff]  ;;  %v375_v14 = vld [vmem:[%s365_s22] sm:$0xff] }
  0x10   : > { %1366 = vmatprep.subr.mxu0 %v1500_v1  ;;  %1379 = vmatprep.subr.mxu1 %v1500_v1  ;;  %v698_v15 = vld [vmem:[%s1759_s5] sm:$0xff]  ;;  %v936_v17 = vld [vmem:[%s1762_s8 + $0x10] sm:$0xff]  ;;  %v851_v38 = vld [vmem:[%s1760_s6 + $0x18] sm:$0xff] }
  0x11   : > { %1367 = vmatpush3.msra.mxu0 %v379_v3  ;;  %1380 = vmatpush3.msra.mxu1 %v379_v3  ;;  %v1280_v22 = vld [vmem:[%s1757_s3] ss:$0 sm:$0xff]  ;;  %v850_v39 = vld [vmem:[%s1760_s6 + $0x10] sm:$0xff]  ;;  %v849_v41 = vld [vmem:[%s1760_s6 + $0x8] sm:$0xff] }
  0x12   : > { %1368 = vmatprep.subr.mxu0 %v1500_v1  ;;  %1381 = vmatprep.subr.mxu1 %v1500_v1  ;;  %v935_v42 = vld [vmem:[%s1762_s8 + $0x8] sm:$0xff]  ;;  %v848_v44 = vld [vmem:[%s1760_s6] sm:$0xff]  ;;  %v1297_v49 = vld [vmem:[%s1760_s6 + $0x38] sm:$0xff] }
  0x13   : > { %1369 = vmatpush3.msra.mxu0 %v378_v4  ;;  %1382 = vmatpush3.msra.mxu1 %v378_v4  ;;  %v934_v45 = vld [vmem:[%s1762_s8] sm:$0xff]  ;;  %v1304_v50 = vld [vmem:[%s1762_s8 + $0x38] sm:$0xff]  ;;  %v1296_v51 = vld [vmem:[%s1760_s6 + $0x30] sm:$0xff] }
  0x14   : > { %1370 = vmatprep.subr.mxu0 %v1500_v1  ;;  %1383 = vmatprep.subr.mxu1 %v1500_v1  ;;  %v1303_v52 = vld [vmem:[%s1762_s8 + $0x30] sm:$0xff]  ;;  %v1295_v53 = vld [vmem:[%s1760_s6 + $0x28] sm:$0xff]  ;;  %v1294_v55 = vld [vmem:[%s1760_s6 + $0x20] sm:$0xff] }
  0x15   : > { %1371 = vmatpush3.msra.mxu0 %v377_v5  ;;  %1372 = vmatprep.mubr.msk.f32.mxu0 %vm1501_vm1, %v1500_v1  ;;  %v1302_v54 = vld [vmem:[%s1762_s8 + $0x28] sm:$0xff]  ;;  %v1301_v56 = vld [vmem:[%s1762_s8 + $0x20] sm:$0xff] }
  0x16   : > { %1384 = vmatpush3.msra.mxu1 %v377_v5  ;;  %1373 = vmatmul.mubr.msk.f32.vlgmr.msra.gmra.mxu0 %vm389_vm0, %v376_v6  ;;  %v1292_v57 = vld [vmem:[%s1763_s9] ss:$0 sm:$0xff] }
  0x17   : > { %1385 = vmatprep.mubr.msk.f32.mxu1 %vm1501_vm1, %v1500_v1  ;;  %1388 = vmatprep.subr.mxu0 %v1500_v1 }
  0x18   : > { %1401 = vmatprep.subr.mxu1 %v1500_v1  ;;  %1386 = vmatmul.mubr.msk.f32.vlgmr.msra.gmra.mxu1 %vm389_vm0, %v1282_v7 }
  0x19   : > { %1389 = vmatpush3.msra.mxu0 %v381_v0  ;;  %1402 = vmatpush3.msra.mxu1 %v381_v0 }
  0x1a   : > { %1390 = vmatprep.subr.mxu0 %v1500_v1  ;;  %1403 = vmatprep.subr.mxu1 %v1500_v1 }
  0x1b   : > { %1391 = vmatpush3.msra.mxu0 %v380_v2  ;;  %1404 = vmatpush3.msra.mxu1 %v380_v2 }
  0x1c   : > { %1392 = vmatprep.subr.mxu0 %v1500_v1  ;;  %1405 = vmatprep.subr.mxu1 %v1500_v1 }
  0x1d   : > { %1393 = vmatpush3.msra.mxu0 %v379_v3  ;;  %1406 = vmatpush3.msra.mxu1 %v379_v3 }
  0x1e   : > { %1394 = vmatprep.subr.mxu0 %v1500_v1  ;;  %1407 = vmatprep.subr.mxu1 %v1500_v1 }
  0x1f   : > { %1395 = vmatpush3.msra.mxu0 %v378_v4  ;;  %1408 = vmatpush3.msra.mxu1 %v378_v4 }
  0x20   : > { %1396 = vmatprep.subr.mxu0 %v1500_v1  ;;  %1409 = vmatprep.subr.mxu1 %v1500_v1 }
  0x21   : > { %1397 = vmatpush3.msra.mxu0 %v377_v5  ;;  %1398 = vmatprep.mubr.msk.f32.mxu0 %vm1501_vm1, %v1500_v1 }
  0x22   : > { %1410 = vmatpush3.msra.mxu1 %v377_v5  ;;  %1411 = vmatprep.mubr.msk.f32.mxu1 %vm1501_vm1, %v1500_v1 }
  0x23   : > { %1399 = vmatmul.mubr.msk.f32.vlgmr.msra.gmra.mxu0 %vm389_vm0, %v1284_v8  ;;  %1412 = vmatmul.mubr.msk.f32.vlgmr.msra.gmra.mxu1 %vm389_vm0, %v1286_v9 }
  0x24   : > { %1421 = vmatprep.subr.mxu1 %v1500_v1  ;;  %1414 = vmatprep.subr.mxu0 %v1500_v1 }
  0x25   : > { %1427 = vmatprep.mubr.msk.f32.mxu1 %vm1501_vm1, %v1500_v1  ;;  %1418 = vmatprep.mubr.msk.f32.mxu0 %vm1501_vm1, %v1500_v1 }
  0x26   : > { %1422 = vmatpush3.msra.mxu1 %v697_v10  ;;  %1415 = vmatpush3.msra.mxu0 %v699_v12 }
  0x27   : > { %1423 = vmatprep.subr.mxu1 %v1500_v1  ;;  %1416 = vmatprep.subr.mxu0 %v1500_v1 }
  0x28   : > { %1424 = vmatpush3.msra.mxu1 %v696_v11  ;;  %1417 = vmatpush3.msra.mxu0 %v698_v15  ;;  %v1306_v11 = vld [vmem:[%s1763_s9 + $0x1] ss:$0 sm:$0xff] }
  0x29   : > { %1425 = vmatprep.subr.mxu1 %v1500_v1  ;;  %1430 = vmatprep.subr.mxu0 %v1500_v1 }
  0x2a   : > { %1426 = vmatpush3.msra.mxu1 %v695_v13 }
  0x2b   : > { %1428 = vmatmul.mubr.msk.f32.vlgmr.msra.gmra.mxu1 %vm774_vm2, %v375_v14  ;;  %1441 = vmatprep.subr.mxu1 %v1500_v1 }
  0x2c   : > { %1449 = vmatprep.mubr.msk.f32.mxu1 %vm1501_vm1, %v1500_v1  ;;  %1442 = vmatpush3.msra.mxu1 %v937_v16 }
  0x2d   : > { %1443 = vmatprep.subr.mxu1 %v1500_v1 }
  0x2e   : > { %1444 = vmatpush3.msra.mxu1 %v936_v17 }
  0x2f   : > { %1445 = vmatprep.subr.mxu1 %v1500_v1 }
  0x30   : > { %1446 = vmatpush3.msra.mxu1 %v935_v42 }
  0x31   : > { %1447 = vmatprep.subr.mxu1 %v1500_v1 }
  0x32   : > { %1448 = vmatpush3.msra.mxu1 %v934_v45 }
  0x33   : > { %1463 = vmatprep.subr.mxu1 %v1500_v1 }
  0xd6   : > { %v459_v18 = vpop.f32.mrf.mxu0 }
  0xd7   : > { %v460_v23 = vadd.f32 %v1280_v22, %v459_v18 }
  0xd8   : > { %v535_v19 = vpop.f32.mrf.mxu1  ;;  %v1374_v20 = vpop.f32.mrf.mxu0 }
  0xd9   : > { %v536_v24 = vadd.f32 %v1280_v22, %v535_v19  ;;  %v463_v25 = vmax.f32 %v460_v23, 0.0 }
  0xda   : > { %v1387_v21 = vpop.f32.mrf.mxu1 }
  0xdb   : > { %v539_v26 = vmax.f32 %v536_v24, 0.0  ;;  %v1299_v21 = vld [vmem:[%s1761_s7 + $0x1] ss:$0 sm:$0xff] }
  0xdd   : > { %v540_v33 = vmax.f32 %v463_v25, %v539_v26 }
  0xe3   : > { %v612_v27 = vpop.f32.mrf.mxu0  ;;  %v689_v28 = vpop.f32.mrf.mxu1 }
  0xe4   : > { %v613_v29 = vadd.f32 %v1280_v22, %v612_v27  ;;  %v690_v30 = vadd.f32 %v1280_v22, %v689_v28 }
  0xe5   : > { %v1400_v31 = vpop.f32.mrf.mxu0  ;;  %v1413_v32 = vpop.f32.mrf.mxu1 }
  0xe6   : > { %v616_v34 = vmax.f32 %v613_v29, 0.0  ;;  %v693_v35 = vmax.f32 %v690_v30, 0.0 }
  0xe8   : > { %v617_v36 = vmax.f32 %v540_v33, %v616_v34 }
  0xea   : > { %v694_v37 = vmax.f32 %v617_v36, %v693_v35 }
  0xeb   : > { %v844_v40 = vpop.f32.mrf.mxu1 }
  0xec   : > { %1419 = vmatmul.mubr.msk.f32.vlgmr.msra.gmra.mxu0 %vm700_vm3, %v694_v37 }
  0xed   : > { %1431 = vmatpush3.msra.mxu0 %v851_v38  ;;  %1438 = vmatprep.mubr.msk.f32.mxu0 %vm1501_vm1, %v1500_v1  ;;  %v1429_v43 = vpop.f32.mrf.mxu1 }
  0xee   : > { %1432 = vmatprep.subr.mxu0 %v1500_v1 }
  0xef   : > { %1433 = vmatpush3.msra.mxu0 %v850_v39 }
  0xf0   : > { %1434 = vmatprep.subr.mxu0 %v1500_v1 }
  0xf1   : > { %1435 = vmatpush3.msra.mxu0 %v849_v41 }
  0xf2   : > { %1436 = vmatprep.subr.mxu0 %v1500_v1 }
  0xf3   : > { %1437 = vmatpush3.msra.mxu0 %v848_v44 }
  0xf4   : > { %1452 = vmatprep.subr.mxu0 %v1500_v1 }
 0x1ac   : > { %v770_v46 = vpop.f32.mrf.mxu0 }
 0x1ad   : > { %v845_v47 = vadd.f32 %v844_v40, %v770_v46 }
 0x1ae   : > { %v1420_v48 = vpop.f32.mrf.mxu0 }
 0x1af   : > { %1439 = vmatmul.mubr.msk.f32.vlgmr.msra.gmra.mxu0 %vm859_vm4, %v845_v47  ;;  %1450 = vmatmul.mubr.msk.f32.vlgmr.msra.gmra.mxu1 %vm859_vm4, %v845_v47 }
 0x1b0   : > { %1460 = vmatprep.mubr.msk.f32.mxu0 %vm1501_vm1, %v1500_v1  ;;  %1471 = vmatprep.mubr.msk.f32.mxu1 %vm1501_vm1, %v1500_v1 }
 0x1b1   : > { %1453 = vmatpush3.msra.mxu0 %v1297_v49  ;;  %1464 = vmatpush3.msra.mxu1 %v1304_v50 }
 0x1b2   : > { %1454 = vmatprep.subr.mxu0 %v1500_v1  ;;  %1465 = vmatprep.subr.mxu1 %v1500_v1 }
 0x1b3   : > { %1455 = vmatpush3.msra.mxu0 %v1296_v51  ;;  %1466 = vmatpush3.msra.mxu1 %v1303_v52 }
 0x1b4   : > { %1456 = vmatprep.subr.mxu0 %v1500_v1  ;;  %1467 = vmatprep.subr.mxu1 %v1500_v1 }
 0x1b5   : > { %1457 = vmatpush3.msra.mxu0 %v1295_v53  ;;  %1468 = vmatpush3.msra.mxu1 %v1302_v54 }
 0x1b6   : > { %1458 = vmatprep.subr.mxu0 %v1500_v1  ;;  %1469 = vmatprep.subr.mxu1 %v1500_v1  ;;  %v1290_v1 = vld [vmem:[%s1761_s7] ss:$0 sm:$0xff] }
 0x1b7   : > { %1459 = vmatpush3.msra.mxu0 %v1294_v55  ;;  %1470 = vmatpush3.msra.mxu1 %v1301_v56 }
 0x26f   : > { %v929_v58 = vpop.f32.mrf.mxu0  ;;  %v1011_v59 = vpop.f32.mrf.mxu1 }
 0x270   : > { %v1012_v60 = vadd.f32 %v1292_v57, %v1011_v59  ;;  %v930_v4 = vadd.f32 %v1290_v1, %v929_v58 }
 0x271   : > { %v1440_v61 = vpop.f32.mrf.mxu0  ;;  %v1451_v62 = vpop.f32.mrf.mxu1 }
 0x272   : > { %v1015_v63 = vsub.f32 0.0, %v1012_v60  ;;  %v933_v6 = vmax.f32 %v930_v4, 0.0 }
 0x274   : > { %v1016_v0 = vmul.f32 1.442695, %v1015_v63 }
 0x276   : > { %1484 = vpow2.f32 %v1016_v0 }
 0x283   : > { %v1485_v2 = vpop.eup %1484 }
 0x284   : > { %v1018_v3 = vadd.f32 1.0, %v1485_v2 }
 0x286   : > { %1486 = vrcp.f32 %v1018_v3 }
 0x293   : > { %v1487_v5 = vpop.eup %1486 }
 0x294   : > { %v1022_v7 = vsub.f32 1.0, %v1487_v5  ;;  %v1021_v8 = vmul.f32 %v1487_v5, %v933_v6 }
 0x296   : > { %v1023_v9 = vmul.f32 %v1022_v7, %v845_v47 }
 0x298   : > { %v1024_v10 = vadd.f32 %v1023_v9, %v1021_v8 }
 0x29a   : > { %1461 = vmatmul.mubr.msk.f32.vlgmr.msra.gmra.mxu0 %vm859_vm4, %v1024_v10  ;;  %1472 = vmatmul.mubr.msk.f32.vlgmr.msra.gmra.mxu1 %vm859_vm4, %v1024_v10 }
 0x35a   : > { %v1107_v12 = vpop.f32.mrf.mxu0  ;;  %v1191_v13 = vpop.f32.mrf.mxu1 }
 0x35b   : > { %v1192_v14 = vadd.f32 %v1306_v11, %v1191_v13  ;;  %v1108_v22 = vadd.f32 %v1299_v21, %v1107_v12 }
 0x35c   : > { %v1462_v15 = vpop.f32.mrf.mxu0  ;;  %v1473_v16 = vpop.f32.mrf.mxu1 }
 0x35d   : > { %v1195_v17 = vsub.f32 0.0, %v1192_v14  ;;  %v1111_v24 = vmax.f32 %v1108_v22, 0.0 }
 0x35f   : > { %v1196_v18 = vmul.f32 1.442695, %v1195_v17 }
 0x361   : > { %1488 = vpow2.f32 %v1196_v18 }
 0x36e   : > { %v1489_v19 = vpop.eup %1488 }
 0x36f   : > { %v1198_v20 = vadd.f32 1.0, %v1489_v19 }
 0x371   : > { %1490 = vrcp.f32 %v1198_v20 }
 0x37e   : > { %v1491_v23 = vpop.eup %1490 }
 0x37f   : > { %v1202_v25 = vsub.f32 1.0, %v1491_v23  ;;  %v1201_v26 = vmul.f32 %v1491_v23, %v1111_v24 }
 0x381   : > { %v1203_v27 = vmul.f32 %v1202_v25, %v1024_v10 }
 0x383   : > { %v1204_v28 = vadd.f32 %v1203_v27, %v1201_v26 }
 0x385   : > { %1205 = vst.msk [vmem:[%s374_s18] sm:$0xff] %vm859_vm4, %v1204_v28 }
 0x386 PF: > { %s20_s13 = sadd.s32 1, %s1498_s13  }
 0x387   : > { %p17_p4 = scmp.ge.s32.totalorder %s20_s13, 4  }
 0x389   :  { %19 = sbr.rel (!%p17_p4) target bundleno = 1 (0x1), region = 100 }

// kernel: qanet_forward.53
= control target key start
LH: loop header
LB: loop body
LE: loop exit
PB: predicated region body
PF: predicated region fallthrough
CT: control target
= control target key end

     0   :  { %s1418_s0 = inlined_call_operand.vmem [shape: f32[2,16,32], index: 0, kind: input, shape index: {}]   ;;  %s1419_s1 = inlined_call_operand.vmem [shape: f32[2,16,32], index: 1, kind: input, shape index: {}]   ;;  %s1420_s2 = inlined_call_operand.vmem [shape: f32[2,16,32], index: 2, kind: input, shape index: {}]   ;;  %s1421_s3 = inlined_call_operand.vmem [shape: f32[2,1,16], index: 3, kind: input, shape index: {}]   ;;  %s1422_s4 = inlined_call_operand.vmem [shape: f32[1,32], index: 4, kind: input, shape index: {}]   ;;  %s1423_s5 = inlined_call_operand.vmem [shape: f32[1,32], index: 5, kind: input, shape index: {}]   ;;  %s1424_s6 = inlined_call_operand.<no memory space> [shape: f32[1,1], index: 6, kind: input, shape index: {}]   ;;  %s1425_s7 = inlined_call_operand.vmem [shape: f32[1,32], index: 7, kind: input, shape index: {}]   ;;  %s1426_s8 = inlined_call_operand.vmem [shape: f32[1,32], index: 8, kind: input, shape index: {}]   ;;  %s1427_s10 = inlined_call_operand.hbm [shape: f32[2,1,16], index: 10, kind: output, shape index: {0}]   ;;  %s1428_s11 = inlined_call_operand.hbm [shape: f32[2,1,16], index: 11, kind: output, shape index: {1}]   ;;  %s1429_s9 = inlined_call_operand.<no memory space> [shape: f32[1,1], index: 9, kind: input, shape index: {}]  }
   0x1   :  { %1431 = sst [smem:[#allocation10_spill]] %s1418_s0  ;;  %v17_v0 = vstv %s1424_s6  ;;  %v19_v1 = vstv %s1429_s9 }
   0x2   :  { %1432 = sst [smem:[#allocation11_spill]] %s1419_s1  ;;  %18 = vst [vmem:[#allocation2] sm:$0x1] %v17_v0  ;;  %20 = vst [vmem:[#allocation3] sm:$0x1] %v19_v1 }
   0x3   :  { %21 = vsyncpa [#allocation5], 0 }
   0x4   :  { %23 = vsyncpa [#allocation5 + $0x1], 0 }
   0x5   :  { %24 = vsyncpa [#allocation7], 0 }
   0x6   :  { %26 = vsyncpa [#allocation7 + $0x1], 0  ;;  %s1259_s21 = smov 0   ;;  %s1261_s22 = smov 0  }
   0x7   :  { %s1263_s23 = smov 0   ;;  %s1265_s24 = smov 0  }
   0x8 LB: > { %s1280_s6 = sadd.s32 4294967295, %s1186_s24   ;;  %s971_s9 = sadd.s32 4294967294, %s1186_s24   ;;  %s1186_s24 = sphi %s1265_s24, %s1441_s24   ;;  %s1182_s23 = sphi %s1263_s23, %s1440_s23   ;;  %s1178_s22 = sphi %s1261_s22, %s1439_s22   ;;  %s1174_s21 = sphi %s1259_s21, %s1438_s21  }
   0x9   : > { %s1284_s25 = sadd.s32 1, %s1186_s24   ;;  %s269_s26 = sadd.s32 1, %s1182_s23 }
   0xa   : > { %s266_s27 = ssub.s32 %s1186_s24, %s1284_s25  ;;  %p279_p0 = scmp.ne.s32.totalorder %s1182_s23, %s1178_s22 }
   0xb   : > { %p267_p1 = scmp.eq.s32.totalorder %s266_s27, 0  ;;  %p280_p2 = scmp.eq.s32.totalorder %s1280_s6, 1 }
   0xc   : > { %p285_p3 = scmp.ne.s32.totalorder %s1178_s22, %s1174_s21  ;;  %p286_p4 = scmp.eq.s32.totalorder %s971_s9, 1 }
   0xd   : > { %s1295_s28 = scalar_select %p267_p1, %s1182_s23, %s269_s26  }
   0xe   : > { %p1297_p5 = por %p280_p2, %p279_p0  ;;  %p1301_p6 = por %p286_p4, %p285_p3 }
   0xf   : > { %p974_p7 = scmp.ge.s32.totalorder %s1186_s24, 1  ;;  %p378_p8 = scmp.lt.s32.totalorder %s1186_s24, 3 }
  0x11   : > { %p379_p9 = pnand %p974_p7, %p378_p8 }
  0x12   : > { %p434_p10 = scmp.lt.s32.totalorder (!%p379_p9), %s1280_s6, 1  ;;  %s1435_s1 = sld [smem:[#allocation11_spill]] (!%p379_p9) }
  0x13   : > { %382 = sbr.rel (%p379_p9) target bundleno = 587 (0x24b), region = 60  ;;  %s1436_s0 = sld [smem:[#allocation10_spill]] (!%p379_p9) }
  0x14   : > { %s1430_s27 = sshll.u32 (!%p379_p9), %s1280_s6, 4  ;;  %s1191_s20 = smov (!%p379_p9), [#allocation4]  }
  0x15   : > { %s1100_s9 = sshll.u32 (!%p379_p9), %s1191_s20, 4  ;;  %s1101_s9 = int_to_ptr.vmem [resolvable:$false] %s1100_s9 }
  0x18   : > { %v1188_v2 = vmov 0.0   ;;  %s1309_s12 = scalar_select %p434_p10, %s1280_s6, 1  ;;  %vm1189_vm0 = vmmov 0   ;;  %v461_v3 = vld [vmem:[#allocation2] sm:$0x1]  ;;  %v1190_v4 = vmov 0   ;;  %v626_v16 = vlaneseq }
  0x19   : > { %1012 = vmatprep.subr.mxu0 %v1188_v2  ;;  %1019 = vmatprep.subr.mxu1 %v1188_v2  ;;  %vm462_vm1 = vcmask 261120   ;;  %v648_v7 = vld [vmem:[#allocation3] sm:$0x1]  ;;  %v460_v10 = vld [vmem:[%s1423_s5] sm:$0x1]  ;;  %vm632_vm2 = vcmask 122880  }
  0x1a   : > { %1016 = vmatprep.mubr.msk.f32.mxu0 %vm1189_vm0, %v1188_v2  ;;  %1023 = vmatprep.mubr.msk.f32.mxu1 %vm1189_vm0, %v1188_v2  ;;  %s997_s13 = sshll.u32 %s1309_s12, 4  ;;  %v459_v11 = vld [vmem:[%s1422_s4] sm:$0x1]  ;;  %v627_v17 = vshrl.u32 %v626_v16, 7 }
  0x1b   : > { %1087 = vset.pattern.permute.xlu0 %v1190_v4  ;;  %s443_s16 = scalar_lea.vmem %s1435_s1, %s997_s13  ;;  %s438_s19 = scalar_lea.vmem %s1436_s0, %s997_s13  ;;  %v647_v14 = vld [vmem:[%s1426_s8] sm:$0x1] }
  0x1c   : > { %623 = vperm.xlu0 %1087, %v461_v3   ;;  %v455_v5 = vld [vmem:[%s443_s16 + $0x8] sm:$0xff]  ;;  %v454_v8 = vld [vmem:[%s443_s16] sm:$0xff]  ;;  %s448_s26 = scalar_lea.vmem %s1420_s2, %s997_s13  ;;  %v628_v18 = vsub.s32 0, %v627_v17  ;;  %s840_s16 = scalar_lea.hbm %s1427_s10, %s1430_s27 }
  0x1d   : > { %v453_v6 = vld [vmem:[%s438_s19 + $0x8] sm:$0xff]  ;;  %1013 = vmatpush3.xpose.msk.msra.mxu0 %vm462_vm1, %v455_v5  ;;  %v452_v9 = vld [vmem:[%s438_s19] sm:$0xff] }
  0x1e   : > { %1020 = vmatpush3.xpose.msk.msra.mxu1 %vm462_vm1, %v453_v6  ;;  %1014 = vmatprep.subr.mxu0 %v1188_v2  ;;  %v457_v12 = vld [vmem:[%s448_s26 + $0x8] sm:$0xff]  ;;  %v456_v13 = vld [vmem:[%s448_s26] sm:$0xff]  ;;  %s451_s26 = scalar_lea.vmem %s1421_s3, %s1309_s12  ;;  %s1358_s12 = sand.u32 1, %s1178_s22  }
  0x1f   : > { %1021 = vmatprep.subr.mxu1 %v1188_v2  ;;  %v646_v15 = vld [vmem:[%s1425_s7] sm:$0x1]  ;;  %s427_s14 = scalar_lea.vmem [#allocation4], %s1358_s12  ;;  %s826_s18 = scalar_lea.sflag [#allocation5], %s1358_s12 }
  0x20   : > { %803 = vperm.xlu0 %1087, %v648_v7   ;;  %v458_v26 = vld [vmem:[%s451_s26] sm:$0x1]  ;;  %s842_s15 = sshll.u32 %s427_s14, 4  ;;  %s1102_s26 = scalar_lea.vmem %s1101_s9, 32  ;;  %s843_s15 = int_to_ptr.vmem [resolvable:$true] %s842_s15 }
  0x21   : > { %1015 = vmatpush3.xpose.msk.msra.mxu0 %vm462_vm1, %v454_v8  ;;  %s1096_s19 = scalar_lea.vmem %s843_s15, 16  ;;  %p1103_p0 = scmp.lt.s32.totalorder %s843_s15, %s1101_s9 }
  0x22   : > { %1022 = vmatpush3.xpose.msk.msra.mxu1 %vm462_vm1, %v452_v9  ;;  %1026 = vmatprep.subr.mxu0 %v1188_v2  ;;  %p1097_p11 = scmp.ne.s32.totalorder %s843_s15, %s1096_s19  ;;  %p1104_p1 = scmp.lt.s32.totalorder %s1102_s26, %s1096_s19 }
  0x23   : > { %1033 = vmatprep.subr.mxu1 %v1188_v2 }
  0x24   : > { %1017 = vmatmul.mubr.msk.f32.vlgmr.msra.gmra.mxu0 %vm462_vm1, %v460_v10  ;;  %p1098_p12 = pnand %p1097_p11, %p1297_p5  ;;  %p1105_p2 = por %p1104_p1, %p1103_p0 }
  0x25   : > { %1024 = vmatmul.mubr.msk.f32.vlgmr.msra.gmra.mxu1 %vm462_vm1, %v459_v11  ;;  %1027 = vmatpush3.xpose.msk.msra.mxu0 %vm462_vm1, %v457_v12 }
  0x26   : > { %1034 = vmatpush3.xpose.msk.msra.mxu1 %vm462_vm1, %v453_v6  ;;  %1028 = vmatprep.subr.mxu0 %v1188_v2  ;;  %p1099_p13 = pneg %p1098_p12 }
  0x27   : > { %1035 = vmatprep.subr.mxu1 %v1188_v2  ;;  %1030 = vmatprep.mubr.msk.f32.mxu0 %vm1189_vm0, %v1188_v2 }
  0x28   : > { %1037 = vmatprep.mubr.msk.f32.mxu1 %vm1189_vm0, %v1188_v2  ;;  %p1106_p3 = pnand %p1105_p2, %p1099_p13 }
  0x29   : > { %1029 = vmatpush3.xpose.msk.msra.mxu0 %vm462_vm1, %v456_v13 }
  0x2a   : > { %1036 = vmatpush3.xpose.msk.msra.mxu1 %vm462_vm1, %v452_v9 }
  0x2c   : > { %1031 = vmatmul.mubr.msk.f32.vlgmr.msra.gmra.mxu0 %vm462_vm1, %v647_v14 }
  0x2d   : > { %1038 = vmatmul.mubr.msk.f32.vlgmr.msra.gmra.mxu1 %vm462_vm1, %v646_v15 }
  0x97   : > { %v624_v19 = vpop.permute.xlu0 %623 }
  0x98   : > { %v629_v20 = vrot.slane %v624_v19, %v628_v18 }
  0x9b   : > { %v804_v29 = vpop.permute.xlu0 %803 }
  0x9c   : > { %v809_v33 = vrot.slane %v804_v29, %v628_v18 }
  0xe4   : > { %v538_v21 = vpop.f32.mrf.mxu0 }
  0xe5   : > { %v617_v22 = vpop.f32.mrf.mxu1 }
  0xe6   : > { %v618_v23 = vadd.f32 %v617_v22, %v538_v21  ;;  %v1018_v24 = vpop.f32.mrf.mxu0 }
  0xe7   : > { %v1025_v25 = vpop.f32.mrf.mxu1 }
  0xe8   : > { %v630_v27 = vadd.f32 %v629_v20, %v618_v23 }
  0xea   : > { %v631_v28 = vadd.f32 %v630_v27, %v458_v26 }
  0xec   : > { %v633_v30 = vsel %vm632_vm2, %v631_v28, -inf  ;;  %v724_v31 = vpop.f32.mrf.mxu0 }
  0xed   : > { %634 = vmax.xlane.f32.xlu1 %v633_v30  ;;  %v797_v32 = vpop.f32.mrf.mxu1 }
  0xee   : > { %v798_v34 = vadd.f32 %v797_v32, %v724_v31  ;;  %v1032_v35 = vpop.f32.mrf.mxu0 }
  0xef   : > { %v1039_v36 = vpop.f32.mrf.mxu1 }
  0xf0   : > { %v810_v37 = vadd.f32 %v809_v33, %v798_v34 }
  0xf2   : > { %v811_v38 = vadd.f32 %v810_v37, %v458_v26 }
  0xf4   : > { %v812_v39 = vsel %vm632_vm2, %v811_v38, -inf }
  0xf5   : > { %813 = vmax.xlane.f32.xlu1 %v812_v39 }
 0x176   : > { %v635_v40 = vpop.xlane.xlu1 %634 }
 0x177   : > { %v636_v41 = vsub.f32 %v631_v28, %v635_v40 }
 0x179   : > { %v637_v42 = vmul.f32 1.442695, %v636_v41 }
 0x17b   : > { %1088 = vpow2.f32 %v637_v42 }
 0x17e   : > { %v814_v43 = vpop.xlane.xlu1 %813 }
 0x17f   : > { %v815_v44 = vsub.f32 %v811_v38, %v814_v43 }
 0x181   : > { %v816_v45 = vmul.f32 1.442695, %v815_v44 }
 0x183   : > { %1090 = vpow2.f32 %v816_v45 }
 0x188   : > { %v1089_v46 = vpop.eup %1088 }
 0x189   : > { %v639_v47 = vsel %vm632_vm2, %v1089_v46, 0.0 }
 0x18a   : > { %640 = vadd.xlane.f32.xlu0 %v639_v47 }
 0x190   : > { %v1091_v48 = vpop.eup %1090 }
 0x191   : > { %v818_v49 = vsel %vm632_vm2, %v1091_v48, 0.0 }
 0x192   : > { %819 = vadd.xlane.f32.xlu1 %v818_v49 }
 0x213   : > { %v641_v50 = vpop.xlane.xlu0 %640 }
 0x214   : > { %1092 = vlog2.f32 %v641_v50 }
 0x21b   : > { %v820_v51 = vpop.xlane.xlu1 %819 }
 0x21c   : > { %1094 = vlog2.f32 %v820_v51 }
 0x221   : > { %v1093_v52 = vpop.eup %1092 }
 0x222   : > { %v643_v53 = vmul.f32 0.6931472, %v1093_v52 }
 0x224   : > { %v644_v54 = vsub.f32 %v636_v41, %v643_v53 }
 0x226   : > { %645 = vst.msk [vmem:[%s427_s14] sm:$0x1] %vm632_vm2, %v644_v54 }
 0x227   : > { %1109 = shalt.err (!%p1106_p3)
}
 0x228   : > { %s1110_s17 = scalar_lea.hbm %s840_s16, 16  ;;  %s1114_s27 = scalar_lea.hbm %s1427_s10, 32 }
 0x229   : > { %p1111_p4 = scmp.ne.s32.totalorder %s840_s16, %s1110_s17  ;;  %p1115_p9 = scmp.lt.s32.totalorder %s840_s16, %s1427_s10 }
 0x22a   : > { %p1116_p10 = scmp.lt.s32.totalorder %s1114_s27, %s1110_s17 }
 0x22b   : > { %p1112_p7 = pnand %p1111_p4, %p1297_p5 }
 0x22c   : > { %p1117_p11 = por %p1116_p10, %p1115_p9 }
 0x22d   : > { %p1113_p8 = pneg %p1112_p7 }
 0x22f   : > { %p1118_p12 = pnand %p1117_p11, %p1113_p8 }
 0x231   : > { %1121 = shalt.err (!%p1118_p12)
}
 0x232   : > { %1040 = dma.vmem_to_hbm [thread:$0]  (%p1297_p5), %s843_s15, 16, %s840_s16, %s826_s18   ;;  %v1095_v55 = vpop.eup %1094 }
 0x233   : > { %s433_s19 = scalar_lea.vmem [#allocation6], %s1358_s12  ;;  %v822_v56 = vmul.f32 0.6931472, %v1095_v55  ;;  %s1437_s9 = sshll.u32 %s1280_s6, 4 }
 0x234   : > { %s855_s20 = sshll.u32 %s433_s19, 4  ;;  %s853_s1 = scalar_lea.hbm %s1428_s11, %s1437_s9  ;;  %s856_s20 = int_to_ptr.vmem [resolvable:$true] %s855_s20 }
 0x235   : > { %v823_v57 = vsub.f32 %v815_v44, %v822_v56  ;;  %s830_s27 = scalar_lea.sflag [#allocation7], %s1358_s12  ;;  %s1122_s17 = scalar_lea.vmem %s856_s20, 16 }
 0x236   : > { %p1123_p13 = scmp.ne.s32.totalorder %s856_s20, %s1122_s17  ;;  %s1192_s15 = smov [#allocation6]  }
 0x237   : > { %824 = vst.msk [vmem:[%s433_s19] sm:$0x1] %vm632_vm2, %v823_v57  ;;  %s1126_s16 = sshll.u32 %s1192_s15, 4  ;;  %s1127_s16 = int_to_ptr.vmem [resolvable:$false] %s1126_s16 }
 0x238   : > { %p1124_p0 = pnand %p1123_p13, %p1297_p5  ;;  %s1128_s18 = scalar_lea.vmem %s1127_s16, 32 }
 0x239   : > { %p1129_p2 = scmp.lt.s32.totalorder %s856_s20, %s1127_s16  ;;  %p1130_p3 = scmp.lt.s32.totalorder %s1128_s18, %s1122_s17 }
 0x23a   : > { %p1125_p1 = pneg %p1124_p0 }
 0x23b   : > { %p1131_p4 = por %p1130_p3, %p1129_p2 }
 0x23d   : > { %p1132_p7 = pnand %p1131_p4, %p1125_p1 }
 0x23f   : > { %1135 = shalt.err (!%p1132_p7)
}
 0x240   : > { %s1136_s6 = scalar_lea.hbm %s853_s1, 16  ;;  %s1140_s13 = scalar_lea.hbm %s1428_s11, 32 }
 0x241   : > { %p1137_p8 = scmp.ne.s32.totalorder %s853_s1, %s1136_s6  ;;  %p1141_p11 = scmp.lt.s32.totalorder %s853_s1, %s1428_s11 }
 0x242   : > { %p1142_p12 = scmp.lt.s32.totalorder %s1140_s13, %s1136_s6 }
 0x243   : > { %p1138_p9 = pnand %p1137_p8, %p1297_p5 }
 0x244   : > { %p1143_p13 = por %p1142_p12, %p1141_p11 }
 0x245   : > { %p1139_p10 = pneg %p1138_p9 }
 0x247   : > { %p1144_p0 = pnand %p1143_p13, %p1139_p10 }
 0x249   : > { %1147 = shalt.err (!%p1144_p0)
}
 0x24a   : > { %1041 = dma.vmem_to_hbm [thread:$0]  (%p1297_p5), %s856_s20, 16, %s853_s1, %s830_s27  }
 0x24b PF: > { %p1051_p1 = scmp.ge.s32.totalorder %s1186_s24, 2  ;;  %s867_s26 = sand.u32 1, %s1174_s21  }
 0x24c   : > { %s868_s0 = scalar_lea.sflag [#allocation5], %s867_s26 }
 0x24d   : > { %p1045_p2 = pnand %p1051_p1, %p1301_p6 }
 0x24f   : > { %p1046_p3 = pneg %p1045_p2 }
 0x251   : > { %1165 = dma.done.wait (%p1046_p3), %s868_s0, 16  }
 0x252   : > { %1167 = vsyncadd (%p1046_p3), %s868_s0, 4294967280  ;;  %s876_s17 = scalar_lea.sflag [#allocation7], %s867_s26 }
 0x253   : > { %1169 = dma.done.wait (%p1046_p3), %s876_s17, 16  }
 0x254   : > { %1171 = vsyncadd (%p1046_p3), %s876_s17, 4294967280  ;;  %p29_p5 = scmp.ge.s32.totalorder %s1284_s25, 4   ;;  %s1438_s21 = smov %s1178_s22 }
 0x255   : > { %s1439_s22 = smov %s1182_s23  ;;  %s1440_s23 = smov %s1295_s28 }
 0x256   : > { %s1441_s24 = smov %s1284_s25  ;;  %31 = sbr.rel (!%p29_p5) target bundleno = 8 (0x8), region = 121 }
 0x25b   :  { %880 = vsyncpa [#allocation5], 1 }
 0x25c   :  { %882 = vsyncpa [#allocation5 + $0x1], 1 }
 0x25d   :  { %883 = vsyncpa [#allocation7], 1 }
 0x25e   :  { %885 = vsyncpa [#allocation7 + $0x1], 1 }

// kernel: qanet_forward.29
= control target key start
LH: loop header
LB: loop body
LE: loop exit
PB: predicated region body
PF: predicated region fallthrough
CT: control target
= control target key end

     0   :  { %s5377_s21 = smov 0   ;;  %s5992_s0 = inlined_call_operand.vmem [shape: f32[2,16,32], index: 0, kind: input, shape index: {}]   ;;  %s5993_s1 = inlined_call_operand.vmem [shape: f32[16,32], index: 1, kind: input, shape index: {}]   ;;  %s5994_s2 = inlined_call_operand.vmem [shape: f32[2,1,16], index: 2, kind: input, shape index: {}]   ;;  %s5995_s3 = inlined_call_operand.vmem [shape: f32[4,1,32], index: 3, kind: input, shape index: {}]   ;;  %s5996_s4 = inlined_call_operand.vmem [shape: f32[4,1,32], index: 4, kind: input, shape index: {}]   ;;  %s5997_s5 = inlined_call_operand.vmem [shape: f32[2,7,32], index: 5, kind: input, shape index: {}]   ;;  %s5998_s6 = inlined_call_operand.vmem [shape: f32[2,32,32], index: 6, kind: input, shape index: {}]   ;;  %s5999_s7 = inlined_call_operand.vmem [shape: f32[2,1,32], index: 7, kind: input, shape index: {}]   ;;  %s6000_s8 = inlined_call_operand.vmem [shape: f32[4,32,8], index: 8, kind: input, shape index: {}]   ;;  %s6001_s9 = inlined_call_operand.vmem [shape: f32[4,32,8], index: 9, kind: input, shape index: {}]   ;;  %s6002_s10 = inlined_call_operand.vmem [shape: f32[4,32,8], index: 10, kind: input, shape index: {}]   ;;  %s6003_s11 = inlined_call_operand.vmem [shape: f32[4,8,32], index: 11, kind: input, shape index: {}]   ;;  %s6004_s12 = inlined_call_operand.vmem [shape: f32[32,32], index: 12, kind: input, shape index: {}]   ;;  %s6005_s13 = inlined_call_operand.vmem [shape: f32[1,32], index: 13, kind: input, shape index: {}]   ;;  %s6006_s14 = inlined_call_operand.vmem [shape: f32[32,32], index: 14, kind: input, shape index: {}]   ;;  %s6007_s15 = inlined_call_operand.vmem [shape: f32[1,32], index: 15, kind: input, shape index: {}]   ;;  %s6008_s16 = inlined_call_operand.vmem [shape: f32[2,16,32], index: 16, kind: output, shape index: {}]  }
   0x1   :  { %6009 = sst [smem:[#allocation2_spill]] %s5992_s0 }
   0x2 LB: > { %s4511_s22 = sadd.s32 4294967295, %s5289_s21   ;;  %p4515_p0 = scmp.ge.s32.totalorder %s5289_s21, 1  ;;  %s5289_s21 = sphi %s5377_s21, %s26_s21  }
   0x3   : > { %p470_p1 = scmp.lt.s32.totalorder %s5289_s21, 3 }
   0x5   : > { %p471_p2 = pnand %p4515_p0, %p470_p1 }
   0x6   : > { %p523_p3 = scmp.lt.s32.totalorder (!%p471_p2), %s4511_s22, 1  ;;  %s6010_s30 = sld [smem:[#allocation2_spill]] (!%p471_p2) }
   0x7   : > { %474 = sbr.rel (%p471_p2) target bundleno = 6150 (0x1806), region = 84 }
   0xc   : > { %s6012_s22 = smov (!%p523_p3, %s4511_s22), 1  ;;  %v539_v0 = vld [vmem:[%s5993_s1 + $0x8] sm:$0xff]  ;;  %v538_v1 = vld [vmem:[%s5993_s1] sm:$0xff]  ;;  %vm542_vm0 = vcmask 261120   ;;  %v589_v18 = vlaneseq  ;;  %v5291_v26 = vmov 0.0   ;;  %vm600_vm3 = vcmask 130048  }
   0xd   : > { %s4678_s23 = sshll.u32 %s6012_s22, 4  ;;  %v4520_v56 = vld [vmem:[%s5995_s3] ss:$0 sm:$0xff] }
   0xe   : > { %s527_s0 = scalar_lea.vmem %s6010_s30, %s4678_s23  ;;  %v5419_v19 = vshrl.u32 %v589_v18, 7  ;;  %v593_v21 = vand.u32 127, %v589_v18  ;;  %v4521_v58 = vld [vmem:[%s5996_s4] ss:$0 sm:$0xff]  ;;  %s530_s30 = scalar_lea.vmem %s5994_s2, %s6012_s22 }
   0xf   : > { %v537_v2 = vld [vmem:[%s527_s0 + $0x8] sm:$0xff]  ;;  %v536_v3 = vld [vmem:[%s527_s0] sm:$0xff]  ;;  %s535_s18 = scalar_lea.vmem %s6008_s16, %s4678_s23 }
  0x10   : > { %v5399_v4 = vadd.f32 %v539_v0, %v537_v2  ;;  %v5401_v5 = vadd.f32 %v538_v1, %v536_v3  ;;  %v591_v20 = vadd.s32 8, %v5419_v19  ;;  %v594_v22 = vadd.s32 4294967293, %v5419_v19  ;;  %v1261_v1 = vld [vmem:[%s5998_s6 + $0x18] sm:$0xff]  ;;  %v1260_v2 = vld [vmem:[%s5998_s6 + $0x10] sm:$0xff]  ;;  %v1259_v3 = vld [vmem:[%s5998_s6 + $0x8] sm:$0xff] }
  0x11   : > { %v690_v23 = vadd.s32 4294967294, %v5419_v19  ;;  %v785_v31 = vadd.s32 4294967295, %v5419_v19  ;;  %vm880_vm7 = vcmp.eq.s32.totalorder %v593_v21, %v5419_v19  ;;  %v973_v37 = vadd.s32 1, %v5419_v19 }
  0x12   : > { %v546_v6 = vsel %vm542_vm0, %v5399_v4, 0.0  ;;  %v543_v7 = vsel %vm542_vm0, %v5401_v5, 0.0  ;;  %v595_v24 = vadd.s32 4294967293, %v591_v20  ;;  %v691_v25 = vadd.s32 4294967294, %v591_v20 }
  0x13   : > { %547 = vadd.xlane.f32.xlu0 %v546_v6  ;;  %vm596_vm1 = vcmp.eq.s32.totalorder %v593_v21, %v594_v22  ;;  %vm692_vm2 = vcmp.eq.s32.totalorder %v593_v21, %v690_v23  ;;  %vm787_vm6 = vcmp.eq.s32.totalorder %v593_v21, %v785_v31  ;;  %v786_v32 = vadd.s32 4294967295, %v591_v20  ;;  %v1258_v6 = vld [vmem:[%s5998_s6] sm:$0xff] }
  0x14   : > { %v5424_v27 = vsel %vm596_vm1, 1.0, %v5291_v26  ;;  %v5426_v28 = vsel %vm692_vm2, 1.0, %v5291_v26  ;;  %vm597_vm4 = vcmp.eq.s32.totalorder %v593_v21, %v595_v24  ;;  %vm693_vm5 = vcmp.eq.s32.totalorder %v593_v21, %v691_v25 }
  0x15   : > { %4880 = vmatprep.mubr.msk.f32.mxu0 %vm600_vm3, %v5424_v27  ;;  %4887 = vmatprep.mubr.msk.f32.mxu1 %vm600_vm3, %v5426_v28  ;;  %v5432_v29 = vsel %vm597_vm4, 1.0, %v5291_v26  ;;  %v5434_v30 = vsel %vm693_vm5, 1.0, %v5291_v26  ;;  %v5437_v33 = vsel %vm787_vm6, 1.0, %v5291_v26  ;;  %v5440_v34 = vsel %vm880_vm7, 1.0, %v5291_v26 }
  0x16   : > { %vm788_vm8 = vcmp.eq.s32.totalorder %v593_v21, %v786_v32  ;;  %vm881_vm9 = vcmp.eq.s32.totalorder %v593_v21, %v591_v20  ;;  %v1068_v38 = vadd.s32 2, %v5419_v19  ;;  %vm975_vm10 = vcmp.eq.s32.totalorder %v593_v21, %v973_v37 }
  0x17   : > { %544 = vadd.xlane.f32.xlu0 %v543_v7  ;;  %v5442_v35 = vsel %vm788_vm8, 1.0, %v5291_v26  ;;  %v5444_v36 = vsel %vm881_vm9, 1.0, %v5291_v26  ;;  %v974_v39 = vadd.s32 1, %v591_v20  ;;  %v1069_v40 = vadd.s32 2, %v591_v20 }
  0x18   : > { %v5448_v41 = vsel %vm975_vm10, 1.0, %v5291_v26  ;;  %vm1070_vm11 = vcmp.eq.s32.totalorder %v593_v21, %v1068_v38  ;;  %v1163_v45 = vadd.s32 3, %v5419_v19  ;;  %v1164_v46 = vadd.s32 3, %v591_v20 }
  0x19   : > { %v5450_v42 = vsel %vm1070_vm11, 1.0, %v5291_v26  ;;  %vm976_vm12 = vcmp.eq.s32.totalorder %v593_v21, %v974_v39  ;;  %vm1071_vm13 = vcmp.eq.s32.totalorder %v593_v21, %v1069_v40  ;;  %v684_v7 = vsub.s32 0, %v5419_v19 }
  0x1a   : > { %v5452_v43 = vsel %vm976_vm12, 1.0, %v5291_v26  ;;  %v5454_v44 = vsel %vm1071_vm13, 1.0, %v5291_v26  ;;  %vm1165_vm14 = vcmp.eq.s32.totalorder %v593_v21, %v1163_v45  ;;  %vm1166_vm15 = vcmp.eq.s32.totalorder %v593_v21, %v1164_v46 }
  0x1b   : > { %v5457_v47 = vsel %vm1165_vm14, 1.0, %v5291_v26  ;;  %v5459_v48 = vsel %vm1166_vm15, 1.0, %v5291_v26  ;;  %v1062_v25 = vsub.s32 4, %v5419_v19  ;;  %v1157_v31 = vsub.s32 5, %v5419_v19 }
  0x1c   : > { %vm2371_vm1 = vcmask 64512  }
  0x9c   : > { %v548_v8 = vpop.xlane.xlu0 %547 }
  0x9d   : > { %v551_v9 = vmul.f32 0.03125, %v548_v8  ;;  %v779_v8 = vsub.s32 1, %v5419_v19 }
  0x9f   : > { %v5408_v10 = vsub.f32 %v5399_v4, %v551_v9  ;;  %v588_v9 = vld [vmem:[%s5997_s5] sm:$0x7f] }
  0xa0   : > { %v545_v11 = vpop.xlane.xlu0 %544 }
  0xa1   : > { %v550_v12 = vmul.f32 0.03125, %v545_v11  ;;  %v555_v13 = vmul.f32 %v5408_v10, %v5408_v10  ;;  %v780_v11 = vrot.slane %v588_v9, %v779_v8 }
  0xa3   : > { %v5413_v14 = vsub.f32 %v5401_v5, %v550_v12  ;;  %v559_v15 = vsel %vm542_vm0, %v555_v13, 0.0  ;;  %v874_v12 = vsub.s32 2, %v5419_v19  ;;  %v967_v13 = vsub.s32 3, %v5419_v19 }
  0xa4   : > { %560 = vadd.xlane.f32.xlu1 %v559_v15 }
  0xa5   : > { %v554_v16 = vmul.f32 %v5413_v14, %v5413_v14  ;;  %v875_v21 = vrot.slane %v588_v9, %v874_v12  ;;  %v968_v22 = vrot.slane %v588_v9, %v967_v13 }
  0xa7   : > { %v556_v17 = vsel %vm542_vm0, %v554_v16, 0.0 }
  0xa8   : > { %557 = vadd.xlane.f32.xlu1 %v556_v17 }
 0x12d   : > { %v561_v49 = vpop.xlane.xlu1 %560 }
 0x12e   : > { %v563_v50 = vmul.f32 0.03125, %v561_v49 }
 0x130   : > { %v565_v51 = vadd.f32 1e-05, %v563_v50  ;;  %v1063_v50 = vrot.slane %v588_v9, %v1062_v25 }
 0x131   : > { %v558_v52 = vpop.xlane.xlu1 %557 }
 0x132   : > { %5235 = vrsqrt.f32 %v565_v51  ;;  %v562_v53 = vmul.f32 0.03125, %v558_v52  ;;  %v1158_v51 = vrot.slane %v588_v9, %v1157_v31 }
 0x134   : > { %v564_v54 = vadd.f32 1e-05, %v562_v53 }
 0x136   : > { %5237 = vrsqrt.f32 %v564_v54 }
 0x13f   : > { %v5236_v55 = vpop.eup %5235 }
 0x140   : > { %v569_v57 = vmul.f32 %v5236_v55, %v5408_v10  ;;  %v685_v10 = vrot.slane %v588_v9, %v684_v7  ;;  %v1252_v55 = vsub.s32 6, %v5419_v19  ;;  %v4563_v19 = vld [vmem:[%s5999_s7 + $0x1] ss:$0 sm:$0xff] }
 0x142   : > { %v578_v59 = vmul.f32 %v4520_v56, %v569_v57 }
 0x143   : > { %v5238_v60 = vpop.eup %5237 }
 0x144   : > { %v587_v61 = vadd.f32 %v4521_v58, %v578_v59  ;;  %v568_v62 = vmul.f32 %v5238_v60, %v5413_v14 }
 0x146   : > { %v577_v63 = vmul.f32 %v4520_v56, %v568_v62  ;;  %4876 = vmatprep.subr.mxu0 %v587_v61  ;;  %4883 = vmatprep.subr.mxu1 %v587_v61 }
 0x147   : > { %4877 = vmatpush3.msra.mxu0 %v587_v61  ;;  %4884 = vmatpush3.msra.mxu1 %v587_v61 }
 0x148   : > { %v586_v0 = vadd.f32 %v4521_v58, %v577_v63 }
 0x14a   : > { %4878 = vmatprep.subr.mxu0 %v586_v0  ;;  %4885 = vmatprep.subr.mxu1 %v586_v0 }
 0x14b   : > { %4879 = vmatpush3.msra.mxu0 %v586_v0  ;;  %4886 = vmatpush3.msra.mxu1 %v586_v0 }
 0x14c   : > { %4881 = vmatmul.mubr.msk.f32.vlgmr.msra.gmra.mxu0 %vm600_vm3, %v5432_v29  ;;  %4888 = vmatmul.mubr.msk.f32.vlgmr.msra.gmra.mxu1 %vm600_vm3, %v5434_v30 }
 0x14d   : > { %4890 = vmatprep.subr.mxu0 %v587_v61  ;;  %4897 = vmatprep.subr.mxu1 %v587_v61 }
 0x14e   : > { %4891 = vmatpush3.msra.mxu0 %v587_v61  ;;  %4898 = vmatpush3.msra.mxu1 %v587_v61 }
 0x14f   : > { %4892 = vmatprep.subr.mxu0 %v586_v0  ;;  %4899 = vmatprep.subr.mxu1 %v586_v0 }
 0x150   : > { %4893 = vmatpush3.msra.mxu0 %v586_v0  ;;  %4894 = vmatprep.mubr.msk.f32.mxu0 %vm600_vm3, %v5437_v33 }
 0x151   : > { %4900 = vmatpush3.msra.mxu1 %v586_v0  ;;  %4901 = vmatprep.mubr.msk.f32.mxu1 %vm600_vm3, %v5440_v34 }
 0x152   : > { %4895 = vmatmul.mubr.msk.f32.vlgmr.msra.gmra.mxu0 %vm600_vm3, %v5442_v35  ;;  %4902 = vmatmul.mubr.msk.f32.vlgmr.msra.gmra.mxu1 %vm600_vm3, %v5444_v36 }
 0x153   : > { %4904 = vmatprep.subr.mxu0 %v587_v61  ;;  %4911 = vmatprep.subr.mxu1 %v587_v61 }
 0x154   : > { %4905 = vmatpush3.msra.mxu0 %v587_v61  ;;  %4912 = vmatpush3.msra.mxu1 %v587_v61 }
 0x155   : > { %4906 = vmatprep.subr.mxu0 %v586_v0  ;;  %4913 = vmatprep.subr.mxu1 %v586_v0 }
 0x156   : > { %4907 = vmatpush3.msra.mxu0 %v586_v0  ;;  %4908 = vmatprep.mubr.msk.f32.mxu0 %vm600_vm3, %v5448_v41 }
 0x157   : > { %4914 = vmatpush3.msra.mxu1 %v586_v0  ;;  %4915 = vmatprep.mubr.msk.f32.mxu1 %vm600_vm3, %v5450_v42 }
 0x158   : > { %4909 = vmatmul.mubr.msk.f32.vlgmr.msra.gmra.mxu0 %vm600_vm3, %v5452_v43  ;;  %4916 = vmatmul.mubr.msk.f32.vlgmr.msra.gmra.mxu1 %vm600_vm3, %v5454_v44 }
 0x159   : > { %4918 = vmatprep.subr.mxu0 %v587_v61  ;;  %4922 = vmatprep.mubr.msk.f32.mxu0 %vm600_vm3, %v5457_v47 }
 0x15a   : > { %4919 = vmatpush3.msra.mxu0 %v587_v61  ;;  %4925 = vmatprep.subr.mxu1 %v1261_v1 }
 0x15b   : > { %4920 = vmatprep.subr.mxu0 %v586_v0  ;;  %4926 = vmatpush3.msra.mxu1 %v1261_v1  ;;  %v1253_v1 = vrot.slane %v588_v9, %v1252_v55  ;;  %v4536_v9 = vld [vmem:[%s5999_s7] ss:$0 sm:$0xff] }
 0x15c   : > { %4921 = vmatpush3.msra.mxu0 %v586_v0  ;;  %4927 = vmatprep.subr.mxu1 %v1260_v2 }
 0x15d   : > { %4923 = vmatmul.mubr.msk.f32.vlgmr.msra.gmra.mxu0 %vm600_vm3, %v5459_v48  ;;  %4928 = vmatpush3.msra.mxu1 %v1260_v2 }
 0x15e   : > { %4940 = vmatprep.mubr.msk.f32.mxu0 %vm600_vm3, %v5424_v27  ;;  %4929 = vmatprep.subr.mxu1 %v1259_v3 }
 0x15f   : > { %4930 = vmatpush3.msra.mxu1 %v1259_v3 }
 0x160   : > { %4931 = vmatprep.subr.mxu1 %v1258_v6 }
 0x161   : > { %4932 = vmatpush3.msra.mxu1 %v1258_v6 }
 0x20c   : > { %v4882_v14 = vpop.f32.mrf.mxu0  ;;  %v4889_v15 = vpop.f32.mrf.mxu1 }
 0x20d   : > { %v687_v18 = vmul.f32 %v4882_v14, %v685_v10  ;;  %v782_v20 = vmul.f32 %v4889_v15, %v780_v11 }
 0x20e   : > { %v673_v16 = vpop.f32.mrf.mxu0  ;;  %v768_v17 = vpop.f32.mrf.mxu1 }
 0x20f   : > { %v686_v23 = vmul.f32 %v685_v10, %v673_v16  ;;  %v781_v24 = vmul.f32 %v780_v11, %v768_v17  ;;  %v784_v32 = vadd.f32 %v782_v20, %v687_v18 }
 0x211   : > { %v783_v45 = vadd.f32 %v781_v24, %v686_v23 }
 0x212   : > { %v4896_v26 = vpop.f32.mrf.mxu0  ;;  %v4903_v27 = vpop.f32.mrf.mxu1 }
 0x213   : > { %v877_v37 = vmul.f32 %v4896_v26, %v875_v21  ;;  %v970_v38 = vmul.f32 %v4903_v27, %v968_v22 }
 0x214   : > { %v863_v39 = vpop.f32.mrf.mxu0  ;;  %v956_v40 = vpop.f32.mrf.mxu1 }
 0x215   : > { %v879_v46 = vadd.f32 %v877_v37, %v784_v32  ;;  %v876_v49 = vmul.f32 %v875_v21, %v863_v39  ;;  %v969_v54 = vmul.f32 %v968_v22, %v956_v40 }
 0x217   : > { %v972_v52 = vadd.f32 %v970_v38, %v879_v46  ;;  %v878_v53 = vadd.f32 %v876_v49, %v783_v45 }
 0x218   : > { %v4910_v56 = vpop.f32.mrf.mxu0  ;;  %v4917_v57 = vpop.f32.mrf.mxu1 }
 0x219   : > { %v971_v58 = vadd.f32 %v969_v54, %v878_v53  ;;  %v1065_v59 = vmul.f32 %v4910_v56, %v1063_v50  ;;  %v1160_v63 = vmul.f32 %v4917_v57, %v1158_v51 }
 0x21a   : > { %v1051_v60 = vpop.f32.mrf.mxu0  ;;  %v1146_v61 = vpop.f32.mrf.mxu1 }
 0x21b   : > { %v1067_v62 = vadd.f32 %v1065_v59, %v972_v52  ;;  %v1064_v0 = vmul.f32 %v1063_v50, %v1051_v60  ;;  %v1159_v3 = vmul.f32 %v1158_v51, %v1146_v61  ;;  %v4540_v60 = vld [vmem:[%s5995_s3 + $0x1] ss:$0 sm:$0xff] }
 0x21d   : > { %v1066_v2 = vadd.f32 %v1064_v0, %v971_v58  ;;  %v4924_v6 = vpop.f32.mrf.mxu0  ;;  %v1162_v10 = vadd.f32 %v1160_v63, %v1067_v62  ;;  %v4542_v63 = vld [vmem:[%s5996_s4 + $0x1] ss:$0 sm:$0xff] }
 0x21e   : > { %v1255_v14 = vmul.f32 %v4924_v6, %v1253_v1 }
 0x21f   : > { %v1161_v11 = vadd.f32 %v1159_v3, %v1066_v2  ;;  %v1241_v15 = vpop.f32.mrf.mxu0 }
 0x220   : > { %v1254_v16 = vmul.f32 %v1253_v1, %v1241_v15  ;;  %v1257_v18 = vadd.f32 %v1255_v14, %v1162_v10 }
 0x222   : > { %v1256_v17 = vadd.f32 %v1254_v16, %v1161_v11 }
 0x224   : > { %4933 = vmatprep.mubr.msk.f32.mxu1 %vm542_vm0, %v1256_v17 }
 0x225   : > { %4934 = vmatmul.mubr.msk.f32.vlgmr.msra.gmra.mxu1 %vm542_vm0, %v1257_v18 }
 0x226   : > { %4954 = vmatprep.mubr.msk.f32.mxu1 %vm600_vm3, %v5437_v33 }
 0x2e5   : > { %v4935_v20 = vpop.f32.mrf.mxu1 }
 0x2e6   : > { %v1347_v21 = vadd.f32 %v4935_v20, %v4536_v9 }
 0x2e7   : > { %v1341_v22 = vpop.f32.mrf.mxu1 }
 0x2e8   : > { %v1351_v23 = vmax.f32 %v1347_v21, 0.0  ;;  %v1342_v24 = vadd.f32 %v4536_v9, %v1341_v22 }
 0x2ea   : > { %v5539_v26 = vadd.f32 %v1351_v23, %v5399_v4  ;;  %v1350_v27 = vmax.f32 %v1342_v24, 0.0 }
 0x2ec   : > { %v5542_v32 = vadd.f32 %v1350_v27, %v5401_v5  ;;  %v1357_v37 = vsel %vm542_vm0, %v5539_v26, 0.0 }
 0x2ed   : > { %1358 = vadd.xlane.f32.xlu0 %v1357_v37 }
 0x2ee   : > { %v1354_v33 = vsel %vm542_vm0, %v5542_v32, 0.0 }
 0x2ef   : > { %1355 = vadd.xlane.f32.xlu1 %v1354_v33 }
 0x376   : > { %v1359_v38 = vpop.xlane.xlu0 %1358 }
 0x377   : > { %v1361_v39 = vmul.f32 0.03125, %v1359_v38 }
 0x378   : > { %v1356_v40 = vpop.xlane.xlu1 %1355 }
 0x379   : > { %v1363_v45 = vsub.f32 %v5539_v26, %v1361_v39  ;;  %v1360_v46 = vmul.f32 0.03125, %v1356_v40 }
 0x37b   : > { %v1362_v4 = vsub.f32 %v5542_v32, %v1360_v46  ;;  %v1365_v49 = vmul.f32 %v1363_v45, %v1363_v45 }
 0x37d   : > { %v1369_v5 = vsel %vm542_vm0, %v1365_v49, 0.0  ;;  %v1364_v50 = vmul.f32 %v1362_v4, %v1362_v4 }
 0x37e   : > { %1370 = vadd.xlane.f32.xlu0 %v1369_v5 }
 0x37f   : > { %v1366_v51 = vsel %vm542_vm0, %v1364_v50, 0.0 }
 0x380   : > { %1367 = vadd.xlane.f32.xlu1 %v1366_v51 }
 0x407   : > { %v1371_v52 = vpop.xlane.xlu0 %1370 }
 0x408   : > { %v1373_v53 = vmul.f32 0.03125, %v1371_v52 }
 0x409   : > { %v1368_v54 = vpop.xlane.xlu1 %1367 }
 0x40a   : > { %v1375_v56 = vadd.f32 1e-05, %v1373_v53  ;;  %v1372_v57 = vmul.f32 0.03125, %v1368_v54 }
 0x40c   : > { %5239 = vrsqrt.f32 %v1375_v56  ;;  %v1374_v58 = vadd.f32 1e-05, %v1372_v57 }
 0x40e   : > { %5241 = vrsqrt.f32 %v1374_v58 }
 0x419   : > { %v5240_v59 = vpop.eup %5239 }
 0x41a   : > { %v1379_v61 = vmul.f32 %v5240_v59, %v1363_v45 }
 0x41b   : > { %v5242_v62 = vpop.eup %5241 }
 0x41c   : > { %v1389_v0 = vmul.f32 %v4540_v60, %v1379_v61  ;;  %v1378_v1 = vmul.f32 %v5242_v62, %v1362_v4 }
 0x41e   : > { %v1399_v2 = vadd.f32 %v4542_v63, %v1389_v0  ;;  %v1388_v3 = vmul.f32 %v4540_v60, %v1378_v1 }
 0x420   : > { %v1398_v6 = vadd.f32 %v4542_v63, %v1388_v3  ;;  %4936 = vmatprep.subr.mxu0 %v1399_v2  ;;  %4950 = vmatprep.subr.mxu1 %v1399_v2 }
 0x421   : > { %4937 = vmatpush3.msra.mxu0 %v1399_v2  ;;  %4951 = vmatpush3.msra.mxu1 %v1399_v2 }
 0x422   : > { %4938 = vmatprep.subr.mxu0 %v1398_v6  ;;  %4952 = vmatprep.subr.mxu1 %v1398_v6 }
 0x423   : > { %4939 = vmatpush3.msra.mxu0 %v1398_v6  ;;  %4953 = vmatpush3.msra.mxu1 %v1398_v6 }
 0x424   : > { %4941 = vmatmul.mubr.msk.f32.vlgmr.msra.gmra.mxu0 %vm600_vm3, %v5432_v29  ;;  %4943 = vmatprep.subr.mxu0 %v1399_v2  ;;  %v4560_v29 = vld [vmem:[%s5998_s6 + $0x30] sm:$0xff] }
 0x425   : > { %4964 = vmatprep.subr.mxu1 %v1399_v2  ;;  %4944 = vmatpush3.msra.mxu0 %v1399_v2 }
 0x426   : > { %4955 = vmatmul.mubr.msk.f32.vlgmr.msra.gmra.mxu1 %vm600_vm3, %v5442_v35  ;;  %4945 = vmatprep.subr.mxu0 %v1398_v6  ;;  %v4543_v35 = vld [vmem:[%s5997_s5 + $0x8] sm:$0x7f] }
 0x427   : > { %4965 = vmatpush3.msra.mxu1 %v1399_v2  ;;  %4946 = vmatpush3.msra.mxu0 %v1398_v6  ;;  %v1729_v17 = vrot.slane %v4543_v35, %v967_v13  ;;  %v1895_v39 = vrot.slane %v4543_v35, %v1157_v31 }
 0x428   : > { %4966 = vmatprep.subr.mxu1 %v1398_v6  ;;  %4947 = vmatprep.mubr.msk.f32.mxu0 %vm600_vm3, %v5426_v28  ;;  %v4561_v28 = vld [vmem:[%s5998_s6 + $0x38] sm:$0xff] }
 0x429   : > { %4967 = vmatpush3.msra.mxu1 %v1398_v6  ;;  %4948 = vmatmul.mubr.msk.f32.vlgmr.msra.gmra.mxu0 %vm600_vm3, %v5434_v30  ;;  %v4559_v30 = vld [vmem:[%s5998_s6 + $0x28] sm:$0xff] }
 0x42a   : > { %4957 = vmatprep.subr.mxu0 %v1399_v2  ;;  %4968 = vmatprep.mubr.msk.f32.mxu1 %vm600_vm3, %v5448_v41  ;;  %v1480_v41 = vrot.slane %v4543_v35, %v684_v7 }
 0x42b   : > { %4978 = vmatprep.subr.mxu1 %v1399_v2  ;;  %4958 = vmatpush3.msra.mxu0 %v1399_v2 }
 0x42c   : > { %4969 = vmatmul.mubr.msk.f32.vlgmr.msra.gmra.mxu1 %vm600_vm3, %v5452_v43  ;;  %4959 = vmatprep.subr.mxu0 %v1398_v6  ;;  %v1563_v43 = vrot.slane %v4543_v35, %v779_v8  ;;  %v1812_v8 = vrot.slane %v4543_v35, %v1062_v25  ;;  %v1978_v25 = vrot.slane %v4543_v35, %v1252_v55 }
 0x42d   : > { %4979 = vmatpush3.msra.mxu1 %v1399_v2  ;;  %4960 = vmatpush3.msra.mxu0 %v1398_v6 }
 0x42e   : > { %4980 = vmatprep.subr.mxu1 %v1398_v6  ;;  %4961 = vmatprep.mubr.msk.f32.mxu0 %vm600_vm3, %v5440_v34  ;;  %v4558_v34 = vld [vmem:[%s5998_s6 + $0x20] sm:$0xff] }
 0x42f   : > { %4981 = vmatpush3.msra.mxu1 %v1398_v6  ;;  %4962 = vmatmul.mubr.msk.f32.vlgmr.msra.gmra.mxu0 %vm600_vm3, %v5444_v36 }
 0x430   : > { %4971 = vmatprep.subr.mxu0 %v1399_v2  ;;  %4975 = vmatprep.mubr.msk.f32.mxu0 %vm600_vm3, %v5450_v42 }
 0x431   : > { %4972 = vmatpush3.msra.mxu0 %v1399_v2  ;;  %4982 = vmatprep.mubr.msk.f32.mxu1 %vm600_vm3, %v5457_v47  ;;  %v1646_v47 = vrot.slane %v4543_v35, %v874_v12 }
 0x432   : > { %4973 = vmatprep.subr.mxu0 %v1398_v6  ;;  %4983 = vmatmul.mubr.msk.f32.vlgmr.msra.gmra.mxu1 %vm600_vm3, %v5459_v48 }
 0x433   : > { %4974 = vmatpush3.msra.mxu0 %v1398_v6 }
 0x434   : > { %4976 = vmatmul.mubr.msk.f32.vlgmr.msra.gmra.mxu0 %vm600_vm3, %v5454_v44  ;;  %4985 = vmatprep.subr.mxu0 %v4561_v28 }
 0x435   : > { %4986 = vmatpush3.msra.mxu0 %v4561_v28 }
 0x436   : > { %4987 = vmatprep.subr.mxu0 %v4560_v29 }
 0x437   : > { %4988 = vmatpush3.msra.mxu0 %v4560_v29 }
 0x438   : > { %4989 = vmatprep.subr.mxu0 %v4559_v30 }
 0x439   : > { %4990 = vmatpush3.msra.mxu0 %v4559_v30 }
 0x43a   : > { %4991 = vmatprep.subr.mxu0 %v4558_v34 }
 0x43b   : > { %4992 = vmatpush3.msra.mxu0 %v4558_v34 }
 0x4e4   : > { %v4942_v36 = vpop.f32.mrf.mxu0 }
 0x4e5   : > { %v1482_v11 = vmul.f32 %v4942_v36, %v1480_v41 }
 0x4e6   : > { %v1468_v42 = vpop.f32.mrf.mxu0  ;;  %v4956_v44 = vpop.f32.mrf.mxu1 }
 0x4e7   : > { %v1648_v15 = vmul.f32 %v4956_v44, %v1646_v47  ;;  %v1481_v18 = vmul.f32 %v1480_v41, %v1468_v42  ;;  %v2131_v44 = vld [vmem:[%s6000_s8 + $0x18] sm:$0xff] }
 0x4e8   : > { %v1634_v48 = vpop.f32.mrf.mxu1  ;;  %4996 = vmatprep.subr.mxu1 %v2131_v44 }
 0x4e9   : > { %v4949_v10 = vpop.f32.mrf.mxu0  ;;  %v1647_v23 = vmul.f32 %v1646_v47, %v1634_v48  ;;  %v2216_v47 = vld [vmem:[%s6001_s9 + $0x18] sm:$0xff]  ;;  %4997 = vmatpush3.msra.mxu1 %v2131_v44  ;;  %v2130_v48 = vld [vmem:[%s6000_s8 + $0x10] sm:$0xff] }
 0x4ea   : > { %v1565_v14 = vmul.f32 %v4949_v10, %v1563_v43  ;;  %5007 = vmatprep.subr.mxu0 %v2216_v47  ;;  %4998 = vmatprep.subr.mxu1 %v2130_v48  ;;  %v2215_v10 = vld [vmem:[%s6001_s9 + $0x10] sm:$0xff] }
 0x4eb   : > { %v1551_v16 = vpop.f32.mrf.mxu0  ;;  %4999 = vmatpush3.msra.mxu1 %v2130_v48 }
 0x4ec   : > { %v1567_v9 = vadd.f32 %v1565_v14, %v1482_v11  ;;  %v1564_v7 = vmul.f32 %v1563_v43, %v1551_v16  ;;  %v4970_v20 = vpop.f32.mrf.mxu1  ;;  %v2129_v11 = vld [vmem:[%s6000_s8 + $0x8] sm:$0xff]  ;;  %v2213_v16 = vld [vmem:[%s6001_s9] sm:$0xff] }
 0x4ed   : > { %v1814_v33 = vmul.f32 %v4970_v20, %v1812_v8  ;;  %5000 = vmatprep.subr.mxu1 %v2129_v11  ;;  %v2214_v14 = vld [vmem:[%s6001_s9 + $0x8] sm:$0xff] }
 0x4ee   : > { %v1650_v21 = vadd.f32 %v1648_v15, %v1567_v9  ;;  %v1566_v22 = vadd.f32 %v1564_v7, %v1481_v18  ;;  %v1800_v12 = vpop.f32.mrf.mxu1  ;;  %5001 = vmatpush3.msra.mxu1 %v2129_v11  ;;  %v2128_v15 = vld [vmem:[%s6000_s8] sm:$0xff]  ;;  %v4585_v11 = vld [vmem:[%s6000_s8 + $0x30] sm:$0xff] }
 0x4ef   : > { %v4963_v24 = vpop.f32.mrf.mxu0  ;;  %v1813_v49 = vmul.f32 %v1812_v8, %v1800_v12  ;;  %5002 = vmatprep.subr.mxu1 %v2128_v15 }
 0x4f0   : > { %v1649_v27 = vadd.f32 %v1647_v23, %v1566_v22  ;;  %v1731_v37 = vmul.f32 %v4963_v24, %v1729_v17  ;;  %5003 = vmatpush3.msra.mxu1 %v2128_v15  ;;  %v4567_v23 = vld [vmem:[%s5995_s3 + $0x2] ss:$0 sm:$0xff] }
 0x4f1   : > { %v1717_v38 = vpop.f32.mrf.mxu0  ;;  %v4583_v15 = vld [vmem:[%s6000_s8 + $0x20] sm:$0xff] }
 0x4f2   : > { %v1733_v13 = vadd.f32 %v1731_v37, %v1650_v21  ;;  %v1730_v40 = vmul.f32 %v1729_v17, %v1717_v38  ;;  %v4984_v45 = vpop.f32.mrf.mxu1  ;;  %v2295_v17 = vld [vmem:[%s6002_s10 + $0x18] sm:$0xff] }
 0x4f3   : > { %v1980_v57 = vmul.f32 %v4984_v45, %v1978_v25  ;;  %5018 = vmatprep.subr.mxu1 %v2295_v17  ;;  %v2293_v45 = vld [vmem:[%s6002_s10 + $0x8] sm:$0xff] }
 0x4f4   : > { %v1816_v46 = vadd.f32 %v1814_v33, %v1733_v13  ;;  %v1732_v4 = vadd.f32 %v1730_v40, %v1649_v27  ;;  %v4977_v5 = vpop.f32.mrf.mxu0  ;;  %v1966_v53 = vpop.f32.mrf.mxu1  ;;  %v4569_v33 = vld [vmem:[%s5996_s4 + $0x2] ss:$0 sm:$0xff]  ;;  %v2294_v40 = vld [vmem:[%s6002_s10 + $0x10] sm:$0xff] }
 0x4f5   : > { %v1897_v50 = vmul.f32 %v4977_v5, %v1895_v39  ;;  %v1979_v59 = vmul.f32 %v1978_v25, %v1966_v53 }
 0x4f6   : > { %v1815_v51 = vadd.f32 %v1813_v49, %v1732_v4  ;;  %v1883_v52 = vpop.f32.mrf.mxu0 }
 0x4f7   : > { %v1896_v54 = vmul.f32 %v1895_v39, %v1883_v52  ;;  %v1899_v56 = vadd.f32 %v1897_v50, %v1816_v46  ;;  %v2292_v46 = vld [vmem:[%s6002_s10] sm:$0xff]  ;;  %v4592_v50 = vld [vmem:[%s6001_s9 + $0x38] sm:$0xff]  ;;  %v4591_v52 = vld [vmem:[%s6001_s9 + $0x30] sm:$0xff] }
 0x4f9   : > { %v1898_v58 = vadd.f32 %v1896_v54, %v1815_v51  ;;  %v1982_v60 = vadd.f32 %v1980_v57, %v1899_v56  ;;  %v4590_v54 = vld [vmem:[%s6001_s9 + $0x28] sm:$0xff]  ;;  %v4589_v56 = vld [vmem:[%s6001_s9 + $0x20] sm:$0xff] }
 0x4fa   : > { %v5714_v57 = vld [vmem:[%s530_s30] ss:$0 sm:$0xff] }
 0x4fb   : > { %v1981_v31 = vadd.f32 %v1979_v59, %v1898_v58 }
 0x4fd   : > { %4993 = vmatprep.mubr.msk.f32.mxu0 %vm542_vm0, %v1981_v31 }
 0x4fe   : > { %4994 = vmatmul.mubr.msk.f32.vlgmr.msra.gmra.mxu0 %vm542_vm0, %v1982_v60 }
 0x4ff   : > { %5008 = vmatpush3.msra.mxu0 %v2216_v47 }
 0x500   : > { %5009 = vmatprep.subr.mxu0 %v2215_v10 }
 0x501   : > { %5010 = vmatpush3.msra.mxu0 %v2215_v10 }
 0x502   : > { %5011 = vmatprep.subr.mxu0 %v2214_v14 }
 0x503   : > { %5012 = vmatpush3.msra.mxu0 %v2214_v14  ;;  %v4584_v14 = vld [vmem:[%s6000_s8 + $0x28] sm:$0xff] }
 0x504   : > { %5013 = vmatprep.subr.mxu0 %v2213_v16 }
 0x505   : > { %5014 = vmatpush3.msra.mxu0 %v2213_v16  ;;  %v4598_v16 = vld [vmem:[%s6002_s10 + $0x38] sm:$0xff] }
 0x5be   : > { %v4995_v55 = vpop.f32.mrf.mxu0 }
 0x5bf   : > { %v2074_v61 = vadd.f32 %v4995_v55, %v4563_v19 }
 0x5c0   : > { %v2068_v62 = vpop.f32.mrf.mxu0 }
 0x5c1   : > { %v2078_v63 = vmax.f32 %v2074_v61, 0.0  ;;  %v2069_v0 = vadd.f32 %v4563_v19, %v2068_v62 }
 0x5c3   : > { %v5617_v1 = vadd.f32 %v2078_v63, %v5539_v26  ;;  %v2077_v2 = vmax.f32 %v2069_v0, 0.0 }
 0x5c5   : > { %v5620_v3 = vadd.f32 %v2077_v2, %v5542_v32  ;;  %v2084_v6 = vsel %vm542_vm0, %v5617_v1, 0.0 }
 0x5c6   : > { %2085 = vadd.xlane.f32.xlu1 %v2084_v6 }
 0x5c7   : > { %v2081_v28 = vsel %vm542_vm0, %v5620_v3, 0.0 }
 0x5c8   : > { %2082 = vadd.xlane.f32.xlu0 %v2081_v28 }
 0x64f   : > { %v2086_v29 = vpop.xlane.xlu1 %2085 }
 0x650   : > { %v2088_v30 = vmul.f32 0.03125, %v2086_v29 }
 0x651   : > { %v2083_v34 = vpop.xlane.xlu0 %2082 }
 0x652   : > { %v2090_v35 = vsub.f32 %v5617_v1, %v2088_v30  ;;  %v2087_v36 = vmul.f32 0.03125, %v2083_v34 }
 0x654   : > { %v2089_v26 = vsub.f32 %v5620_v3, %v2087_v36  ;;  %v2092_v41 = vmul.f32 %v2090_v35, %v2090_v35 }
 0x656   : > { %v2096_v32 = vsel %vm542_vm0, %v2092_v41, 0.0  ;;  %v2091_v42 = vmul.f32 %v2089_v26, %v2089_v26 }
 0x657   : > { %2097 = vadd.xlane.f32.xlu1 %v2096_v32  ;;  %v4586_v32 = vld [vmem:[%s6000_s8 + $0x38] sm:$0xff] }
 0x658   : > { %v2093_v43 = vsel %vm542_vm0, %v2091_v42, 0.0 }
 0x659   : > { %2094 = vadd.xlane.f32.xlu0 %v2093_v43 }
 0x6e0   : > { %v2098_v18 = vpop.xlane.xlu1 %2097 }
 0x6e1   : > { %v2100_v9 = vmul.f32 0.03125, %v2098_v18  ;;  %v4596_v18 = vld [vmem:[%s6002_s10 + $0x28] sm:$0xff] }
 0x6e2   : > { %v2095_v7 = vpop.xlane.xlu0 %2094 }
 0x6e3   : > { %v2102_v20 = vadd.f32 1e-05, %v2100_v9  ;;  %v2099_v8 = vmul.f32 0.03125, %v2095_v7  ;;  %v4595_v9 = vld [vmem:[%s6002_s10 + $0x20] sm:$0xff] }
 0x6e5   : > { %5243 = vrsqrt.f32 %v2102_v20  ;;  %v2101_v21 = vadd.f32 1e-05, %v2099_v8 }
 0x6e7   : > { %5245 = vrsqrt.f32 %v2101_v21 }
 0x6f2   : > { %v5244_v22 = vpop.eup %5243 }
 0x6f3   : > { %v2106_v12 = vmul.f32 %v5244_v22, %v2090_v35 }
 0x6f4   : > { %v5246_v24 = vpop.eup %5245 }
 0x6f5   : > { %v2105_v27 = vmul.f32 %v5246_v24, %v2089_v26  ;;  %v2116_v37 = vmul.f32 %v4567_v23, %v2106_v12 }
 0x6f7   : > { %v2115_v38 = vmul.f32 %v4567_v23, %v2105_v27  ;;  %v5665_v13 = vadd.f32 %v4569_v33, %v2116_v37 }
 0x6f9   : > { %v5663_v39 = vadd.f32 %v4569_v33, %v2115_v38 }
 0x6fb   : > { %5004 = vmatprep.mubr.msk.f32.mxu1 %vm542_vm0, %v5663_v39  ;;  %5015 = vmatprep.mubr.msk.f32.mxu0 %vm542_vm0, %v5663_v39 }
 0x6fc   : > { %5005 = vmatmul.mubr.msk.f32.vlgmr.msra.gmra.mxu1 %vm542_vm0, %v5665_v13  ;;  %5016 = vmatmul.mubr.msk.f32.vlgmr.msra.gmra.mxu0 %vm542_vm0, %v5665_v13 }
 0x6fd   : > { %5019 = vmatpush3.msra.mxu1 %v2295_v17  ;;  %5026 = vmatprep.mubr.msk.f32.mxu1 %vm542_vm0, %v5663_v39  ;;  %v4597_v17 = vld [vmem:[%s6002_s10 + $0x30] sm:$0xff] }
 0x6fe   : > { %5020 = vmatprep.subr.mxu1 %v2294_v40 }
 0x6ff   : > { %5021 = vmatpush3.msra.mxu1 %v2294_v40 }
 0x700   : > { %5022 = vmatprep.subr.mxu1 %v2293_v45 }
 0x701   : > { %5023 = vmatpush3.msra.mxu1 %v2293_v45 }
 0x702   : > { %5024 = vmatprep.subr.mxu1 %v2292_v46 }
 0x703   : > { %5025 = vmatpush3.msra.mxu1 %v2292_v46 }
 0x704   : > { %5027 = vmatmul.mubr.msk.f32.vlgmr.msra.gmra.mxu1 %vm542_vm0, %v5665_v13 }
 0x7bc   : > { %v5006_v4 = vpop.f32.mrf.mxu1  ;;  %v5017_v49 = vpop.f32.mrf.mxu0 }
 0x7bd   : > { %5029 = vmatprep.subr.msk.mxu0 %vm2371_vm1, %v5017_v49 }
 0x7be   : > { %v2204_v5 = vpop.f32.mrf.mxu1  ;;  %v2283_v25 = vpop.f32.mrf.mxu0  ;;  %5030 = vmatpush3.xpose.msk.msra.mxu0 %vm2371_vm1, %v5017_v49 }
 0x7bf   : > { %5031 = vmatprep.subr.msk.mxu0 %vm2371_vm1, %v2283_v25  ;;  %5033 = vmatprep.mubr.msk.f32.mxu0 %vm2371_vm1, %v2204_v5 }
 0x7c2   : > { %5032 = vmatpush3.xpose.msk.msra.mxu0 %vm2371_vm1, %v2283_v25 }
 0x7c3   : > { %5054 = vmatprep.subr.mxu0 %v4592_v50 }
 0x7c4   : > { %v5028_v51 = vpop.f32.mrf.mxu1 }
 0x7c5   : > { %5036 = vmatprep.subr.mxu1 %v5028_v51  ;;  %5034 = vmatmul.mubr.msk.f32.vlgmr.msra.gmra.mxu0 %vm2371_vm1, %v5006_v4 }
 0x7c6   : > { %v2362_v53 = vpop.f32.mrf.mxu1  ;;  %5037 = vmatpush3.msra.mxu1 %v5028_v51  ;;  %5055 = vmatpush3.msra.mxu0 %v4592_v50 }
 0x7c7   : > { %5038 = vmatprep.subr.mxu1 %v2362_v53  ;;  %5062 = vmatprep.mubr.msk.f32.mxu0 %vm542_vm0, %v5663_v39 }
 0x7c8   : > { %5039 = vmatpush3.msra.mxu1 %v2362_v53  ;;  %5056 = vmatprep.subr.mxu0 %v4591_v52 }
 0x7c9   : > { %5057 = vmatpush3.msra.mxu0 %v4591_v52  ;;  %5043 = vmatprep.subr.mxu1 %v4586_v32 }
 0x7ca   : > { %5058 = vmatprep.subr.mxu0 %v4590_v54 }
 0x7cb   : > { %5059 = vmatpush3.msra.mxu0 %v4590_v54 }
 0x7cc   : > { %5060 = vmatprep.subr.mxu0 %v4589_v56 }
 0x7cd   : > { %5061 = vmatpush3.msra.mxu0 %v4589_v56  ;;  %v2572_v56 = vld [vmem:[%s6003_s11] sm:$0xff] }
 0x7ce   : > { %5063 = vmatmul.mubr.msk.f32.vlgmr.msra.gmra.mxu0 %vm542_vm0, %v5665_v13 }
 0x885   : > { %v5035_v58 = vpop.f32.mrf.mxu0 }
 0x886   : > { %v2460_v59 = vmul.f32 0.35355338, %v5035_v58 }
 0x887   : > { %v2450_v31 = vpop.f32.mrf.mxu0 }
 0x888   : > { %v2459_v60 = vmul.f32 0.35355338, %v2450_v31  ;;  %v2468_v19 = vadd.f32 %v5714_v57, %v2460_v59 }
 0x88a   : > { %v2472_v55 = vsel %vm600_vm3, %v2468_v19, -inf  ;;  %v2467_v61 = vadd.f32 %v5714_v57, %v2459_v60 }
 0x88b   : > { %2473 = vmax.xlane.f32.xlu1 %v2472_v55 }
 0x88c   : > { %v2469_v62 = vsel %vm600_vm3, %v2467_v61, -inf }
 0x88d   : > { %2470 = vmax.xlane.f32.xlu0 %v2469_v62  ;;  %v4620_v62 = vld [vmem:[%s6001_s9 + $0x50] sm:$0xff] }
 0x88e   : > { %v5064_v63 = vpop.f32.mrf.mxu0 }
 0x88f   : > { %5076 = vmatprep.subr.msk.mxu0 %vm2371_vm1, %v5064_v63 }
 0x890   : > { %v2724_v0 = vpop.f32.mrf.mxu0  ;;  %5077 = vmatpush3.xpose.msk.msra.mxu0 %vm2371_vm1, %v5064_v63  ;;  %v4619_v63 = vld [vmem:[%s6001_s9 + $0x48] sm:$0xff] }
 0x891   : > { %5078 = vmatprep.subr.msk.mxu0 %vm2371_vm1, %v2724_v0 }
 0x894   : > { %5079 = vmatpush3.xpose.msk.msra.mxu0 %vm2371_vm1, %v2724_v0  ;;  %v4618_v0 = vld [vmem:[%s6001_s9 + $0x40] sm:$0xff] }
 0x914   : > { %v2474_v2 = vpop.xlane.xlu1 %2473 }
 0x915   : > { %v2476_v6 = vsub.f32 %v2468_v19, %v2474_v2  ;;  %v4607_v2 = vld [vmem:[%s6003_s11 + $0x8] sm:$0xff] }
 0x916   : > { %v2471_v28 = vpop.xlane.xlu0 %2470  ;;  %5090 = vmatprep.subr.mxu0 %v4607_v2 }
 0x917   : > { %v2479_v29 = vmul.f32 1.442695, %v2476_v6  ;;  %v2475_v30 = vsub.f32 %v2467_v61, %v2471_v28  ;;  %v4621_v61 = vld [vmem:[%s6001_s9 + $0x58] sm:$0xff] }
 0x918   : > { %v4615_v6 = vld [vmem:[%s6000_s8 + $0x58] sm:$0xff] }
 0x919   : > { %5247 = vpow2.f32 %v2479_v29  ;;  %v2477_v34 = vmul.f32 1.442695, %v2475_v30  ;;  %v4614_v30 = vld [vmem:[%s6000_s8 + $0x50] sm:$0xff] }
 0x91b   : > { %5249 = vpow2.f32 %v2477_v34  ;;  %v4613_v34 = vld [vmem:[%s6000_s8 + $0x48] sm:$0xff] }
 0x926   : > { %v5248_v35 = vpop.eup %5247 }
 0x927   : > { %v2484_v36 = vsel %vm600_vm3, %v5248_v35, 0.0 }
 0x928   : > { %v5250_v26 = vpop.eup %5249  ;;  %2485 = vadd.xlane.f32.xlu1 %v2484_v36  ;;  %v4612_v36 = vld [vmem:[%s6000_s8 + $0x40] sm:$0xff] }
 0x929   : > { %v2481_v41 = vsel %vm600_vm3, %v5250_v26, 0.0 }
 0x92a   : > { %2482 = vadd.xlane.f32.xlu0 %v2481_v41 }
 0x9b1   : > { %v2486_v42 = vpop.xlane.xlu1 %2485 }
 0x9b2   : > { %5251 = vrcp.f32 %v2486_v42 }
 0x9b3   : > { %v2483_v43 = vpop.xlane.xlu0 %2482 }
 0x9b4   : > { %5253 = vrcp.f32 %v2483_v43  ;;  %v4625_v43 = vld [vmem:[%s6002_s10 + $0x48] sm:$0xff] }
 0x9bf   : > { %v5252_v44 = vpop.eup %5251 }
 0x9c0   : > { %v2490_v10 = vmul.f32 %v5252_v44, %v5248_v35 }
 0x9c1   : > { %v5254_v47 = vpop.eup %5253 }
 0x9c2   : > { %v2488_v48 = vmul.f32 %v5254_v47, %v5250_v26  ;;  %v4627_v26 = vld [vmem:[%s6002_s10 + $0x58] sm:$0xff]  ;;  %v4624_v47 = vld [vmem:[%s6002_s10 + $0x40] sm:$0xff] }
 0x9c4   : > { %5040 = vmatprep.mubr.msk.f32.mxu1 %vm600_vm3, %v2488_v48 }
 0x9c5   : > { %5041 = vmatmul.mubr.msk.f32.vlgmr.msra.gmra.mxu1 %vm600_vm3, %v2490_v10 }
 0x9c6   : > { %5044 = vmatpush3.msra.mxu1 %v4586_v32  ;;  %5051 = vmatprep.mubr.msk.f32.mxu1 %vm542_vm0, %v5663_v39  ;;  %v4626_v32 = vld [vmem:[%s6002_s10 + $0x50] sm:$0xff] }
 0x9c7   : > { %5045 = vmatprep.subr.mxu1 %v4585_v11 }
 0x9c8   : > { %5046 = vmatpush3.msra.mxu1 %v4585_v11 }
 0x9c9   : > { %5047 = vmatprep.subr.mxu1 %v4584_v14 }
 0x9ca   : > { %5048 = vmatpush3.msra.mxu1 %v4584_v14 }
 0x9cb   : > { %5049 = vmatprep.subr.mxu1 %v4583_v15 }
 0x9cc   : > { %5050 = vmatpush3.msra.mxu1 %v4583_v15 }
 0x9cd   : > { %5052 = vmatmul.mubr.msk.f32.vlgmr.msra.gmra.mxu1 %vm542_vm0, %v5665_v13  ;;  %5065 = vmatprep.subr.mxu1 %v4598_v16 }
 0x9ce   : > { %5066 = vmatpush3.msra.mxu1 %v4598_v16  ;;  %5073 = vmatprep.mubr.msk.f32.mxu1 %vm542_vm0, %v5663_v39 }
 0x9cf   : > { %5067 = vmatprep.subr.mxu1 %v4597_v17 }
 0x9d0   : > { %5068 = vmatpush3.msra.mxu1 %v4597_v17 }
 0x9d1   : > { %5069 = vmatprep.subr.mxu1 %v4596_v18 }
 0x9d2   : > { %5070 = vmatpush3.msra.mxu1 %v4596_v18 }
 0x9d3   : > { %5071 = vmatprep.subr.mxu1 %v4595_v9 }
 0x9d4   : > { %5072 = vmatpush3.msra.mxu1 %v4595_v9 }
 0x9d5   : > { %5074 = vmatmul.mubr.msk.f32.vlgmr.msra.gmra.mxu1 %vm542_vm0, %v5665_v13 }
 0xa85   : > { %v5042_v7 = vpop.f32.mrf.mxu1 }
 0xa87   : > { %v2563_v20 = vpop.f32.mrf.mxu1 }
 0xa8d   : > { %v5053_v8 = vpop.f32.mrf.mxu1 }
 0xa8f   : > { %v2644_v21 = vpop.f32.mrf.mxu1 }
 0xa90   : > { %5080 = vmatprep.mubr.msk.f32.mxu0 %vm2371_vm1, %v2644_v21 }
 0xa91   : > { %5081 = vmatmul.mubr.msk.f32.vlgmr.msra.gmra.mxu0 %vm2371_vm1, %v5053_v8 }
 0xa92   : > { %5091 = vmatpush3.msra.mxu0 %v4607_v2  ;;  %v4645_v2 = vld [vmem:[%s6001_s9 + $0x60] sm:$0xff] }
 0xa93   : > { %5100 = vmatprep.subr.mxu0 %v4615_v6 }
 0xa95   : > { %v5075_v22 = vpop.f32.mrf.mxu1 }
 0xa96   : > { %5083 = vmatprep.subr.mxu1 %v5075_v22 }
 0xa97   : > { %v2804_v23 = vpop.f32.mrf.mxu1  ;;  %5084 = vmatpush3.msra.mxu1 %v5075_v22 }
 0xa98   : > { %5085 = vmatprep.subr.mxu1 %v2804_v23 }
 0xa99   : > { %5086 = vmatpush3.msra.mxu1 %v2804_v23 }
 0xa9a   : > { %5095 = vmatprep.subr.mxu1 %v2572_v56 }
 0xb51   : > { %v5082_v12 = vpop.f32.mrf.mxu0 }
 0xb52   : > { %v2901_v24 = vmul.f32 0.35355338, %v5082_v12 }
 0xb53   : > { %v2891_v27 = vpop.f32.mrf.mxu0 }
 0xb54   : > { %v2900_v37 = vmul.f32 0.35355338, %v2891_v27  ;;  %v2903_v33 = vadd.f32 %v5714_v57, %v2901_v24 }
 0xb56   : > { %v2907_v38 = vsel %vm600_vm3, %v2903_v33, -inf  ;;  %v2902_v40 = vadd.f32 %v5714_v57, %v2900_v37 }
 0xb57   : > { %2908 = vmax.xlane.f32.xlu1 %v2907_v38 }
 0xb58   : > { %v2904_v45 = vsel %vm600_vm3, %v2902_v40, -inf }
 0xb59   : > { %2905 = vmax.xlane.f32.xlu0 %v2904_v45 }
 0xbe0   : > { %v2909_v46 = vpop.xlane.xlu1 %2908 }
 0xbe1   : > { %v2911_v4 = vsub.f32 %v2903_v33, %v2909_v46 }
 0xbe2   : > { %v2906_v49 = vpop.xlane.xlu0 %2905 }
 0xbe3   : > { %v2914_v5 = vmul.f32 1.442695, %v2911_v4  ;;  %v2910_v25 = vsub.f32 %v2902_v40, %v2906_v49  ;;  %v4642_v4 = vld [vmem:[%s6000_s8 + $0x78] sm:$0xff] }
 0xbe5   : > { %5255 = vpow2.f32 %v2914_v5  ;;  %v2912_v50 = vmul.f32 1.442695, %v2910_v25 }
 0xbe7   : > { %5257 = vpow2.f32 %v2912_v50 }
 0xbf2   : > { %v5256_v51 = vpop.eup %5255 }
 0xbf3   : > { %v2919_v52 = vsel %vm600_vm3, %v5256_v51, 0.0 }
 0xbf4   : > { %v5258_v53 = vpop.eup %5257  ;;  %2920 = vadd.xlane.f32.xlu1 %v2919_v52 }
 0xbf5   : > { %v2916_v54 = vsel %vm600_vm3, %v5258_v53, 0.0 }
 0xbf6   : > { %2917 = vadd.xlane.f32.xlu0 %v2916_v54  ;;  %v4640_v54 = vld [vmem:[%s6000_s8 + $0x68] sm:$0xff] }
 0xc7d   : > { %v2921_v58 = vpop.xlane.xlu1 %2920 }
 0xc7e   : > { %5259 = vrcp.f32 %v2921_v58  ;;  %v4654_v58 = vld [vmem:[%s6002_s10 + $0x78] sm:$0xff] }
 0xc7f   : > { %v2918_v59 = vpop.xlane.xlu0 %2917 }
 0xc80   : > { %5261 = vrcp.f32 %v2918_v59  ;;  %v4653_v59 = vld [vmem:[%s6002_s10 + $0x70] sm:$0xff] }
 0xc8b   : > { %v5260_v31 = vpop.eup %5259 }
 0xc8c   : > { %v2925_v55 = vmul.f32 %v5260_v31, %v5256_v51  ;;  %v4652_v31 = vld [vmem:[%s6002_s10 + $0x68] sm:$0xff] }
 0xc8d   : > { %v5262_v60 = vpop.eup %5261 }
 0xc8e   : > { %v2923_v19 = vmul.f32 %v5262_v60, %v5258_v53  ;;  %v4641_v53 = vld [vmem:[%s6000_s8 + $0x70] sm:$0xff]  ;;  %v4651_v60 = vld [vmem:[%s6002_s10 + $0x60] sm:$0xff] }
 0xc90   : > { %5087 = vmatprep.mubr.msk.f32.mxu1 %vm600_vm3, %v2923_v19  ;;  %v4636_v19 = vld [vmem:[%s6003_s11 + $0x10] sm:$0xff] }
 0xc91   : > { %5088 = vmatmul.mubr.msk.f32.vlgmr.msra.gmra.mxu1 %vm600_vm3, %v2925_v55  ;;  %v4648_v55 = vld [vmem:[%s6001_s9 + $0x78] sm:$0xff] }
 0xc92   : > { %5097 = vmatprep.mubr.msk.f32.mxu1 %vm2371_vm1, %v2563_v20  ;;  %5096 = vmatpush3.msra.mxu1 %v2572_v56  ;;  %v4639_v56 = vld [vmem:[%s6000_s8 + $0x60] sm:$0xff] }
 0xc93   : > { %5111 = vmatprep.subr.mxu1 %v4621_v61 }
 0xc95   : > { %5098 = vmatmul.mubr.msk.f32.vlgmr.msra.gmra.mxu1 %vm2371_vm1, %v5042_v7 }
 0xc96   : > { %5112 = vmatpush3.msra.mxu1 %v4621_v61  ;;  %5119 = vmatprep.mubr.msk.f32.mxu1 %vm542_vm0, %v5663_v39 }
 0xc97   : > { %5113 = vmatprep.subr.mxu1 %v4620_v62 }
 0xc98   : > { %5114 = vmatpush3.msra.mxu1 %v4620_v62 }
 0xc99   : > { %5115 = vmatprep.subr.mxu1 %v4619_v63 }
 0xc9a   : > { %5116 = vmatpush3.msra.mxu1 %v4619_v63  ;;  %v4647_v63 = vld [vmem:[%s6001_s9 + $0x70] sm:$0xff] }
 0xc9b   : > { %5117 = vmatprep.subr.mxu1 %v4618_v0 }
 0xc9c   : > { %5118 = vmatpush3.msra.mxu1 %v4618_v0  ;;  %v4646_v0 = vld [vmem:[%s6001_s9 + $0x68] sm:$0xff] }
 0xc9d   : > { %5120 = vmatmul.mubr.msk.f32.vlgmr.msra.gmra.mxu1 %vm542_vm0, %v5665_v13 }
 0xd51   : > { %v5089_v28 = vpop.f32.mrf.mxu1 }
 0xd53   : > { %v2998_v29 = vpop.f32.mrf.mxu1 }
 0xd54   : > { %5092 = vmatprep.mubr.msk.f32.mxu0 %vm2371_vm1, %v2998_v29 }
 0xd55   : > { %5093 = vmatmul.mubr.msk.f32.vlgmr.msra.gmra.mxu0 %vm2371_vm1, %v5089_v28  ;;  %v5807_v35 = vpop.f32.mrf.mxu1 }
 0xd56   : > { %5101 = vmatpush3.msra.mxu0 %v4615_v6  ;;  %5108 = vmatprep.mubr.msk.f32.mxu0 %vm542_vm0, %v5663_v39 }
 0xd57   : > { %5102 = vmatprep.subr.mxu0 %v4614_v30  ;;  %v5815_v41 = vpop.f32.mrf.mxu1 }
 0xd58   : > { %5103 = vmatpush3.msra.mxu0 %v4614_v30 }
 0xd59   : > { %5104 = vmatprep.subr.mxu0 %v4613_v34 }
 0xd5a   : > { %5105 = vmatpush3.msra.mxu0 %v4613_v34 }
 0xd5b   : > { %5106 = vmatprep.subr.mxu0 %v4612_v36 }
 0xd5c   : > { %5107 = vmatpush3.msra.mxu0 %v4612_v36 }
 0xd5d   : > { %5109 = vmatmul.mubr.msk.f32.vlgmr.msra.gmra.mxu0 %vm542_vm0, %v5665_v13  ;;  %v5121_v42 = vpop.f32.mrf.mxu1  ;;  %5122 = vmatprep.subr.mxu0 %v4627_v26 }
 0xd5e   : > { %5123 = vmatpush3.msra.mxu0 %v4627_v26  ;;  %5130 = vmatprep.mubr.msk.f32.mxu0 %vm542_vm0, %v5663_v39 }
 0xd5f   : > { %5133 = vmatprep.subr.msk.mxu1 %vm2371_vm1, %v5121_v42  ;;  %v3322_v44 = vpop.f32.mrf.mxu1  ;;  %5124 = vmatprep.subr.mxu0 %v4626_v32 }
 0xd60   : > { %5134 = vmatpush3.xpose.msk.msra.mxu1 %vm2371_vm1, %v5121_v42  ;;  %5125 = vmatpush3.msra.mxu0 %v4626_v32 }
 0xd61   : > { %5135 = vmatprep.subr.msk.mxu1 %vm2371_vm1, %v3322_v44  ;;  %5126 = vmatprep.subr.mxu0 %v4625_v43 }
 0xd62   : > { %5127 = vmatpush3.msra.mxu0 %v4625_v43 }
 0xd63   : > { %5128 = vmatprep.subr.mxu0 %v4624_v47 }
 0xd64   : > { %5136 = vmatpush3.xpose.msk.msra.mxu1 %vm2371_vm1, %v3322_v44  ;;  %5129 = vmatpush3.msra.mxu0 %v4624_v47 }
 0xd65   : > { %5131 = vmatmul.mubr.msk.f32.vlgmr.msra.gmra.mxu0 %vm542_vm0, %v5665_v13  ;;  %5147 = vmatprep.subr.mxu1 %v4636_v19 }
 0xe15   : > { %v5836_v48 = vpop.f32.mrf.mxu0 }
 0xe16   : > { %v3168_v30 = vadd.f32 %v5807_v35, %v5836_v48 }
 0xe17   : > { %v5838_v10 = vpop.f32.mrf.mxu0 }
 0xe18   : > { %v3163_v36 = vadd.f32 %v5815_v41, %v5838_v10 }
 0xe1d   : > { %v5110_v11 = vpop.f32.mrf.mxu0 }
 0xe1f   : > { %v3242_v14 = vpop.f32.mrf.mxu0 }
 0xe20   : > { %5137 = vmatprep.mubr.msk.f32.mxu1 %vm2371_vm1, %v3242_v14 }
 0xe21   : > { %5138 = vmatmul.mubr.msk.f32.vlgmr.msra.gmra.mxu1 %vm2371_vm1, %v5110_v11 }
 0xe22   : > { %5148 = vmatpush3.msra.mxu1 %v4636_v19  ;;  %v4260_v19 = vld [vmem:[%s6004_s12 + $0x18] sm:$0xff] }
 0xe23   : > { %5163 = vmatprep.subr.mxu1 %v4648_v55 }
 0xe25   : > { %v5132_v15 = vpop.f32.mrf.mxu0 }
 0xe26   : > { %5140 = vmatprep.subr.mxu0 %v5132_v15 }
 0xe27   : > { %v3402_v16 = vpop.f32.mrf.mxu0  ;;  %5141 = vmatpush3.msra.mxu0 %v5132_v15 }
 0xe28   : > { %5142 = vmatprep.subr.mxu0 %v3402_v16 }
 0xe29   : > { %5143 = vmatpush3.msra.mxu0 %v3402_v16 }
 0xe2a   : > { %5152 = vmatprep.subr.mxu0 %v4642_v4 }
 0xee1   : > { %v5139_v17 = vpop.f32.mrf.mxu1 }
 0xee2   : > { %v3499_v18 = vmul.f32 0.35355338, %v5139_v17 }
 0xee3   : > { %v3489_v9 = vpop.f32.mrf.mxu1 }
 0xee4   : > { %v3498_v7 = vmul.f32 0.35355338, %v3489_v9  ;;  %v3501_v20 = vadd.f32 %v5714_v57, %v3499_v18 }
 0xee6   : > { %v3505_v8 = vsel %vm600_vm3, %v3501_v20, -inf  ;;  %v3500_v21 = vadd.f32 %v5714_v57, %v3498_v7 }
 0xee7   : > { %3506 = vmax.xlane.f32.xlu1 %v3505_v8 }
 0xee8   : > { %v3502_v22 = vsel %vm600_vm3, %v3500_v21, -inf }
 0xee9   : > { %3503 = vmax.xlane.f32.xlu0 %v3502_v22 }
 0xf70   : > { %v3507_v23 = vpop.xlane.xlu1 %3506 }
 0xf71   : > { %v3509_v12 = vsub.f32 %v3501_v20, %v3507_v23 }
 0xf72   : > { %v3504_v24 = vpop.xlane.xlu0 %3503 }
 0xf73   : > { %v3512_v27 = vmul.f32 1.442695, %v3509_v12  ;;  %v3508_v37 = vsub.f32 %v3500_v21, %v3504_v24 }
 0xf75   : > { %5263 = vpow2.f32 %v3512_v27  ;;  %v3510_v33 = vmul.f32 1.442695, %v3508_v37 }
 0xf77   : > { %5265 = vpow2.f32 %v3510_v33  ;;  %v4663_v33 = vld [vmem:[%s6003_s11 + $0x18] sm:$0xff] }
 0xf82   : > { %v5264_v38 = vpop.eup %5263 }
 0xf83   : > { %v3517_v40 = vsel %vm600_vm3, %v5264_v38, 0.0 }
 0xf84   : > { %v5266_v45 = vpop.eup %5265  ;;  %3518 = vadd.xlane.f32.xlu1 %v3517_v40 }
 0xf85   : > { %v3514_v46 = vsel %vm600_vm3, %v5266_v45, 0.0 }
 0xf86   : > { %3515 = vadd.xlane.f32.xlu0 %v3514_v46 }
0x100d   : > { %v3519_v49 = vpop.xlane.xlu1 %3518 }
0x100e   : > { %5267 = vrcp.f32 %v3519_v49 }
0x100f   : > { %v3516_v5 = vpop.xlane.xlu0 %3515 }
0x1010   : > { %5269 = vrcp.f32 %v3516_v5 }
0x101b   : > { %v5268_v25 = vpop.eup %5267 }
0x101c   : > { %v3523_v52 = vmul.f32 %v5268_v25, %v5264_v38 }
0x101d   : > { %v5270_v50 = vpop.eup %5269 }
0x101e   : > { %v3521_v51 = vmul.f32 %v5270_v50, %v5266_v45 }
0x1020   : > { %5144 = vmatprep.mubr.msk.f32.mxu0 %vm600_vm3, %v3521_v51 }
0x1021   : > { %5145 = vmatmul.mubr.msk.f32.vlgmr.msra.gmra.mxu0 %vm600_vm3, %v3523_v52 }
0x1022   : > { %5153 = vmatpush3.msra.mxu0 %v4642_v4  ;;  %5160 = vmatprep.mubr.msk.f32.mxu0 %vm542_vm0, %v5663_v39 }
0x1023   : > { %5154 = vmatprep.subr.mxu0 %v4641_v53 }
0x1024   : > { %5155 = vmatpush3.msra.mxu0 %v4641_v53 }
0x1025   : > { %5156 = vmatprep.subr.mxu0 %v4640_v54 }
0x1026   : > { %5157 = vmatpush3.msra.mxu0 %v4640_v54 }
0x1027   : > { %5158 = vmatprep.subr.mxu0 %v4639_v56 }
0x1028   : > { %5159 = vmatpush3.msra.mxu0 %v4639_v56 }
0x1029   : > { %5161 = vmatmul.mubr.msk.f32.vlgmr.msra.gmra.mxu0 %vm542_vm0, %v5665_v13  ;;  %5174 = vmatprep.subr.mxu0 %v4654_v58 }
0x102a   : > { %5175 = vmatpush3.msra.mxu0 %v4654_v58  ;;  %5182 = vmatprep.mubr.msk.f32.mxu0 %vm542_vm0, %v5663_v39 }
0x102b   : > { %5176 = vmatprep.subr.mxu0 %v4653_v59 }
0x102c   : > { %5177 = vmatpush3.msra.mxu0 %v4653_v59 }
0x102d   : > { %5178 = vmatprep.subr.mxu0 %v4652_v31 }
0x102e   : > { %5179 = vmatpush3.msra.mxu0 %v4652_v31 }
0x102f   : > { %5180 = vmatprep.subr.mxu0 %v4651_v60 }
0x1030   : > { %5181 = vmatpush3.msra.mxu0 %v4651_v60 }
0x1031   : > { %5183 = vmatmul.mubr.msk.f32.vlgmr.msra.gmra.mxu0 %vm542_vm0, %v5665_v13 }
0x10e1   : > { %v5146_v61 = vpop.f32.mrf.mxu0 }
0x10e3   : > { %v3596_v62 = vpop.f32.mrf.mxu0 }
0x10e4   : > { %5149 = vmatprep.mubr.msk.f32.mxu1 %vm2371_vm1, %v3596_v62  ;;  %v4257_v62 = vld [vmem:[%s6004_s12] sm:$0xff] }
0x10e5   : > { %5150 = vmatmul.mubr.msk.f32.vlgmr.msra.gmra.mxu1 %vm2371_vm1, %v5146_v61  ;;  %v4258_v61 = vld [vmem:[%s6004_s12 + $0x8] sm:$0xff] }
0x10e6   : > { %5164 = vmatpush3.msra.mxu1 %v4648_v55  ;;  %5171 = vmatprep.mubr.msk.f32.mxu1 %vm542_vm0, %v5663_v39  ;;  %v4259_v55 = vld [vmem:[%s6004_s12 + $0x10] sm:$0xff] }
0x10e7   : > { %5165 = vmatprep.subr.mxu1 %v4647_v63 }
0x10e8   : > { %5166 = vmatpush3.msra.mxu1 %v4647_v63 }
0x10e9   : > { %v5162_v6 = vpop.f32.mrf.mxu0  ;;  %5167 = vmatprep.subr.mxu1 %v4646_v0 }
0x10ea   : > { %5168 = vmatpush3.msra.mxu1 %v4646_v0 }
0x10eb   : > { %5169 = vmatprep.subr.mxu1 %v4645_v2  ;;  %v3761_v28 = vpop.f32.mrf.mxu0 }
0x10ec   : > { %5170 = vmatpush3.msra.mxu1 %v4645_v2 }
0x10ed   : > { %5172 = vmatmul.mubr.msk.f32.vlgmr.msra.gmra.mxu1 %vm542_vm0, %v5665_v13 }
0x10ee   : > { %5189 = vmatprep.mubr.msk.f32.mxu1 %vm2371_vm1, %v3761_v28 }
0x10f1   : > { %v5184_v39 = vpop.f32.mrf.mxu0 }
0x10f2   : > { %5192 = vmatprep.subr.mxu0 %v5184_v39 }
0x10f3   : > { %v3921_v29 = vpop.f32.mrf.mxu0  ;;  %5193 = vmatpush3.msra.mxu0 %v5184_v39 }
0x10f4   : > { %5194 = vmatprep.subr.mxu0 %v3921_v29 }
0x10f5   : > { %5195 = vmatpush3.msra.mxu0 %v3921_v29 }
0x10f6   : > { %5204 = vmatprep.subr.mxu0 %v4260_v19 }
0x11a5   : > { %v5151_v34 = vpop.f32.mrf.mxu1 }
0x11a6   : > { %v3689_v26 = vadd.f32 %v5151_v34, %v3168_v30  ;;  %v4667_v34 = vld [vmem:[%s5995_s3 + $0x3] ss:$0 sm:$0xff] }
0x11a7   : > { %v3679_v32 = vpop.f32.mrf.mxu1 }
0x11a8   : > { %v3688_v42 = vadd.f32 %v3679_v32, %v3163_v36 }
0x11ad   : > { %v5173_v43 = vpop.f32.mrf.mxu1 }
0x11ae   : > { %5185 = vmatprep.subr.msk.mxu1 %vm2371_vm1, %v5173_v43 }
0x11af   : > { %v3841_v13 = vpop.f32.mrf.mxu1  ;;  %5186 = vmatpush3.xpose.msk.msra.mxu1 %vm2371_vm1, %v5173_v43  ;;  %v4669_v43 = vld [vmem:[%s5996_s4 + $0x3] ss:$0 sm:$0xff] }
0x11b0   : > { %5187 = vmatprep.subr.msk.mxu1 %vm2371_vm1, %v3841_v13 }
0x11b3   : > { %5188 = vmatpush3.xpose.msk.msra.mxu1 %vm2371_vm1, %v3841_v13 }
0x11b4   : > { %5199 = vmatprep.subr.mxu1 %v4663_v33 }
0x11b6   : > { %5190 = vmatmul.mubr.msk.f32.vlgmr.msra.gmra.mxu1 %vm2371_vm1, %v5162_v6 }
0x11b7   : > { %5200 = vmatpush3.msra.mxu1 %v4663_v33 }
0x1276   : > { %v5191_v35 = vpop.f32.mrf.mxu1 }
0x1277   : > { %v4018_v44 = vmul.f32 0.35355338, %v5191_v35 }
0x1278   : > { %v4008_v47 = vpop.f32.mrf.mxu1 }
0x1279   : > { %v4017_v48 = vmul.f32 0.35355338, %v4008_v47  ;;  %v4020_v41 = vadd.f32 %v5714_v57, %v4018_v44  ;;  %v4354_v44 = vld [vmem:[%s6006_s14 + $0x18] sm:$0xff]  ;;  %v4353_v47 = vld [vmem:[%s6006_s14 + $0x10] sm:$0xff] }
0x127a   : > { %5215 = vmatprep.subr.mxu1 %v4354_v44 }
0x127b   : > { %v4024_v10 = vsel %vm600_vm3, %v4020_v41, -inf  ;;  %v4019_v11 = vadd.f32 %v5714_v57, %v4017_v48  ;;  %v4352_v48 = vld [vmem:[%s6006_s14 + $0x8] sm:$0xff] }
0x127c   : > { %4025 = vmax.xlane.f32.xlu1 %v4024_v10  ;;  %v4670_v10 = vld [vmem:[%s6005_s13] ss:$0 sm:$0xff] }
0x127d   : > { %v4021_v14 = vsel %vm600_vm3, %v4019_v11, -inf }
0x127e   : > { %4022 = vmax.xlane.f32.xlu0 %v4021_v14 }
0x1305   : > { %v4026_v15 = vpop.xlane.xlu1 %4025 }
0x1306   : > { %v4028_v16 = vsub.f32 %v4020_v41, %v4026_v15  ;;  %v4351_v41 = vld [vmem:[%s6006_s14] sm:$0xff] }
0x1307   : > { %v4023_v17 = vpop.xlane.xlu0 %4022 }
0x1308   : > { %v4031_v18 = vmul.f32 1.442695, %v4028_v16  ;;  %v4027_v9 = vsub.f32 %v4019_v11, %v4023_v17 }
0x130a   : > { %5271 = vpow2.f32 %v4031_v18  ;;  %v4029_v7 = vmul.f32 1.442695, %v4027_v9  ;;  %v4673_v9 = vld [vmem:[%s6007_s15] ss:$0 sm:$0xff] }
0x130c   : > { %5273 = vpow2.f32 %v4029_v7 }
0x1317   : > { %v5272_v20 = vpop.eup %5271 }
0x1318   : > { %v4036_v8 = vsel %vm600_vm3, %v5272_v20, 0.0 }
0x1319   : > { %v5274_v21 = vpop.eup %5273  ;;  %4037 = vadd.xlane.f32.xlu1 %v4036_v8 }
0x131a   : > { %v4033_v22 = vsel %vm600_vm3, %v5274_v21, 0.0 }
0x131b   : > { %4034 = vadd.xlane.f32.xlu0 %v4033_v22 }
0x13a2   : > { %v4038_v57 = vpop.xlane.xlu1 %4037 }
0x13a3   : > { %5275 = vrcp.f32 %v4038_v57 }
0x13a4   : > { %v4035_v23 = vpop.xlane.xlu0 %4034 }
0x13a5   : > { %5277 = vrcp.f32 %v4035_v23 }
0x13b0   : > { %v5276_v12 = vpop.eup %5275 }
0x13b1   : > { %v4042_v37 = vmul.f32 %v5276_v12, %v5272_v20 }
0x13b2   : > { %v5278_v24 = vpop.eup %5277 }
0x13b3   : > { %v4040_v27 = vmul.f32 %v5278_v24, %v5274_v21 }
0x13b5   : > { %5196 = vmatprep.mubr.msk.f32.mxu0 %vm600_vm3, %v4040_v27 }
0x13b6   : > { %5197 = vmatmul.mubr.msk.f32.vlgmr.msra.gmra.mxu0 %vm600_vm3, %v4042_v37 }
0x13b7   : > { %5205 = vmatpush3.msra.mxu0 %v4260_v19 }
0x13b8   : > { %5206 = vmatprep.subr.mxu0 %v4259_v55 }
0x13b9   : > { %5207 = vmatpush3.msra.mxu0 %v4259_v55 }
0x13ba   : > { %5208 = vmatprep.subr.mxu0 %v4258_v61 }
0x13bb   : > { %5209 = vmatpush3.msra.mxu0 %v4258_v61 }
0x13bc   : > { %5210 = vmatprep.subr.mxu0 %v4257_v62 }
0x13bd   : > { %5211 = vmatpush3.msra.mxu0 %v4257_v62 }
0x1476   : > { %v5198_v38 = vpop.f32.mrf.mxu0 }
0x1478   : > { %v4115_v40 = vpop.f32.mrf.mxu0 }
0x1479   : > { %5201 = vmatprep.mubr.msk.f32.mxu1 %vm2371_vm1, %v4115_v40 }
0x147a   : > { %5202 = vmatmul.mubr.msk.f32.vlgmr.msra.gmra.mxu1 %vm2371_vm1, %v5198_v38 }
0x147b   : > { %5216 = vmatpush3.msra.mxu1 %v4354_v44 }
0x147c   : > { %5217 = vmatprep.subr.mxu1 %v4353_v47 }
0x147d   : > { %5218 = vmatpush3.msra.mxu1 %v4353_v47 }
0x147e   : > { %5219 = vmatprep.subr.mxu1 %v4352_v48 }
0x147f   : > { %5220 = vmatpush3.msra.mxu1 %v4352_v48 }
0x1480   : > { %5221 = vmatprep.subr.mxu1 %v4351_v41 }
0x1481   : > { %5222 = vmatpush3.msra.mxu1 %v4351_v41 }
0x153a   : > { %v5203_v45 = vpop.f32.mrf.mxu1 }
0x153b   : > { %v4208_v46 = vadd.f32 %v5203_v45, %v3689_v26 }
0x153c   : > { %v4198_v4 = vpop.f32.mrf.mxu1 }
0x153d   : > { %v5927_v49 = vadd.f32 %v4208_v46, %v5617_v1  ;;  %v4207_v5 = vadd.f32 %v4198_v4, %v3688_v42 }
0x153f   : > { %v5930_v25 = vadd.f32 %v4207_v5, %v5620_v3  ;;  %v4214_v50 = vsel %vm542_vm0, %v5927_v49, 0.0 }
0x1540   : > { %4215 = vadd.xlane.f32.xlu1 %v4214_v50 }
0x1541   : > { %v4211_v51 = vsel %vm542_vm0, %v5930_v25, 0.0 }
0x1542   : > { %4212 = vadd.xlane.f32.xlu0 %v4211_v51 }
0x15c9   : > { %v4216_v52 = vpop.xlane.xlu1 %4215 }
0x15ca   : > { %v4218_v53 = vmul.f32 0.03125, %v4216_v52 }
0x15cb   : > { %v4213_v54 = vpop.xlane.xlu0 %4212 }
0x15cc   : > { %v4220_v56 = vsub.f32 %v5927_v49, %v4218_v53  ;;  %v4217_v58 = vmul.f32 0.03125, %v4213_v54 }
0x15ce   : > { %v4219_v1 = vsub.f32 %v5930_v25, %v4217_v58  ;;  %v4222_v59 = vmul.f32 %v4220_v56, %v4220_v56 }
0x15d0   : > { %v4226_v3 = vsel %vm542_vm0, %v4222_v59, 0.0  ;;  %v4221_v31 = vmul.f32 %v4219_v1, %v4219_v1 }
0x15d1   : > { %4227 = vadd.xlane.f32.xlu1 %v4226_v3 }
0x15d2   : > { %v4223_v60 = vsel %vm542_vm0, %v4221_v31, 0.0 }
0x15d3   : > { %4224 = vadd.xlane.f32.xlu0 %v4223_v60 }
0x165a   : > { %v4228_v63 = vpop.xlane.xlu1 %4227 }
0x165b   : > { %v4230_v0 = vmul.f32 0.03125, %v4228_v63 }
0x165c   : > { %v4225_v2 = vpop.xlane.xlu0 %4224 }
0x165d   : > { %v4232_v6 = vadd.f32 1e-05, %v4230_v0  ;;  %v4229_v28 = vmul.f32 0.03125, %v4225_v2 }
0x165f   : > { %5279 = vrsqrt.f32 %v4232_v6  ;;  %v4231_v39 = vadd.f32 1e-05, %v4229_v28 }
0x1661   : > { %5281 = vrsqrt.f32 %v4231_v39 }
0x166c   : > { %v5280_v29 = vpop.eup %5279 }
0x166d   : > { %v4236_v30 = vmul.f32 %v5280_v29, %v4220_v56 }
0x166e   : > { %v5282_v36 = vpop.eup %5281 }
0x166f   : > { %v4235_v26 = vmul.f32 %v5282_v36, %v4219_v1  ;;  %v4246_v32 = vmul.f32 %v4667_v34, %v4236_v30 }
0x1671   : > { %v4245_v42 = vmul.f32 %v4667_v34, %v4235_v26  ;;  %v4256_v35 = vadd.f32 %v4669_v43, %v4246_v32 }
0x1673   : > { %v4255_v13 = vadd.f32 %v4669_v43, %v4245_v42 }
0x1675   : > { %5212 = vmatprep.mubr.msk.f32.mxu0 %vm542_vm0, %v4255_v13 }
0x1676   : > { %5213 = vmatmul.mubr.msk.f32.vlgmr.msra.gmra.mxu0 %vm542_vm0, %v4256_v35 }
0x1736   : > { %v5214_v11 = vpop.f32.mrf.mxu0 }
0x1737   : > { %v4346_v14 = vadd.f32 %v5214_v11, %v4670_v10 }
0x1738   : > { %v4340_v15 = vpop.f32.mrf.mxu0 }
0x1739   : > { %v4341_v16 = vadd.f32 %v4670_v10, %v4340_v15  ;;  %v4350_v18 = vmax.f32 %v4346_v14, 0.0 }
0x173b   : > { %v4349_v17 = vmax.f32 %v4341_v16, 0.0 }
0x173d   : > { %5223 = vmatprep.mubr.msk.f32.mxu1 %vm542_vm0, %v4349_v17 }
0x173e   : > { %5224 = vmatmul.mubr.msk.f32.vlgmr.msra.gmra.mxu1 %vm542_vm0, %v4350_v18 }
0x17fe   : > { %v5225_v7 = vpop.f32.mrf.mxu1 }
0x17ff   : > { %v4440_v20 = vadd.f32 %v5225_v7, %v4673_v9 }
0x1800   : > { %v4434_v8 = vpop.f32.mrf.mxu1 }
0x1801   : > { %v4444_v21 = vadd.f32 %v4440_v20, %v5927_v49  ;;  %v4435_v22 = vadd.f32 %v4673_v9, %v4434_v8 }
0x1803   : > { %4446 = vst.msk [vmem:[%s535_s18 + $0x8] sm:$0xff] %vm542_vm0, %v4444_v21  ;;  %v4443_v57 = vadd.f32 %v4435_v22, %v5930_v25 }
0x1805   : > { %4445 = vst.msk [vmem:[%s535_s18] sm:$0xff] %vm542_vm0, %v4443_v57 }
0x1806 PF: > { %s26_s21 = sadd.s32 1, %s5289_s21  }
0x1807   : > { %p23_p4 = scmp.ge.s32.totalorder %s26_s21, 4  }
0x1809   :  { %25 = sbr.rel (!%p23_p4) target bundleno = 2 (0x2), region = 138 }

// kernel: qanet_forward.30
= control target key start
LH: loop header
LB: loop body
LE: loop exit
PB: predicated region body
PF: predicated region fallthrough
CT: control target
= control target key end

     0   :  { %s4721_s21 = smov 0   ;;  %s5355_s0 = inlined_call_operand.vmem [shape: f32[2,8,32], index: 0, kind: input, shape index: {}]   ;;  %s5356_s1 = inlined_call_operand.vmem [shape: f32[8,32], index: 1, kind: input, shape index: {}]   ;;  %s5357_s2 = inlined_call_operand.vmem [shape: f32[2,1,8], index: 2, kind: input, shape index: {}]   ;;  %s5358_s3 = inlined_call_operand.vmem [shape: f32[4,1,32], index: 3, kind: input, shape index: {}]   ;;  %s5359_s4 = inlined_call_operand.vmem [shape: f32[4,1,32], index: 4, kind: input, shape index: {}]   ;;  %s5360_s5 = inlined_call_operand.vmem [shape: f32[2,7,32], index: 5, kind: input, shape index: {}]   ;;  %s5361_s6 = inlined_call_operand.vmem [shape: f32[2,32,32], index: 6, kind: input, shape index: {}]   ;;  %s5362_s7 = inlined_call_operand.vmem [shape: f32[2,1,32], index: 7, kind: input, shape index: {}]   ;;  %s5363_s8 = inlined_call_operand.vmem [shape: f32[4,32,8], index: 8, kind: input, shape index: {}]   ;;  %s5364_s9 = inlined_call_operand.vmem [shape: f32[4,32,8], index: 9, kind: input, shape index: {}]   ;;  %s5365_s10 = inlined_call_operand.vmem [shape: f32[4,32,8], index: 10, kind: input, shape index: {}]   ;;  %s5366_s11 = inlined_call_operand.vmem [shape: f32[4,8,32], index: 11, kind: input, shape index: {}]   ;;  %s5367_s12 = inlined_call_operand.vmem [shape: f32[32,32], index: 12, kind: input, shape index: {}]   ;;  %s5368_s13 = inlined_call_operand.vmem [shape: f32[1,32], index: 13, kind: input, shape index: {}]   ;;  %s5369_s14 = inlined_call_operand.vmem [shape: f32[32,32], index: 14, kind: input, shape index: {}]   ;;  %s5370_s15 = inlined_call_operand.vmem [shape: f32[1,32], index: 15, kind: input, shape index: {}]   ;;  %s5371_s16 = inlined_call_operand.vmem [shape: f32[2,8,32], index: 16, kind: output, shape index: {}]  }
   0x1   :  { %5372 = sst [smem:[#allocation2_spill]] %s5355_s0 }
   0x2 LB: > { %s4035_s22 = sadd.s32 4294967295, %s4632_s21   ;;  %p4039_p0 = scmp.ge.s32.totalorder %s4632_s21, 1  ;;  %s4632_s21 = sphi %s4721_s21, %s26_s21  }
   0x3   : > { %p469_p1 = scmp.lt.s32.totalorder %s4632_s21, 3 }
   0x5   : > { %p470_p2 = pnand %p4039_p0, %p469_p1 }
   0x6   : > { %p520_p3 = scmp.lt.s32.totalorder (!%p470_p2), %s4035_s22, 1  ;;  %s5373_s28 = sld [smem:[#allocation2_spill]] (!%p470_p2) }
   0x7   : > { %473 = sbr.rel (%p470_p2) target bundleno = 6084 (0x17c4), region = 84 }
   0xc   : > { %s5375_s22 = smov (!%p520_p3, %s4035_s22), 1  ;;  %v532_v0 = vld [vmem:[%s5356_s1] sm:$0xff]  ;;  %vm534_vm0 = vcmask 261120   ;;  %v4634_v9 = vmov 0.0   ;;  %vm4635_vm1 = vmmov 0   ;;  %v566_v13 = vlaneseq  ;;  %v1147_v35 = vld [vmem:[%s5361_s6 + $0x18] sm:$0xff] }
   0xd   : > { %s4040_s23 = sshll.u32 %s5375_s22, 3  ;;  %4286 = vmatprep.subr.mxu0 %v4634_v9  ;;  %4291 = vmatprep.subr.mxu1 %v4634_v9  ;;  %v4042_v19 = vld [vmem:[%s5358_s3] ss:$0 sm:$0xff]  ;;  %vm573_vm4 = vcmask 64512   ;;  %v1146_v36 = vld [vmem:[%s5361_s6 + $0x10] sm:$0xff]  ;;  %v1145_v37 = vld [vmem:[%s5361_s6 + $0x8] sm:$0xff]  ;;  %s526_s24 = scalar_lea.vmem %s5357_s2, %s5375_s22 }
   0xe   : > { %s523_s29 = scalar_lea.vmem %s5373_s28, %s4040_s23  ;;  %4288 = vmatprep.mubr.msk.f32.mxu0 %vm4635_vm1, %v4634_v9  ;;  %4293 = vmatprep.mubr.msk.f32.mxu1 %vm4635_vm1, %v4634_v9  ;;  %v4752_v14 = vshrl.u32 %v566_v13, 7  ;;  %v569_v15 = vand.u32 127, %v566_v13  ;;  %v4043_v21 = vld [vmem:[%s5359_s4] ss:$0 sm:$0xff]  ;;  %s530_s0 = scalar_lea.vmem %s5371_s16, %s4040_s23 }
   0xf   : > { %v531_v1 = vld [vmem:[%s523_s29] sm:$0xff] }
  0x10   : > { %v4740_v2 = vadd.f32 %v532_v0, %v531_v1  ;;  %v570_v16 = vadd.s32 4294967293, %v4752_v14  ;;  %v653_v17 = vadd.s32 4294967294, %v4752_v14  ;;  %v735_v23 = vadd.s32 4294967295, %v4752_v14  ;;  %v1144_v38 = vld [vmem:[%s5361_s6] sm:$0xff] }
  0x11   : > { %vm817_vm6 = vcmp.eq.s32.totalorder %v569_v15, %v4752_v14  ;;  %v898_v27 = vadd.s32 1, %v4752_v14  ;;  %v980_v28 = vadd.s32 2, %v4752_v14  ;;  %v1062_v31 = vadd.s32 3, %v4752_v14  ;;  %v565_v41 = vld [vmem:[%s5360_s5] sm:$0x7f] }
  0x12   : > { %v535_v3 = vsel %vm534_vm0, %v4740_v2, 0.0  ;;  %vm571_vm2 = vcmp.eq.s32.totalorder %v569_v15, %v570_v16  ;;  %vm654_vm3 = vcmp.eq.s32.totalorder %v569_v15, %v653_v17  ;;  %vm736_vm5 = vcmp.eq.s32.totalorder %v569_v15, %v735_v23 }
  0x13   : > { %536 = vadd.xlane.f32.xlu0 %v535_v3  ;;  %v4764_v25 = vsel %vm571_vm2, 1.0, %v4634_v9  ;;  %v4767_v26 = vsel %vm654_vm3, 1.0, %v4634_v9  ;;  %v4779_v29 = vsel %vm736_vm5, 1.0, %v4634_v9  ;;  %v4782_v30 = vsel %vm817_vm6, 1.0, %v4634_v9 }
  0x14   : > { %vm899_vm7 = vcmp.eq.s32.totalorder %v569_v15, %v898_v27  ;;  %vm981_vm8 = vcmp.eq.s32.totalorder %v569_v15, %v980_v28  ;;  %vm1063_vm9 = vcmp.eq.s32.totalorder %v569_v15, %v1062_v31  ;;  %v649_v39 = vsub.s32 0, %v4752_v14 }
  0x15   : > { %v4796_v32 = vsel %vm899_vm7, 1.0, %v4634_v9  ;;  %v4799_v33 = vsel %vm981_vm8, 1.0, %v4634_v9  ;;  %v4814_v34 = vsel %vm1063_vm9, 1.0, %v4634_v9  ;;  %v731_v40 = vsub.s32 1, %v4752_v14 }
  0x16   : > { %v650_v42 = vrot.slane %v565_v41, %v649_v39  ;;  %v813_v44 = vsub.s32 2, %v4752_v14  ;;  %v894_v45 = vsub.s32 3, %v4752_v14  ;;  %v976_v48 = vsub.s32 4, %v4752_v14 }
  0x17   : > { %v732_v43 = vrot.slane %v565_v41, %v731_v40  ;;  %v1058_v49 = vsub.s32 5, %v4752_v14  ;;  %v1140_v63 = vsub.s32 6, %v4752_v14  ;;  %v4070_v14 = vld [vmem:[%s5362_s7 + $0x1] ss:$0 sm:$0xff] }
  0x18   : > { %v814_v54 = vrot.slane %v565_v41, %v813_v44  ;;  %v895_v55 = vrot.slane %v565_v41, %v894_v45  ;;  %v977_v58 = vrot.slane %v565_v41, %v976_v48 }
  0x19   : > { %v1059_v59 = vrot.slane %v565_v41, %v1058_v49 }
  0x9c   : > { %v537_v4 = vpop.xlane.xlu0 %536 }
  0x9d   : > { %v539_v5 = vmul.f32 0.03125, %v537_v4 }
  0x9f   : > { %v540_v6 = vsub.f32 %v4740_v2, %v539_v5 }
  0xa1   : > { %v541_v7 = vmul.f32 %v540_v6, %v540_v6 }
  0xa3   : > { %v542_v8 = vsel %vm534_vm0, %v541_v7, 0.0 }
  0xa4   : > { %543 = vadd.xlane.f32.xlu0 %v542_v8 }
 0x12d   : > { %v544_v10 = vpop.xlane.xlu0 %543 }
 0x12e   : > { %v545_v11 = vmul.f32 0.03125, %v544_v10  ;;  %v1141_v10 = vrot.slane %v565_v41, %v1140_v63 }
 0x130   : > { %v546_v12 = vadd.f32 1e-05, %v545_v11 }
 0x132   : > { %4602 = vrsqrt.f32 %v546_v12 }
 0x13f   : > { %v4603_v18 = vpop.eup %4602 }
 0x140   : > { %v548_v20 = vmul.f32 %v4603_v18, %v540_v6 }
 0x142   : > { %v556_v22 = vmul.f32 %v4042_v19, %v548_v20  ;;  %v4051_v20 = vld [vmem:[%s5362_s7] ss:$0 sm:$0xff] }
 0x144   : > { %v564_v24 = vadd.f32 %v4043_v21, %v556_v22 }
 0x146   : > { %4287 = vmatpush3.msra.mxu0 %v564_v24  ;;  %4292 = vmatpush3.msra.mxu1 %v564_v24 }
 0x147   : > { %4289 = vmatmul.mubr.msk.f32.vlgmr.msra.gmra.mxu0 %vm573_vm4, %v4764_v25  ;;  %4294 = vmatmul.mubr.msk.f32.vlgmr.msra.gmra.mxu1 %vm573_vm4, %v4767_v26 }
 0x148   : > { %4296 = vmatprep.subr.mxu0 %v4634_v9  ;;  %4301 = vmatprep.subr.mxu1 %v4634_v9 }
 0x149   : > { %4297 = vmatpush3.msra.mxu0 %v564_v24  ;;  %4302 = vmatpush3.msra.mxu1 %v564_v24 }
 0x14a   : > { %4298 = vmatprep.mubr.msk.f32.mxu0 %vm4635_vm1, %v4634_v9  ;;  %4303 = vmatprep.mubr.msk.f32.mxu1 %vm4635_vm1, %v4634_v9 }
 0x14b   : > { %4306 = vmatprep.subr.mxu0 %v4634_v9  ;;  %4311 = vmatprep.subr.mxu1 %v4634_v9 }
 0x14c   : > { %4299 = vmatmul.mubr.msk.f32.vlgmr.msra.gmra.mxu0 %vm573_vm4, %v4779_v29  ;;  %4304 = vmatmul.mubr.msk.f32.vlgmr.msra.gmra.mxu1 %vm573_vm4, %v4782_v30 }
 0x14d   : > { %4307 = vmatpush3.msra.mxu0 %v564_v24  ;;  %4312 = vmatpush3.msra.mxu1 %v564_v24 }
 0x14e   : > { %4308 = vmatprep.mubr.msk.f32.mxu0 %vm4635_vm1, %v4634_v9  ;;  %4313 = vmatprep.mubr.msk.f32.mxu1 %vm4635_vm1, %v4634_v9 }
 0x14f   : > { %4316 = vmatprep.subr.mxu0 %v4634_v9  ;;  %4321 = vmatprep.subr.mxu1 %v4634_v9 }
 0x150   : > { %4309 = vmatmul.mubr.msk.f32.vlgmr.msra.gmra.mxu0 %vm573_vm4, %v4796_v32  ;;  %4314 = vmatmul.mubr.msk.f32.vlgmr.msra.gmra.mxu1 %vm573_vm4, %v4799_v33 }
 0x151   : > { %4317 = vmatpush3.msra.mxu0 %v564_v24  ;;  %4318 = vmatprep.mubr.msk.f32.mxu0 %vm4635_vm1, %v4634_v9 }
 0x152   : > { %4329 = vmatprep.mubr.msk.f32.mxu1 %vm4635_vm1, %v4634_v9  ;;  %4332 = vmatprep.subr.mxu0 %v4634_v9 }
 0x153   : > { %4322 = vmatpush3.msra.mxu1 %v1147_v35 }
 0x154   : > { %4319 = vmatmul.mubr.msk.f32.vlgmr.msra.gmra.mxu0 %vm573_vm4, %v4814_v34  ;;  %4323 = vmatprep.subr.mxu1 %v4634_v9 }
 0x155   : > { %4334 = vmatprep.mubr.msk.f32.mxu0 %vm4635_vm1, %v4634_v9  ;;  %4324 = vmatpush3.msra.mxu1 %v1146_v36 }
 0x156   : > { %4325 = vmatprep.subr.mxu1 %v4634_v9 }
 0x157   : > { %4326 = vmatpush3.msra.mxu1 %v1145_v37 }
 0x158   : > { %4327 = vmatprep.subr.mxu1 %v4634_v9 }
 0x159   : > { %4328 = vmatpush3.msra.mxu1 %v1144_v38 }
 0x15a   : > { %4342 = vmatprep.subr.mxu1 %v4634_v9 }
 0x207   : > { %v643_v46 = vpop.f32.mrf.mxu0  ;;  %v725_v47 = vpop.f32.mrf.mxu1 }
 0x208   : > { %v651_v50 = vmul.f32 %v650_v42, %v643_v46  ;;  %v733_v51 = vmul.f32 %v732_v43, %v725_v47 }
 0x209   : > { %v4290_v52 = vpop.f32.mrf.mxu0  ;;  %v4295_v53 = vpop.f32.mrf.mxu1 }
 0x20a   : > { %v734_v60 = vadd.f32 %v733_v51, %v651_v50  ;;  %v4056_v50 = vld [vmem:[%s5359_s4 + $0x1] ss:$0 sm:$0xff] }
 0x20c   : > { %v807_v56 = vpop.f32.mrf.mxu0  ;;  %v888_v57 = vpop.f32.mrf.mxu1 }
 0x20d   : > { %v815_v61 = vmul.f32 %v814_v54, %v807_v56  ;;  %v896_v62 = vmul.f32 %v895_v55, %v888_v57 }
 0x20e   : > { %v4300_v0 = vpop.f32.mrf.mxu0  ;;  %v4305_v1 = vpop.f32.mrf.mxu1 }
 0x20f   : > { %v816_v3 = vadd.f32 %v815_v61, %v734_v60 }
 0x210   : > { %v970_v4 = vpop.f32.mrf.mxu0  ;;  %v1052_v5 = vpop.f32.mrf.mxu1 }
 0x211   : > { %v897_v6 = vadd.f32 %v896_v62, %v816_v3  ;;  %v978_v7 = vmul.f32 %v977_v58, %v970_v4  ;;  %v1060_v8 = vmul.f32 %v1059_v59, %v1052_v5 }
 0x212   : > { %v4310_v11 = vpop.f32.mrf.mxu0  ;;  %v4315_v12 = vpop.f32.mrf.mxu1 }
 0x213   : > { %v979_v13 = vadd.f32 %v978_v7, %v897_v6 }
 0x214   : > { %v1134_v15 = vpop.f32.mrf.mxu0 }
 0x215   : > { %v1061_v16 = vadd.f32 %v1060_v8, %v979_v13  ;;  %v1142_v17 = vmul.f32 %v1141_v10, %v1134_v15 }
 0x216   : > { %v4320_v18 = vpop.f32.mrf.mxu0 }
 0x217   : > { %v1143_v19 = vadd.f32 %v1142_v17, %v1061_v16 }
 0x219   : > { %4330 = vmatmul.mubr.msk.f32.vlgmr.msra.gmra.mxu1 %vm534_vm0, %v1143_v19 }
 0x21a   : > { %4344 = vmatprep.mubr.msk.f32.mxu1 %vm4635_vm1, %v4634_v9 }
 0x2d9   : > { %v1224_v21 = vpop.f32.mrf.mxu1 }
 0x2da   : > { %v1225_v22 = vadd.f32 %v4051_v20, %v1224_v21 }
 0x2db   : > { %v4331_v23 = vpop.f32.mrf.mxu1 }
 0x2dc   : > { %v1228_v24 = vmax.f32 %v1225_v22, 0.0 }
 0x2de   : > { %v4870_v27 = vadd.f32 %v1228_v24, %v4740_v2  ;;  %v4054_v2 = vld [vmem:[%s5358_s3 + $0x1] ss:$0 sm:$0xff] }
 0x2e0   : > { %v1230_v28 = vsel %vm534_vm0, %v4870_v27, 0.0 }
 0x2e1   : > { %1231 = vadd.xlane.f32.xlu1 %v1230_v28 }
 0x36a   : > { %v1232_v31 = vpop.xlane.xlu1 %1231 }
 0x36b   : > { %v1233_v35 = vmul.f32 0.03125, %v1232_v31 }
 0x36d   : > { %v1234_v36 = vsub.f32 %v4870_v27, %v1233_v35 }
 0x36f   : > { %v1235_v37 = vmul.f32 %v1234_v36, %v1234_v36 }
 0x371   : > { %v1236_v38 = vsel %vm534_vm0, %v1235_v37, 0.0  ;;  %v1918_v37 = vld [vmem:[%s5363_s8 + $0x18] sm:$0xff] }
 0x372   : > { %1237 = vadd.xlane.f32.xlu1 %v1236_v38  ;;  %v1917_v38 = vld [vmem:[%s5363_s8 + $0x10] sm:$0xff] }
 0x3fb   : > { %v1238_v41 = vpop.xlane.xlu1 %1237 }
 0x3fc   : > { %v1239_v42 = vmul.f32 0.03125, %v1238_v41  ;;  %v1994_v41 = vld [vmem:[%s5364_s9 + $0x10] sm:$0xff] }
 0x3fe   : > { %v1240_v43 = vadd.f32 1e-05, %v1239_v42  ;;  %v1916_v42 = vld [vmem:[%s5363_s8 + $0x8] sm:$0xff] }
 0x400   : > { %4604 = vrsqrt.f32 %v1240_v43  ;;  %v1993_v43 = vld [vmem:[%s5364_s9 + $0x8] sm:$0xff] }
 0x40d   : > { %v4605_v46 = vpop.eup %4604 }
 0x40e   : > { %v1242_v47 = vmul.f32 %v4605_v46, %v1234_v36  ;;  %v1915_v46 = vld [vmem:[%s5363_s8] sm:$0xff] }
 0x410   : > { %v1251_v51 = vmul.f32 %v4054_v2, %v1242_v47  ;;  %v1992_v2 = vld [vmem:[%s5364_s9] sm:$0xff] }
 0x412   : > { %v1260_v52 = vadd.f32 %v4056_v50, %v1251_v51 }
 0x414   : > { %4333 = vmatpush3.msra.mxu0 %v1260_v52  ;;  %4343 = vmatpush3.msra.mxu1 %v1260_v52 }
 0x415   : > { %4335 = vmatmul.mubr.msk.f32.vlgmr.msra.gmra.mxu0 %vm573_vm4, %v4764_v25  ;;  %4337 = vmatprep.subr.mxu0 %v4634_v9  ;;  %v4068_v25 = vld [vmem:[%s5361_s6 + $0x38] sm:$0xff] }
 0x416   : > { %4345 = vmatmul.mubr.msk.f32.vlgmr.msra.gmra.mxu1 %vm573_vm4, %v4779_v29  ;;  %4352 = vmatprep.subr.mxu1 %v4634_v9  ;;  %v4066_v29 = vld [vmem:[%s5361_s6 + $0x28] sm:$0xff] }
 0x417   : > { %4338 = vmatpush3.msra.mxu0 %v1260_v52  ;;  %4353 = vmatpush3.msra.mxu1 %v1260_v52 }
 0x418   : > { %4339 = vmatprep.mubr.msk.f32.mxu0 %vm4635_vm1, %v4634_v9  ;;  %4347 = vmatprep.subr.mxu0 %v4634_v9 }
 0x419   : > { %4354 = vmatprep.mubr.msk.f32.mxu1 %vm4635_vm1, %v4634_v9  ;;  %4362 = vmatprep.subr.mxu1 %v4634_v9 }
 0x41a   : > { %4340 = vmatmul.mubr.msk.f32.vlgmr.msra.gmra.mxu0 %vm573_vm4, %v4767_v26  ;;  %4355 = vmatmul.mubr.msk.f32.vlgmr.msra.gmra.mxu1 %vm573_vm4, %v4796_v32  ;;  %v4067_v26 = vld [vmem:[%s5361_s6 + $0x30] sm:$0xff]  ;;  %v4057_v32 = vld [vmem:[%s5360_s5 + $0x8] sm:$0x7f] }
 0x41b   : > { %4348 = vmatpush3.msra.mxu0 %v1260_v52  ;;  %4363 = vmatpush3.msra.mxu1 %v1260_v52  ;;  %v1336_v53 = vrot.slane %v4057_v32, %v649_v39  ;;  %v1412_v55 = vrot.slane %v4057_v32, %v731_v40  ;;  %v1488_v56 = vrot.slane %v4057_v32, %v813_v44 }
 0x41c   : > { %4349 = vmatprep.mubr.msk.f32.mxu0 %vm4635_vm1, %v4634_v9  ;;  %4357 = vmatprep.subr.mxu0 %v4634_v9  ;;  %v1564_v59 = vrot.slane %v4057_v32, %v894_v45  ;;  %v1640_v1 = vrot.slane %v4057_v32, %v976_v48  ;;  %v1716_v40 = vrot.slane %v4057_v32, %v1058_v49 }
 0x41d   : > { %4364 = vmatprep.mubr.msk.f32.mxu1 %vm4635_vm1, %v4634_v9  ;;  %4378 = vmatprep.subr.mxu1 %v4634_v9  ;;  %v1792_v45 = vrot.slane %v4057_v32, %v1140_v63 }
 0x41e   : > { %4350 = vmatmul.mubr.msk.f32.vlgmr.msra.gmra.mxu0 %vm573_vm4, %v4782_v30  ;;  %4365 = vmatmul.mubr.msk.f32.vlgmr.msra.gmra.mxu1 %vm573_vm4, %v4814_v34  ;;  %v4065_v30 = vld [vmem:[%s5361_s6 + $0x20] sm:$0xff] }
 0x41f   : > { %4358 = vmatpush3.msra.mxu0 %v1260_v52  ;;  %4359 = vmatprep.mubr.msk.f32.mxu0 %vm4635_vm1, %v4634_v9 }
 0x420   : > { %4367 = vmatprep.subr.mxu0 %v4634_v9  ;;  %4386 = vmatprep.mubr.msk.f32.mxu1 %vm4635_vm1, %v4634_v9 }
 0x421   : > { %4379 = vmatpush3.msra.mxu1 %v1918_v37 }
 0x422   : > { %4360 = vmatmul.mubr.msk.f32.vlgmr.msra.gmra.mxu0 %vm573_vm4, %v4799_v33  ;;  %4380 = vmatprep.subr.mxu1 %v4634_v9 }
 0x423   : > { %4375 = vmatprep.mubr.msk.f32.mxu0 %vm4635_vm1, %v4634_v9  ;;  %4368 = vmatpush3.msra.mxu0 %v4068_v25  ;;  %v4073_v25 = vld [vmem:[%s5358_s3 + $0x2] ss:$0 sm:$0xff] }
 0x424   : > { %4369 = vmatprep.subr.mxu0 %v4634_v9  ;;  %4381 = vmatpush3.msra.mxu1 %v1917_v38 }
 0x425   : > { %4370 = vmatpush3.msra.mxu0 %v4067_v26  ;;  %4382 = vmatprep.subr.mxu1 %v4634_v9 }
 0x426   : > { %4371 = vmatprep.subr.mxu0 %v4634_v9  ;;  %4383 = vmatpush3.msra.mxu1 %v1916_v42 }
 0x427   : > { %4372 = vmatpush3.msra.mxu0 %v4066_v29  ;;  %4384 = vmatprep.subr.mxu1 %v4634_v9  ;;  %v4075_v29 = vld [vmem:[%s5359_s4 + $0x2] ss:$0 sm:$0xff] }
 0x428   : > { %4373 = vmatprep.subr.mxu0 %v4634_v9  ;;  %4385 = vmatpush3.msra.mxu1 %v1915_v46 }
 0x429   : > { %4374 = vmatpush3.msra.mxu0 %v4065_v30  ;;  %4400 = vmatprep.subr.mxu1 %v4634_v9 }
 0x42a   : > { %4389 = vmatprep.subr.mxu0 %v4634_v9 }
 0x4d5   : > { %v1329_v33 = vpop.f32.mrf.mxu0 }
 0x4d6   : > { %v1481_v34 = vpop.f32.mrf.mxu1  ;;  %v1337_v61 = vmul.f32 %v1336_v53, %v1329_v33  ;;  %v2069_v33 = vld [vmem:[%s5365_s10 + $0x18] sm:$0xff]  ;;  %v2067_v53 = vld [vmem:[%s5365_s10 + $0x8] sm:$0xff] }
 0x4d7   : > { %v4336_v54 = vpop.f32.mrf.mxu0  ;;  %v1489_v0 = vmul.f32 %v1488_v56, %v1481_v34  ;;  %v2068_v34 = vld [vmem:[%s5365_s10 + $0x10] sm:$0xff] }
 0x4d8   : > { %v4346_v57 = vpop.f32.mrf.mxu1  ;;  %v2066_v54 = vld [vmem:[%s5365_s10] sm:$0xff] }
 0x4da   : > { %v1405_v58 = vpop.f32.mrf.mxu0  ;;  %v1633_v60 = vpop.f32.mrf.mxu1 }
 0x4db   : > { %v1413_v62 = vmul.f32 %v1412_v55, %v1405_v58  ;;  %v1641_v8 = vmul.f32 %v1640_v1, %v1633_v60  ;;  %v4085_v60 = vld [vmem:[%s5363_s8 + $0x30] sm:$0xff] }
 0x4dc   : > { %v4341_v39 = vpop.f32.mrf.mxu0  ;;  %v4356_v3 = vpop.f32.mrf.mxu1 }
 0x4dd   : > { %v1414_v4 = vadd.f32 %v1413_v62, %v1337_v61  ;;  %v4084_v61 = vld [vmem:[%s5363_s8 + $0x28] sm:$0xff]  ;;  %v4096_v39 = vld [vmem:[%s5365_s10 + $0x38] sm:$0xff]  ;;  %v4095_v3 = vld [vmem:[%s5365_s10 + $0x30] sm:$0xff] }
 0x4de   : > { %v1557_v5 = vpop.f32.mrf.mxu0  ;;  %v1785_v44 = vpop.f32.mrf.mxu1 }
 0x4df   : > { %v1490_v6 = vadd.f32 %v1489_v0, %v1414_v4  ;;  %v1565_v7 = vmul.f32 %v1564_v59, %v1557_v5  ;;  %v1793_v16 = vmul.f32 %v1792_v45, %v1785_v44  ;;  %v4086_v59 = vld [vmem:[%s5363_s8 + $0x38] sm:$0xff]  ;;  %v4083_v0 = vld [vmem:[%s5363_s8 + $0x20] sm:$0xff]  ;;  %v4094_v4 = vld [vmem:[%s5365_s10 + $0x28] sm:$0xff] }
 0x4e0   : > { %v4351_v10 = vpop.f32.mrf.mxu0  ;;  %v4366_v11 = vpop.f32.mrf.mxu1  ;;  %v4093_v5 = vld [vmem:[%s5365_s10 + $0x20] sm:$0xff] }
 0x4e1   : > { %v1566_v12 = vadd.f32 %v1565_v7, %v1490_v6  ;;  %v5081_v44 = vld [vmem:[%s526_s24] ss:$0 sm:$0xff] }
 0x4e2   : > { %v1709_v13 = vpop.f32.mrf.mxu0 }
 0x4e3   : > { %v1642_v15 = vadd.f32 %v1641_v8, %v1566_v12  ;;  %v1717_v48 = vmul.f32 %v1716_v40, %v1709_v13 }
 0x4e4   : > { %v4361_v17 = vpop.f32.mrf.mxu0 }
 0x4e5   : > { %v1718_v18 = vadd.f32 %v1717_v48, %v1642_v15 }
 0x4e7   : > { %v1794_v19 = vadd.f32 %v1793_v16, %v1718_v18 }
 0x4e9   : > { %4376 = vmatmul.mubr.msk.f32.vlgmr.msra.gmra.mxu0 %vm534_vm0, %v1794_v19 }
 0x4ea   : > { %4397 = vmatprep.mubr.msk.f32.mxu0 %vm4635_vm1, %v4634_v9 }
 0x5a9   : > { %v1877_v49 = vpop.f32.mrf.mxu0 }
 0x5aa   : > { %v1878_v63 = vadd.f32 %v4070_v14, %v1877_v49 }
 0x5ab   : > { %v4377_v20 = vpop.f32.mrf.mxu0 }
 0x5ac   : > { %v1881_v21 = vmax.f32 %v1878_v63, 0.0  ;;  %v4091_v63 = vld [vmem:[%s5364_s9 + $0x38] sm:$0xff]  ;;  %v4090_v20 = vld [vmem:[%s5364_s9 + $0x30] sm:$0xff] }
 0x5ae   : > { %v4957_v22 = vadd.f32 %v1881_v21, %v4870_v27  ;;  %v1995_v27 = vld [vmem:[%s5364_s9 + $0x18] sm:$0xff]  ;;  %v4089_v21 = vld [vmem:[%s5364_s9 + $0x28] sm:$0xff] }
 0x5af   : > { %4390 = vmatpush3.msra.mxu0 %v1995_v27 }
 0x5b0   : > { %v1883_v23 = vsel %vm534_vm0, %v4957_v22, 0.0  ;;  %4391 = vmatprep.subr.mxu0 %v4634_v9 }
 0x5b1   : > { %1884 = vadd.xlane.f32.xlu0 %v1883_v23  ;;  %4392 = vmatpush3.msra.mxu0 %v1994_v41  ;;  %v4088_v23 = vld [vmem:[%s5364_s9 + $0x20] sm:$0xff] }
 0x5b2   : > { %4393 = vmatprep.subr.mxu0 %v4634_v9 }
 0x5b3   : > { %4394 = vmatpush3.msra.mxu0 %v1993_v43 }
 0x5b4   : > { %4395 = vmatprep.subr.mxu0 %v4634_v9 }
 0x5b5   : > { %4396 = vmatpush3.msra.mxu0 %v1992_v2 }
 0x5b6   : > { %4411 = vmatprep.subr.mxu0 %v4634_v9 }
 0x63a   : > { %v1885_v24 = vpop.xlane.xlu0 %1884 }
 0x63b   : > { %v1886_v28 = vmul.f32 0.03125, %v1885_v24 }
 0x63d   : > { %v1887_v31 = vsub.f32 %v4957_v22, %v1886_v28 }
 0x63f   : > { %v1888_v35 = vmul.f32 %v1887_v31, %v1887_v31 }
 0x641   : > { %v1889_v36 = vsel %vm534_vm0, %v1888_v35, 0.0 }
 0x642   : > { %1890 = vadd.xlane.f32.xlu1 %v1889_v36 }
 0x6cb   : > { %v1891_v47 = vpop.xlane.xlu1 %1890 }
 0x6cc   : > { %v1892_v50 = vmul.f32 0.03125, %v1891_v47 }
 0x6ce   : > { %v1893_v51 = vadd.f32 1e-05, %v1892_v50  ;;  %v4101_v50 = vld [vmem:[%s5366_s11 + $0x8] sm:$0xff] }
 0x6d0   : > { %4606 = vrsqrt.f32 %v1893_v51 }
 0x6dd   : > { %v4607_v52 = vpop.eup %4606 }
 0x6de   : > { %v1895_v26 = vmul.f32 %v4607_v52, %v1887_v31 }
 0x6e0   : > { %v1904_v30 = vmul.f32 %v4073_v25, %v1895_v26  ;;  %v2308_v26 = vld [vmem:[%s5366_s11] sm:$0xff] }
 0x6e2   : > { %v5001_v32 = vadd.f32 %v4075_v29, %v1904_v30  ;;  %v4112_v29 = vld [vmem:[%s5364_s9 + $0x58] sm:$0xff]  ;;  %v4111_v30 = vld [vmem:[%s5364_s9 + $0x50] sm:$0xff] }
 0x6e4   : > { %4387 = vmatmul.mubr.msk.f32.vlgmr.msra.gmra.mxu1 %vm534_vm0, %v5001_v32  ;;  %4398 = vmatmul.mubr.msk.f32.vlgmr.msra.gmra.mxu0 %vm534_vm0, %v5001_v32 }
 0x6e5   : > { %4401 = vmatpush3.msra.mxu1 %v2069_v33  ;;  %4408 = vmatprep.mubr.msk.f32.mxu1 %vm4635_vm1, %v4634_v9  ;;  %v4110_v33 = vld [vmem:[%s5364_s9 + $0x48] sm:$0xff] }
 0x6e6   : > { %4402 = vmatprep.subr.mxu1 %v4634_v9  ;;  %4413 = vmatprep.mubr.msk.f32.mxu0 %vm4635_vm1, %v4634_v9 }
 0x6e7   : > { %4403 = vmatpush3.msra.mxu1 %v2068_v34  ;;  %v4109_v34 = vld [vmem:[%s5364_s9 + $0x40] sm:$0xff] }
 0x6e8   : > { %4404 = vmatprep.subr.mxu1 %v4634_v9 }
 0x6e9   : > { %4405 = vmatpush3.msra.mxu1 %v2067_v53  ;;  %v4107_v53 = vld [vmem:[%s5363_s8 + $0x58] sm:$0xff] }
 0x6ea   : > { %4406 = vmatprep.subr.mxu1 %v4634_v9 }
 0x6eb   : > { %4407 = vmatpush3.msra.mxu1 %v2066_v54 }
 0x6ec   : > { %4409 = vmatmul.mubr.msk.f32.vlgmr.msra.gmra.mxu1 %vm534_vm0, %v5001_v32  ;;  %4416 = vmatprep.subr.mxu1 %v4634_v9 }
 0x6ed   : > { %4418 = vmatprep.mubr.msk.f32.mxu1 %vm4635_vm1, %v4634_v9 }
 0x7a4   : > { %v1988_v55 = vpop.f32.mrf.mxu1  ;;  %v2062_v56 = vpop.f32.mrf.mxu0 }
 0x7a5   : > { %4412 = vmatpush3.xpose.msk.msra.mxu0 %vm573_vm4, %v2062_v56 }
 0x7a6   : > { %v4388_v57 = vpop.f32.mrf.mxu1  ;;  %v4399_v58 = vpop.f32.mrf.mxu0  ;;  %4421 = vmatprep.subr.mxu0 %v4634_v9 }
 0x7a7   : > { %v4105_v57 = vld [vmem:[%s5363_s8 + $0x48] sm:$0xff] }
 0x7a8   : > { %4414 = vmatmul.mubr.msk.f32.vlgmr.msra.gmra.mxu0 %vm573_vm4, %v1988_v55  ;;  %v4106_v55 = vld [vmem:[%s5363_s8 + $0x50] sm:$0xff] }
 0x7a9   : > { %4422 = vmatpush3.msra.mxu0 %v4086_v59  ;;  %4429 = vmatprep.mubr.msk.f32.mxu0 %vm4635_vm1, %v4634_v9  ;;  %v4104_v59 = vld [vmem:[%s5363_s8 + $0x40] sm:$0xff] }
 0x7aa   : > { %4423 = vmatprep.subr.mxu0 %v4634_v9 }
 0x7ab   : > { %4424 = vmatpush3.msra.mxu0 %v4085_v60 }
 0x7ac   : > { %v2136_v62 = vpop.f32.mrf.mxu1  ;;  %4425 = vmatprep.subr.mxu0 %v4634_v9 }
 0x7ad   : > { %4417 = vmatpush3.msra.mxu1 %v2136_v62  ;;  %4426 = vmatpush3.msra.mxu0 %v4084_v61  ;;  %v4117_v61 = vld [vmem:[%s5365_s10 + $0x58] sm:$0xff]  ;;  %v4116_v62 = vld [vmem:[%s5365_s10 + $0x50] sm:$0xff] }
 0x7ae   : > { %v4410_v1 = vpop.f32.mrf.mxu1  ;;  %4427 = vmatprep.subr.mxu0 %v4634_v9  ;;  %4432 = vmatprep.subr.mxu1 %v4634_v9 }
 0x7af   : > { %4428 = vmatpush3.msra.mxu0 %v4083_v0  ;;  %v4115_v0 = vld [vmem:[%s5365_s10 + $0x48] sm:$0xff] }
 0x7b0   : > { %4430 = vmatmul.mubr.msk.f32.vlgmr.msra.gmra.mxu0 %vm534_vm0, %v5001_v32  ;;  %4443 = vmatprep.subr.mxu0 %v4634_v9 }
 0x7b1   : > { %4444 = vmatpush3.msra.mxu0 %v4096_v39  ;;  %4451 = vmatprep.mubr.msk.f32.mxu0 %vm4635_vm1, %v4634_v9  ;;  %v4114_v39 = vld [vmem:[%s5365_s10 + $0x40] sm:$0xff] }
 0x7b2   : > { %4445 = vmatprep.subr.mxu0 %v4634_v9 }
 0x7b3   : > { %4446 = vmatpush3.msra.mxu0 %v4095_v3 }
 0x7b4   : > { %4447 = vmatprep.subr.mxu0 %v4634_v9 }
 0x7b5   : > { %4448 = vmatpush3.msra.mxu0 %v4094_v4 }
 0x7b6   : > { %4449 = vmatprep.subr.mxu0 %v4634_v9 }
 0x7b7   : > { %4450 = vmatpush3.msra.mxu0 %v4093_v5 }
 0x7b8   : > { %4452 = vmatmul.mubr.msk.f32.vlgmr.msra.gmra.mxu0 %vm534_vm0, %v5001_v32  ;;  %4464 = vmatprep.subr.mxu0 %v4634_v9 }
 0x7b9   : > { %4466 = vmatprep.mubr.msk.f32.mxu0 %vm4635_vm1, %v4634_v9  ;;  %4465 = vmatpush3.msra.mxu0 %v4101_v50 }
 0x7ba   : > { %4474 = vmatprep.subr.mxu0 %v4634_v9 }
 0x868   : > { %v2212_v40 = vpop.f32.mrf.mxu0 }
 0x869   : > { %v2216_v6 = vmul.f32 0.35355338, %v2212_v40 }
 0x86a   : > { %v4415_v7 = vpop.f32.mrf.mxu0 }
 0x86b   : > { %v2223_v8 = vadd.f32 %v5081_v44, %v2216_v6 }
 0x86d   : > { %v2224_v45 = vsel %vm573_vm4, %v2223_v8, -inf }
 0x86e   : > { %2225 = vmax.xlane.f32.xlu0 %v2224_v45 }
 0x870   : > { %v2380_v10 = vpop.f32.mrf.mxu0 }
 0x872   : > { %v4431_v11 = vpop.f32.mrf.mxu0 }
 0x878   : > { %v2530_v12 = vpop.f32.mrf.mxu0 }
 0x87a   : > { %v4453_v13 = vpop.f32.mrf.mxu0 }
 0x8f7   : > { %v2226_v15 = vpop.xlane.xlu0 %2225 }
 0x8f8   : > { %v2227_v48 = vsub.f32 %v2223_v8, %v2226_v15 }
 0x8fa   : > { %v2228_v16 = vmul.f32 1.442695, %v2227_v48 }
 0x8fc   : > { %4608 = vpow2.f32 %v2228_v16 }
 0x909   : > { %v4609_v17 = vpop.eup %4608 }
 0x90a   : > { %v2230_v18 = vsel %vm573_vm4, %v4609_v17, 0.0 }
 0x90b   : > { %2231 = vadd.xlane.f32.xlu1 %v2230_v18 }
 0x994   : > { %v2232_v19 = vpop.xlane.xlu1 %2231 }
 0x995   : > { %4610 = vrcp.f32 %v2232_v19  ;;  %v4122_v19 = vld [vmem:[%s5366_s11 + $0x10] sm:$0xff] }
 0x9a2   : > { %v4611_v14 = vpop.eup %4610 }
 0x9a3   : > { %v2234_v49 = vmul.f32 %v4611_v14, %v4609_v17 }
 0x9a5   : > { %4419 = vmatmul.mubr.msk.f32.vlgmr.msra.gmra.mxu1 %vm573_vm4, %v2234_v49 }
 0x9a6   : > { %4433 = vmatpush3.msra.mxu1 %v4091_v63  ;;  %4440 = vmatprep.mubr.msk.f32.mxu1 %vm4635_vm1, %v4634_v9 }
 0x9a7   : > { %4434 = vmatprep.subr.mxu1 %v4634_v9 }
 0x9a8   : > { %4435 = vmatpush3.msra.mxu1 %v4090_v20  ;;  %v4127_v20 = vld [vmem:[%s5363_s8 + $0x78] sm:$0xff] }
 0x9a9   : > { %4436 = vmatprep.subr.mxu1 %v4634_v9 }
 0x9aa   : > { %4437 = vmatpush3.msra.mxu1 %v4089_v21  ;;  %v4126_v21 = vld [vmem:[%s5363_s8 + $0x70] sm:$0xff] }
 0x9ab   : > { %4438 = vmatprep.subr.mxu1 %v4634_v9 }
 0x9ac   : > { %4439 = vmatpush3.msra.mxu1 %v4088_v23  ;;  %v4125_v23 = vld [vmem:[%s5363_s8 + $0x68] sm:$0xff] }
 0x9ad   : > { %4441 = vmatmul.mubr.msk.f32.vlgmr.msra.gmra.mxu1 %vm534_vm0, %v5001_v32  ;;  %4454 = vmatprep.subr.mxu1 %v4634_v9 }
 0x9ae   : > { %4456 = vmatprep.mubr.msk.f32.mxu1 %vm4635_vm1, %v4634_v9 }
 0xa65   : > { %v2304_v24 = vpop.f32.mrf.mxu1 }
 0xa67   : > { %v4420_v28 = vpop.f32.mrf.mxu1 }
 0xa68   : > { %v4137_v28 = vld [vmem:[%s5365_s10 + $0x78] sm:$0xff] }
 0xa6d   : > { %v2455_v31 = vpop.f32.mrf.mxu1 }
 0xa6e   : > { %4455 = vmatpush3.xpose.msk.msra.mxu1 %vm573_vm4, %v2455_v31  ;;  %v4136_v31 = vld [vmem:[%s5365_s10 + $0x70] sm:$0xff] }
 0xa6f   : > { %v4442_v35 = vpop.f32.mrf.mxu1  ;;  %4459 = vmatprep.subr.mxu1 %v4634_v9 }
 0xa70   : > { %v4135_v35 = vld [vmem:[%s5365_s10 + $0x68] sm:$0xff] }
 0xa71   : > { %4457 = vmatmul.mubr.msk.f32.vlgmr.msra.gmra.mxu1 %vm573_vm4, %v2380_v10 }
 0xa72   : > { %4460 = vmatpush3.msra.mxu1 %v2530_v12  ;;  %4461 = vmatprep.mubr.msk.f32.mxu1 %vm4635_vm1, %v4634_v9 }
 0xa73   : > { %4469 = vmatprep.subr.mxu1 %v4634_v9 }
 0xb31   : > { %v2606_v36 = vpop.f32.mrf.mxu1 }
 0xb32   : > { %v2610_v37 = vmul.f32 0.35355338, %v2606_v36  ;;  %v4134_v36 = vld [vmem:[%s5365_s10 + $0x60] sm:$0xff] }
 0xb33   : > { %v4458_v27 = vpop.f32.mrf.mxu1 }
 0xb34   : > { %v2611_v38 = vadd.f32 %v5081_v44, %v2610_v37  ;;  %v4132_v37 = vld [vmem:[%s5364_s9 + $0x78] sm:$0xff] }
 0xb36   : > { %v2612_v41 = vsel %vm573_vm4, %v2611_v38, -inf }
 0xb37   : > { %2613 = vmax.xlane.f32.xlu0 %v2612_v41 }
 0xbc0   : > { %v2614_v42 = vpop.xlane.xlu0 %2613 }
 0xbc1   : > { %v2615_v43 = vsub.f32 %v2611_v38, %v2614_v42  ;;  %v4131_v38 = vld [vmem:[%s5364_s9 + $0x70] sm:$0xff]  ;;  %v4130_v42 = vld [vmem:[%s5364_s9 + $0x68] sm:$0xff] }
 0xbc3   : > { %v2616_v46 = vmul.f32 1.442695, %v2615_v43  ;;  %v4129_v43 = vld [vmem:[%s5364_s9 + $0x60] sm:$0xff] }
 0xbc5   : > { %4612 = vpow2.f32 %v2616_v46 }
 0xbd2   : > { %v4613_v2 = vpop.eup %4612 }
 0xbd3   : > { %v2618_v47 = vsel %vm573_vm4, %v4613_v2, 0.0 }
 0xbd4   : > { %2619 = vadd.xlane.f32.xlu1 %v2618_v47 }
 0xc5d   : > { %v2620_v51 = vpop.xlane.xlu1 %2619 }
 0xc5e   : > { %4614 = vrcp.f32 %v2620_v51 }
 0xc6b   : > { %v4615_v52 = vpop.eup %4614 }
 0xc6c   : > { %v2622_v25 = vmul.f32 %v4615_v52, %v4613_v2 }
 0xc6e   : > { %4462 = vmatmul.mubr.msk.f32.vlgmr.msra.gmra.mxu1 %vm573_vm4, %v2622_v25 }
 0xc6f   : > { %4470 = vmatpush3.msra.mxu1 %v2308_v26  ;;  %4471 = vmatprep.mubr.msk.f32.mxu1 %vm4635_vm1, %v4634_v9 }
 0xc70   : > { %4485 = vmatprep.subr.mxu1 %v4634_v9 }
 0xc72   : > { %4472 = vmatmul.mubr.msk.f32.vlgmr.msra.gmra.mxu1 %vm573_vm4, %v2304_v24  ;;  %v4124_v24 = vld [vmem:[%s5363_s8 + $0x60] sm:$0xff] }
 0xc73   : > { %4486 = vmatpush3.msra.mxu1 %v4112_v29  ;;  %4493 = vmatprep.mubr.msk.f32.mxu1 %vm4635_vm1, %v4634_v9 }
 0xc74   : > { %4487 = vmatprep.subr.mxu1 %v4634_v9 }
 0xc75   : > { %4488 = vmatpush3.msra.mxu1 %v4111_v30 }
 0xc76   : > { %4489 = vmatprep.subr.mxu1 %v4634_v9 }
 0xc77   : > { %4490 = vmatpush3.msra.mxu1 %v4110_v33 }
 0xc78   : > { %4491 = vmatprep.subr.mxu1 %v4634_v9 }
 0xc79   : > { %4492 = vmatpush3.msra.mxu1 %v4109_v34 }
 0xc7a   : > { %4494 = vmatmul.mubr.msk.f32.vlgmr.msra.gmra.mxu1 %vm534_vm0, %v5001_v32  ;;  %4507 = vmatprep.subr.mxu1 %v4634_v9 }
 0xc7b   : > { %4509 = vmatprep.mubr.msk.f32.mxu1 %vm4635_vm1, %v4634_v9 }
 0xd2e   : > { %v2692_v54 = vpop.f32.mrf.mxu1 }
 0xd2f   : > { %4467 = vmatmul.mubr.msk.f32.vlgmr.msra.gmra.mxu0 %vm573_vm4, %v2692_v54 }
 0xd30   : > { %4475 = vmatpush3.msra.mxu0 %v4107_v53  ;;  %v4463_v56 = vpop.f32.mrf.mxu1  ;;  %4482 = vmatprep.mubr.msk.f32.mxu0 %vm4635_vm1, %v4634_v9 }
 0xd31   : > { %4476 = vmatprep.subr.mxu0 %v4634_v9 }
 0xd32   : > { %4477 = vmatpush3.msra.mxu0 %v4106_v55  ;;  %v5165_v58 = vpop.f32.mrf.mxu1 }
 0xd33   : > { %4478 = vmatprep.subr.mxu0 %v4634_v9 }
 0xd34   : > { %4479 = vmatpush3.msra.mxu0 %v4105_v57  ;;  %v4473_v60 = vpop.f32.mrf.mxu1 }
 0xd35   : > { %4480 = vmatprep.subr.mxu0 %v4634_v9 }
 0xd36   : > { %4481 = vmatpush3.msra.mxu0 %v4104_v59 }
 0xd37   : > { %4483 = vmatmul.mubr.msk.f32.vlgmr.msra.gmra.mxu0 %vm534_vm0, %v5001_v32  ;;  %4496 = vmatprep.subr.mxu0 %v4634_v9 }
 0xd38   : > { %4497 = vmatpush3.msra.mxu0 %v4117_v61  ;;  %4504 = vmatprep.mubr.msk.f32.mxu0 %vm4635_vm1, %v4634_v9 }
 0xd39   : > { %4498 = vmatprep.subr.mxu0 %v4634_v9 }
 0xd3a   : > { %v2990_v1 = vpop.f32.mrf.mxu1  ;;  %4499 = vmatpush3.msra.mxu0 %v4116_v62 }
 0xd3b   : > { %4500 = vmatprep.subr.mxu0 %v4634_v9  ;;  %4508 = vmatpush3.xpose.msk.msra.mxu1 %vm573_vm4, %v2990_v1 }
 0xd3c   : > { %v4495_v3 = vpop.f32.mrf.mxu1  ;;  %4501 = vmatpush3.msra.mxu0 %v4115_v0  ;;  %4512 = vmatprep.subr.mxu1 %v4634_v9 }
 0xd3d   : > { %4502 = vmatprep.subr.mxu0 %v4634_v9 }
 0xd3e   : > { %4503 = vmatpush3.msra.mxu0 %v4114_v39 }
 0xd3f   : > { %4505 = vmatmul.mubr.msk.f32.vlgmr.msra.gmra.mxu0 %vm534_vm0, %v5001_v32  ;;  %4517 = vmatprep.subr.mxu0 %v4634_v9 }
 0xd40   : > { %4519 = vmatprep.mubr.msk.f32.mxu0 %vm4635_vm1, %v4634_v9  ;;  %4518 = vmatpush3.msra.mxu0 %v4122_v19  ;;  %v4145_v19 = vld [vmem:[%s5358_s3 + $0x3] ss:$0 sm:$0xff] }
 0xd41   : > { %4533 = vmatprep.subr.mxu0 %v4634_v9 }
 0xdef   : > { %v5199_v4 = vpop.f32.mrf.mxu0 }
 0xdf0   : > { %v2841_v51 = vadd.f32 %v5165_v58, %v5199_v4 }
 0xdf1   : > { %v4468_v5 = vpop.f32.mrf.mxu0 }
 0xdf7   : > { %v2915_v40 = vpop.f32.mrf.mxu0 }
 0xdf8   : > { %4510 = vmatmul.mubr.msk.f32.vlgmr.msra.gmra.mxu1 %vm573_vm4, %v2915_v40 }
 0xdf9   : > { %v4484_v6 = vpop.f32.mrf.mxu0  ;;  %4514 = vmatprep.mubr.msk.f32.mxu1 %vm4635_vm1, %v4634_v9 }
 0xdff   : > { %v3065_v7 = vpop.f32.mrf.mxu0 }
 0xe00   : > { %4513 = vmatpush3.msra.mxu1 %v3065_v7 }
 0xe01   : > { %v4506_v8 = vpop.f32.mrf.mxu0  ;;  %4522 = vmatprep.subr.mxu1 %v4634_v9 }
 0xeb8   : > { %v3141_v45 = vpop.f32.mrf.mxu1 }
 0xeb9   : > { %v3145_v10 = vmul.f32 0.35355338, %v3141_v45 }
 0xeba   : > { %v4511_v11 = vpop.f32.mrf.mxu1 }
 0xebb   : > { %v3146_v12 = vadd.f32 %v5081_v44, %v3145_v10  ;;  %v3805_v11 = vld [vmem:[%s5367_s12 + $0x18] sm:$0xff] }
 0xebd   : > { %v3147_v13 = vsel %vm573_vm4, %v3146_v12, -inf }
 0xebe   : > { %3148 = vmax.xlane.f32.xlu0 %v3147_v13  ;;  %v3802_v13 = vld [vmem:[%s5367_s12] sm:$0xff] }
 0xf47   : > { %v3149_v15 = vpop.xlane.xlu0 %3148 }
 0xf48   : > { %v3150_v48 = vsub.f32 %v3146_v12, %v3149_v15  ;;  %v3803_v12 = vld [vmem:[%s5367_s12 + $0x8] sm:$0xff]  ;;  %v3890_v15 = vld [vmem:[%s5369_s14 + $0x18] sm:$0xff] }
 0xf4a   : > { %v3151_v16 = vmul.f32 1.442695, %v3150_v48 }
 0xf4c   : > { %4616 = vpow2.f32 %v3151_v16 }
 0xf59   : > { %v4617_v17 = vpop.eup %4616 }
 0xf5a   : > { %v3153_v18 = vsel %vm573_vm4, %v4617_v17, 0.0 }
 0xf5b   : > { %3154 = vadd.xlane.f32.xlu1 %v3153_v18 }
 0xfe4   : > { %v3155_v14 = vpop.xlane.xlu1 %3154 }
 0xfe5   : > { %4618 = vrcp.f32 %v3155_v14 }
 0xff2   : > { %v4619_v49 = vpop.eup %4618 }
 0xff3   : > { %v3157_v63 = vmul.f32 %v4619_v49, %v4617_v17  ;;  %v4147_v49 = vld [vmem:[%s5359_s4 + $0x3] ss:$0 sm:$0xff] }
 0xff5   : > { %4515 = vmatmul.mubr.msk.f32.vlgmr.msra.gmra.mxu1 %vm573_vm4, %v3157_v63 }
 0xff6   : > { %4523 = vmatpush3.msra.mxu1 %v4127_v20  ;;  %4530 = vmatprep.mubr.msk.f32.mxu1 %vm4635_vm1, %v4634_v9 }
 0xff7   : > { %4524 = vmatprep.subr.mxu1 %v4634_v9 }
 0xff8   : > { %4525 = vmatpush3.msra.mxu1 %v4126_v21  ;;  %v3889_v21 = vld [vmem:[%s5369_s14 + $0x10] sm:$0xff] }
 0xff9   : > { %4526 = vmatprep.subr.mxu1 %v4634_v9 }
 0xffa   : > { %4527 = vmatpush3.msra.mxu1 %v4125_v23  ;;  %v3888_v23 = vld [vmem:[%s5369_s14 + $0x8] sm:$0xff] }
 0xffb   : > { %4528 = vmatprep.subr.mxu1 %v4634_v9 }
 0xffc   : > { %4529 = vmatpush3.msra.mxu1 %v4124_v24  ;;  %v3887_v24 = vld [vmem:[%s5369_s14] sm:$0xff] }
 0xffd   : > { %4531 = vmatmul.mubr.msk.f32.vlgmr.msra.gmra.mxu1 %vm534_vm0, %v5001_v32  ;;  %4544 = vmatprep.subr.mxu1 %v4634_v9 }
 0xffe   : > { %4545 = vmatpush3.msra.mxu1 %v4137_v28  ;;  %4552 = vmatprep.mubr.msk.f32.mxu1 %vm4635_vm1, %v4634_v9  ;;  %v4148_v28 = vld [vmem:[%s5368_s13] ss:$0 sm:$0xff] }
 0xfff   : > { %4546 = vmatprep.subr.mxu1 %v4634_v9 }
0x1000   : > { %4547 = vmatpush3.msra.mxu1 %v4136_v31 }
0x1001   : > { %4548 = vmatprep.subr.mxu1 %v4634_v9 }
0x1002   : > { %4549 = vmatpush3.msra.mxu1 %v4135_v35 }
0x1003   : > { %4550 = vmatprep.subr.mxu1 %v4634_v9 }
0x1004   : > { %4551 = vmatpush3.msra.mxu1 %v4134_v36 }
0x1005   : > { %4553 = vmatmul.mubr.msk.f32.vlgmr.msra.gmra.mxu1 %vm534_vm0, %v5001_v32  ;;  %4565 = vmatprep.subr.mxu1 %v4634_v9 }
0x1006   : > { %4567 = vmatprep.mubr.msk.f32.mxu1 %vm4635_vm1, %v4634_v9 }
0x10b5   : > { %v3227_v27 = vpop.f32.mrf.mxu1 }
0x10b6   : > { %4520 = vmatmul.mubr.msk.f32.vlgmr.msra.gmra.mxu0 %vm573_vm4, %v3227_v27  ;;  %v4150_v27 = vld [vmem:[%s5370_s15] ss:$0 sm:$0xff] }
0x10b7   : > { %4534 = vmatpush3.msra.mxu0 %v4132_v37  ;;  %v4516_v41 = vpop.f32.mrf.mxu1  ;;  %4541 = vmatprep.mubr.msk.f32.mxu0 %vm4635_vm1, %v4634_v9 }
0x10b8   : > { %4535 = vmatprep.subr.mxu0 %v4634_v9 }
0x10b9   : > { %4536 = vmatpush3.msra.mxu0 %v4131_v38 }
0x10ba   : > { %4537 = vmatprep.subr.mxu0 %v4634_v9 }
0x10bb   : > { %4538 = vmatpush3.msra.mxu0 %v4130_v42 }
0x10bc   : > { %4539 = vmatprep.subr.mxu0 %v4634_v9 }
0x10bd   : > { %v3378_v46 = vpop.f32.mrf.mxu1  ;;  %4540 = vmatpush3.msra.mxu0 %v4129_v43 }
0x10be   : > { %4542 = vmatmul.mubr.msk.f32.vlgmr.msra.gmra.mxu0 %vm534_vm0, %v5001_v32  ;;  %4555 = vmatprep.subr.mxu0 %v4634_v9 }
0x10bf   : > { %v4532_v2 = vpop.f32.mrf.mxu1  ;;  %4557 = vmatprep.mubr.msk.f32.mxu0 %vm4635_vm1, %v4634_v9 }
0x10c5   : > { %v3528_v47 = vpop.f32.mrf.mxu1 }
0x10c7   : > { %v4554_v50 = vpop.f32.mrf.mxu1 }
0x1176   : > { %v3302_v52 = vpop.f32.mrf.mxu0 }
0x1177   : > { %v3306_v25 = vadd.f32 %v3302_v52, %v2841_v51 }
0x1178   : > { %v4521_v26 = vpop.f32.mrf.mxu0 }
0x117e   : > { %v3453_v29 = vpop.f32.mrf.mxu0 }
0x117f   : > { %4556 = vmatpush3.xpose.msk.msra.mxu0 %vm573_vm4, %v3453_v29 }
0x1180   : > { %v4543_v30 = vpop.f32.mrf.mxu0  ;;  %4560 = vmatprep.subr.mxu0 %v4634_v9 }
0x1182   : > { %4558 = vmatmul.mubr.msk.f32.vlgmr.msra.gmra.mxu0 %vm573_vm4, %v3378_v46 }
0x1183   : > { %4561 = vmatpush3.msra.mxu0 %v3528_v47  ;;  %4562 = vmatprep.mubr.msk.f32.mxu0 %vm4635_vm1, %v4634_v9 }
0x1184   : > { %4570 = vmatprep.subr.mxu0 %v4634_v9 }
0x1242   : > { %v3604_v32 = vpop.f32.mrf.mxu0 }
0x1243   : > { %v3608_v33 = vmul.f32 0.35355338, %v3604_v32 }
0x1244   : > { %v4559_v34 = vpop.f32.mrf.mxu0 }
0x1245   : > { %v3609_v53 = vadd.f32 %v5081_v44, %v3608_v33  ;;  %v4142_v44 = vld [vmem:[%s5366_s11 + $0x18] sm:$0xff] }
0x1246   : > { %4566 = vmatpush3.msra.mxu1 %v4142_v44 }
0x1247   : > { %v3610_v54 = vsel %vm573_vm4, %v3609_v53, -inf  ;;  %4581 = vmatprep.subr.mxu1 %v4634_v9 }
0x1248   : > { %3611 = vmax.xlane.f32.xlu0 %v3610_v54 }
0x12d1   : > { %v3612_v55 = vpop.xlane.xlu0 %3611 }
0x12d2   : > { %v3613_v56 = vsub.f32 %v3609_v53, %v3612_v55 }
0x12d4   : > { %v3614_v57 = vmul.f32 1.442695, %v3613_v56 }
0x12d6   : > { %4620 = vpow2.f32 %v3614_v57 }
0x12e3   : > { %v4621_v58 = vpop.eup %4620 }
0x12e4   : > { %v3616_v59 = vsel %vm573_vm4, %v4621_v58, 0.0 }
0x12e5   : > { %3617 = vadd.xlane.f32.xlu1 %v3616_v59 }
0x136e   : > { %v3618_v60 = vpop.xlane.xlu1 %3617 }
0x136f   : > { %4622 = vrcp.f32 %v3618_v60 }
0x137c   : > { %v4623_v61 = vpop.eup %4622 }
0x137d   : > { %v3620_v62 = vmul.f32 %v4623_v61, %v4621_v58 }
0x137f   : > { %4563 = vmatmul.mubr.msk.f32.vlgmr.msra.gmra.mxu0 %vm573_vm4, %v3620_v62 }
0x1380   : > { %4578 = vmatprep.mubr.msk.f32.mxu0 %vm4635_vm1, %v4634_v9  ;;  %4571 = vmatpush3.msra.mxu0 %v3805_v11 }
0x1381   : > { %4572 = vmatprep.subr.mxu0 %v4634_v9 }
0x143f   : > { %v3690_v0 = vpop.f32.mrf.mxu0 }
0x1440   : > { %4568 = vmatmul.mubr.msk.f32.vlgmr.msra.gmra.mxu1 %vm573_vm4, %v3690_v0 }
0x1441   : > { %v4564_v1 = vpop.f32.mrf.mxu0  ;;  %4589 = vmatprep.mubr.msk.f32.mxu1 %vm4635_vm1, %v4634_v9  ;;  %4582 = vmatpush3.msra.mxu1 %v3890_v15 }
0x1442   : > { %4583 = vmatprep.subr.mxu1 %v4634_v9 }
0x1443   : > { %4584 = vmatpush3.msra.mxu1 %v3889_v21 }
0x1444   : > { %4585 = vmatprep.subr.mxu1 %v4634_v9 }
0x1445   : > { %4586 = vmatpush3.msra.mxu1 %v3888_v23 }
0x1446   : > { %4587 = vmatprep.subr.mxu1 %v4634_v9 }
0x1447   : > { %4588 = vmatpush3.msra.mxu1 %v3887_v24 }
0x1500   : > { %v3765_v39 = vpop.f32.mrf.mxu1 }
0x1501   : > { %v3769_v3 = vadd.f32 %v3765_v39, %v3306_v25 }
0x1502   : > { %v4569_v4 = vpop.f32.mrf.mxu1 }
0x1503   : > { %v3770_v5 = vadd.f32 %v3769_v3, %v4957_v22  ;;  %v3804_v22 = vld [vmem:[%s5367_s12 + $0x10] sm:$0xff] }
0x1504   : > { %4573 = vmatpush3.msra.mxu0 %v3804_v22 }
0x1505   : > { %v3771_v40 = vsel %vm534_vm0, %v3770_v5, 0.0  ;;  %4574 = vmatprep.subr.mxu0 %v4634_v9 }
0x1506   : > { %3772 = vadd.xlane.f32.xlu0 %v3771_v40  ;;  %4575 = vmatpush3.msra.mxu0 %v3803_v12 }
0x1507   : > { %4576 = vmatprep.subr.mxu0 %v4634_v9 }
0x1508   : > { %4577 = vmatpush3.msra.mxu0 %v3802_v13 }
0x158f   : > { %v3773_v6 = vpop.xlane.xlu0 %3772 }
0x1590   : > { %v3774_v7 = vmul.f32 0.03125, %v3773_v6 }
0x1592   : > { %v3775_v8 = vsub.f32 %v3770_v5, %v3774_v7 }
0x1594   : > { %v3776_v45 = vmul.f32 %v3775_v8, %v3775_v8 }
0x1596   : > { %v3777_v10 = vsel %vm534_vm0, %v3776_v45, 0.0 }
0x1597   : > { %3778 = vadd.xlane.f32.xlu1 %v3777_v10 }
0x1620   : > { %v3779_v48 = vpop.xlane.xlu1 %3778 }
0x1621   : > { %v3780_v16 = vmul.f32 0.03125, %v3779_v48 }
0x1623   : > { %v3781_v17 = vadd.f32 1e-05, %v3780_v16 }
0x1625   : > { %4624 = vrsqrt.f32 %v3781_v17 }
0x1632   : > { %v4625_v18 = vpop.eup %4624 }
0x1633   : > { %v3783_v14 = vmul.f32 %v4625_v18, %v3775_v8 }
0x1635   : > { %v3792_v63 = vmul.f32 %v4145_v19, %v3783_v14 }
0x1637   : > { %v3801_v20 = vadd.f32 %v4147_v49, %v3792_v63 }
0x1639   : > { %4579 = vmatmul.mubr.msk.f32.vlgmr.msra.gmra.mxu0 %vm534_vm0, %v3801_v20 }
0x16f9   : > { %v3882_v31 = vpop.f32.mrf.mxu0 }
0x16fa   : > { %v3883_v35 = vadd.f32 %v4148_v28, %v3882_v31 }
0x16fb   : > { %v4580_v36 = vpop.f32.mrf.mxu0 }
0x16fc   : > { %v3886_v37 = vmax.f32 %v3883_v35, 0.0 }
0x16fe   : > { %4590 = vmatmul.mubr.msk.f32.vlgmr.msra.gmra.mxu1 %vm534_vm0, %v3886_v37 }
0x17be   : > { %v3967_v9 = vpop.f32.mrf.mxu1 }
0x17bf   : > { %v3968_v38 = vadd.f32 %v4150_v27, %v3967_v9 }
0x17c0   : > { %v4591_v41 = vpop.f32.mrf.mxu1 }
0x17c1   : > { %v3971_v42 = vadd.f32 %v3968_v38, %v3770_v5 }
0x17c3   : > { %3972 = vst.msk [vmem:[%s530_s0] sm:$0xff] %vm534_vm0, %v3971_v42 }
0x17c4 PF: > { %s26_s21 = sadd.s32 1, %s4632_s21  }
0x17c5   : > { %p23_p4 = scmp.ge.s32.totalorder %s26_s21, 4  }
0x17c7   :  { %25 = sbr.rel (!%p23_p4) target bundleno = 2 (0x2), region = 138 }

// kernel: qanet_forward.31
= control target key start
LH: loop header
LB: loop body
LE: loop exit
PB: predicated region body
PF: predicated region fallthrough
CT: control target
= control target key end

     0   :  { %s4615_s19 = smov 0   ;;  %s5177_s0 = inlined_call_operand.vmem [shape: f32[2,16,32], index: 0, kind: input, shape index: {}]   ;;  %s5178_s1 = inlined_call_operand.vmem [shape: f32[2,8,32], index: 1, kind: input, shape index: {}]   ;;  %s5179_s2 = inlined_call_operand.vmem [shape: f32[2,1,16], index: 2, kind: input, shape index: {}]   ;;  %s5180_s3 = inlined_call_operand.vmem [shape: f32[2,1,8], index: 3, kind: input, shape index: {}]   ;;  %s5181_s4 = inlined_call_operand.vmem [shape: f32[1,32], index: 4, kind: input, shape index: {}]   ;;  %s5182_s5 = inlined_call_operand.vmem [shape: f32[1,32], index: 5, kind: input, shape index: {}]   ;;  %s5183_s6 = inlined_call_operand.vmem [shape: f32[1,32], index: 6, kind: input, shape index: {}]   ;;  %s5184_s7 = inlined_call_operand.<no memory space> [shape: f32[1,1], index: 7, kind: input, shape index: {}]   ;;  %s5185_s8 = inlined_call_operand.vmem [shape: f32[4,7,32], index: 8, kind: input, shape index: {}]   ;;  %s5186_s9 = inlined_call_operand.vmem [shape: f32[4,32,32], index: 9, kind: input, shape index: {}]   ;;  %s5187_s10 = inlined_call_operand.vmem [shape: f32[1,32], index: 10, kind: input, shape index: {}]   ;;  %s5188_s11 = inlined_call_operand.vmem [shape: f32[2,16,32], index: 11, kind: output, shape index: {}]  }
   0x1   :  { %v16_v0 = vstv %s5184_s7 }
   0x2   :  { %17 = vst [vmem:[#allocation2] sm:$0x1] %v16_v0 }
   0x3 LB: > { %s3963_s20 = sadd.s32 4294967295, %s4547_s19   ;;  %p3967_p0 = scmp.ge.s32.totalorder %s4547_s19, 1  ;;  %s4547_s19 = sphi %s4615_s19, %s23_s19  }
   0x4   : > { %p364_p1 = scmp.lt.s32.totalorder %s4547_s19, 3 }
   0x6   : > { %p365_p2 = pnand %p3967_p0, %p364_p1 }
   0x7   : > { %p414_p3 = scmp.lt.s32.totalorder (!%p365_p2), %s3963_s20, 1 }
   0x8   : > { %368 = sbr.rel (%p365_p2) target bundleno = 1804 (0x70c), region = 64 }
   0xd   : > { %v606_v1 = vlaneseq  ;;  %v4549_v2 = vmov 0.0   ;;  %vm4550_vm0 = vmmov 0   ;;  %s5190_s20 = smov (!%p414_p3, %s3963_s20), 1  ;;  %v4551_v4 = vmov 0   ;;  %v3973_v5 = vld [vmem:[%s5183_s6] ss:$0 sm:$0xff] }
   0xe   : > { %4240 = vmatprep.subr.mxu1 %v4549_v2  ;;  %4244 = vmatprep.mubr.msk.f32.mxu1 %vm4550_vm0, %v4549_v2  ;;  %s4076_s7 = sshll.u32 %s5190_s20, 4  ;;  %s3970_s21 = sshll.u32 %s5190_s20, 3  ;;  %vm449_vm1 = vcmask 261120   ;;  %v604_v7 = vld [vmem:[%s5181_s4] sm:$0x1]  ;;  %vm844_vm2 = vcmask 130048  }
   0xf   : > { %v4629_v3 = vshrl.u32 %v606_v1, 7  ;;  %4527 = vset.pattern.permute.xlu1 %v4551_v4  ;;  %4528 = vset.pattern.permute.xlu0 %v4551_v4  ;;  %s418_s26 = scalar_lea.vmem %s5177_s0, %s4076_s7  ;;  %s422_s29 = scalar_lea.vmem %s5178_s1, %s3970_s21  ;;  %v619_v8 = vld [vmem:[%s5182_s5] sm:$0x1]  ;;  %vm814_vm3 = vcmask 64512  }
  0x10   : > { %v4653_v9 = vld [vmem:[%s418_s26] sm:$0xff]  ;;  %v4655_v10 = vld [vmem:[%s418_s26 + $0x8] sm:$0xff]  ;;  %s425_s17 = scalar_lea.vmem %s5179_s2, %s5190_s20  ;;  %s428_s22 = scalar_lea.vmem %s5180_s3, %s5190_s20 }
  0x11   : > { %v4637_v6 = vsub.s32 0, %v4629_v3  ;;  %v436_v11 = vld [vmem:[%s422_s29] sm:$0xff]  ;;  %v448_v14 = vmul.f32 %v3973_v5, %v4655_v10  ;;  %v447_v15 = vmul.f32 %v3973_v5, %v4653_v9  ;;  %s433_s14 = scalar_lea.vmem %s5188_s11, %s4076_s7 }
  0x12   : > { %4235 = vmatprep.subr.msk.mxu0 %vm449_vm1, %v436_v11  ;;  %v3985_v22 = vld [vmem:[#allocation2] ss:$0 sm:$0xff] }
  0x13   : > { %v624_v12 = vrot.slane %v619_v8, %v4637_v6  ;;  %v609_v13 = vrot.slane %v604_v7, %v4637_v6  ;;  %4236 = vmatpush3.xpose.msk.msra.mxu0 %vm449_vm1, %v436_v11  ;;  %4241 = vmatpush3.xpose.msk.msra.mxu1 %vm449_vm1, %v448_v14  ;;  %v3987_v42 = vld [vmem:[%s425_s17] ss:$0 sm:$0xff] }
  0x14   : > { %4237 = vmatprep.mubr.msk.f32.mxu0 %vm449_vm1, %v447_v15  ;;  %4247 = vmatprep.subr.mxu0 %v4549_v2  ;;  %v3986_v46 = vld [vmem:[%s428_s22] ss:$0 sm:$0xff] }
  0x15   : > { %v626_v16 = vmul.f32 %v624_v12, %v436_v11  ;;  %v612_v17 = vmul.f32 %v609_v13, %v4655_v10  ;;  %v611_v18 = vmul.f32 %v609_v13, %v4653_v9  ;;  %4242 = vmatprep.subr.mxu1 %v4549_v2 }
  0x16   : > { %4238 = vmatmul.mubr.msk.f32.vlgmr.msra.gmra.mxu0 %vm449_vm1, %v448_v14 }
  0x17   : > { %v627_v19 = vsel %vm449_vm1, %v626_v16, 0.0  ;;  %v616_v20 = vsel %vm449_vm1, %v612_v17, 0.0  ;;  %4248 = vmatpush3.xpose.msk.msra.mxu0 %vm449_vm1, %v4655_v10  ;;  %4251 = vmatprep.mubr.msk.f32.mxu0 %vm4550_vm0, %v4549_v2  ;;  %v613_v21 = vsel %vm449_vm1, %v611_v18, 0.0  ;;  %v4706_v16 = vadd.s32 8, %v4629_v3 }
  0x18   : > { %628 = vadd.xlane.f32.xlu0 %v627_v19  ;;  %4243 = vmatpush3.xpose.msk.msra.mxu1 %vm449_vm1, %v447_v15  ;;  %v4709_v17 = vand.u32 127, %v606_v1  ;;  %v1111_v18 = vadd.s32 4294967293, %v4629_v3 }
  0x19   : > { %4249 = vmatprep.subr.mxu0 %v4549_v2  ;;  %4254 = vmatprep.subr.mxu1 %v4549_v2 }
  0x1a   : > { %617 = vadd.xlane.f32.xlu1 %v616_v20  ;;  %vm1113_vm4 = vcmp.eq.s32.totalorder %v4709_v17, %v1111_v18  ;;  %vm1396_vm14 = vcmp.eq.s32.totalorder %v4709_v17, %v4629_v3  ;;  %vm1397_vm15 = vcmp.eq.s32.totalorder %v4709_v17, %v4706_v16 }
  0x1b   : > { %4245 = vmatmul.mubr.msk.f32.vlgmr.msra.gmra.mxu1 %vm449_vm1, %v436_v11  ;;  %4250 = vmatpush3.xpose.msk.msra.mxu0 %vm449_vm1, %v4653_v9 }
  0x1c   : > { %614 = vadd.xlane.f32.xlu0 %v613_v21  ;;  %4255 = vmatpush3.xpose.msk.msra.mxu1 %vm449_vm1, %v436_v11  ;;  %v1112_v21 = vadd.s32 4294967293, %v4706_v16 }
  0x1d   : > { %4256 = vmatprep.mubr.msk.f32.mxu1 %vm4550_vm0, %v4549_v2  ;;  %4259 = vmatprep.subr.mxu0 %v436_v11 }
  0x1e   : > { %4252 = vmatmul.mubr.msk.f32.vlgmr.msra.gmra.mxu0 %vm449_vm1, %v604_v7  ;;  %vm1114_vm5 = vcmp.eq.s32.totalorder %v4709_v17, %v1112_v21 }
  0x1f   : > { %4257 = vmatmul.mubr.msk.f32.vlgmr.msra.gmra.mxu1 %vm449_vm1, %v619_v8  ;;  %4260 = vmatpush3.msra.mxu0 %v436_v11 }
  0x20   : > { %4269 = vmatprep.subr.mxu0 %v4655_v10 }
  0x2b   : > { %794 = vperm.xlu1 %4527, %v3985_v22   ;;  %v1301_v22 = vadd.s32 4294967295, %v4629_v3 }
  0x2d   : > { %vm1303_vm6 = vcmp.eq.s32.totalorder %v4709_v17, %v1301_v22 }
  0xa1   : > { %v629_v24 = vpop.xlane.xlu0 %628 }
  0xa3   : > { %v618_v27 = vpop.xlane.xlu1 %617 }
  0xa5   : > { %v615_v32 = vpop.xlane.xlu0 %614 }
  0xa7   : > { %v795_v39 = vpop.permute.xlu1 %794 }
  0xd6   : > { %v4239_v23 = vpop.f32.mrf.mxu0 }
  0xd8   : > { %v525_v26 = vpop.f32.mrf.mxu0 }
  0xdb   : > { %v600_v25 = vpop.f32.mrf.mxu1 }
  0xdd   : > { %v4246_v28 = vpop.f32.mrf.mxu1 }
  0xde   : > { %v704_v29 = vpop.f32.mrf.mxu0  ;;  %v4735_v28 = vsel %vm1303_vm6, 1.0, %v4549_v2 }
  0xdf   : > { %v802_v30 = vrot.slane %v704_v29, %v4637_v6  ;;  %v776_v31 = vpop.f32.mrf.mxu1  ;;  %v1490_v29 = vadd.s32 1, %v4706_v16 }
  0xe0   : > { %v783_v33 = vrot.slane %v776_v31, %v4637_v6  ;;  %v4253_v34 = vpop.f32.mrf.mxu0 }
  0xe1   : > { %v803_v35 = vadd.f32 %v802_v30, %v629_v24  ;;  %v4258_v36 = vpop.f32.mrf.mxu1  ;;  %v4719_v24 = vsel %vm1113_vm4, 1.0, %v4549_v2  ;;  %vm1492_vm9 = vcmp.eq.s32.totalorder %v4709_v17, %v1490_v29  ;;  %v1680_v34 = vadd.s32 3, %v4706_v16 }
  0xe2   : > { %v785_v37 = vadd.f32 %v783_v33, %v618_v27  ;;  %v784_v38 = vadd.f32 %v783_v33, %v615_v32  ;;  %v4731_v27 = vsel %vm1114_vm5, 1.0, %v4549_v2  ;;  %v4767_v32 = vsel %vm1492_vm9, 1.0, %v4549_v2 }
  0xe3   : > { %v804_v40 = vadd.f32 %v803_v35, %v600_v25  ;;  %v1302_v25 = vadd.s32 4294967295, %v4706_v16  ;;  %v1679_v33 = vadd.s32 3, %v4629_v3  ;;  %vm1682_vm11 = vcmp.eq.s32.totalorder %v4709_v17, %v1680_v34 }
  0xe4   : > { %v786_v41 = vadd.f32 %v784_v38, %v525_v26  ;;  %v787_v43 = vadd.f32 %v4239_v23, %v785_v37  ;;  %v1489_v26 = vadd.s32 1, %v4629_v3  ;;  %v4787_v36 = vsel %vm1682_vm11, 1.0, %v4549_v2 }
  0xe5   : > { %v805_v44 = vadd.f32 %v804_v40, %v795_v39  ;;  %vm1304_vm7 = vcmp.eq.s32.totalorder %v4709_v17, %v1302_v25  ;;  %vm1681_vm10 = vcmp.eq.s32.totalorder %v4709_v17, %v1679_v33  ;;  %v1206_v37 = vadd.s32 4294967294, %v4629_v3 }
  0xe6   : > { %v797_v45 = vadd.f32 %v795_v39, %v786_v41  ;;  %v798_v48 = vadd.f32 %v795_v39, %v787_v43  ;;  %vm1491_vm8 = vcmp.eq.s32.totalorder %v4709_v17, %v1489_v26  ;;  %v4750_v30 = vsel %vm1304_vm7, 1.0, %v4549_v2 }
  0xe7   : > { %v843_v47 = vadd.f32 %v3987_v42, %v805_v44  ;;  %v4754_v31 = vsel %vm1491_vm8, 1.0, %v4549_v2  ;;  %v4781_v35 = vsel %vm1681_vm10, 1.0, %v4549_v2  ;;  %v1207_v38 = vadd.s32 4294967294, %v4706_v16 }
  0xe8   : > { %v812_v50 = vadd.f32 %v3986_v46, %v797_v45  ;;  %v813_v52 = vadd.f32 %v3986_v46, %v798_v48  ;;  %vm1208_vm12 = vcmp.eq.s32.totalorder %v4709_v17, %v1206_v37  ;;  %v1584_v45 = vadd.s32 2, %v4629_v3 }
  0xe9   : > { %v845_v49 = vsel %vm844_vm2, %v843_v47, -inf  ;;  %vm1209_vm13 = vcmp.eq.s32.totalorder %v4709_v17, %v1207_v38  ;;  %v4810_v43 = vsel %vm1208_vm12, 1.0, %v4549_v2  ;;  %v4834_v46 = vsel %vm1396_vm14, 1.0, %v4549_v2 }
  0xea   : > { %846 = vmax.xlane.f32.xlu0 %v845_v49  ;;  %v815_v51 = vsel %vm814_vm3, %v812_v50, -inf  ;;  %v818_v53 = vsel %vm814_vm3, %v813_v52, -inf  ;;  %v4816_v44 = vsel %vm1209_vm13, 1.0, %v4549_v2  ;;  %v4843_v48 = vsel %vm1397_vm15, 1.0, %v4549_v2 }
  0xeb   : > { %vm1586_vm0 = vcmp.eq.s32.totalorder %v4709_v17, %v1584_v45  ;;  %v4937_v34 = vsub.s32 5, %v4629_v3 }
  0xec   : > { %v4859_v49 = vsel %vm1586_vm0, 1.0, %v4549_v2 }
  0xee   : > { %816 = vmax.xlane.f32.xlu0 %v815_v51 }
  0xf2   : > { %819 = vmax.xlane.f32.xlu0 %v818_v53  ;;  %v1775_v53 = vld [vmem:[%s5186_s9 + $0x8] sm:$0xff] }
 0x173   : > { %v847_v54 = vpop.xlane.xlu0 %846 }
 0x174   : > { %v848_v55 = vsub.f32 %v843_v47, %v847_v54  ;;  %v1585_v47 = vadd.s32 2, %v4706_v16  ;;  %v4028_v54 = vld [vmem:[%s5186_s9 + $0x30] sm:$0xff] }
 0x176   : > { %v849_v56 = vmul.f32 1.442695, %v848_v55  ;;  %v1774_v55 = vld [vmem:[%s5186_s9] sm:$0xff] }
 0x177   : > { %v817_v57 = vpop.xlane.xlu0 %816 }
 0x178   : > { %4529 = vpow2.f32 %v849_v56  ;;  %v821_v58 = vsub.f32 %v812_v50, %v817_v57  ;;  %v1777_v50 = vld [vmem:[%s5186_s9 + $0x18] sm:$0xff]  ;;  %v4027_v56 = vld [vmem:[%s5186_s9 + $0x28] sm:$0xff]  ;;  %v4026_v57 = vld [vmem:[%s5186_s9 + $0x20] sm:$0xff] }
 0x17a   : > { %v823_v59 = vmul.f32 1.442695, %v821_v58 }
 0x17b   : > { %v820_v60 = vpop.xlane.xlu0 %819 }
 0x17c   : > { %4531 = vpow2.f32 %v823_v59  ;;  %v822_v61 = vsub.f32 %v813_v52, %v820_v60  ;;  %v1776_v52 = vld [vmem:[%s5186_s9 + $0x10] sm:$0xff] }
 0x17e   : > { %v825_v62 = vmul.f32 1.442695, %v822_v61  ;;  %v4913_v61 = vsub.s32 1, %v4629_v3 }
 0x180   : > { %4533 = vpow2.f32 %v825_v62  ;;  %v4916_v62 = vsub.s32 2, %v4629_v3 }
 0x185   : > { %v4530_v63 = vpop.eup %4529 }
 0x186   : > { %v851_v0 = vsel %vm844_vm2, %v4530_v63, 0.0 }
 0x187   : > { %852 = vadd.xlane.f32.xlu0 %v851_v0 }
 0x189   : > { %v4532_v4 = vpop.eup %4531 }
 0x18a   : > { %v827_v5 = vsel %vm814_vm3, %v4532_v4, 0.0 }
 0x18b   : > { %828 = vadd.xlane.f32.xlu1 %v827_v5 }
 0x18d   : > { %v4534_v7 = vpop.eup %4533 }
 0x18e   : > { %v830_v8 = vsel %vm814_vm3, %v4534_v7, 0.0 }
 0x18f   : > { %831 = vadd.xlane.f32.xlu0 %v830_v8 }
 0x210   : > { %v853_v11 = vpop.xlane.xlu0 %852 }
 0x211   : > { %4535 = vrcp.f32 %v853_v11 }
 0x214   : > { %v829_v12 = vpop.xlane.xlu1 %828 }
 0x215   : > { %4537 = vrcp.f32 %v829_v12 }
 0x218   : > { %v832_v13 = vpop.xlane.xlu0 %831 }
 0x219   : > { %4539 = vrcp.f32 %v832_v13  ;;  %v4929_v13 = vsub.s32 3, %v4629_v3 }
 0x21e   : > { %v4536_v14 = vpop.eup %4535 }
 0x21f   : > { %v855_v15 = vmul.f32 %v4536_v14, %v4530_v63  ;;  %v1105_v63 = vld [vmem:[%s5185_s8] sm:$0x7f] }
 0x220   : > { %v1201_v5 = vrot.slane %v1105_v63, %v4637_v6  ;;  %v1296_v8 = vrot.slane %v1105_v63, %v4913_v61  ;;  %v1391_v11 = vrot.slane %v1105_v63, %v4916_v62 }
 0x221   : > { %4264 = vmatprep.subr.mxu1 %v855_v15 }
 0x222   : > { %v4538_v19 = vpop.eup %4537  ;;  %4265 = vmatpush3.msra.mxu1 %v855_v15  ;;  %v4932_v15 = vsub.s32 4, %v4629_v3 }
 0x223   : > { %v834_v20 = vmul.f32 %v4538_v19, %v4532_v4  ;;  %4276 = vmatprep.subr.mxu1 %v4655_v10 }
 0x224   : > { %v1579_v25 = vrot.slane %v1105_v63, %v4932_v15 }
 0x225   : > { %4261 = vmatprep.mubr.msk.f32.mxu0 %vm814_vm3, %v834_v20  ;;  %4266 = vmatprep.mubr.msk.f32.mxu1 %vm814_vm3, %v834_v20 }
 0x226   : > { %v4540_v1 = vpop.eup %4539 }
 0x227   : > { %v836_v23 = vmul.f32 %v4540_v1, %v4534_v7 }
 0x229   : > { %4262 = vmatmul.mubr.msk.f32.vlgmr.msra.gmra.mxu0 %vm814_vm3, %v836_v23  ;;  %4267 = vmatmul.mubr.msk.f32.vlgmr.msra.gmra.mxu1 %vm814_vm3, %v836_v23  ;;  %vm1587_vm3 = vcmp.eq.s32.totalorder %v4709_v17, %v1585_v47  ;;  %v1484_v23 = vrot.slane %v1105_v63, %v4929_v13 }
 0x22a   : > { %4277 = vmatpush3.msra.mxu1 %v4655_v10  ;;  %4280 = vmatprep.mubr.msk.f32.mxu1 %vm844_vm2, %v4719_v24  ;;  %v4870_v51 = vsel %vm1587_vm3, 1.0, %v4549_v2  ;;  %v4029_v2 = vld [vmem:[%s5186_s9 + $0x38] sm:$0xff] }
 0x22b   : > { %4278 = vmatprep.subr.mxu1 %v4653_v9  ;;  %4270 = vmatpush3.msra.mxu0 %v4655_v10 }
 0x22c   : > { %4279 = vmatpush3.msra.mxu1 %v4653_v9  ;;  %4271 = vmatprep.subr.mxu0 %v4653_v9 }
 0x22d   : > { %4290 = vmatprep.subr.mxu1 %v4655_v10  ;;  %4281 = vmatmul.mubr.msk.f32.vlgmr.msra.gmra.mxu1 %vm844_vm2, %v4731_v27 }
 0x22e   : > { %4291 = vmatpush3.msra.mxu1 %v4655_v10  ;;  %4294 = vmatprep.mubr.msk.f32.mxu1 %vm844_vm2, %v4735_v28 }
 0x22f   : > { %4292 = vmatprep.subr.mxu1 %v4653_v9  ;;  %4272 = vmatpush3.msra.mxu0 %v4653_v9 }
 0x230   : > { %4293 = vmatpush3.msra.mxu1 %v4653_v9  ;;  %4283 = vmatprep.subr.mxu0 %v4655_v10 }
 0x231   : > { %4304 = vmatprep.subr.mxu1 %v4655_v10  ;;  %4295 = vmatmul.mubr.msk.f32.vlgmr.msra.gmra.mxu1 %vm844_vm2, %v4750_v30 }
 0x232   : > { %4305 = vmatpush3.msra.mxu1 %v4655_v10  ;;  %4308 = vmatprep.mubr.msk.f32.mxu1 %vm844_vm2, %v4754_v31 }
 0x233   : > { %4306 = vmatprep.subr.mxu1 %v4653_v9 }
 0x234   : > { %4307 = vmatpush3.msra.mxu1 %v4653_v9 }
 0x235   : > { %4318 = vmatprep.subr.mxu1 %v4655_v10  ;;  %4309 = vmatmul.mubr.msk.f32.vlgmr.msra.gmra.mxu1 %vm844_vm2, %v4767_v32 }
 0x236   : > { %4319 = vmatpush3.msra.mxu1 %v4655_v10  ;;  %4322 = vmatprep.mubr.msk.f32.mxu1 %vm844_vm2, %v4781_v35 }
 0x237   : > { %4320 = vmatprep.subr.mxu1 %v4653_v9 }
 0x238   : > { %4321 = vmatpush3.msra.mxu1 %v4653_v9 }
 0x239   : > { %4323 = vmatmul.mubr.msk.f32.vlgmr.msra.gmra.mxu1 %vm844_vm2, %v4787_v36 }
 0x23a   : > { %4340 = vmatprep.mubr.msk.f32.mxu1 %vm844_vm2, %v4719_v24 }
 0x2e9   : > { %v4795_v39 = vpop.f32.mrf.mxu0  ;;  %v4268_v40 = vpop.f32.mrf.mxu1 }
 0x2ea   : > { %4336 = vmatprep.subr.mxu1 %v4795_v39  ;;  %v4909_v58 = vmul.f32 %v4795_v39, %v4655_v10 }
 0x2eb   : > { %v4798_v41 = vpop.f32.mrf.mxu0  ;;  %v1003_v42 = vpop.f32.mrf.mxu1  ;;  %4337 = vmatpush3.msra.mxu1 %v4795_v39 }
 0x2ec   : > { %4273 = vmatprep.mubr.msk.f32.mxu0 %vm844_vm2, %v1003_v42  ;;  %4338 = vmatprep.subr.mxu1 %v4798_v41 }
 0x2ed   : > { %4274 = vmatmul.mubr.msk.f32.vlgmr.msra.gmra.mxu0 %vm844_vm2, %v4268_v40  ;;  %4339 = vmatpush3.msra.mxu1 %v4798_v41  ;;  %v4282_v59 = vpop.f32.mrf.mxu1 }
 0x2ee   : > { %4284 = vmatpush3.msra.mxu0 %v4655_v10  ;;  %4343 = vmatprep.subr.mxu1 %v4795_v39  ;;  %v1203_v16 = vmul.f32 %v4282_v59, %v1201_v5 }
 0x2ef   : > { %4285 = vmatprep.subr.mxu0 %v4653_v9  ;;  %4341 = vmatmul.mubr.msk.f32.vlgmr.msra.gmra.mxu1 %vm844_vm2, %v4731_v27  ;;  %v1189_v60 = vpop.f32.mrf.mxu1 }
 0x2f0   : > { %4286 = vmatpush3.msra.mxu0 %v4653_v9  ;;  %4344 = vmatpush3.msra.mxu1 %v4795_v39  ;;  %v1202_v21 = vmul.f32 %v1201_v5, %v1189_v60 }
 0x2f1   : > { %4287 = vmatprep.mubr.msk.f32.mxu0 %vm844_vm2, %v4810_v43  ;;  %4297 = vmatprep.subr.mxu0 %v4655_v10  ;;  %v4296_v0 = vpop.f32.mrf.mxu1 }
 0x2f2   : > { %4345 = vmatprep.subr.mxu1 %v4798_v41  ;;  %4288 = vmatmul.mubr.msk.f32.vlgmr.msra.gmra.mxu0 %vm844_vm2, %v4816_v44  ;;  %v1393_v18 = vmul.f32 %v4296_v0, %v1391_v11 }
 0x2f3   : > { %4298 = vmatpush3.msra.mxu0 %v4655_v10  ;;  %4346 = vmatpush3.msra.mxu1 %v4798_v41  ;;  %v1379_v12 = vpop.f32.mrf.mxu1 }
 0x2f4   : > { %4299 = vmatprep.subr.mxu0 %v4653_v9  ;;  %4347 = vmatprep.mubr.msk.f32.mxu1 %vm844_vm2, %v4810_v43  ;;  %v1392_v33 = vmul.f32 %v1391_v11, %v1379_v12 }
 0x2f5   : > { %4357 = vmatprep.subr.mxu1 %v4795_v39  ;;  %4300 = vmatpush3.msra.mxu0 %v4653_v9  ;;  %v4310_v20 = vpop.f32.mrf.mxu1 }
 0x2f6   : > { %4348 = vmatmul.mubr.msk.f32.vlgmr.msra.gmra.mxu1 %vm844_vm2, %v4816_v44  ;;  %4301 = vmatprep.mubr.msk.f32.mxu0 %vm844_vm2, %v4834_v46  ;;  %v1581_v45 = vmul.f32 %v4310_v20, %v1579_v25  ;;  %v4048_v20 = vld [vmem:[%s5186_s9 + $0x48] sm:$0xff] }
 0x2f7   : > { %4358 = vmatpush3.msra.mxu1 %v4795_v39  ;;  %4311 = vmatprep.subr.mxu0 %v4655_v10  ;;  %v1567_v38 = vpop.f32.mrf.mxu1 }
 0x2f8   : > { %4359 = vmatprep.subr.mxu1 %v4798_v41  ;;  %4302 = vmatmul.mubr.msk.f32.vlgmr.msra.gmra.mxu0 %vm844_vm2, %v4843_v48 }
 0x2f9   : > { %4312 = vmatpush3.msra.mxu0 %v4655_v10  ;;  %4360 = vmatpush3.msra.mxu1 %v4798_v41 }
 0x2fa   : > { %4313 = vmatprep.subr.mxu0 %v4653_v9  ;;  %4361 = vmatprep.mubr.msk.f32.mxu1 %vm844_vm2, %v4834_v46 }
 0x2fb   : > { %4371 = vmatprep.subr.mxu1 %v4795_v39  ;;  %4314 = vmatpush3.msra.mxu0 %v4653_v9 }
 0x2fc   : > { %4362 = vmatmul.mubr.msk.f32.vlgmr.msra.gmra.mxu1 %vm844_vm2, %v4843_v48  ;;  %4315 = vmatprep.mubr.msk.f32.mxu0 %vm844_vm2, %v4859_v49 }
 0x2fd   : > { %4372 = vmatpush3.msra.mxu1 %v4795_v39  ;;  %4325 = vmatprep.subr.mxu0 %v1777_v50 }
 0x2fe   : > { %4373 = vmatprep.subr.mxu1 %v4798_v41  ;;  %4316 = vmatmul.mubr.msk.f32.vlgmr.msra.gmra.mxu0 %vm844_vm2, %v4870_v51 }
 0x2ff   : > { %4326 = vmatpush3.msra.mxu0 %v1777_v50  ;;  %4374 = vmatpush3.msra.mxu1 %v4798_v41  ;;  %v4940_v50 = vsub.s32 6, %v4629_v3 }
 0x300   : > { %4327 = vmatprep.subr.mxu0 %v1776_v52  ;;  %4375 = vmatprep.mubr.msk.f32.mxu1 %vm844_vm2, %v4859_v49 }
 0x301   : > { %4385 = vmatprep.subr.mxu1 %v4029_v2  ;;  %4328 = vmatpush3.msra.mxu0 %v1776_v52  ;;  %v1769_v60 = vrot.slane %v1105_v63, %v4940_v50 }
 0x302   : > { %4376 = vmatmul.mubr.msk.f32.vlgmr.msra.gmra.mxu1 %vm844_vm2, %v4870_v51  ;;  %4329 = vmatprep.subr.mxu0 %v1775_v53 }
 0x303   : > { %4386 = vmatpush3.msra.mxu1 %v4029_v2  ;;  %4330 = vmatpush3.msra.mxu0 %v1775_v53  ;;  %v1674_v53 = vrot.slane %v1105_v63, %v4937_v34  ;;  %v4969_v63 = vmul.f32 %v4798_v41, %v4653_v9 }
 0x304   : > { %4387 = vmatprep.subr.mxu1 %v4028_v54  ;;  %4331 = vmatprep.subr.mxu0 %v1774_v55 }
 0x305   : > { %4388 = vmatpush3.msra.mxu1 %v4028_v54  ;;  %4332 = vmatpush3.msra.mxu0 %v1774_v55  ;;  %v4324_v54 = vpop.f32.mrf.mxu1 }
 0x306   : > { %4389 = vmatprep.subr.mxu1 %v4027_v56  ;;  %4350 = vmatprep.subr.mxu0 %v4795_v39 }
 0x307   : > { %4390 = vmatpush3.msra.mxu1 %v4027_v56  ;;  %v1580_v56 = vmul.f32 %v1579_v25, %v1567_v38  ;;  %v1757_v11 = vpop.f32.mrf.mxu1 }
 0x308   : > { %4391 = vmatprep.subr.mxu1 %v4026_v57 }
 0x309   : > { %4392 = vmatpush3.msra.mxu1 %v4026_v57 }
 0x30a   : > { %4410 = vmatprep.subr.mxu1 %v4909_v58 }
 0x3ad   : > { %v4921_v4 = vpop.f32.mrf.mxu0 }
 0x3af   : > { %v4924_v7 = vpop.f32.mrf.mxu0 }
 0x3b2   : > { %v4289_v14 = vpop.f32.mrf.mxu0 }
 0x3b3   : > { %v1298_v17 = vmul.f32 %v4289_v14, %v1296_v8 }
 0x3b4   : > { %v1284_v19 = vpop.f32.mrf.mxu0 }
 0x3b5   : > { %v1300_v22 = vadd.f32 %v1298_v17, %v1203_v16  ;;  %v1297_v1 = vmul.f32 %v1296_v8, %v1284_v19  ;;  %v1771_v16 = vmul.f32 %v4324_v54, %v1769_v60  ;;  %v1770_v17 = vmul.f32 %v1769_v60, %v1757_v11 }
 0x3b7   : > { %v1395_v26 = vadd.f32 %v1393_v18, %v1300_v22  ;;  %v1299_v29 = vadd.f32 %v1297_v1, %v1202_v21  ;;  %v4047_v21 = vld [vmem:[%s5186_s9 + $0x40] sm:$0xff]  ;;  %v5019_v22 = vmul.f32 %v4921_v4, %v4655_v10  ;;  %v4342_v1 = vpop.f32.mrf.mxu1 }
 0x3b8   : > { %v4303_v37 = vpop.f32.mrf.mxu0 }
 0x3b9   : > { %v1394_v40 = vadd.f32 %v1392_v33, %v1299_v29  ;;  %v1486_v42 = vmul.f32 %v4303_v37, %v1484_v23 }
 0x3ba   : > { %v1472_v47 = vpop.f32.mrf.mxu0 }
 0x3bb   : > { %v1488_v52 = vadd.f32 %v1486_v42, %v1395_v26  ;;  %v1485_v2 = vmul.f32 %v1484_v23, %v1472_v47  ;;  %v1929_v23 = vpop.f32.mrf.mxu1  ;;  %v4011_v26 = vld [vmem:[%s5185_s8 + $0x8] sm:$0x7f] }
 0x3bc   : > { %v1941_v33 = vrot.slane %v4011_v26, %v4637_v6  ;;  %v2024_v37 = vrot.slane %v4011_v26, %v4913_v61  ;;  %v2107_v42 = vrot.slane %v4011_v26, %v4916_v62 }
 0x3bd   : > { %v1487_v55 = vadd.f32 %v1485_v2, %v1394_v40  ;;  %v1583_v57 = vadd.f32 %v1581_v45, %v1488_v52  ;;  %v4349_v25 = vpop.f32.mrf.mxu1  ;;  %v2190_v45 = vrot.slane %v4011_v26, %v4929_v13 }
 0x3be   : > { %v4317_v59 = vpop.f32.mrf.mxu0  ;;  %v1943_v10 = vmul.f32 %v4342_v1, %v1941_v33  ;;  %v2026_v4 = vmul.f32 %v4349_v25, %v2024_v37  ;;  %v1942_v2 = vmul.f32 %v1941_v33, %v1929_v23 }
 0x3bf   : > { %v1582_v0 = vadd.f32 %v1580_v56, %v1487_v55  ;;  %v1676_v5 = vmul.f32 %v4317_v59, %v1674_v53  ;;  %v2012_v29 = vpop.f32.mrf.mxu1  ;;  %v2273_v59 = vrot.slane %v4011_v26, %v4932_v15 }
 0x3c0   : > { %v1662_v8 = vpop.f32.mrf.mxu0  ;;  %v2028_v55 = vadd.f32 %v2026_v4, %v1943_v10 }
 0x3c1   : > { %v1675_v12 = vmul.f32 %v1674_v53, %v1662_v8  ;;  %v1678_v14 = vadd.f32 %v1676_v5, %v1583_v57  ;;  %v4363_v38 = vpop.f32.mrf.mxu1  ;;  %v2025_v53 = vmul.f32 %v2024_v37, %v2012_v29  ;;  %v2356_v5 = vrot.slane %v4011_v26, %v4937_v34 }
 0x3c2   : > { %v2192_v57 = vmul.f32 %v4363_v38, %v2190_v45 }
 0x3c3   : > { %v1677_v3 = vadd.f32 %v1675_v12, %v1582_v0  ;;  %v1773_v19 = vadd.f32 %v1771_v16, %v1678_v14  ;;  %v2178_v52 = vpop.f32.mrf.mxu1  ;;  %v2027_v8 = vadd.f32 %v2025_v53, %v1942_v2 }
 0x3c5   : > { %v1772_v18 = vadd.f32 %v1770_v17, %v1677_v3  ;;  %v4377_v0 = vpop.f32.mrf.mxu1  ;;  %v2191_v17 = vmul.f32 %v2190_v45, %v2178_v52 }
 0x3c7   : > { %4333 = vmatprep.mubr.msk.f32.mxu0 %vm449_vm1, %v1772_v18 }
 0x3c8   : > { %4334 = vmatmul.mubr.msk.f32.vlgmr.msra.gmra.mxu0 %vm449_vm1, %v1773_v19  ;;  %v2358_v19 = vmul.f32 %v4377_v0, %v2356_v5 }
 0x3c9   : > { %4351 = vmatpush3.msra.mxu0 %v4795_v39  ;;  %4354 = vmatprep.mubr.msk.f32.mxu0 %vm844_vm2, %v4735_v28 }
 0x3ca   : > { %4352 = vmatprep.subr.mxu0 %v4798_v41 }
 0x3cb   : > { %4353 = vmatpush3.msra.mxu0 %v4798_v41 }
 0x3cc   : > { %4364 = vmatprep.subr.mxu0 %v4795_v39  ;;  %4355 = vmatmul.mubr.msk.f32.vlgmr.msra.gmra.mxu0 %vm844_vm2, %v4750_v30 }
 0x3cd   : > { %4365 = vmatpush3.msra.mxu0 %v4795_v39  ;;  %4368 = vmatprep.mubr.msk.f32.mxu0 %vm844_vm2, %v4754_v31 }
 0x3ce   : > { %4366 = vmatprep.subr.mxu0 %v4798_v41 }
 0x3cf   : > { %4367 = vmatpush3.msra.mxu0 %v4798_v41 }
 0x3d0   : > { %4378 = vmatprep.subr.mxu0 %v4795_v39  ;;  %4369 = vmatmul.mubr.msk.f32.vlgmr.msra.gmra.mxu0 %vm844_vm2, %v4767_v32 }
 0x3d1   : > { %4379 = vmatpush3.msra.mxu0 %v4795_v39  ;;  %4382 = vmatprep.mubr.msk.f32.mxu0 %vm844_vm2, %v4781_v35  ;;  %v4050_v39 = vld [vmem:[%s5186_s9 + $0x58] sm:$0xff] }
 0x3d2   : > { %4380 = vmatprep.subr.mxu0 %v4798_v41 }
 0x3d3   : > { %4381 = vmatpush3.msra.mxu0 %v4798_v41  ;;  %v4049_v41 = vld [vmem:[%s5186_s9 + $0x50] sm:$0xff] }
 0x3d4   : > { %4396 = vmatprep.subr.mxu0 %v4909_v58  ;;  %4383 = vmatmul.mubr.msk.f32.vlgmr.msra.gmra.mxu0 %vm844_vm2, %v4787_v36 }
 0x3d5   : > { %4397 = vmatpush3.msra.mxu0 %v4909_v58  ;;  %4400 = vmatprep.mubr.msk.f32.mxu0 %vm844_vm2, %v4719_v24 }
 0x3d6   : > { %4398 = vmatprep.subr.mxu0 %v4969_v63 }
 0x3d7   : > { %4399 = vmatpush3.msra.mxu0 %v4969_v63 }
 0x3d8   : > { %4403 = vmatprep.subr.mxu0 %v4909_v58  ;;  %4401 = vmatmul.mubr.msk.f32.vlgmr.msra.gmra.mxu0 %vm844_vm2, %v4731_v27 }
 0x3d9   : > { %4404 = vmatpush3.msra.mxu0 %v4909_v58  ;;  %4407 = vmatprep.mubr.msk.f32.mxu0 %vm844_vm2, %v4810_v43 }
 0x3da   : > { %4405 = vmatprep.subr.mxu0 %v4969_v63 }
 0x3db   : > { %4406 = vmatpush3.msra.mxu0 %v4969_v63 }
 0x3dc   : > { %4417 = vmatprep.subr.mxu0 %v4909_v58  ;;  %4408 = vmatmul.mubr.msk.f32.vlgmr.msra.gmra.mxu0 %vm844_vm2, %v4816_v44 }
 0x3dd   : > { %4418 = vmatpush3.msra.mxu0 %v4909_v58  ;;  %4421 = vmatprep.mubr.msk.f32.mxu0 %vm844_vm2, %v4834_v46 }
 0x3de   : > { %4419 = vmatprep.subr.mxu0 %v4969_v63 }
 0x3df   : > { %4420 = vmatpush3.msra.mxu0 %v4969_v63 }
 0x3e0   : > { %4431 = vmatprep.subr.mxu0 %v4909_v58  ;;  %4422 = vmatmul.mubr.msk.f32.vlgmr.msra.gmra.mxu0 %vm844_vm2, %v4843_v48 }
 0x3e1   : > { %4432 = vmatpush3.msra.mxu0 %v4909_v58  ;;  %4435 = vmatprep.mubr.msk.f32.mxu0 %vm844_vm2, %v4859_v49 }
 0x3e2   : > { %4433 = vmatprep.subr.mxu0 %v4969_v63 }
 0x3e3   : > { %4434 = vmatpush3.msra.mxu0 %v4969_v63 }
 0x3e4   : > { %4445 = vmatprep.subr.mxu0 %v4050_v39  ;;  %4436 = vmatmul.mubr.msk.f32.vlgmr.msra.gmra.mxu0 %vm844_vm2, %v4870_v51 }
 0x3e5   : > { %4446 = vmatpush3.msra.mxu0 %v4050_v39 }
 0x3e6   : > { %4447 = vmatprep.subr.mxu0 %v4049_v41 }
 0x3e7   : > { %4448 = vmatpush3.msra.mxu0 %v4049_v41  ;;  %v2344_v41 = vpop.f32.mrf.mxu1 }
 0x3e8   : > { %4449 = vmatprep.subr.mxu0 %v4048_v20  ;;  %v2357_v33 = vmul.f32 %v2356_v5, %v2344_v41 }
 0x3e9   : > { %4450 = vmatpush3.msra.mxu0 %v4048_v20  ;;  %v2439_v20 = vrot.slane %v4011_v26, %v4940_v50  ;;  %v5061_v26 = vmul.f32 %v4924_v7, %v4653_v9 }
 0x3ea   : > { %4451 = vmatprep.subr.mxu0 %v4047_v21 }
 0x3eb   : > { %4452 = vmatpush3.msra.mxu0 %v4047_v21 }
 0x3ec   : > { %4470 = vmatprep.subr.mxu0 %v5019_v22 }
 0x488   : > { %v5027_v40 = vpop.f32.mrf.mxu0 }
 0x48a   : > { %v5031_v47 = vpop.f32.mrf.mxu0 }
 0x48c   : > { %v4356_v54 = vpop.f32.mrf.mxu0 }
 0x48d   : > { %v2109_v56 = vmul.f32 %v4356_v54, %v2107_v42 }
 0x48e   : > { %v2095_v60 = vpop.f32.mrf.mxu0 }
 0x48f   : > { %v2111_v11 = vadd.f32 %v2109_v56, %v2028_v55  ;;  %v2108_v12 = vmul.f32 %v2107_v42, %v2095_v60 }
 0x490   : > { %v4370_v14 = vpop.f32.mrf.mxu0 }
 0x491   : > { %v2194_v16 = vadd.f32 %v2192_v57, %v2111_v11  ;;  %v2110_v3 = vadd.f32 %v2108_v12, %v2027_v8  ;;  %v2275_v18 = vmul.f32 %v4370_v14, %v2273_v59 }
 0x492   : > { %v2261_v39 = vpop.f32.mrf.mxu0 }
 0x493   : > { %v2193_v21 = vadd.f32 %v2191_v17, %v2110_v3  ;;  %v2277_v1 = vadd.f32 %v2275_v18, %v2194_v16  ;;  %v2274_v23 = vmul.f32 %v2273_v59, %v2261_v39 }
 0x494   : > { %v4384_v25 = vpop.f32.mrf.mxu0 }
 0x495   : > { %v2276_v29 = vadd.f32 %v2274_v23, %v2193_v21  ;;  %v2360_v37 = vadd.f32 %v2358_v19, %v2277_v1  ;;  %v2441_v38 = vmul.f32 %v4384_v25, %v2439_v20 }
 0x496   : > { %v2427_v10 = vpop.f32.mrf.mxu0 }
 0x497   : > { %v2359_v4 = vadd.f32 %v2357_v33, %v2276_v29  ;;  %v2440_v42 = vmul.f32 %v2439_v20, %v2427_v10  ;;  %v2443_v53 = vadd.f32 %v2441_v38, %v2360_v37 }
 0x498   : > { %v4402_v9 = vpop.f32.mrf.mxu0 }
 0x499   : > { %v2442_v2 = vadd.f32 %v2440_v42, %v2359_v4 }
 0x49b   : > { %4393 = vmatprep.mubr.msk.f32.mxu1 %vm449_vm1, %v2442_v2 }
 0x49c   : > { %4394 = vmatmul.mubr.msk.f32.vlgmr.msra.gmra.mxu1 %vm449_vm1, %v2443_v53 }
 0x49d   : > { %4411 = vmatpush3.msra.mxu1 %v4909_v58  ;;  %4414 = vmatprep.mubr.msk.f32.mxu1 %vm844_vm2, %v4735_v28 }
 0x49e   : > { %4412 = vmatprep.subr.mxu1 %v4969_v63 }
 0x49f   : > { %4413 = vmatpush3.msra.mxu1 %v4969_v63 }
 0x4a0   : > { %4424 = vmatprep.subr.mxu1 %v4909_v58  ;;  %4415 = vmatmul.mubr.msk.f32.vlgmr.msra.gmra.mxu1 %vm844_vm2, %v4750_v30 }
 0x4a1   : > { %4425 = vmatpush3.msra.mxu1 %v4909_v58  ;;  %4428 = vmatprep.mubr.msk.f32.mxu1 %vm844_vm2, %v4754_v31 }
 0x4a2   : > { %4426 = vmatprep.subr.mxu1 %v4969_v63 }
 0x4a3   : > { %4427 = vmatpush3.msra.mxu1 %v4969_v63 }
 0x4a4   : > { %4438 = vmatprep.subr.mxu1 %v4909_v58  ;;  %4429 = vmatmul.mubr.msk.f32.vlgmr.msra.gmra.mxu1 %vm844_vm2, %v4767_v32 }
 0x4a5   : > { %4439 = vmatpush3.msra.mxu1 %v4909_v58  ;;  %4442 = vmatprep.mubr.msk.f32.mxu1 %vm844_vm2, %v4781_v35 }
 0x4a6   : > { %4440 = vmatprep.subr.mxu1 %v4969_v63 }
 0x4a7   : > { %4441 = vmatpush3.msra.mxu1 %v4969_v63 }
 0x4a8   : > { %4456 = vmatprep.subr.mxu1 %v5019_v22  ;;  %4443 = vmatmul.mubr.msk.f32.vlgmr.msra.gmra.mxu1 %vm844_vm2, %v4787_v36 }
 0x4a9   : > { %4457 = vmatpush3.msra.mxu1 %v5019_v22  ;;  %4460 = vmatprep.mubr.msk.f32.mxu1 %vm844_vm2, %v4719_v24  ;;  %v2600_v24 = vpop.f32.mrf.mxu0 }
 0x4aa   : > { %4458 = vmatprep.subr.mxu1 %v5061_v26 }
 0x4ab   : > { %4459 = vmatpush3.msra.mxu1 %v5061_v26 }
 0x4ac   : > { %4463 = vmatprep.subr.mxu1 %v5019_v22  ;;  %4461 = vmatmul.mubr.msk.f32.vlgmr.msra.gmra.mxu1 %vm844_vm2, %v4731_v27  ;;  %v4409_v27 = vpop.f32.mrf.mxu0 }
 0x4ad   : > { %4464 = vmatpush3.msra.mxu1 %v5019_v22  ;;  %4467 = vmatprep.mubr.msk.f32.mxu1 %vm844_vm2, %v4810_v43  ;;  %v4032_v43 = vld [vmem:[%s5185_s8 + $0x10] sm:$0x7f] }
 0x4ae   : > { %4465 = vmatprep.subr.mxu1 %v5061_v26  ;;  %v2778_v55 = vrot.slane %v4032_v43, %v4916_v62  ;;  %v2861_v56 = vrot.slane %v4032_v43, %v4929_v13  ;;  %v3027_v3 = vrot.slane %v4032_v43, %v4937_v34  ;;  %v3110_v33 = vrot.slane %v4032_v43, %v4940_v50 }
 0x4af   : > { %4466 = vmatpush3.msra.mxu1 %v5061_v26 }
 0x4b0   : > { %4477 = vmatprep.subr.mxu1 %v5019_v22  ;;  %4468 = vmatmul.mubr.msk.f32.vlgmr.msra.gmra.mxu1 %vm844_vm2, %v4816_v44  ;;  %v3994_v44 = vld [vmem:[%s5187_s10] ss:$0 sm:$0xff] }
 0x4b1   : > { %4478 = vmatpush3.msra.mxu1 %v5019_v22  ;;  %4481 = vmatprep.mubr.msk.f32.mxu1 %vm844_vm2, %v4834_v46  ;;  %v2612_v46 = vrot.slane %v4032_v43, %v4637_v6  ;;  %v1860_v7 = vadd.f32 %v5027_v40, %v3994_v44 }
 0x4b2   : > { %4479 = vmatprep.subr.mxu1 %v5061_v26 }
 0x4b3   : > { %4480 = vmatpush3.msra.mxu1 %v5061_v26  ;;  %v2614_v63 = vmul.f32 %v4402_v9, %v2612_v46  ;;  %v2613_v60 = vmul.f32 %v2612_v46, %v2600_v24 }
 0x4b4   : > { %4491 = vmatprep.subr.mxu1 %v5019_v22  ;;  %4482 = vmatmul.mubr.msk.f32.vlgmr.msra.gmra.mxu1 %vm844_vm2, %v4843_v48  ;;  %v2683_v48 = vpop.f32.mrf.mxu0 }
 0x4b5   : > { %4492 = vmatpush3.msra.mxu1 %v5019_v22  ;;  %4495 = vmatprep.mubr.msk.f32.mxu1 %vm844_vm2, %v4859_v49  ;;  %v2695_v49 = vrot.slane %v4032_v43, %v4913_v61 }
 0x4b6   : > { %4493 = vmatprep.subr.mxu1 %v5061_v26  ;;  %v4423_v58 = vpop.f32.mrf.mxu0 }
 0x4b7   : > { %4494 = vmatpush3.msra.mxu1 %v5061_v26  ;;  %v2697_v52 = vmul.f32 %v4409_v27, %v2695_v49  ;;  %v2696_v0 = vmul.f32 %v2695_v49, %v2683_v48  ;;  %v2863_v12 = vmul.f32 %v4423_v58, %v2861_v56 }
 0x4b8   : > { %4496 = vmatmul.mubr.msk.f32.vlgmr.msra.gmra.mxu1 %vm844_vm2, %v4870_v51  ;;  %v1859_v51 = vadd.f32 %v3994_v44, %v5031_v47  ;;  %v2849_v59 = vpop.f32.mrf.mxu0  ;;  %v2944_v47 = vrot.slane %v4032_v43, %v4932_v15 }
 0x4b9   : > { %v2699_v11 = vadd.f32 %v2697_v52, %v2614_v63  ;;  %v2698_v17 = vadd.f32 %v2696_v0, %v2613_v60  ;;  %v2862_v21 = vmul.f32 %v2861_v56, %v2849_v59 }
 0x4ba   : > { %v4437_v16 = vpop.f32.mrf.mxu0 }
 0x4bb   : > { %v3029_v23 = vmul.f32 %v4437_v16, %v3027_v3 }
 0x4bc   : > { %v3015_v29 = vpop.f32.mrf.mxu0 }
 0x4bd   : > { %v3028_v2 = vmul.f32 %v3027_v3, %v3015_v29 }
 0x55c   : > { %v4395_v45 = vpop.f32.mrf.mxu1 }
 0x55d   : > { %v5107_v54 = vadd.f32 %v4395_v45, %v1860_v7 }
 0x55e   : > { %v2521_v57 = vpop.f32.mrf.mxu1 }
 0x55f   : > { %v5111_v5 = vadd.f32 %v2521_v57, %v1859_v51 }
 0x560   : > { %v4416_v8 = vpop.f32.mrf.mxu1 }
 0x561   : > { %v2780_v40 = vmul.f32 %v4416_v8, %v2778_v55 }
 0x562   : > { %v2766_v14 = vpop.f32.mrf.mxu1 }
 0x563   : > { %v2782_v18 = vadd.f32 %v2780_v40, %v2699_v11  ;;  %v2779_v19 = vmul.f32 %v2778_v55, %v2766_v14 }
 0x564   : > { %v4430_v39 = vpop.f32.mrf.mxu1 }
 0x565   : > { %v2865_v41 = vadd.f32 %v2863_v12, %v2782_v18  ;;  %v2781_v20 = vadd.f32 %v2779_v19, %v2698_v17  ;;  %v2946_v1 = vmul.f32 %v4430_v39, %v2944_v47 }
 0x566   : > { %v2932_v25 = vpop.f32.mrf.mxu1 }
 0x567   : > { %v2864_v37 = vadd.f32 %v2862_v21, %v2781_v20  ;;  %v2948_v38 = vadd.f32 %v2946_v1, %v2865_v41  ;;  %v2945_v10 = vmul.f32 %v2944_v47, %v2932_v25 }
 0x568   : > { %v4444_v4 = vpop.f32.mrf.mxu1 }
 0x569   : > { %v2947_v42 = vadd.f32 %v2945_v10, %v2864_v37  ;;  %v3031_v53 = vadd.f32 %v3029_v23, %v2948_v38  ;;  %v3112_v9 = vmul.f32 %v4444_v4, %v3110_v33 }
 0x56a   : > { %v3098_v24 = vpop.f32.mrf.mxu1 }
 0x56b   : > { %v3030_v27 = vadd.f32 %v3028_v2, %v2947_v42  ;;  %v3111_v44 = vmul.f32 %v3110_v33, %v3098_v24  ;;  %v3114_v48 = vadd.f32 %v3112_v9, %v3031_v53 }
 0x56d   : > { %v3113_v46 = vadd.f32 %v3111_v44, %v3030_v27 }
 0x56f   : > { %4453 = vmatprep.mubr.msk.f32.mxu0 %vm449_vm1, %v3113_v46 }
 0x570   : > { %4454 = vmatmul.mubr.msk.f32.vlgmr.msra.gmra.mxu0 %vm449_vm1, %v3114_v48 }
 0x571   : > { %4471 = vmatpush3.msra.mxu0 %v5019_v22  ;;  %4474 = vmatprep.mubr.msk.f32.mxu0 %vm844_vm2, %v4735_v28  ;;  %v4071_v28 = vld [vmem:[%s5186_s9 + $0x78] sm:$0xff] }
 0x572   : > { %4472 = vmatprep.subr.mxu0 %v5061_v26  ;;  %4505 = vmatprep.subr.mxu1 %v4071_v28 }
 0x573   : > { %4473 = vmatpush3.msra.mxu0 %v5061_v26  ;;  %4506 = vmatpush3.msra.mxu1 %v4071_v28 }
 0x574   : > { %4484 = vmatprep.subr.mxu0 %v5019_v22  ;;  %4475 = vmatmul.mubr.msk.f32.vlgmr.msra.gmra.mxu0 %vm844_vm2, %v4750_v30  ;;  %v4070_v30 = vld [vmem:[%s5186_s9 + $0x70] sm:$0xff] }
 0x575   : > { %4485 = vmatpush3.msra.mxu0 %v5019_v22  ;;  %4488 = vmatprep.mubr.msk.f32.mxu0 %vm844_vm2, %v4754_v31  ;;  %v4069_v31 = vld [vmem:[%s5186_s9 + $0x68] sm:$0xff] }
 0x576   : > { %4486 = vmatprep.subr.mxu0 %v5061_v26  ;;  %4507 = vmatprep.subr.mxu1 %v4070_v30 }
 0x577   : > { %4487 = vmatpush3.msra.mxu0 %v5061_v26  ;;  %4508 = vmatpush3.msra.mxu1 %v4070_v30 }
 0x578   : > { %4498 = vmatprep.subr.mxu0 %v5019_v22  ;;  %4489 = vmatmul.mubr.msk.f32.vlgmr.msra.gmra.mxu0 %vm844_vm2, %v4767_v32  ;;  %v4068_v32 = vld [vmem:[%s5186_s9 + $0x60] sm:$0xff] }
 0x579   : > { %4499 = vmatpush3.msra.mxu0 %v5019_v22  ;;  %4502 = vmatprep.mubr.msk.f32.mxu0 %vm844_vm2, %v4781_v35  ;;  %v4462_v35 = vpop.f32.mrf.mxu1 }
 0x57a   : > { %4500 = vmatprep.subr.mxu0 %v5061_v26  ;;  %4509 = vmatprep.subr.mxu1 %v4069_v31 }
 0x57b   : > { %4501 = vmatpush3.msra.mxu0 %v5061_v26  ;;  %4510 = vmatpush3.msra.mxu1 %v4069_v31  ;;  %v4053_v26 = vld [vmem:[%s5185_s8 + $0x18] sm:$0x7f] }
 0x57c   : > { %4503 = vmatmul.mubr.msk.f32.vlgmr.msra.gmra.mxu0 %vm844_vm2, %v4787_v36  ;;  %4511 = vmatprep.subr.mxu1 %v4068_v32  ;;  %v3271_v36 = vpop.f32.mrf.mxu1  ;;  %v3283_v43 = vrot.slane %v4053_v26, %v4637_v6  ;;  %v3366_v58 = vrot.slane %v4053_v26, %v4913_v61  ;;  %v3449_v55 = vrot.slane %v4053_v26, %v4916_v62 }
 0x57d   : > { %4512 = vmatpush3.msra.mxu1 %v4068_v32  ;;  %v3532_v56 = vrot.slane %v4053_v26, %v4929_v13  ;;  %v3615_v12 = vrot.slane %v4053_v26, %v4932_v15  ;;  %v3781_v21 = vrot.slane %v4053_v26, %v4940_v50 }
 0x57e   : > { %v4469_v22 = vpop.f32.mrf.mxu1  ;;  %v3285_v51 = vmul.f32 %v4462_v35, %v3283_v43  ;;  %v3284_v60 = vmul.f32 %v3283_v43, %v3271_v36 }
 0x57f   : > { %v3368_v45 = vmul.f32 %v4469_v22, %v3366_v58 }
 0x580   : > { %v3354_v49 = vpop.f32.mrf.mxu1 }
 0x581   : > { %v3367_v0 = vmul.f32 %v3366_v58, %v3354_v49  ;;  %v3370_v11 = vadd.f32 %v3368_v45, %v3285_v51 }
 0x582   : > { %v4483_v7 = vpop.f32.mrf.mxu1 }
 0x583   : > { %v3534_v61 = vmul.f32 %v4483_v7, %v3532_v56  ;;  %v3369_v16 = vadd.f32 %v3367_v0, %v3284_v60 }
 0x584   : > { %v3520_v59 = vpop.f32.mrf.mxu1 }
 0x585   : > { %v3533_v19 = vmul.f32 %v3532_v56, %v3520_v59 }
 0x586   : > { %v4497_v14 = vpop.f32.mrf.mxu1 }
 0x588   : > { %v3686_v20 = vpop.f32.mrf.mxu1 }
 0x630   : > { %v4455_v63 = vpop.f32.mrf.mxu0 }
 0x631   : > { %v3202_v52 = vadd.f32 %v4455_v63, %v5107_v54  ;;  %v3698_v54 = vrot.slane %v4053_v26, %v4937_v34 }
 0x632   : > { %v3192_v57 = vpop.f32.mrf.mxu0 }
 0x633   : > { %v3201_v8 = vadd.f32 %v3192_v57, %v5111_v5  ;;  %v3700_v41 = vmul.f32 %v4497_v14, %v3698_v54  ;;  %v3699_v34 = vmul.f32 %v3698_v54, %v3686_v20 }
 0x634   : > { %v4476_v6 = vpop.f32.mrf.mxu0 }
 0x635   : > { %v3451_v40 = vmul.f32 %v4476_v6, %v3449_v55 }
 0x636   : > { %v3437_v47 = vpop.f32.mrf.mxu0 }
 0x637   : > { %v3453_v62 = vadd.f32 %v3451_v40, %v3370_v11  ;;  %v3450_v3 = vmul.f32 %v3449_v55, %v3437_v47 }
 0x638   : > { %v4490_v13 = vpop.f32.mrf.mxu0 }
 0x639   : > { %v3536_v17 = vadd.f32 %v3534_v61, %v3453_v62  ;;  %v3452_v18 = vadd.f32 %v3450_v3, %v3369_v16  ;;  %v3617_v39 = vmul.f32 %v4490_v13, %v3615_v12 }
 0x63a   : > { %v3603_v5 = vpop.f32.mrf.mxu0 }
 0x63b   : > { %v3535_v1 = vadd.f32 %v3533_v19, %v3452_v18  ;;  %v3619_v23 = vadd.f32 %v3617_v39, %v3536_v17  ;;  %v3616_v15 = vmul.f32 %v3615_v12, %v3603_v5 }
 0x63c   : > { %v4504_v25 = vpop.f32.mrf.mxu0 }
 0x63d   : > { %v3618_v29 = vadd.f32 %v3616_v15, %v3535_v1  ;;  %v3702_v33 = vadd.f32 %v3700_v41, %v3619_v23  ;;  %v3783_v37 = vmul.f32 %v4504_v25, %v3781_v21 }
 0x63e   : > { %v3769_v38 = vpop.f32.mrf.mxu0 }
 0x63f   : > { %v3701_v10 = vadd.f32 %v3699_v34, %v3618_v29  ;;  %v3782_v4 = vmul.f32 %v3781_v21, %v3769_v38  ;;  %v3785_v2 = vadd.f32 %v3783_v37, %v3702_v33 }
 0x641   : > { %v3784_v42 = vadd.f32 %v3782_v4, %v3701_v10 }
 0x643   : > { %4513 = vmatprep.mubr.msk.f32.mxu1 %vm449_vm1, %v3784_v42 }
 0x644   : > { %4514 = vmatmul.mubr.msk.f32.vlgmr.msra.gmra.mxu1 %vm449_vm1, %v3785_v2 }
 0x704   : > { %v4515_v53 = vpop.f32.mrf.mxu1 }
 0x705   : > { %v3873_v50 = vadd.f32 %v4515_v53, %v3202_v52 }
 0x706   : > { %v3863_v9 = vpop.f32.mrf.mxu1 }
 0x707   : > { %v3875_v24 = vmax.f32 %v3873_v50, 0.0  ;;  %v3872_v27 = vadd.f32 %v3863_v9, %v3201_v8 }
 0x709   : > { %3877 = vst.msk [vmem:[%s433_s14 + $0x8] sm:$0xff] %vm449_vm1, %v3875_v24  ;;  %v3874_v44 = vmax.f32 %v3872_v27, 0.0 }
 0x70b   : > { %3876 = vst.msk [vmem:[%s433_s14] sm:$0xff] %vm449_vm1, %v3874_v44 }
 0x70c PF: > { %s23_s19 = sadd.s32 1, %s4547_s19  }
 0x70d   : > { %p20_p4 = scmp.ge.s32.totalorder %s23_s19, 4  }
 0x70f   :  { %22 = sbr.rel (!%p20_p4) target bundleno = 3 (0x3), region = 109 }

</bundles_post_ra>
